<compile_context>
chip_gen: v7x
topology: tpu7x:2x2x1
jax: 0.10.0
libtpu: 0.0.40
codegen_flags: <defaults>
</compile_context>

<pallas_src>
import jax
import jax.numpy as jnp
from jax.experimental import pallas as pl
from jax.experimental.pallas import tpu as pltpu

_MATMUL_DTYPE = jnp.bfloat16        # MXU operand dtype; jnp.float32 for exact f32
_BN_EPS = 1e-5
_TARGET_TILE_PIXELS = 2048          # ~rows*W per grid step (512-2048 per review)
_VMEM_LIMIT_BYTES = 64 * 1024 * 1024


# ---------------------------------------------------------------------------
# Pallas kernels
# ---------------------------------------------------------------------------

def _conv_body(tile, w_ref, th, w_img):
    """tile: (TH+2, W+2, C) f32 window -> (TH*W, Cout) f32 via one matmul.

    Builds the 9 reflect-padded 3x3 taps from static shifted slices and folds
    them into the K dimension (K = 9*C) of a single MXU matmul.
    """
    c = tile.shape[-1]
    tile = tile.astype(w_ref.dtype)                      # bf16 matmul operand
    taps = [tile[dy:dy + th, dx:dx + w_img, :]
            for dy in range(3) for dx in range(3)]
    patch = jnp.concatenate(taps, axis=-1).reshape(th * w_img, 9 * c)
    return jnp.dot(patch, w_ref[...], preferred_element_type=jnp.float32)


def _make_conv_kernel(th, w_img, fuse_bn_relu):
    """3x3 conv kernel; optionally applies relu(x*scale + shift) first."""
    if fuse_bn_relu:
        def kernel(x_ref, w_ref, scale_ref, shift_ref, o_ref):
            r = pl.program_id(1)
            row0 = pl.multiple_of(r * th, th)
            tile = x_ref[0, pl.ds(row0, th + 2), :, :]   # (TH+2, W+2, C) f32
            tile = jnp.maximum(tile * scale_ref[...] + shift_ref[...], 0.0)
            o_ref[0] = _conv_body(tile, w_ref, th, w_img).astype(o_ref.dtype)
        return kernel

    def kernel(x_ref, w_ref, o_ref):
        r = pl.program_id(1)
        row0 = pl.multiple_of(r * th, th)
        tile = x_ref[0, pl.ds(row0, th + 2), :, :]
        o_ref[0] = _conv_body(tile, w_ref, th, w_img).astype(o_ref.dtype)
    return kernel


def _make_bilin_conv_kernel(th, w_img, cm):
    """conv24(cat([x11, x12*x13], C)) with the product computed in-kernel.

    x_ref holds the padded merged activation [x11 | x12 | x13] (3*Cm channels);
    per-tap patch columns are ordered [x11-channels, product-channels] to match
    the (18*Cm, Cout) weight matrix built from PyTorch's cat ordering.
    """
    def kernel(x_ref, w_ref, o_ref):
        r = pl.program_id(1)
        row0 = pl.multiple_of(r * th, th)
        tile = x_ref[0, pl.ds(row0, th + 2), :, :]       # (TH+2, W+2, 3*Cm) f32
        a = tile[:, :, 0:cm]
        p = tile[:, :, cm:2 * cm] * tile[:, :, 2 * cm:3 * cm]   # f32 product
        a = a.astype(w_ref.dtype)
        p = p.astype(w_ref.dtype)
        chunks = []
        for dy in range(3):
            for dx in range(3):
                chunks.append(a[dy:dy + th, dx:dx + w_img, :])
                chunks.append(p[dy:dy + th, dx:dx + w_img, :])
        patch = jnp.concatenate(chunks, axis=-1).reshape(th * w_img, 18 * cm)
        o_ref[0] = jnp.dot(patch, w_ref[...],
                           preferred_element_type=jnp.float32).astype(o_ref.dtype)
    return kernel


# ---------------------------------------------------------------------------
# Wrappers (JAX glue: padding, weight reshapes, BN statistics)
# ---------------------------------------------------------------------------

def _choose_row_tile(h, w, target_pixels=_TARGET_TILE_PIXELS):
    """Largest row tile TH dividing H with TH*W a lane-friendly block size."""
    cands = [th for th in range(1, h + 1)
             if h % th == 0
             and (th == h or (th * w) % 128 == 0)
             and th * w <= target_pixels]
    return max(cands) if cands else h


def _to_matrix_weight(w_pt, dtype):
    """PyTorch conv weight (Cout, Cin, 3, 3) -> (9*Cin, Cout), tap-major rows."""
    cout, cin = w_pt.shape[0], w_pt.shape[1]
    return jnp.transpose(w_pt, (2, 3, 1, 0)).reshape(9 * cin, cout).astype(dtype)


def _reflect_pad(x_nhwc):
    return jnp.pad(x_nhwc, ((0, 0), (1, 1), (1, 1), (0, 0)), mode="reflect")


def conv3x3_reflect(x, w_mat, scale=None, shift=None):
    """3x3 reflect-padded conv (bias=False) over NHWC x.

    w_mat: (9*Cin, Cout).  If scale/shift (shape (1, Cin)) are given, applies
    relu(x*scale + shift) in-kernel before the conv (fused BN1 + ReLU).
    """
    n, h, w, cin = x.shape
    cout = w_mat.shape[1]
    th = _choose_row_tile(h, w)
    r_tiles = h // th
    xp = _reflect_pad(x)                                  # (N, H+2, W+2, Cin)
    # TODO(synk): for very large H*W*C the resident full padded image per batch
    # element exceeds VMEM; switch to halo-tiled manual DMA (emit_pipeline).
    fuse = scale is not None

    in_specs = [
        pl.BlockSpec((1, h + 2, w + 2, cin), lambda ni, ri: (ni, 0, 0, 0)),
        pl.BlockSpec((9 * cin, cout), lambda ni, ri: (0, 0)),
    ]
    args = [xp, w_mat]
    if fuse:
        in_specs += [pl.BlockSpec((1, cin), lambda ni, ri: (0, 0)),
                     pl.BlockSpec((1, cin), lambda ni, ri: (0, 0))]
        args += [scale, shift]

    out = pl.pallas_call(
        _make_conv_kernel(th, w, fuse),
        out_shape=jax.ShapeDtypeStruct((n, h * w, cout), jnp.float32),
        grid=(n, r_tiles),
        in_specs=in_specs,
        out_specs=pl.BlockSpec((1, th * w, cout), lambda ni, ri: (ni, ri, 0)),
        compiler_params=pltpu.CompilerParams(
            dimension_semantics=("parallel", "parallel"),
            vmem_limit_bytes=_VMEM_LIMIT_BYTES),
    )(*args)
    return out.reshape(n, h, w, cout)


def bilin_conv3x3_reflect(xcat, w24_mat, cm):
    """conv24(cat([x11, x12*x13], C)).  xcat: (N,H,W,3*Cm) = [x11|x12|x13]."""
    n, h, w, _ = xcat.shape
    cout = w24_mat.shape[1]
    th = _choose_row_tile(h, w)
    r_tiles = h // th
    xp = _reflect_pad(xcat)                               # (N, H+2, W+2, 3*Cm)
    out = pl.pallas_call(
        _make_bilin_conv_kernel(th, w, cm),
        out_shape=jax.ShapeDtypeStruct((n, h * w, cout), jnp.float32),
        grid=(n, r_tiles),
        in_specs=[
            pl.BlockSpec((1, h + 2, w + 2, 3 * cm), lambda ni, ri: (ni, 0, 0, 0)),
            pl.BlockSpec((18 * cm, cout), lambda ni, ri: (0, 0)),
        ],
        out_specs=pl.BlockSpec((1, th * w, cout), lambda ni, ri: (ni, ri, 0)),
        compiler_params=pltpu.CompilerParams(
            dimension_semantics=("parallel", "parallel"),
            vmem_limit_bytes=_VMEM_LIMIT_BYTES),
    )(xp, w24_mat)
    return out.reshape(n, h, w, cout)


def _bn_scale_shift(x_nhwc, eps=_BN_EPS):
    """Training-mode BatchNorm2d (gamma=1, beta=0) as per-channel scale/shift."""
    mean = jnp.mean(x_nhwc, axis=(0, 1, 2))
    var = jnp.mean(jnp.square(x_nhwc - mean), axis=(0, 1, 2))    # biased var
    scale = jax.lax.rsqrt(var + eps)
    shift = -mean * scale
    return scale.reshape(1, -1), shift.reshape(1, -1)


# ---------------------------------------------------------------------------
# Full module forward
# ---------------------------------------------------------------------------

def double_conv_bilin(x_nchw, params):
    """Forward of DoubleConvBILIN.  x_nchw: (N, Cin, H, W) f32 -> (N, Cout, H, W)."""
    cdt = _MATMUL_DTYPE
    cm = params["conv21"].shape[0]
    w1 = _to_matrix_weight(params["conv1"], cdt)                   # (9*Cin, Cm)
    # conv21/22/23 merged along Cout: x1's taps are read once, not 3x.
    w2 = jnp.concatenate([_to_matrix_weight(params["conv21"], cdt),
                          _to_matrix_weight(params["conv22"], cdt),
                          _to_matrix_weight(params["conv23"], cdt)], axis=1)
    w24 = _to_matrix_weight(params["conv24"], cdt)                 # (18*Cm, Cout)

    x = jnp.transpose(x_nchw, (0, 2, 3, 1))                        # NCHW -> NHWC
    x1_raw = conv3x3_reflect(x, w1)                                # conv1 (pre-BN)
    scale1, shift1 = _bn_scale_shift(x1_raw)                       # bn1 stats (glue)
    # bn1 + relu fused into the merged conv21/22/23 kernel (exact: pointwise op
    # commutes with reflect padding).  Output channels = [x11 | x12 | x13].
    xcat = conv3x3_reflect(x1_raw, w2, scale=scale1, shift=shift1)
    y = bilin_conv3x3_reflect(xcat, w24, cm)                       # conv24 + product
    # bn2 (training-mode batch statistics, gamma=1, beta=0)
    mean = jnp.mean(y, axis=(0, 1, 2))
    var = jnp.mean(jnp.square(y - mean), axis=(0, 1, 2))
    y = (y - mean) * jax.lax.rsqrt(var + _BN_EPS)
    return jnp.transpose(y, (0, 3, 1, 2))                          # NHWC -> NCHW


# ---------------------------------------------------------------------------
# Pure-JAX (XLA) reference for a correctness sanity check
# ---------------------------------------------------------------------------

def _conv_ref(x_nchw, w):
    xp = jnp.pad(x_nchw, ((0, 0), (0, 0), (1, 1), (1, 1)), mode="reflect")
    return jax.lax.conv_general_dilated(
        xp, w, window_strides=(1, 1), padding="VALID",
        dimension_numbers=("NCHW", "OIHW", "NCHW"),
        precision=jax.lax.Precision.HIGHEST)


def _bn_ref(x_nchw, eps=_BN_EPS):
    mean = jnp.mean(x_nchw, axis=(0, 2, 3), keepdims=True)
    var = jnp.mean(jnp.square(x_nchw - mean), axis=(0, 2, 3), keepdims=True)
    return (x_nchw - mean) * jax.lax.rsqrt(var + eps)


def double_conv_bilin_ref(x, params):
    x1 = jax.nn.relu(_bn_ref(_conv_ref(x, params["conv1"])))
    x11 = _conv_ref(x1, params["conv21"])
    x12 = _conv_ref(x1, params["conv22"])
    x13 = _conv_ref(x1, params["conv23"])
    y = _conv_ref(jnp.concatenate([x11, x12 * x13], axis=1), params["conv24"])
    return _bn_ref(y)


# ---------------------------------------------------------------------------
# Demo
# ---------------------------------------------------------------------------

if __name__ == "__main__":
    N, Cin, H, W = 2, 4, 16, 16
    Cout = 8
    Cm = Cout  # mid_channels defaults to out_channels

    key = jax.random.PRNGKey(0)
    ks = jax.random.split(key, 6)
    x = jax.random.normal(ks[0], (N, Cin, H, W), jnp.float32)

    # Deterministic synthetic weights in PyTorch Conv2d layout (Cout, Cin, 3, 3)
    params = {
        "conv1":  0.2 * jax.random.normal(ks[1], (Cm, Cin, 3, 3), jnp.float32),
        "conv21": 0.2 * jax.random.normal(ks[2], (Cm, Cm, 3, 3), jnp.float32),
        "conv22": 0.2 * jax.random.normal(ks[3], (Cm, Cm, 3, 3), jnp.float32),
        "conv23": 0.2 * jax.random.normal(ks[4], (Cm, Cm, 3, 3), jnp.float32),
        "conv24": 0.2 * jax.random.normal(ks[5], (Cout, 2 * Cm, 3, 3), jnp.float32),
    }

    y = jax.jit(double_conv_bilin)(x, params)
    jax.block_until_ready(y)
    assert y.shape == (N, Cout, H, W), y.shape
    assert y.dtype == jnp.float32

    y_ref = jax.jit(double_conv_bilin_ref)(x, params)
    jax.block_until_ready(y_ref)
    err = float(jnp.max(jnp.abs(y - y_ref)))
    assert err < 0.25, f"max |pallas - ref| = {err}"   # bf16-operand tolerance
    print("KERNEL_OK")
</pallas_src>

<mosaic_0001>
module attributes {stable_mosaic.version = 11 : i64} {
  func.func @kernel(%arg0: i32, %arg1: i32, %arg2: memref<1x18x18x4xf32, #tpu.memory_space<vmem>>, %arg3: memref<36x8xbf16, #tpu.memory_space<vmem>>, %arg4: memref<1x256x8xf32, #tpu.memory_space<vmem>>) attributes {dimension_semantics = [#tpu.dimension_semantics<parallel>, #tpu.dimension_semantics<parallel>], iteration_bounds = array<i64: 2, 1>, scalar_prefetch = 0 : i64, scratch_operands = 0 : i64, tpu.core_type = #tpu.core_type<tc>, window_params = [{transform_indices = @transform_0, window_bounds = array<i64: 1, 18, 18, 4>}, {pipeline_mode = #tpu.pipeline_mode<synchronous>, transform_indices = @transform_1, window_bounds = array<i64: 36, 8>}, {transform_indices = @transform_2, window_bounds = array<i64: 1, 256, 8>}]} {
    %c16_i32 = arith.constant 16 : i32
    %0 = arith.muli %arg1, %c16_i32 : i32
    %1 = tpu.assume_multiple %0, 16 : i32
    %c0 = arith.constant 0 : index
    %2 = arith.index_cast %1 : i32 to index
    %c0_0 = arith.constant 0 : index
    %c0_1 = arith.constant 0 : index
    %3 = vector.load %arg2[%c0, %2, %c0_0, %c0_1] : memref<1x18x18x4xf32, #tpu.memory_space<vmem>>, vector<1x18x18x4xf32>
    %4 = vector.shape_cast %3 : vector<1x18x18x4xf32> to vector<18x18x4xf32>
    %5 = arith.truncf %4 : vector<18x18x4xf32> to vector<18x18x4xbf16>
    %6 = vector.extract_strided_slice %5 {offsets = [0, 0, 0], sizes = [16, 16, 4], strides = [1, 1, 1]} : vector<18x18x4xbf16> to vector<16x16x4xbf16>
    %7 = vector.extract_strided_slice %5 {offsets = [0, 1, 0], sizes = [16, 16, 4], strides = [1, 1, 1]} : vector<18x18x4xbf16> to vector<16x16x4xbf16>
    %8 = vector.extract_strided_slice %5 {offsets = [0, 2, 0], sizes = [16, 16, 4], strides = [1, 1, 1]} : vector<18x18x4xbf16> to vector<16x16x4xbf16>
    %9 = vector.extract_strided_slice %5 {offsets = [1, 0, 0], sizes = [16, 16, 4], strides = [1, 1, 1]} : vector<18x18x4xbf16> to vector<16x16x4xbf16>
    %10 = vector.extract_strided_slice %5 {offsets = [1, 1, 0], sizes = [16, 16, 4], strides = [1, 1, 1]} : vector<18x18x4xbf16> to vector<16x16x4xbf16>
    %11 = vector.extract_strided_slice %5 {offsets = [1, 2, 0], sizes = [16, 16, 4], strides = [1, 1, 1]} : vector<18x18x4xbf16> to vector<16x16x4xbf16>
    %12 = vector.extract_strided_slice %5 {offsets = [2, 0, 0], sizes = [16, 16, 4], strides = [1, 1, 1]} : vector<18x18x4xbf16> to vector<16x16x4xbf16>
    %13 = vector.extract_strided_slice %5 {offsets = [2, 1, 0], sizes = [16, 16, 4], strides = [1, 1, 1]} : vector<18x18x4xbf16> to vector<16x16x4xbf16>
    %14 = vector.extract_strided_slice %5 {offsets = [2, 2, 0], sizes = [16, 16, 4], strides = [1, 1, 1]} : vector<18x18x4xbf16> to vector<16x16x4xbf16>
    %15 = tpu.concatenate %6, %7, %8, %9, %10, %11, %12, %13, %14 in 2 : vector<16x16x4xbf16>, vector<16x16x4xbf16>, vector<16x16x4xbf16>, vector<16x16x4xbf16>, vector<16x16x4xbf16>, vector<16x16x4xbf16>, vector<16x16x4xbf16>, vector<16x16x4xbf16>, vector<16x16x4xbf16> -> vector<16x16x36xbf16>
    %16 = vector.shape_cast %15 : vector<16x16x36xbf16> to vector<256x36xbf16>
    %c0_2 = arith.constant 0 : index
    %c0_3 = arith.constant 0 : index
    %17 = vector.load %arg3[%c0_2, %c0_3] : memref<36x8xbf16, #tpu.memory_space<vmem>>, vector<36x8xbf16>
    %cst = arith.constant dense<0.000000e+00> : vector<256x8xf32>
    %18 = tpu.matmul %16, %17, %cst {dimension_numbers = #tpu.dot_dimension_numbers<[1], [0], [0], [1], [0, 0, 1, 1], [], []>} : vector<256x36xbf16>, vector<36x8xbf16>, vector<256x8xf32> -> vector<256x8xf32>
    %c0_4 = arith.constant 0 : index
    %c0_5 = arith.constant 0 : index
    %c0_6 = arith.constant 0 : index
    %19 = vector.load %arg4[%c0_4, %c0_5, %c0_6] : memref<1x256x8xf32, #tpu.memory_space<vmem>>, vector<1x256x8xf32>
    %20 = vector.shape_cast %19 : vector<1x256x8xf32> to vector<256x8xf32>
    %21 = vector.shape_cast %18 : vector<256x8xf32> to vector<1x256x8xf32>
    tpu.vector_store %arg4[%c0_4, %c0_5, %c0_6], %21 {strides = array<i32>} : memref<1x256x8xf32, #tpu.memory_space<vmem>>, vector<1x256x8xf32>,
    return
  }
  func.func @transform_0(%arg0: i32, %arg1: i32) -> (i32, i32, i32, i32) {
    %c0_i32 = arith.constant 0 : i32
    %c0_i32_0 = arith.constant 0 : i32
    %c0_i32_1 = arith.constant 0 : i32
    %c0_i32_2 = arith.constant 0 : i32
    return %arg0, %c0_i32, %c0_i32_0, %c0_i32_1 : i32, i32, i32, i32
  }
  func.func @transform_1(%arg0: i32, %arg1: i32) -> (i32, i32) {
    %c0_i32 = arith.constant 0 : i32
    %c0_i32_0 = arith.constant 0 : i32
    %c0_i32_1 = arith.constant 0 : i32
    return %c0_i32, %c0_i32_0 : i32, i32
  }
  func.func @transform_2(%arg0: i32, %arg1: i32) -> (i32, i32, i32) {
    %c0_i32 = arith.constant 0 : i32
    %c0_i32_0 = arith.constant 0 : i32
    return %arg0, %arg1, %c0_i32 : i32, i32, i32
  }
}

module attributes {stable_mosaic.version = 11 : i64} {
  func.func @kernel(%arg0: i32, %arg1: i32, %arg2: memref<1x18x18x8xf32, #tpu.memory_space<vmem>>, %arg3: memref<72x24xbf16, #tpu.memory_space<vmem>>, %arg4: memref<1x8xf32, #tpu.memory_space<vmem>>, %arg5: memref<1x8xf32, #tpu.memory_space<vmem>>, %arg6: memref<1x256x24xf32, #tpu.memory_space<vmem>>) attributes {dimension_semantics = [#tpu.dimension_semantics<parallel>, #tpu.dimension_semantics<parallel>], iteration_bounds = array<i64: 2, 1>, scalar_prefetch = 0 : i64, scratch_operands = 0 : i64, tpu.core_type = #tpu.core_type<tc>, window_params = [{transform_indices = @transform_0, window_bounds = array<i64: 1, 18, 18, 8>}, {pipeline_mode = #tpu.pipeline_mode<synchronous>, transform_indices = @transform_1, window_bounds = array<i64: 72, 24>}, {pipeline_mode = #tpu.pipeline_mode<synchronous>, transform_indices = @transform_2, window_bounds = array<i64: 1, 8>}, {pipeline_mode = #tpu.pipeline_mode<synchronous>, transform_indices = @transform_3, window_bounds = array<i64: 1, 8>}, {transform_indices = @transform_4, window_bounds = array<i64: 1, 256, 24>}]} {
    %c16_i32 = arith.constant 16 : i32
    %0 = arith.muli %arg1, %c16_i32 : i32
    %1 = tpu.assume_multiple %0, 16 : i32
    %c0 = arith.constant 0 : index
    %2 = arith.index_cast %1 : i32 to index
    %c0_0 = arith.constant 0 : index
    %c0_1 = arith.constant 0 : index
    %3 = vector.load %arg2[%c0, %2, %c0_0, %c0_1] : memref<1x18x18x8xf32, #tpu.memory_space<vmem>>, vector<1x18x18x8xf32>
    %4 = vector.shape_cast %3 : vector<1x18x18x8xf32> to vector<18x18x8xf32>
    %c0_2 = arith.constant 0 : index
    %c0_3 = arith.constant 0 : index
    %5 = vector.load %arg4[%c0_2, %c0_3] : memref<1x8xf32, #tpu.memory_space<vmem>>, vector<1x8xf32>
    %6 = vector.shape_cast %5 : vector<1x8xf32> to vector<1x1x8xf32>
    %7 = vector.broadcast %6 : vector<1x1x8xf32> to vector<18x18x8xf32>
    %8 = arith.mulf %4, %7 : vector<18x18x8xf32>
    %c0_4 = arith.constant 0 : index
    %c0_5 = arith.constant 0 : index
    %9 = vector.load %arg5[%c0_4, %c0_5] : memref<1x8xf32, #tpu.memory_space<vmem>>, vector<1x8xf32>
    %10 = vector.shape_cast %9 : vector<1x8xf32> to vector<1x1x8xf32>
    %11 = vector.broadcast %10 : vector<1x1x8xf32> to vector<18x18x8xf32>
    %12 = arith.addf %8, %11 : vector<18x18x8xf32>
    %cst = arith.constant 0.000000e+00 : f32
    %13 = vector.broadcast %cst : f32 to vector<18x18x8xf32>
    %14 = arith.maximumf %12, %13 : vector<18x18x8xf32>
    %15 = arith.truncf %14 : vector<18x18x8xf32> to vector<18x18x8xbf16>
    %16 = vector.extract_strided_slice %15 {offsets = [0, 0, 0], sizes = [16, 16, 8], strides = [1, 1, 1]} : vector<18x18x8xbf16> to vector<16x16x8xbf16>
    %17 = vector.extract_strided_slice %15 {offsets = [0, 1, 0], sizes = [16, 16, 8], strides = [1, 1, 1]} : vector<18x18x8xbf16> to vector<16x16x8xbf16>
    %18 = vector.extract_strided_slice %15 {offsets = [0, 2, 0], sizes = [16, 16, 8], strides = [1, 1, 1]} : vector<18x18x8xbf16> to vector<16x16x8xbf16>
    %19 = vector.extract_strided_slice %15 {offsets = [1, 0, 0], sizes = [16, 16, 8], strides = [1, 1, 1]} : vector<18x18x8xbf16> to vector<16x16x8xbf16>
    %20 = vector.extract_strided_slice %15 {offsets = [1, 1, 0], sizes = [16, 16, 8], strides = [1, 1, 1]} : vector<18x18x8xbf16> to vector<16x16x8xbf16>
    %21 = vector.extract_strided_slice %15 {offsets = [1, 2, 0], sizes = [16, 16, 8], strides = [1, 1, 1]} : vector<18x18x8xbf16> to vector<16x16x8xbf16>
    %22 = vector.extract_strided_slice %15 {offsets = [2, 0, 0], sizes = [16, 16, 8], strides = [1, 1, 1]} : vector<18x18x8xbf16> to vector<16x16x8xbf16>
    %23 = vector.extract_strided_slice %15 {offsets = [2, 1, 0], sizes = [16, 16, 8], strides = [1, 1, 1]} : vector<18x18x8xbf16> to vector<16x16x8xbf16>
    %24 = vector.extract_strided_slice %15 {offsets = [2, 2, 0], sizes = [16, 16, 8], strides = [1, 1, 1]} : vector<18x18x8xbf16> to vector<16x16x8xbf16>
    %25 = tpu.concatenate %16, %17, %18, %19, %20, %21, %22, %23, %24 in 2 : vector<16x16x8xbf16>, vector<16x16x8xbf16>, vector<16x16x8xbf16>, vector<16x16x8xbf16>, vector<16x16x8xbf16>, vector<16x16x8xbf16>, vector<16x16x8xbf16>, vector<16x16x8xbf16>, vector<16x16x8xbf16> -> vector<16x16x72xbf16>
    %26 = vector.shape_cast %25 : vector<16x16x72xbf16> to vector<256x72xbf16>
    %c0_6 = arith.constant 0 : index
    %c0_7 = arith.constant 0 : index
    %27 = vector.load %arg3[%c0_6, %c0_7] : memref<72x24xbf16, #tpu.memory_space<vmem>>, vector<72x24xbf16>
    %cst_8 = arith.constant dense<0.000000e+00> : vector<256x24xf32>
    %28 = tpu.matmul %26, %27, %cst_8 {dimension_numbers = #tpu.dot_dimension_numbers<[1], [0], [0], [1], [0, 0, 1, 1], [], []>} : vector<256x72xbf16>, vector<72x24xbf16>, vector<256x24xf32> -> vector<256x24xf32>
    %c0_9 = arith.constant 0 : index
    %c0_10 = arith.constant 0 : index
    %c0_11 = arith.constant 0 : index
    %29 = vector.load %arg6[%c0_9, %c0_10, %c0_11] : memref<1x256x24xf32, #tpu.memory_space<vmem>>, vector<1x256x24xf32>
    %30 = vector.shape_cast %29 : vector<1x256x24xf32> to vector<256x24xf32>
    %31 = vector.shape_cast %28 : vector<256x24xf32> to vector<1x256x24xf32>
    tpu.vector_store %arg6[%c0_9, %c0_10, %c0_11], %31 {strides = array<i32>} : memref<1x256x24xf32, #tpu.memory_space<vmem>>, vector<1x256x24xf32>,
    return
  }
  func.func @transform_0(%arg0: i32, %arg1: i32) -> (i32, i32, i32, i32) {
    %c0_i32 = arith.constant 0 : i32
    %c0_i32_0 = arith.constant 0 : i32
    %c0_i32_1 = arith.constant 0 : i32
    %c0_i32_2 = arith.constant 0 : i32
    return %arg0, %c0_i32, %c0_i32_0, %c0_i32_1 : i32, i32, i32, i32
  }
  func.func @transform_1(%arg0: i32, %arg1: i32) -> (i32, i32) {
    %c0_i32 = arith.constant 0 : i32
    %c0_i32_0 = arith.constant 0 : i32
    %c0_i32_1 = arith.constant 0 : i32
    return %c0_i32, %c0_i32_0 : i32, i32
  }
  func.func @transform_2(%arg0: i32, %arg1: i32) -> (i32, i32) {
    %c0_i32 = arith.constant 0 : i32
    %c0_i32_0 = arith.constant 0 : i32
    %c0_i32_1 = arith.constant 0 : i32
    return %c0_i32, %c0_i32_0 : i32, i32
  }
  func.func @transform_3(%arg0: i32, %arg1: i32) -> (i32, i32) {
    %c0_i32 = arith.constant 0 : i32
    %c0_i32_0 = arith.constant 0 : i32
    %c0_i32_1 = arith.constant 0 : i32
    return %c0_i32, %c0_i32_0 : i32, i32
  }
  func.func @transform_4(%arg0: i32, %arg1: i32) -> (i32, i32, i32) {
    %c0_i32 = arith.constant 0 : i32
    %c0_i32_0 = arith.constant 0 : i32
    return %arg0, %arg1, %c0_i32 : i32, i32, i32
  }
}

module attributes {stable_mosaic.version = 11 : i64} {
  func.func @kernel(%arg0: i32, %arg1: i32, %arg2: memref<1x18x18x24xf32, #tpu.memory_space<vmem>>, %arg3: memref<144x8xbf16, #tpu.memory_space<vmem>>, %arg4: memref<1x256x8xf32, #tpu.memory_space<vmem>>) attributes {dimension_semantics = [#tpu.dimension_semantics<parallel>, #tpu.dimension_semantics<parallel>], iteration_bounds = array<i64: 2, 1>, scalar_prefetch = 0 : i64, scratch_operands = 0 : i64, tpu.core_type = #tpu.core_type<tc>, window_params = [{transform_indices = @transform_0, window_bounds = array<i64: 1, 18, 18, 24>}, {pipeline_mode = #tpu.pipeline_mode<synchronous>, transform_indices = @transform_1, window_bounds = array<i64: 144, 8>}, {transform_indices = @transform_2, window_bounds = array<i64: 1, 256, 8>}]} {
    %c16_i32 = arith.constant 16 : i32
    %0 = arith.muli %arg1, %c16_i32 : i32
    %1 = tpu.assume_multiple %0, 16 : i32
    %c0 = arith.constant 0 : index
    %2 = arith.index_cast %1 : i32 to index
    %c0_0 = arith.constant 0 : index
    %c0_1 = arith.constant 0 : index
    %3 = vector.load %arg2[%c0, %2, %c0_0, %c0_1] : memref<1x18x18x24xf32, #tpu.memory_space<vmem>>, vector<1x18x18x24xf32>
    %4 = vector.shape_cast %3 : vector<1x18x18x24xf32> to vector<18x18x24xf32>
    %5 = vector.extract_strided_slice %4 {offsets = [0, 0, 0], sizes = [18, 18, 8], strides = [1, 1, 1]} : vector<18x18x24xf32> to vector<18x18x8xf32>
    %6 = vector.extract_strided_slice %4 {offsets = [0, 0, 8], sizes = [18, 18, 8], strides = [1, 1, 1]} : vector<18x18x24xf32> to vector<18x18x8xf32>
    %7 = vector.extract_strided_slice %4 {offsets = [0, 0, 16], sizes = [18, 18, 8], strides = [1, 1, 1]} : vector<18x18x24xf32> to vector<18x18x8xf32>
    %8 = arith.mulf %6, %7 : vector<18x18x8xf32>
    %9 = arith.truncf %5 : vector<18x18x8xf32> to vector<18x18x8xbf16>
    %10 = arith.truncf %8 : vector<18x18x8xf32> to vector<18x18x8xbf16>
    %11 = vector.extract_strided_slice %9 {offsets = [0, 0, 0], sizes = [16, 16, 8], strides = [1, 1, 1]} : vector<18x18x8xbf16> to vector<16x16x8xbf16>
    %12 = vector.extract_strided_slice %10 {offsets = [0, 0, 0], sizes = [16, 16, 8], strides = [1, 1, 1]} : vector<18x18x8xbf16> to vector<16x16x8xbf16>
    %13 = vector.extract_strided_slice %9 {offsets = [0, 1, 0], sizes = [16, 16, 8], strides = [1, 1, 1]} : vector<18x18x8xbf16> to vector<16x16x8xbf16>
    %14 = vector.extract_strided_slice %10 {offsets = [0, 1, 0], sizes = [16, 16, 8], strides = [1, 1, 1]} : vector<18x18x8xbf16> to vector<16x16x8xbf16>
    %15 = vector.extract_strided_slice %9 {offsets = [0, 2, 0], sizes = [16, 16, 8], strides = [1, 1, 1]} : vector<18x18x8xbf16> to vector<16x16x8xbf16>
    %16 = vector.extract_strided_slice %10 {offsets = [0, 2, 0], sizes = [16, 16, 8], strides = [1, 1, 1]} : vector<18x18x8xbf16> to vector<16x16x8xbf16>
    %17 = vector.extract_strided_slice %9 {offsets = [1, 0, 0], sizes = [16, 16, 8], strides = [1, 1, 1]} : vector<18x18x8xbf16> to vector<16x16x8xbf16>
    %18 = vector.extract_strided_slice %10 {offsets = [1, 0, 0], sizes = [16, 16, 8], strides = [1, 1, 1]} : vector<18x18x8xbf16> to vector<16x16x8xbf16>
    %19 = vector.extract_strided_slice %9 {offsets = [1, 1, 0], sizes = [16, 16, 8], strides = [1, 1, 1]} : vector<18x18x8xbf16> to vector<16x16x8xbf16>
    %20 = vector.extract_strided_slice %10 {offsets = [1, 1, 0], sizes = [16, 16, 8], strides = [1, 1, 1]} : vector<18x18x8xbf16> to vector<16x16x8xbf16>
    %21 = vector.extract_strided_slice %9 {offsets = [1, 2, 0], sizes = [16, 16, 8], strides = [1, 1, 1]} : vector<18x18x8xbf16> to vector<16x16x8xbf16>
    %22 = vector.extract_strided_slice %10 {offsets = [1, 2, 0], sizes = [16, 16, 8], strides = [1, 1, 1]} : vector<18x18x8xbf16> to vector<16x16x8xbf16>
    %23 = vector.extract_strided_slice %9 {offsets = [2, 0, 0], sizes = [16, 16, 8], strides = [1, 1, 1]} : vector<18x18x8xbf16> to vector<16x16x8xbf16>
    %24 = vector.extract_strided_slice %10 {offsets = [2, 0, 0], sizes = [16, 16, 8], strides = [1, 1, 1]} : vector<18x18x8xbf16> to vector<16x16x8xbf16>
    %25 = vector.extract_strided_slice %9 {offsets = [2, 1, 0], sizes = [16, 16, 8], strides = [1, 1, 1]} : vector<18x18x8xbf16> to vector<16x16x8xbf16>
    %26 = vector.extract_strided_slice %10 {offsets = [2, 1, 0], sizes = [16, 16, 8], strides = [1, 1, 1]} : vector<18x18x8xbf16> to vector<16x16x8xbf16>
    %27 = vector.extract_strided_slice %9 {offsets = [2, 2, 0], sizes = [16, 16, 8], strides = [1, 1, 1]} : vector<18x18x8xbf16> to vector<16x16x8xbf16>
    %28 = vector.extract_strided_slice %10 {offsets = [2, 2, 0], sizes = [16, 16, 8], strides = [1, 1, 1]} : vector<18x18x8xbf16> to vector<16x16x8xbf16>
    %29 = tpu.concatenate %11, %12, %13, %14, %15, %16, %17, %18, %19, %20, %21, %22, %23, %24, %25, %26 in 2 : vector<16x16x8xbf16>, vector<16x16x8xbf16>, vector<16x16x8xbf16>, vector<16x16x8xbf16>, vector<16x16x8xbf16>, vector<16x16x8xbf16>, vector<16x16x8xbf16>, vector<16x16x8xbf16>, vector<16x16x8xbf16>, vector<16x16x8xbf16>, vector<16x16x8xbf16>, vector<16x16x8xbf16>, vector<16x16x8xbf16>, vector<16x16x8xbf16>, vector<16x16x8xbf16>, vector<16x16x8xbf16> -> vector<16x16x128xbf16>
    %30 = tpu.concatenate %27, %28 in 2 : vector<16x16x8xbf16>, vector<16x16x8xbf16> -> vector<16x16x16xbf16>
    %31 = tpu.concatenate %29, %30 in 2 : vector<16x16x128xbf16>, vector<16x16x16xbf16> -> vector<16x16x144xbf16>
    %32 = vector.shape_cast %31 : vector<16x16x144xbf16> to vector<256x144xbf16>
    %c0_2 = arith.constant 0 : index
    %c0_3 = arith.constant 0 : index
    %33 = vector.load %arg3[%c0_2, %c0_3] : memref<144x8xbf16, #tpu.memory_space<vmem>>, vector<144x8xbf16>
    %cst = arith.constant dense<0.000000e+00> : vector<256x8xf32>
    %34 = tpu.matmul %32, %33, %cst {dimension_numbers = #tpu.dot_dimension_numbers<[1], [0], [0], [1], [0, 0, 1, 1], [], []>} : vector<256x144xbf16>, vector<144x8xbf16>, vector<256x8xf32> -> vector<256x8xf32>
    %c0_4 = arith.constant 0 : index
    %c0_5 = arith.constant 0 : index
    %c0_6 = arith.constant 0 : index
    %35 = vector.load %arg4[%c0_4, %c0_5, %c0_6] : memref<1x256x8xf32, #tpu.memory_space<vmem>>, vector<1x256x8xf32>
    %36 = vector.shape_cast %35 : vector<1x256x8xf32> to vector<256x8xf32>
    %37 = vector.shape_cast %34 : vector<256x8xf32> to vector<1x256x8xf32>
    tpu.vector_store %arg4[%c0_4, %c0_5, %c0_6], %37 {strides = array<i32>} : memref<1x256x8xf32, #tpu.memory_space<vmem>>, vector<1x256x8xf32>,
    return
  }
  func.func @transform_0(%arg0: i32, %arg1: i32) -> (i32, i32, i32, i32) {
    %c0_i32 = arith.constant 0 : i32
    %c0_i32_0 = arith.constant 0 : i32
    %c0_i32_1 = arith.constant 0 : i32
    %c0_i32_2 = arith.constant 0 : i32
    return %arg0, %c0_i32, %c0_i32_0, %c0_i32_1 : i32, i32, i32, i32
  }
  func.func @transform_1(%arg0: i32, %arg1: i32) -> (i32, i32) {
    %c0_i32 = arith.constant 0 : i32
    %c0_i32_0 = arith.constant 0 : i32
    %c0_i32_1 = arith.constant 0 : i32
    return %c0_i32, %c0_i32_0 : i32, i32
  }
  func.func @transform_2(%arg0: i32, %arg1: i32) -> (i32, i32, i32) {
    %c0_i32 = arith.constant 0 : i32
    %c0_i32_0 = arith.constant 0 : i32
    return %arg0, %arg1, %c0_i32 : i32, i32, i32
  }
}

</mosaic_0001>

<bundles_post_ra>
// kernel: double_conv_bilin.3
= control target key start
LH: loop header
LB: loop body
LE: loop exit
PB: predicated region body
PF: predicated region fallthrough
CT: control target
= control target key end

     0   :  { %7 = vsyncpa [#allocation3], 0  ;;  %s2841_s0 = inlined_call_operand.hbm [shape: f32[2,18,18,4], index: 0, kind: input, shape index: {}]   ;;  %s2842_s1 = inlined_call_operand.hbm [shape: bf16[36,8], index: 1, kind: input, shape index: {}]   ;;  %s2843_s2 = inlined_call_operand.hbm [shape: f32[2,256,8], index: 2, kind: output, shape index: {}]  }
   0x1   :  { %9 = vsyncpa [#allocation3 + $0x1], 0 }
   0x2   :  { %10 = vsyncpa [#allocation6], 0 }
   0x3   :  { %11 = vsyncpa [#allocation4], 0 }
   0x4   :  { %13 = vsyncpa [#allocation4 + $0x1], 0  ;;  %s1844_s9 = smov 0   ;;  %s1846_s10 = smov 0  }
   0x5   :  { %s1848_s11 = smov 0   ;;  %s1850_s12 = smov 0  }
   0x6   :  { %s1852_s13 = smov 0   ;;  %s1854_s14 = smov 0  }
   0x7 LB: > { %s1476_s15 = sadd.s32 4294967295, %s1811_s14   ;;  %s1477_s16 = sadd.s32 4294967294, %s1811_s14   ;;  %s1811_s14 = sphi %s1854_s14, %s19_s14   ;;  %s1807_s13 = sphi %s1852_s13, %s2866_s13   ;;  %s1803_s12 = sphi %s1850_s12, %s2865_s12   ;;  %s1799_s11 = sphi %s1848_s11, %s2864_s11   ;;  %s1795_s10 = sphi %s1846_s10, %s2863_s10   ;;  %s1791_s9 = sphi %s1844_s9, %s2862_s9  }
   0x8   : > { %p51_p0 = scmp.ne.s32.totalorder %s1795_s10, %s1791_s9  ;;  %p1878_p1 = scmp.eq.s32.totalorder %s1476_s15, 0 }
   0x9   : > { %p1882_p2 = scmp.eq.s32.totalorder %s1476_s15, 1  ;;  %p104_p3 = scmp.eq.s32.totalorder %s1477_s16, 1 }
   0xa   : > { %s2848_s17 = scalar_select %p1878_p1, 1, 0 }
   0xb   : > { %s2849_s18 = scalar_select %p1882_p2, 1, 0 }
   0xc   : > { %p1888_p4 = por %p1878_p1, %p51_p0  ;;  %p1478_p5 = scmp.ge.s32.totalorder %s1811_s14, 1 }
   0xd   : > { %p1893_p6 = por %p104_p3, %p51_p0  ;;  %p111_p7 = scmp.lt.s32.totalorder %s1811_s14, 3 }
   0xe   : > { %s2850_s19 = scalar_select %p1888_p4, 1, 0 }
   0xf   : > { %s2851_s20 = scalar_select %p1893_p6, 1, 0 }
  0x10   : > { %p1898_p8 = pnand %p1478_p5, %p111_p7  ;;  %s1813_s22 = smov [#allocation5]  }
  0x11   : > { %s123_s23 = sshll.u32 %s1813_s22, 4  ;;  %s31_s25 = sadd.s32 1, %s1807_s13  ;;  %s124_s23 = int_to_ptr.vmem [resolvable:$true] %s123_s23 }
  0x12   : > { %s2852_s21 = scalar_select %p1898_p8, 1, 0 }
  0x13   : > { %p1586_p9 = pneg %p1898_p8  ;;  %s1667_s28 = scalar_lea.hbm %s2842_s1, 320 }
  0x14   : > { %p1668_p12 = scmp.ne.s32.totalorder %s2842_s1, %s1667_s28  ;;  %p1674_p5 = scmp.lt.u32.totalorder %s1667_s28, %s2842_s1 }
  0x15   : > { %p1907_p11 = pnand %p1586_p9, %p1878_p1 }
  0x17   : > { %p1669_p13 = pneg %p1907_p11 }
  0x19   : > { %p1670_p0 = pnand %p1669_p13, %p1668_p12 }
  0x1b   : > { %p1671_p3 = pneg %p1670_p0 }
  0x1d   : > { %p1676_p7 = pnand %p1674_p5, %p1671_p3 }
  0x1f   : > { %1679 = shalt.err (!%p1676_p7)
}
  0x20   : > { %s1680_s5 = scalar_lea.vmem %s124_s23, 320  ;;  %p1688_p1 = scmp.lt.s32.totalorder %s124_s23, %s124_s23 }
  0x21   : > { %p1681_p9 = scmp.ne.s32.totalorder %s124_s23, %s1680_s5  ;;  %p1689_p4 = scmp.lt.s32.totalorder %s1680_s5, %s1680_s5 }
  0x23   : > { %p1683_p10 = pnand %p1681_p9, %p1669_p13  ;;  %p1690_p8 = por %p1689_p4, %p1688_p1 }
  0x25   : > { %p1684_p6 = pneg %p1683_p10 }
  0x27   : > { %p1691_p2 = pnand %p1690_p8, %p1684_p6 }
  0x29   : > { %1694 = shalt.err (!%p1691_p2)
}
  0x2a   : > { %s1814_s6 = smov 64   ;;  %s1815_s7 = smov 4  }
  0x2b   : > { %1589 = dma.hbm_to_vmem [thread:$0]  (!%p1907_p11), %s2842_s1, 320, %s124_s23, [#allocation6], %s1814_s6, %s1814_s6, %s1815_s7  }
  0x2c   : > { %p33_p1 = scmp.ge.s32.totalorder %s31_s25, 2  ;;  %s38_s16 = sadd.s32 1, %s1799_s11 }
  0x2d   : > { %p45_p2 = scmp.ne.s32.totalorder %s1799_s11, %s1795_s10  ;;  %p46_p4 = scmp.eq.s32.totalorder %s1811_s14, 0 }
  0x2e   : > { %s2868_s25 = smov (%p33_p1, %s31_s25), 0  ;;  %p2854_p8 = scmp.ne.s32.totalorder %s2849_s18, 0 }
  0x2f   : > { %p47_p6 = por %p46_p4, %p45_p2  ;;  %s35_s26 = ssub.s32 %s1807_s13, %s2868_s25 }
  0x30   : > { %p1936_p10 = por %p2854_p8, %p45_p2  ;;  %p1599_p12 = scmp.lt.s32.totalorder %s1811_s14, 2 }
  0x31   : > { %p36_p13 = scmp.eq.s32.totalorder %s35_s26, 0  ;;  %s137_s24 = sand.u32 1, %s1799_s11  }
  0x32   : > { %s1575_s27 = smul.u32 432, %s137_s24  ;;  %p1948_p11 = pnand %p1599_p12, %p47_p6 }
  0x33   : > { %s1945_s28 = scalar_select %p36_p13, %s1799_s11, %s38_s16  }
  0x34   : > { %s1576_s23 = smul.u32 6912, %s1807_s13  ;;  %s141_s29 = scalar_lea.vmem [#allocation2], %s1575_s27 }
  0x35   : > { %s148_s30 = sshll.u32 %s141_s29, 4  ;;  %s1959_s6 = scalar_lea.sflag [#allocation3], %s137_s24  ;;  %s1957_s30 = int_to_ptr.vmem [resolvable:$true] %s148_s30 }
  0x36   : > { %s1955_s5 = scalar_lea.hbm %s2841_s0, %s1576_s23  ;;  %p1697_p3 = pneg %p1948_p11 }
  0x37   : > { %s1695_s7 = scalar_lea.hbm %s1955_s5, 6912  ;;  %s1700_s16 = scalar_lea.hbm %s2841_s0, 13824 }
  0x38   : > { %p1696_p0 = scmp.ne.s32.totalorder %s1955_s5, %s1695_s7  ;;  %p1701_p9 = scmp.lt.u32.totalorder %s1955_s5, %s2841_s0 }
  0x39   : > { %p1702_p1 = scmp.lt.u32.totalorder %s1700_s16, %s1695_s7  ;;  %p1704_p4 = scmp.lt.u32.totalorder %s1695_s7, %s1955_s5 }
  0x3a   : > { %p1698_p5 = pnand %p1697_p3, %p1696_p0 }
  0x3b   : > { %p1703_p2 = por %p1702_p1, %p1701_p9 }
  0x3c   : > { %p1699_p7 = pneg %p1698_p5 }
  0x3d   : > { %p1705_p6 = por %p1704_p4, %p1703_p2 }
  0x3f   : > { %p1706_p8 = pnand %p1705_p6, %p1699_p7 }
  0x41   : > { %1709 = shalt.err (!%p1706_p8)
}
  0x42   : > { %s1710_s24 = scalar_lea.vmem %s1957_s30, 6912  ;;  %s1816_s23 = smov [#allocation2]  }
  0x43   : > { %p1711_p12 = scmp.ne.s32.totalorder %s1957_s30, %s1710_s24  ;;  %s1715_s29 = sshll.u32 %s1816_s23, 4  ;;  %s1716_s29 = int_to_ptr.vmem [resolvable:$false] %s1715_s29 }
  0x44   : > { %s1717_s4 = scalar_lea.vmem %s1716_s29, 13824  ;;  %p1718_p5 = scmp.lt.s32.totalorder %s1957_s30, %s1716_s29 }
  0x45   : > { %p1713_p13 = pnand %p1711_p12, %p1697_p3  ;;  %p1719_p9 = scmp.lt.s32.totalorder %s1717_s4, %s1710_s24 }
  0x47   : > { %p1714_p0 = pneg %p1713_p13  ;;  %p1720_p1 = por %p1719_p9, %p1718_p5 }
  0x49   : > { %p1721_p2 = pnand %p1720_p1, %p1714_p0 }
  0x4b   : > { %1724 = shalt.err (!%p1721_p2)
}
  0x4c   : > { %s1817_s18 = smov 128   ;;  %s1818_s7 = smov 8  }
  0x4d   : > { %1593 = dma.hbm_to_vmem [thread:$0]  (!%p1948_p11), %s1955_s5, 6912, %s1957_s30, %s1959_s6, %s1817_s18, %s1817_s18, %s1818_s7  }
  0x4e   : > { %p2857_p3 = scmp.ne.s32.totalorder %s2852_s21, 0 }
  0x4f   : > { %s1990_s8 = sand.u32 (!%p2857_p3), 1, %s1795_s10   ;;  %p2858_p7 = scmp.ne.s32.totalorder (!%p2857_p3), %s2850_s19, 0 }
  0x50   : > { %160 = sbr.rel (%p2857_p3) target bundleno = 694 (0x2b6), region = 28  ;;  %s163_s16 = scalar_lea.sflag (!%p2857_p3), [#allocation3], %s1990_s8 }
  0x51   : > { %s1577_s15 = smul.u32 (!%p2857_p3), 432, %s1990_s8 }
  0x53   : > { %s1994_s26 = scalar_lea.vmem (!%p2857_p3), [#allocation2], %s1577_s15 }
  0x57   : > { %1778 = dma.done.wait (%p2858_p7), %s163_s16, 6912  }
  0x58   : > { %1780 = vsyncadd (%p2858_p7), %s163_s16, 4294960384  ;;  %p2859_p11 = scmp.ne.s32.totalorder %s2848_s17, 0 }
  0x5a   : > { %1782 = dma.done.wait (%p2859_p11), [#allocation6], 320  }
  0x5b   : > { %1784 = vsyncadd (%p2859_p11), [#allocation6], 4294966976  ;;  %v223_v0 = vld [vmem:[%s1994_s26 + $0xd8] sm:$0xff]  ;;  %v224_v1 = vld [vmem:[%s1994_s26 + $0xe0] sm:$0xff]  ;;  %vm543_vm0 = vcmask 1046528   ;;  %s1819_s17 = smov 12  }
  0x5c   : > { %v199_v2 = vld [vmem:[%s1994_s26 + $0x18] sm:$0xff]  ;;  %v2007_v3 = vpack.c.bf16 %v224_v1, %v223_v0  ;;  %v200_v4 = vld [vmem:[%s1994_s26 + $0x20] sm:$0xff]  ;;  %v221_v6 = vld [vmem:[%s1994_s26 + $0xc8] sm:$0xff]  ;;  %vm286_vm1 = vsmask.f32 7424  ;;  %s1820_s19 = smov 8  }
  0x5d   : > { %v220_v5 = vld [vmem:[%s1994_s26 + $0xc0] sm:$0xff]  ;;  %v2012_v7 = vpack.c.bf16 %v200_v4, %v199_v2  ;;  %v222_v8 = vld [vmem:[%s1994_s26 + $0xd0] sm:$0x3]  ;;  %v197_v11 = vld [vmem:[%s1994_s26 + $0x8] sm:$0xff]  ;;  %s1821_s21 = smov 4   ;;  %s1822_s30 = smov 16  }
  0x5e   : > { %v2015_v9 = vpack.c.bf16 %v221_v6, %v220_v5  ;;  %v196_v10 = vld [vmem:[%s1994_s26] sm:$0xff]  ;;  %641 = vrot.lane.b32.xlu1 %v2007_v3, %s1819_s17  ;;  %v267_v12 = vpack.c.bf16 %v222_v8, %v222_v8  ;;  %v198_v13 = vld [vmem:[%s1994_s26 + $0x10] sm:$0x3]  ;;  %v225_v15 = vld [vmem:[%s1994_s26 + $0xe8] sm:$0x3]  ;;  %v571_v16 = vrot.slane %v2007_v3, 1 }
  0x5f   : > { %v2022_v14 = vpack.c.bf16 %v197_v11, %v196_v10  ;;  %v396_v17 = vshrl.u32 %v2007_v3, 16  ;;  %625 = vrot.lane.b32.xlu0 %v2012_v7, %s1819_s17  ;;  %v251_v19 = vpack.c.bf16 %v198_v13, %v198_v13  ;;  %v269_v20 = vpack.c.bf16 %v225_v15, %v225_v15  ;;  %v201_v21 = vld [vmem:[%s1994_s26 + $0x28] sm:$0x3]  ;;  %v226_v47 = vld [vmem:[%s1994_s26 + $0xf0] sm:$0xff]  ;;  %v227_v48 = vld [vmem:[%s1994_s26 + $0xf8] sm:$0xff]  ;;  %s1823_s3 = smov 20  }
  0x60   : > { %v568_v18 = vrot.slane %v2015_v9, 1  ;;  %v547_v22 = vrot.slane %v2012_v7, 1  ;;  %v569_v23 = vrot.slane %v267_v12, 1  ;;  %v253_v25 = vpack.c.bf16 %v201_v21, %v201_v21  ;;  %v202_v53 = vld [vmem:[%s1994_s26 + $0x30] sm:$0xff]  ;;  %v203_v54 = vld [vmem:[%s1994_s26 + $0x38] sm:$0xff]  ;;  %s1824_s5 = smov 24  }
  0x61   : > { %v544_v24 = vrot.slane %v2022_v14, 1  ;;  %v300_v26 = vshrl.u32 %v2012_v7, 16  ;;  %v545_v27 = vrot.slane %v251_v19, 1  ;;  %v572_v28 = vrot.slane %v269_v20, 1  ;;  %v228_v63 = vld [vmem:[%s1994_s26 + $0x100] sm:$0x3] }
  0x62   : > { %v302_v29 = vshll.u32 %v2012_v7, 16  ;;  %v288_v30 = vshrl.u32 %v2022_v14, 16  ;;  %v2037_v31 = vsel %vm543_vm0, %v568_v18, %v569_v23  ;;  %v548_v32 = vrot.slane %v253_v25, 1  ;;  %v204_v1 = vld [vmem:[%s1994_s26 + $0x40] sm:$0x3]  ;;  %s1825_s6 = smov 28  }
  0x63   : > { %v307_v33 = vshll.u32 %v253_v25, 16  ;;  %v290_v34 = vshll.u32 %v2022_v14, 16  ;;  %608 = vrot.lane.b32.xlu1 %v2037_v31, %s1820_s19  ;;  %v546_v35 = vsel %vm543_vm0, %v544_v24, %v545_v27  ;;  %v2044_v36 = vsel %vm543_vm0, %v571_v16, %v572_v28  ;;  %v229_v28 = vld [vmem:[%s1994_s26 + $0x108] sm:$0xff]  ;;  %s1826_s27 = smov 32   ;;  %s1484_s24 = sshll.u32 %s1990_s8, 8 }
  0x64   : > { %v304_v37 = vrot.slane %v302_v29, 1  ;;  %v295_v38 = vshll.u32 %v251_v19, 16  ;;  %592 = vrot.lane.b32.xlu0 %v546_v35, %s1820_s19  ;;  %v2048_v39 = vsel %vm543_vm0, %v547_v22, %v548_v32  ;;  %v398_v42 = vshll.u32 %v2007_v3, 16  ;;  %v230_v29 = vld [vmem:[%s1994_s26 + $0x110] sm:$0xff]  ;;  %s2718_s23 = scalar_lea.vmem [#allocation7], %s1484_s24  ;;  %s1509_s29 = sshll.u32 %s1803_s12, 12 }
  0x65   : > { %v309_v40 = vrot.slane %v307_v33, 1  ;;  %v292_v41 = vrot.slane %v290_v34, 1  ;;  %v403_v45 = vshll.u32 %v269_v20, 16  ;;  %v384_v46 = vshrl.u32 %v2015_v9, 16  ;;  %v206_v32 = vld [vmem:[%s1994_s26 + $0x50] sm:$0xff]  ;;  %s1380_s4 = sshll.u32 %s2718_s23, 4  ;;  %s2779_s12 = scalar_lea.hbm %s2843_s2, %s1509_s29  ;;  %s2785_s4 = int_to_ptr.vmem [resolvable:$true] %s1380_s4 }
  0x66   : > { %v305_v43 = vor.u32 %v304_v37, %v300_v26  ;;  %v297_v44 = vrot.slane %v295_v38, 1  ;;  %v400_v50 = vrot.slane %v398_v42, 1  ;;  %v386_v51 = vshll.u32 %v2015_v9, 16  ;;  %v231_v38 = vld [vmem:[%s1994_s26 + $0x118] sm:$0x3]  ;;  %s1365_s15 = scalar_lea.sflag [#allocation4], %s1990_s8 }
  0x67   : > { %v293_v49 = vor.u32 %v292_v41, %v288_v30  ;;  %v391_v52 = vshll.u32 %v267_v12, 16  ;;  %610 = vrot.lane.b32.xlu1 %v2044_v36, %s1820_s19  ;;  %v405_v57 = vrot.slane %v403_v45, 1  ;;  %v2062_v59 = vpack.c.bf16 %v227_v48, %v226_v47  ;;  %v205_v30 = vld [vmem:[%s1994_s26 + $0x48] sm:$0xff]  ;;  %s1725_s16 = scalar_lea.vmem %s2785_s4, 4096 }
  0x68   : > { %v310_v55 = vsel %vm286_vm1, %v305_v43, %v309_v40  ;;  %594 = vrot.lane.b32.xlu0 %v2048_v39, %s1820_s19  ;;  %v401_v56 = vor.u32 %v400_v50, %v396_v17  ;;  %v388_v58 = vrot.slane %v386_v51, 1  ;;  %v2065_v62 = vpack.c.bf16 %v203_v54, %v202_v53  ;;  %v207_v40 = vld [vmem:[%s1994_s26 + $0x58] sm:$0x3]  ;;  %p1726_p4 = scmp.ne.s32.totalorder %s2785_s4, %s1725_s16 }
  0x69   : > { %v298_v60 = vsel %vm286_vm1, %v293_v49, %v297_v44  ;;  %v393_v61 = vrot.slane %v391_v52, 1  ;;  %v271_v4 = vpack.c.bf16 %v228_v63, %v228_v63  ;;  %v410_v5 = vshll.u32 %v2062_v59, 16  ;;  %v1664_v44 = vld [vmem:[#allocation5] sm:$0xff]   ;;  %v1665_v51 = vld [vmem:[#allocation5 + $0x8] sm:$0xff]  }
  0x6a   : > { %v389_v0 = vor.u32 %v388_v58, %v384_v46  ;;  %v2072_v2 = vsel %vm286_vm1, %v401_v56, %v405_v57  ;;  %v255_v8 = vpack.c.bf16 %v204_v1, %v204_v1  ;;  %v314_v10 = vshll.u32 %v2065_v62, 16  ;;  %1529 = vmatprep.subr.bf16.mxu0 %v1664_v44  ;;  %1567 = vmatprep.subr.bf16.mxu1 %v1664_v44  ;;  %v1666_v56 = vld [vmem:[#allocation5 + $0x10] ss:$0 sps:$4 sm:$0x33]   ;;  %p1727_p6 = pnand %p1726_p4, %p1936_p10 }
  0x6b   : > { %481 = vrot.lane.b32.xlu1 %v310_v55, %s1821_s21  ;;  %v408_v11 = vshrl.u32 %v2062_v59, 16  ;;  %v412_v12 = vrot.slane %v410_v5, 1  ;;  %v415_v13 = vshll.u32 %v271_v4, 16  ;;  %v312_v15 = vshrl.u32 %v2065_v62, 16  ;;  %1530 = vmatpush3.bf16.msra.mxu0 %v1664_v44 }
  0x6c   : > { %479 = vrot.lane.b32.xlu0 %v298_v60, %s1821_s21  ;;  %v2076_v6 = vsel %vm286_vm1, %v389_v0, %v393_v61  ;;  %v316_v16 = vrot.slane %v314_v10, 1  ;;  %v319_v17 = vshll.u32 %v255_v8, 16  ;;  %v574_v24 = vrot.slane %v2062_v59, 1  ;;  %1570 = vmatpush3.bf16.msra.mxu1 %v1664_v44  ;;  %v233_v10 = vld [vmem:[%s1994_s26 + $0x128] sm:$0xff]  ;;  %v211_v44 = vld [vmem:[%s1994_s26 + $0x78] sm:$0xff]  ;;  %p1728_p8 = pneg %p1727_p6 }
  0x6d   : > { %v413_v18 = vor.u32 %v412_v12, %v408_v11  ;;  %v417_v19 = vrot.slane %v415_v13, 1  ;;  %v575_v25 = vrot.slane %v271_v4, 1  ;;  %v550_v26 = vrot.slane %v2065_v62, 1  ;;  %1531 = vmatprep.subr.bf16.mxu0 %v1665_v51  ;;  %1568 = vmatprep.subr.bf16.mxu1 %v1665_v51  ;;  %v208_v11 = vld [vmem:[%s1994_s26 + $0x60] sm:$0xff]  ;;  %v209_v12 = vld [vmem:[%s1994_s26 + $0x68] sm:$0xff] }
  0x6e   : > { %v317_v20 = vor.u32 %v316_v16, %v312_v15  ;;  %v321_v21 = vrot.slane %v319_v17, 1  ;;  %v551_v27 = vrot.slane %v255_v8, 1  ;;  %v2115_v34 = vpack.c.bf16 %v230_v29, %v229_v28  ;;  %v232_v8 = vld [vmem:[%s1994_s26 + $0x120] sm:$0xff]  ;;  %v234_v16 = vld [vmem:[%s1994_s26 + $0x130] sm:$0x3] }
  0x6f   : > { %497 = vrot.lane.b32.xlu1 %v2072_v2, %s1821_s21  ;;  %v2093_v22 = vsel %vm286_vm1, %v413_v18, %v417_v19  ;;  %v2113_v33 = vsel %vm543_vm0, %v574_v24, %v575_v25  ;;  %v2120_v37 = vpack.c.bf16 %v206_v32, %v205_v30  ;;  %v273_v41 = vpack.c.bf16 %v231_v38, %v231_v38  ;;  %v210_v17 = vld [vmem:[%s1994_s26 + $0x70] sm:$0x3] }
  0x70   : > { %495 = vrot.lane.b32.xlu0 %v2076_v6, %s1821_s21  ;;  %v2096_v23 = vsel %vm286_vm1, %v317_v20, %v321_v21  ;;  %v2118_v35 = vsel %vm543_vm0, %v550_v26, %v551_v27  ;;  %v257_v42 = vpack.c.bf16 %v207_v40, %v207_v40  ;;  %v420_v45 = vshrl.u32 %v2115_v34, 16  ;;  %1532 = vmatpush3.bf16.msra.mxu0 %v1665_v51 }
  0x71   : > { %v326_v43 = vshll.u32 %v2120_v37, 16  ;;  %v427_v47 = vshll.u32 %v273_v41, 16  ;;  %v324_v48 = vshrl.u32 %v2120_v37, 16  ;;  %1571 = vmatpush3.bf16.msra.mxu1 %v1665_v51  ;;  %vm1167_vm2 = vcmask 1041408   ;;  %v213_v51 = vld [vmem:[%s1994_s26 + $0x88] sm:$0x3] }
  0x72   : > { %v331_v50 = vshll.u32 %v257_v42, 16  ;;  %1573 = vmatprep.subr.msk.bf16.mxu0 %vm1167_vm2, %v1666_v56  ;;  %v1169_v58 = vsel %vm1167_vm2, %v1666_v56, 0  ;;  %1574 = vmatprep.subr.msk.bf16.mxu1 %vm1167_vm2, %v1666_v56  ;;  %v577_v61 = vrot.slane %v2115_v34, 1  ;;  %v578_v63 = vrot.slane %v273_v41, 1 }
  0x73   : > { %643 = vrot.lane.b32.xlu1 %v2062_v59, %s1819_s17  ;;  %v328_v49 = vrot.slane %v326_v43, 1  ;;  %v429_v53 = vrot.slane %v427_v47, 1  ;;  %v553_v0 = vrot.slane %v2120_v37, 1  ;;  %v554_v1 = vrot.slane %v257_v42, 1  ;;  %v235_v42 = vld [vmem:[%s1994_s26 + $0x138] sm:$0xff]  ;;  %v236_v43 = vld [vmem:[%s1994_s26 + $0x140] sm:$0xff] }
  0x74   : > { %627 = vrot.lane.b32.xlu0 %v2065_v62, %s1819_s17  ;;  %1534 = vmatpush3.bf16.msra.mxu0 %v1169_v58  ;;  %v579_v4 = vsel %vm543_vm0, %v577_v61, %v578_v63  ;;  %v2172_v13 = vpack.c.bf16 %v233_v10, %v232_v8  ;;  %v2174_v15 = vpack.c.bf16 %v209_v12, %v208_v11  ;;  %vm850_vm3 = vcmask 31744  }
  0x75   : > { %v329_v54 = vor.u32 %v328_v49, %v324_v48  ;;  %1572 = vmatpush3.bf16.msra.mxu1 %v1169_v58  ;;  %v555_v5 = vsel %vm543_vm0, %v553_v0, %v554_v1  ;;  %v275_v18 = vpack.c.bf16 %v234_v16, %v234_v16  ;;  %v259_v20 = vpack.c.bf16 %v210_v17, %v210_v17 }
  0x76   : > { %v434_v19 = vshll.u32 %v2172_v13, 16  ;;  %v338_v21 = vshll.u32 %v2174_v15, 16  ;;  %v336_v25 = vshrl.u32 %v2174_v15, 16  ;;  %v580_v38 = vrot.slane %v2172_v13, 1 }
  0x77   : > { %685 = vrot.lane.b32.xlu1 %v2072_v2, %s1822_s30  ;;  %v439_v24 = vshll.u32 %v275_v18, 16  ;;  %v343_v27 = vshll.u32 %v259_v20, 16  ;;  %v581_v40 = vrot.slane %v275_v18, 1  ;;  %v556_v41 = vrot.slane %v2174_v15, 1 }
  0x78   : > { %669 = vrot.lane.b32.xlu0 %v310_v55, %s1822_s30  ;;  %v333_v55 = vrot.slane %v331_v50, 1  ;;  %v340_v26 = vrot.slane %v338_v21, 1  ;;  %v2207_v47 = vpack.c.bf16 %v236_v43, %v235_v42  ;;  %v237_v50 = vld [vmem:[%s1994_s26 + $0x148] sm:$0x3]  ;;  %v240_v43 = vld [vmem:[%s1994_s26 + $0x160] sm:$0x3] }
  0x79   : > { %v441_v29 = vrot.slane %v439_v24, 1  ;;  %v345_v32 = vrot.slane %v343_v27, 1  ;;  %vm883_vm4 = vcmask 64512   ;;  %vm916_vm5 = vcmask 97280  }
  0x7a   : > { %v334_v60 = vsel %vm286_vm1, %v329_v54, %v333_v55  ;;  %v341_v30 = vor.u32 %v340_v26, %v336_v25  ;;  %v261_v54 = vpack.c.bf16 %v213_v51, %v213_v51  ;;  %v444_v56 = vshrl.u32 %v2207_v47, 16 }
  0x7b   : > { %687 = vrot.lane.b32.xlu1 %v2093_v22, %s1822_s30  ;;  %v583_v18 = vrot.slane %v2207_v47, 1  ;;  %vm949_vm6 = vcmask 130048   ;;  %vm982_vm7 = vcmask 162816   ;;  %vm1015_vm8 = vcmask 195584  }
  0x7c   : > { %671 = vrot.lane.b32.xlu0 %v2096_v23, %s1822_s30  ;;  %v355_v63 = vshll.u32 %v261_v54, 16  ;;  %vm1048_vm9 = vcmask 228352   ;;  %vm1081_vm10 = vcmask 261120   ;;  %vm1134_vm11 = vcmask 293888  }
  0x7f   : > { %721 = vrot.lane.b32.xlu1 %v2044_v36, %s1823_s3 }
  0x80   : > { %705 = vrot.lane.b32.xlu0 %v2048_v39, %s1823_s3  ;;  %v422_v39 = vshll.u32 %v2115_v34, 16 }
  0x82   : > { %v424_v46 = vrot.slane %v422_v39, 1  ;;  %v557_v39 = vrot.slane %v259_v20, 1 }
  0x83   : > { %723 = vrot.lane.b32.xlu1 %v2113_v33, %s1823_s3 }
  0x84   : > { %707 = vrot.lane.b32.xlu0 %v2118_v35, %s1823_s3  ;;  %v425_v52 = vor.u32 %v424_v46, %v420_v45  ;;  %v212_v45 = vld [vmem:[%s1994_s26 + $0x80] sm:$0xff]  ;;  %v582_v46 = vsel %vm543_vm0, %v580_v38, %v581_v40  ;;  %v558_v48 = vsel %vm543_vm0, %v556_v41, %v557_v39  ;;  %v214_v38 = vld [vmem:[%s1994_s26 + $0x90] sm:$0xff]  ;;  %v215_v40 = vld [vmem:[%s1994_s26 + $0x98] sm:$0xff] }
  0x85   : > { %v2210_v49 = vpack.c.bf16 %v212_v45, %v211_v44  ;;  %v2294_v42 = vpack.c.bf16 %v215_v40, %v214_v38  ;;  %v216_v45 = vld [vmem:[%s1994_s26 + $0xa0] sm:$0x3]  ;;  %v241_v40 = vld [vmem:[%s1994_s26 + $0x168] sm:$0xff] }
  0x86   : > { %v430_v57 = vsel %vm286_vm1, %v425_v52, %v429_v53  ;;  %v277_v52 = vpack.c.bf16 %v237_v50, %v237_v50  ;;  %v446_v53 = vshll.u32 %v2207_v47, 16  ;;  %v279_v50 = vpack.c.bf16 %v240_v43, %v240_v43 }
  0x87   : > { %754 = vrot.lane.b32.xlu1 %v2062_v59, %s1824_s5  ;;  %v350_v55 = vshll.u32 %v2210_v49, 16  ;;  %v559_v21 = vrot.slane %v2210_v49, 1  ;;  %v263_v51 = vpack.c.bf16 %v216_v45, %v216_v45  ;;  %v562_v45 = vrot.slane %v2294_v42, 1 }
  0x88   : > { %738 = vrot.lane.b32.xlu0 %v2065_v62, %s1824_s5  ;;  %v451_v58 = vshll.u32 %v277_v52, 16  ;;  %v587_v38 = vrot.slane %v279_v50, 1 }
  0x89   : > { %v352_v61 = vrot.slane %v350_v55, 1 }
  0x8a   : > { %v453_v1 = vrot.slane %v451_v58, 1  ;;  %v360_v58 = vshrl.u32 %v2294_v42, 16 }
  0x8b   : > { %756 = vrot.lane.b32.xlu1 %v2115_v34, %s1824_s5 }
  0x8c   : > { %740 = vrot.lane.b32.xlu0 %v2120_v37, %s1824_s5 }
  0x8f   : > { %798 = vrot.lane.b32.xlu1 %v2093_v22, %s1825_s6 }
  0x90   : > { %782 = vrot.lane.b32.xlu0 %v2096_v23, %s1825_s6 }
  0x93   : > { %800 = vrot.lane.b32.xlu1 %v430_v57, %s1825_s6 }
  0x94   : > { %784 = vrot.lane.b32.xlu0 %v334_v60, %s1825_s6 }
  0x97   : > { %834 = vrot.lane.b32.xlu1 %v2113_v33, %s1826_s27 }
  0x98   : > { %818 = vrot.lane.b32.xlu0 %v2118_v35, %s1826_s27 }
  0x9b   : > { %499 = vrot.lane.b32.xlu1 %v2093_v22, %s1821_s21  ;;  %v432_v22 = vshrl.u32 %v2172_v13, 16 }
  0x9c   : > { %483 = vrot.lane.b32.xlu0 %v2096_v23, %s1821_s21  ;;  %v436_v23 = vrot.slane %v434_v19, 1  ;;  %v584_v19 = vrot.slane %v277_v52, 1  ;;  %v362_v52 = vshll.u32 %v2294_v42, 16 }
  0x9e   : > { %v437_v28 = vor.u32 %v436_v23, %v432_v22  ;;  %v560_v22 = vrot.slane %v261_v54, 1  ;;  %v2259_v24 = vsel %vm543_vm0, %v583_v18, %v584_v19 }
  0x9f   : > { %836 = vrot.lane.b32.xlu1 %v579_v4, %s1826_s27 }
  0xa0   : > { %820 = vrot.lane.b32.xlu0 %v555_v5, %s1826_s27  ;;  %v2264_v26 = vsel %vm543_vm0, %v559_v21, %v560_v22 }
  0xa3   : > { %501 = vrot.lane.b32.xlu1 %v430_v57, %s1821_s21 }
  0xa4   : > { %485 = vrot.lane.b32.xlu0 %v334_v60, %s1821_s21 }
  0xa7   : > { %612 = vrot.lane.b32.xlu1 %v2113_v33, %s1820_s19  ;;  %v442_v33 = vsel %vm286_vm1, %v437_v28, %v441_v29 }
  0xa8   : > { %596 = vrot.lane.b32.xlu0 %v2118_v35, %s1820_s19  ;;  %v346_v35 = vsel %vm286_vm1, %v341_v30, %v345_v32  ;;  %v238_v32 = vld [vmem:[%s1994_s26 + $0x150] sm:$0xff] }
  0xab   : > { %614 = vrot.lane.b32.xlu1 %v579_v4, %s1820_s19 }
  0xac   : > { %598 = vrot.lane.b32.xlu0 %v555_v5, %s1820_s19 }
  0xaf   : > { %645 = vrot.lane.b32.xlu1 %v2115_v34, %s1819_s17 }
  0xb0   : > { %629 = vrot.lane.b32.xlu0 %v2120_v37, %s1819_s17 }
  0xb3   : > { %647 = vrot.lane.b32.xlu1 %v2172_v13, %s1819_s17 }
  0xb4   : > { %631 = vrot.lane.b32.xlu0 %v2174_v15, %s1819_s17 }
  0xb7   : > { %689 = vrot.lane.b32.xlu1 %v430_v57, %s1822_s30  ;;  %v448_v57 = vrot.slane %v446_v53, 1 }
  0xb8   : > { %673 = vrot.lane.b32.xlu0 %v334_v60, %s1822_s30  ;;  %v348_v60 = vshrl.u32 %v2210_v49, 16 }
  0xb9   : > { %v449_v0 = vor.u32 %v448_v57, %v444_v56  ;;  %v463_v56 = vshll.u32 %v279_v50, 16 }
  0xbb   : > { %691 = vrot.lane.b32.xlu1 %v442_v33, %s1822_s30  ;;  %v2233_v10 = vsel %vm286_vm1, %v449_v0, %v453_v1  ;;  %v465_v1 = vrot.slane %v463_v56, 1 }
  0xbc   : > { %675 = vrot.lane.b32.xlu0 %v346_v35, %s1822_s30 }
  0xbf   : > { %725 = vrot.lane.b32.xlu1 %v579_v4, %s1823_s3  ;;  %v353_v4 = vor.u32 %v352_v61, %v348_v60  ;;  %v364_v60 = vrot.slane %v362_v52, 1  ;;  %v367_v61 = vshll.u32 %v263_v51, 16  ;;  %v217_v52 = vld [vmem:[%s1994_s26 + $0xa8] sm:$0xff] }
  0xc0   : > { %709 = vrot.lane.b32.xlu0 %v555_v5, %s1823_s3  ;;  %v357_v5 = vrot.slane %v355_v63, 1 }
  0xc1   : > { %v369_v18 = vrot.slane %v367_v61, 1  ;;  %v243_v61 = vld [vmem:[%s1994_s26 + $0x178] sm:$0x3] }
  0xc2   : > { %v2238_v12 = vsel %vm286_vm1, %v353_v4, %v357_v5  ;;  %v365_v5 = vor.u32 %v364_v60, %v360_v58 }
  0xc3   : > { %727 = vrot.lane.b32.xlu1 %v582_v46, %s1823_s3 }
  0xc4   : > { %711 = vrot.lane.b32.xlu0 %v558_v48, %s1823_s3 }
  0xc7   : > { %758 = vrot.lane.b32.xlu1 %v2172_v13, %s1824_s5 }
  0xc8   : > { %742 = vrot.lane.b32.xlu0 %v2174_v15, %s1824_s5 }
  0xcb   : > { %760 = vrot.lane.b32.xlu1 %v2207_v47, %s1824_s5 }
  0xcc   : > { %744 = vrot.lane.b32.xlu0 %v2210_v49, %s1824_s5 }
  0xcf   : > { %802 = vrot.lane.b32.xlu1 %v442_v33, %s1825_s6 }
  0xd0   : > { %786 = vrot.lane.b32.xlu0 %v346_v35, %s1825_s6  ;;  %v2230_v8 = vpop.permute.xlu1 %641 }
  0xd1   : > { %v2235_v11 = vpop.permute.xlu0 %625 }
  0xd3   : > { %804 = vrot.lane.b32.xlu1 %v2233_v10, %s1825_s6 }
  0xd4   : > { %788 = vrot.lane.b32.xlu0 %v2238_v12, %s1825_s6 }
  0xd5   : > { %v2244_v16 = vpop.permute.xlu1 %608 }
  0xd6   : > { %v2246_v17 = vpop.permute.xlu0 %592 }
  0xd7   : > { %838 = vrot.lane.b32.xlu1 %v582_v46, %s1826_s27 }
  0xd8   : > { %822 = vrot.lane.b32.xlu0 %v558_v48, %s1826_s27 }
  0xd9   : > { %v2251_v20 = vpop.permute.xlu1 %610 }
  0xda   : > { %v2254_v23 = vpop.permute.xlu0 %594 }
  0xdb   : > { %503 = vrot.lane.b32.xlu1 %v442_v33, %s1821_s21  ;;  %v239_v33 = vld [vmem:[%s1994_s26 + $0x158] sm:$0xff] }
  0xdc   : > { %487 = vrot.lane.b32.xlu0 %v346_v35, %s1821_s21  ;;  %v2290_v41 = vpack.c.bf16 %v239_v33, %v238_v32  ;;  %v2336_v32 = vsel %vm286_vm1, %v365_v5, %v369_v18  ;;  %v219_v5 = vld [vmem:[%s1994_s26 + $0xb8] sm:$0x3] }
  0xdd   : > { %v2261_v25 = vpop.permute.xlu1 %481 }
  0xde   : > { %v2266_v27 = vpop.permute.xlu0 %479  ;;  %v456_v54 = vshrl.u32 %v2290_v41, 16 }
  0xdf   : > { %840 = vrot.lane.b32.xlu1 %v2259_v24, %s1826_s27  ;;  %v852_v58 = vsel %vm850_vm3, %v2022_v14, %v2266_v27 }
  0xe0   : > { %824 = vrot.lane.b32.xlu0 %v2264_v26, %s1826_s27  ;;  %v885_v14 = vsel %vm883_vm4, %v852_v58, %v2246_v17 }
  0xe1   : > { %v2272_v28 = vpop.permute.xlu1 %497 }
  0xe2   : > { %v2274_v29 = vpop.permute.xlu0 %495 }
  0xe3   : > { %505 = vrot.lane.b32.xlu1 %v2233_v10, %s1821_s21  ;;  %v868_v56 = vsel %vm850_vm3, %v2015_v9, %v2274_v29 }
  0xe4   : > { %489 = vrot.lane.b32.xlu0 %v2238_v12, %s1821_s21 }
  0xe5   : > { %v2280_v30 = vpop.permute.xlu1 %643 }
  0xe6   : > { %v2284_v35 = vpop.permute.xlu0 %627 }
  0xe7   : > { %616 = vrot.lane.b32.xlu1 %v582_v46, %s1820_s19  ;;  %v458_v46 = vshll.u32 %v2290_v41, 16 }
  0xe8   : > { %600 = vrot.lane.b32.xlu0 %v558_v48, %s1820_s19 }
  0xe9   : > { %v2292_v39 = vpop.permute.xlu1 %685  ;;  %v460_v55 = vrot.slane %v458_v46, 1  ;;  %v563_v46 = vrot.slane %v263_v51, 1 }
  0xea   : > { %v2297_v44 = vpop.permute.xlu0 %669 }
  0xeb   : > { %618 = vrot.lane.b32.xlu1 %v2259_v24, %s1820_s19  ;;  %v461_v0 = vor.u32 %v460_v55, %v456_v54  ;;  %v218_v54 = vld [vmem:[%s1994_s26 + $0xb0] sm:$0xff] }
  0xec   : > { %602 = vrot.lane.b32.xlu0 %v2264_v26, %s1820_s19  ;;  %v2367_v60 = vpack.c.bf16 %v218_v54, %v217_v52 }
  0xed   : > { %v2305_v48 = vpop.permute.xlu1 %687  ;;  %v2333_v21 = vsel %vm286_vm1, %v461_v0, %v465_v1  ;;  %v2371_v0 = vsel %vm543_vm0, %v562_v45, %v563_v46 }
  0xee   : > { %v2308_v53 = vpop.permute.xlu0 %671 }
  0xef   : > { %649 = vrot.lane.b32.xlu1 %v2207_v47, %s1819_s17 }
  0xf0   : > { %633 = vrot.lane.b32.xlu0 %v2210_v49, %s1819_s17 }
  0xf1   : > { %v2315_v57 = vpop.permute.xlu1 %721 }
  0xf2   : > { %v2318_v63 = vpop.permute.xlu0 %705 }
  0xf3   : > { %651 = vrot.lane.b32.xlu1 %v2290_v41, %s1819_s17 }
  0xf4   : > { %635 = vrot.lane.b32.xlu0 %v2294_v42, %s1819_s17 }
  0xf5   : > { %v2324_v4 = vpop.permute.xlu1 %723 }
  0xf6   : > { %v2326_v19 = vpop.permute.xlu0 %707 }
  0xf7   : > { %693 = vrot.lane.b32.xlu1 %v2233_v10, %s1822_s30  ;;  %v586_v10 = vrot.slane %v2290_v41, 1 }
  0xf8   : > { %677 = vrot.lane.b32.xlu0 %v2238_v12, %s1822_s30  ;;  %v242_v12 = vld [vmem:[%s1994_s26 + $0x170] sm:$0xff] }
  0xf9   : > { %v755_v22 = vpop.permute.xlu1 %754  ;;  %v2357_v50 = vpack.c.bf16 %v242_v12, %v241_v40  ;;  %v2365_v51 = vsel %vm543_vm0, %v586_v10, %v587_v38  ;;  %v2388_v10 = vpack.c.bf16 %v219_v5, %v219_v5  ;;  %v918_v40 = vsel %vm916_vm5, %v885_v14, %v2235_v11 }
  0xfa   : > { %v739_v33 = vpop.permute.xlu0 %738  ;;  %v951_v46 = vsel %vm949_vm6, %v918_v40, %v2297_v44 }
  0xfb   : > { %695 = vrot.lane.b32.xlu1 %v2333_v21, %s1822_s30  ;;  %v470_v27 = vshll.u32 %v2357_v50, 16  ;;  %v468_v45 = vshrl.u32 %v2357_v50, 16  ;;  %v379_v5 = vshll.u32 %v2388_v10, 16 }
  0xfc   : > { %679 = vrot.lane.b32.xlu0 %v2336_v32, %s1822_s30 }
  0xfd   : > { %v2345_v43 = vpop.permute.xlu1 %756  ;;  %v472_v52 = vrot.slane %v470_v27, 1 }
  0xfe   : > { %v2350_v55 = vpop.permute.xlu0 %740 }
  0xff   : > { %729 = vrot.lane.b32.xlu1 %v2259_v24, %s1823_s3  ;;  %v901_v24 = vsel %vm883_vm4, %v868_v56, %v2244_v16  ;;  %v374_v16 = vshll.u32 %v2367_v60, 16  ;;  %v372_v56 = vshrl.u32 %v2367_v60, 16 }
 0x100   : > { %713 = vrot.lane.b32.xlu0 %v2264_v26, %s1823_s3  ;;  %v2380_v26 = vpack.c.bf16 %v243_v61, %v243_v61  ;;  %v934_v18 = vsel %vm916_vm5, %v901_v24, %v2230_v8 }
 0x101   : > { %v799_v29 = vpop.permute.xlu1 %798  ;;  %v967_v38 = vsel %vm949_vm6, %v934_v18, %v2292_v39  ;;  %v984_v39 = vsel %vm982_vm7, %v951_v46, %v2318_v63  ;;  %v376_v44 = vrot.slane %v374_v16, 1  ;;  %v854_v63 = vsel %vm850_vm3, %v2012_v7, %v2261_v25 }
 0x102   : > { %v783_v1 = vpop.permute.xlu0 %782  ;;  %v1000_v8 = vsel %vm982_vm7, %v967_v38, %v2315_v57  ;;  %v475_v54 = vshll.u32 %v2380_v26, 16  ;;  %v870_v57 = vsel %vm850_vm3, %v2007_v3, %v2272_v28  ;;  %v1017_v58 = vsel %vm1015_vm8, %v984_v39, %v739_v33 }
 0x103   : > { %731 = vrot.lane.b32.xlu1 %v2365_v51, %s1823_s3  ;;  %v1033_v11 = vsel %vm1015_vm8, %v1000_v8, %v755_v22  ;;  %v1050_v22 = vsel %vm1048_vm9, %v1017_v58, %v783_v1  ;;  %v903_v33 = vsel %vm883_vm4, %v870_v57, %v2251_v20  ;;  %v473_v7 = vor.u32 %v472_v52, %v468_v45 }
 0x104   : > { %715 = vrot.lane.b32.xlu0 %v2371_v0, %s1823_s3  ;;  %v1066_v61 = vsel %vm1048_vm9, %v1033_v11, %v799_v29  ;;  %v477_v25 = vrot.slane %v475_v54, 1  ;;  %v936_v29 = vsel %vm916_vm5, %v903_v33, %v2280_v30  ;;  %v887_v1 = vsel %vm883_vm4, %v854_v63, %v2254_v23  ;;  %v246_v33 = vld [vmem:[%s1994_s26 + $0x190] sm:$0x3] }
 0x105   : > { %v801_v17 = vpop.permute.xlu1 %800  ;;  %v377_v18 = vor.u32 %v376_v44, %v372_v56  ;;  %v381_v38 = vrot.slane %v379_v5, 1  ;;  %v920_v20 = vsel %vm916_vm5, %v887_v1, %v2284_v35  ;;  %v969_v40 = vsel %vm949_vm6, %v936_v29, %v2305_v48 }
 0x106   : > { %v785_v12 = vpop.permute.xlu0 %784  ;;  %v953_v45 = vsel %vm949_vm6, %v920_v20, %v2308_v53  ;;  %v1002_v30 = vsel %vm982_vm7, %v969_v40, %v2324_v4  ;;  %v2453_v48 = vsel %vm286_vm1, %v473_v7, %v477_v25  ;;  %v590_v11 = vrot.slane %v2380_v26, 1 }
 0x107   : > { %762 = vrot.lane.b32.xlu1 %v2290_v41, %s1824_s5  ;;  %v986_v23 = vsel %vm982_vm7, %v953_v45, %v2326_v19  ;;  %v1035_v35 = vsel %vm1015_vm8, %v1002_v30, %v2345_v43  ;;  %v382_v52 = vsel %vm286_vm1, %v377_v18, %v381_v38  ;;  %v565_v44 = vrot.slane %v2367_v60, 1 }
 0x108   : > { %746 = vrot.lane.b32.xlu0 %v2294_v42, %s1824_s5  ;;  %v1019_v53 = vsel %vm1015_vm8, %v986_v23, %v2350_v55  ;;  %v1068_v4 = vsel %vm1048_vm9, %v1035_v35, %v801_v17  ;;  %v566_v57 = vrot.slane %v2388_v10, 1  ;;  %v283_v25 = vpack.c.bf16 %v246_v33, %v246_v33 }
 0x109   : > { %v835_v24 = vpop.permute.xlu1 %834  ;;  %v1052_v54 = vsel %vm1048_vm9, %v1019_v53, %v785_v12  ;;  %v589_v12 = vrot.slane %v2357_v50, 1 }
 0x10a   : > { %v819_v14 = vpop.permute.xlu0 %818  ;;  %v1099_v27 = vsel %vm1081_vm10, %v1066_v61, %v835_v24  ;;  %v567_v26 = vsel %vm543_vm0, %v565_v44, %v566_v57  ;;  %v665_v38 = vshll.u32 %v283_v25, 16  ;;  %v249_v57 = vld [vmem:[%s1994_s26 + $0x1a8] sm:$0x3] }
 0x10b   : > { %764 = vrot.lane.b32.xlu1 %v2357_v50, %s1824_s5  ;;  %v1083_v28 = vsel %vm1081_vm10, %v1050_v22, %v819_v14  ;;  %1551 = vmatprep.mubr.msk.bf16.mxu1 %vm1134_vm11, %v1099_v27  ;;  %v591_v61 = vsel %vm543_vm0, %v589_v12, %v590_v11  ;;  %v245_v22 = vld [vmem:[%s1994_s26 + $0x188] sm:$0xff]  ;;  %v248_v12 = vld [vmem:[%s1994_s26 + $0x1a0] sm:$0xff]  ;;  %v2560_v33 = vpack.c.bf16 %v249_v57, %v249_v57 }
 0x10c   : > { %748 = vrot.lane.b32.xlu0 %v2367_v60, %s1824_s5  ;;  %1535 = vmatprep.mubr.msk.bf16.mxu0 %vm1134_vm11, %v1083_v28  ;;  %v667_v30 = vrot.slane %v665_v38, 1 }
 0x10d   : > { %v2432_v16 = vpop.permute.xlu1 %499 }
 0x10e   : > { %v2438_v46 = vpop.permute.xlu0 %483 }
 0x10f   : > { %806 = vrot.lane.b32.xlu1 %v2333_v21, %s1825_s6 }
 0x110   : > { %790 = vrot.lane.b32.xlu0 %v2336_v32, %s1825_s6 }
 0x111   : > { %v837_v8 = vpop.permute.xlu1 %836 }
 0x112   : > { %v1101_v19 = vsel %vm1081_vm10, %v1068_v4, %v837_v8  ;;  %v821_v39 = vpop.permute.xlu0 %820 }
 0x113   : > { %v1085_v43 = vsel %vm1081_vm10, %v1052_v54, %v821_v39  ;;  %808 = vrot.lane.b32.xlu1 %v2453_v48, %s1825_s6  ;;  %1552 = vmatmul.mubr.msk.bf16.vlgmr.msra.gmra.mrb[0].mxu1 %vm1134_vm11, %v1101_v19  ;;  %v703_v19 = vrot.slane %v283_v25, 1 }
 0x114   : > { %792 = vrot.lane.b32.xlu0 %v382_v52, %s1825_s6  ;;  %1536 = vmatmul.mubr.msk.bf16.vlgmr.msra.gmra.mrb[0].mxu0 %vm1134_vm11, %v1085_v43  ;;  %v247_v43 = vld [vmem:[%s1994_s26 + $0x198] sm:$0xff] }
 0x115   : > { %v2467_v55 = vpop.permute.xlu1 %501  ;;  %v2545_v11 = vpack.c.bf16 %v248_v12, %v247_v43 }
 0x116   : > { %v2469_v17 = vpop.permute.xlu0 %485 }
 0x117   : > { %842 = vrot.lane.b32.xlu1 %v2365_v51, %s1826_s27  ;;  %v773_v25 = vshll.u32 %v2545_v11, 16  ;;  %v771_v38 = vshrl.u32 %v2545_v11, 16 }
 0x118   : > { %826 = vrot.lane.b32.xlu0 %v2371_v0, %s1826_s27 }
 0x119   : > { %v2477_v56 = vpop.permute.xlu1 %612 }
 0x11a   : > { %v2481_v58 = vpop.permute.xlu0 %596 }
 0x11b   : > { %507 = vrot.lane.b32.xlu1 %v2333_v21, %s1821_s21 }
 0x11c   : > { %491 = vrot.lane.b32.xlu0 %v2336_v32, %s1821_s21  ;;  %v244_v32 = vld [vmem:[%s1994_s26 + $0x180] sm:$0xff]  ;;  %s1827_s26 = smov [#allocation7]  }
 0x11d   : > { %v2488_v24 = vpop.permute.xlu1 %614  ;;  %v282_v27 = vpack.c.bf16 %v245_v22, %v244_v32  ;;  %v872_v22 = vsel %vm850_vm3, %v2062_v59, %v2432_v16 }
 0x11e   : > { %v2491_v5 = vpop.permute.xlu0 %598 }
 0x11f   : > { %844 = vrot.lane.b32.xlu1 %v591_v61, %s1826_s27  ;;  %v660_v29 = vshll.u32 %v282_v27, 16  ;;  %v702_v54 = vrot.slane %v282_v27, 1 }
 0x120   : > { %828 = vrot.lane.b32.xlu0 %v567_v26, %s1826_s27 }
 0x121   : > { %v646_v10 = vpop.permute.xlu1 %645 }
 0x122   : > { %v2495_v63 = vpop.permute.xlu0 %629 }
 0x123   : > { %509 = vrot.lane.b32.xlu1 %v2453_v48, %s1821_s21 }
 0x124   : > { %493 = vrot.lane.b32.xlu0 %v382_v52, %s1821_s21 }
 0x125   : > { %v2500_v21 = vpop.permute.xlu1 %647 }
 0x126   : > { %v2504_v14 = vpop.permute.xlu0 %631 }
 0x127   : > { %620 = vrot.lane.b32.xlu1 %v2365_v51, %s1820_s19  ;;  %v658_v51 = vshrl.u32 %v282_v27, 16 }
 0x128   : > { %604 = vrot.lane.b32.xlu0 %v2371_v0, %s1820_s19  ;;  %v662_v0 = vrot.slane %v660_v29, 1 }
 0x129   : > { %v690_v28 = vpop.permute.xlu1 %689 }
 0x12a   : > { %v674_v7 = vpop.permute.xlu0 %673  ;;  %v663_v45 = vor.u32 %v662_v0, %v658_v51 }
 0x12b   : > { %622 = vrot.lane.b32.xlu1 %v591_v61, %s1820_s19 }
 0x12c   : > { %606 = vrot.lane.b32.xlu0 %v567_v26, %s1820_s19  ;;  %v2532_v53 = vsel %vm286_vm1, %v663_v45, %v667_v30 }
 0x12d   : > { %v2513_v1 = vpop.permute.xlu1 %691 }
 0x12e   : > { %v2515_v18 = vpop.permute.xlu0 %675 }
 0x12f   : > { %653 = vrot.lane.b32.xlu1 %v2357_v50, %s1819_s17 }
 0x130   : > { %637 = vrot.lane.b32.xlu0 %v2367_v60, %s1819_s17 }
 0x131   : > { %v726_v20 = vpop.permute.xlu1 %725 }
 0x132   : > { %v710_v40 = vpop.permute.xlu0 %709 }
 0x133   : > { %655 = vrot.lane.b32.xlu1 %v282_v27, %s1819_s17 }
 0x134   : > { %639 = vrot.lane.b32.xlu0 %v2015_v9, %s1819_s17  ;;  %s1729_s17 = sshll.u32 %s1827_s26, 4  ;;  %s1730_s17 = int_to_ptr.vmem [resolvable:$false] %s1729_s17 }
 0x135   : > { %v2524_v23 = vpop.permute.xlu1 %727  ;;  %s1731_s21 = scalar_lea.vmem %s1730_s17, 8192  ;;  %p1732_p12 = scmp.lt.s32.totalorder %s2785_s4, %s1730_s17 }
 0x136   : > { %v2526_v35 = vpop.permute.xlu0 %711  ;;  %p1733_p13 = scmp.lt.s32.totalorder %s1731_s21, %s1725_s16 }
 0x137   : > { %697 = vrot.lane.b32.xlu1 %v2453_v48, %s1822_s30 }
 0x138   : > { %681 = vrot.lane.b32.xlu0 %v382_v52, %s1822_s30  ;;  %v2543_v52 = vsel %vm543_vm0, %v702_v54, %v703_v19  ;;  %p1734_p0 = por %p1733_p13, %p1732_p12 }
 0x139   : > { %v759_v4 = vpop.permute.xlu1 %758 }
 0x13a   : > { %v743_v8 = vpop.permute.xlu0 %742  ;;  %p1735_p5 = pnand %p1734_p0, %p1728_p8 }
 0x13b   : > { %699 = vrot.lane.b32.xlu1 %v2532_v53, %s1822_s30 }
 0x13c   : > { %683 = vrot.lane.b32.xlu0 %v2076_v6, %s1822_s30 }
 0x13d   : > { %v761_v39 = vpop.permute.xlu1 %760 }
 0x13e   : > { %v745_v48 = vpop.permute.xlu0 %744 }
 0x13f   : > { %733 = vrot.lane.b32.xlu1 %v591_v61, %s1823_s3  ;;  %v856_v61 = vsel %vm850_vm3, %v2065_v62, %v2438_v46 }
 0x140   : > { %717 = vrot.lane.b32.xlu0 %v567_v26, %s1823_s3  ;;  %v905_v26 = vsel %vm883_vm4, %v872_v22, %v2477_v56  ;;  %v889_v59 = vsel %vm883_vm4, %v856_v61, %v2481_v58 }
 0x141   : > { %v803_v44 = vpop.permute.xlu1 %802  ;;  %v938_v16 = vsel %vm916_vm5, %v905_v26, %v646_v10  ;;  %v922_v51 = vsel %vm916_vm5, %v889_v59, %v2495_v63  ;;  %v775_v10 = vrot.slane %v773_v25, 1  ;;  %v778_v63 = vshll.u32 %v2560_v33, 16 }
 0x142   : > { %v787_v32 = vpop.permute.xlu0 %786  ;;  %v971_v62 = vsel %vm949_vm6, %v938_v16, %v690_v28  ;;  %v955_v56 = vsel %vm949_vm6, %v922_v51, %v674_v7 }
 0x143   : > { %735 = vrot.lane.b32.xlu1 %v2543_v52, %s1823_s3  ;;  %v1004_v0 = vsel %vm982_vm7, %v971_v62, %v726_v20  ;;  %v988_v45 = vsel %vm982_vm7, %v955_v56, %v710_v40  ;;  %v874_v40 = vsel %vm850_vm3, %v2115_v34, %v2467_v55  ;;  %v776_v34 = vor.u32 %v775_v10, %v771_v38 }
 0x144   : > { %719 = vrot.lane.b32.xlu0 %v2037_v31, %s1823_s3  ;;  %v1037_v58 = vsel %vm1015_vm8, %v1004_v0, %v759_v4  ;;  %v1021_v28 = vsel %vm1015_vm8, %v988_v45, %v743_v8  ;;  %v907_v8 = vsel %vm883_vm4, %v874_v40, %v2488_v24  ;;  %v780_v55 = vrot.slane %v778_v63, 1 }
 0x145   : > { %v805_v29 = vpop.permute.xlu1 %804  ;;  %v1070_v7 = vsel %vm1048_vm9, %v1037_v58, %v803_v44  ;;  %v1054_v20 = vsel %vm1048_vm9, %v1021_v28, %v787_v32  ;;  %v940_v43 = vsel %vm916_vm5, %v907_v8, %v2500_v21 }
 0x146   : > { %v789_v46 = vpop.permute.xlu0 %788 }
 0x147   : > { %766 = vrot.lane.b32.xlu1 %v282_v27, %s1824_s5 }
 0x148   : > { %750 = vrot.lane.b32.xlu0 %v2015_v9, %s1824_s5  ;;  %v858_v9 = vsel %vm850_vm3, %v2120_v37, %v2469_v17  ;;  %v973_v17 = vsel %vm949_vm6, %v940_v43, %v2513_v1 }
 0x149   : > { %v839_v30 = vpop.permute.xlu1 %838  ;;  %v891_v19 = vsel %vm883_vm4, %v858_v9, %v2491_v5  ;;  %v1006_v44 = vsel %vm982_vm7, %v973_v17, %v2524_v23 }
 0x14a   : > { %v1103_v27 = vsel %vm1081_vm10, %v1070_v7, %v839_v30  ;;  %v823_v54 = vpop.permute.xlu0 %822  ;;  %v924_v37 = vsel %vm916_vm5, %v891_v19, %v2504_v14  ;;  %v1039_v21 = vsel %vm1015_vm8, %v1006_v44, %v761_v39  ;;  %v781_v14 = vsel %vm286_vm1, %v776_v34, %v780_v55 }
 0x14b   : > { %v1087_v4 = vsel %vm1081_vm10, %v1054_v20, %v823_v54  ;;  %768 = vrot.lane.b32.xlu1 %v2545_v11, %s1824_s5  ;;  %1555 = vmatprep.mubr.msk.bf16.mxu1 %vm1134_vm11, %v1103_v27 }
 0x14c   : > { %752 = vrot.lane.b32.xlu0 %v2007_v3, %s1824_s5  ;;  %1539 = vmatprep.mubr.msk.bf16.mxu0 %vm1134_vm11, %v1087_v4  ;;  %v957_v3 = vsel %vm949_vm6, %v924_v37, %v2515_v18  ;;  %v1072_v18 = vsel %vm1048_vm9, %v1039_v21, %v805_v29 }
 0x14d   : > { %v504_v12 = vpop.permute.xlu1 %503  ;;  %v990_v5 = vsel %vm982_vm7, %v957_v3, %v2526_v35  ;;  %v816_v35 = vrot.slane %v2560_v33, 1 }
 0x14e   : > { %v488_v24 = vpop.permute.xlu0 %487  ;;  %v1023_v1 = vsel %vm1015_vm8, %v990_v5, %v745_v48  ;;  %v876_v7 = vsel %vm850_vm3, %v2172_v13, %v504_v12 }
 0x14f   : > { %810 = vrot.lane.b32.xlu1 %v2532_v53, %s1825_s6  ;;  %v1056_v23 = vsel %vm1048_vm9, %v1023_v1, %v789_v46  ;;  %v860_v30 = vsel %vm850_vm3, %v2174_v15, %v488_v24 }
 0x150   : > { %794 = vrot.lane.b32.xlu0 %v2076_v6, %s1825_s6  ;;  %v815_v6 = vrot.slane %v2545_v11, 1 }
 0x151   : > { %v841_v57 = vpop.permute.xlu1 %840 }
 0x152   : > { %v1105_v32 = vsel %vm1081_vm10, %v1072_v18, %v841_v57  ;;  %v825_v53 = vpop.permute.xlu0 %824  ;;  %v817_v61 = vsel %vm543_vm0, %v815_v6, %v816_v35 }
 0x153   : > { %v1089_v22 = vsel %vm1081_vm10, %v1056_v23, %v825_v53  ;;  %812 = vrot.lane.b32.xlu1 %v781_v14, %s1825_s6  ;;  %1556 = vmatmul.mubr.msk.bf16.gmra.mrb[4].mxu1 %vm1134_vm11, %v1105_v32 }
 0x154   : > { %796 = vrot.lane.b32.xlu0 %v2072_v2, %s1825_s6  ;;  %1540 = vmatmul.mubr.msk.bf16.gmra.mrb[4].mxu0 %vm1134_vm11, %v1089_v22 }
 0x155   : > { %v506_v39 = vpop.permute.xlu1 %505 }
 0x156   : > { %v490_v48 = vpop.permute.xlu0 %489  ;;  %v878_v3 = vsel %vm850_vm3, %v2207_v47, %v506_v39 }
 0x157   : > { %846 = vrot.lane.b32.xlu1 %v2543_v52, %s1826_s27  ;;  %v862_v5 = vsel %vm850_vm3, %v2210_v49, %v490_v48 }
 0x158   : > { %830 = vrot.lane.b32.xlu0 %v2037_v31, %s1826_s27 }
 0x159   : > { %v617_v26 = vpop.permute.xlu1 %616 }
 0x15a   : > { %v601_v25 = vpop.permute.xlu0 %600  ;;  %v909_v20 = vsel %vm883_vm4, %v876_v7, %v617_v26 }
 0x15b   : > { %848 = vrot.lane.b32.xlu1 %v817_v61, %s1826_s27  ;;  %v893_v27 = vsel %vm883_vm4, %v860_v30, %v601_v25 }
 0x15c   : > { %832 = vrot.lane.b32.xlu0 %v2044_v36, %s1826_s27 }
 0x15d   : > { %v619_v2 = vpop.permute.xlu1 %618 }
 0x15e   : > { %v603_v11 = vpop.permute.xlu0 %602  ;;  %v911_v21 = vsel %vm883_vm4, %v878_v3, %v619_v2 }
 0x15f   : > { %v895_v14 = vsel %vm883_vm4, %v862_v5, %v603_v11 }
 0x161   : > { %v650_v33 = vpop.permute.xlu1 %649 }
 0x162   : > { %v634_v59 = vpop.permute.xlu0 %633  ;;  %v942_v54 = vsel %vm916_vm5, %v909_v20, %v650_v33 }
 0x163   : > { %v926_v4 = vsel %vm916_vm5, %v893_v27, %v634_v59 }
 0x165   : > { %v652_v16 = vpop.permute.xlu1 %651 }
 0x166   : > { %v636_v29 = vpop.permute.xlu0 %635  ;;  %v944_v1 = vsel %vm916_vm5, %v911_v21, %v652_v16 }
 0x167   : > { %v928_v57 = vsel %vm916_vm5, %v895_v14, %v636_v29 }
 0x169   : > { %v694_v51 = vpop.permute.xlu1 %693 }
 0x16a   : > { %v678_v52 = vpop.permute.xlu0 %677  ;;  %v975_v9 = vsel %vm949_vm6, %v942_v54, %v694_v51 }
 0x16b   : > { %v959_v34 = vsel %vm949_vm6, %v926_v4, %v678_v52 }
 0x16d   : > { %v696_v62 = vpop.permute.xlu1 %695 }
 0x16e   : > { %v680_v46 = vpop.permute.xlu0 %679  ;;  %v977_v47 = vsel %vm949_vm6, %v944_v1, %v696_v62 }
 0x16f   : > { %v961_v32 = vsel %vm949_vm6, %v928_v57, %v680_v46 }
 0x171   : > { %v730_v31 = vpop.permute.xlu1 %729 }
 0x172   : > { %v714_v56 = vpop.permute.xlu0 %713  ;;  %v1008_v55 = vsel %vm982_vm7, %v975_v9, %v730_v31 }
 0x173   : > { %v992_v13 = vsel %vm982_vm7, %v959_v34, %v714_v56 }
 0x175   : > { %v732_v0 = vpop.permute.xlu1 %731 }
 0x176   : > { %v716_v38 = vpop.permute.xlu0 %715  ;;  %v1010_v53 = vsel %vm982_vm7, %v977_v47, %v732_v0 }
 0x177   : > { %v994_v49 = vsel %vm982_vm7, %v961_v32, %v716_v38 }
 0x179   : > { %v763_v45 = vpop.permute.xlu1 %762 }
 0x17a   : > { %v747_v58 = vpop.permute.xlu0 %746  ;;  %v1041_v15 = vsel %vm1015_vm8, %v1008_v55, %v763_v45 }
 0x17b   : > { %v1025_v19 = vsel %vm1015_vm8, %v992_v13, %v747_v58 }
 0x17d   : > { %v765_v10 = vpop.permute.xlu1 %764 }
 0x17e   : > { %v749_v63 = vpop.permute.xlu0 %748  ;;  %v1043_v22 = vsel %vm1015_vm8, %v1010_v53, %v765_v10 }
 0x17f   : > { %v1027_v6 = vsel %vm1015_vm8, %v994_v49, %v749_v63 }
 0x181   : > { %v807_v28 = vpop.permute.xlu1 %806 }
 0x182   : > { %v791_v36 = vpop.permute.xlu0 %790  ;;  %v1074_v43 = vsel %vm1048_vm9, %v1041_v15, %v807_v28 }
 0x183   : > { %v1058_v37 = vsel %vm1048_vm9, %v1025_v19, %v791_v36 }
 0x185   : > { %v809_v40 = vpop.permute.xlu1 %808 }
 0x186   : > { %v793_v8 = vpop.permute.xlu0 %792  ;;  %v1076_v35 = vsel %vm1048_vm9, %v1043_v22, %v809_v40 }
 0x187   : > { %v1060_v48 = vsel %vm1048_vm9, %v1027_v6, %v793_v8 }
 0x189   : > { %v843_v12 = vpop.permute.xlu1 %842 }
 0x18a   : > { %v1107_v17 = vsel %vm1081_vm10, %v1074_v43, %v843_v12  ;;  %v827_v24 = vpop.permute.xlu0 %826 }
 0x18b   : > { %v1091_v44 = vsel %vm1081_vm10, %v1058_v37, %v827_v24  ;;  %1559 = vmatprep.mubr.msk.bf16.mxu1 %vm1134_vm11, %v1107_v17 }
 0x18c   : > { %1543 = vmatprep.mubr.msk.bf16.mxu0 %vm1134_vm11, %v1091_v44 }
 0x18d   : > { %v508_v18 = vpop.permute.xlu1 %507 }
 0x18e   : > { %v492_v23 = vpop.permute.xlu0 %491  ;;  %v880_v54 = vsel %vm850_vm3, %v2290_v41, %v508_v18 }
 0x18f   : > { %v864_v40 = vsel %vm850_vm3, %v2294_v42, %v492_v23 }
 0x191   : > { %v845_v39 = vpop.permute.xlu1 %844 }
 0x192   : > { %v1109_v61 = vsel %vm1081_vm10, %v1076_v35, %v845_v39  ;;  %v829_v26 = vpop.permute.xlu0 %828 }
 0x193   : > { %v1093_v25 = vsel %vm1081_vm10, %v1060_v48, %v829_v26  ;;  %1560 = vmatmul.mubr.msk.bf16.gmra.mrb[8].mxu1 %vm1134_vm11, %v1109_v61 }
 0x194   : > { %1544 = vmatmul.mubr.msk.bf16.gmra.mrb[8].mxu0 %vm1134_vm11, %v1093_v25 }
 0x195   : > { %v510_v2 = vpop.permute.xlu1 %509 }
 0x196   : > { %v494_v11 = vpop.permute.xlu0 %493  ;;  %v882_v19 = vsel %vm850_vm3, %v2357_v50, %v510_v2 }
 0x197   : > { %v866_v42 = vsel %vm850_vm3, %v2367_v60, %v494_v11 }
 0x199   : > { %v621_v33 = vpop.permute.xlu1 %620 }
 0x19a   : > { %v605_v59 = vpop.permute.xlu0 %604  ;;  %v913_v4 = vsel %vm883_vm4, %v880_v54, %v621_v33 }
 0x19b   : > { %v897_v9 = vsel %vm883_vm4, %v864_v40, %v605_v59 }
 0x19d   : > { %v623_v16 = vpop.permute.xlu1 %622 }
 0x19e   : > { %v607_v29 = vpop.permute.xlu0 %606  ;;  %v915_v12 = vsel %vm883_vm4, %v882_v19, %v623_v16 }
 0x19f   : > { %v899_v24 = vsel %vm883_vm4, %v866_v42, %v607_v29 }
 0x1a1   : > { %v654_v51 = vpop.permute.xlu1 %653 }
 0x1a2   : > { %v638_v52 = vpop.permute.xlu0 %637  ;;  %v946_v8 = vsel %vm916_vm5, %v913_v4, %v654_v51 }
 0x1a3   : > { %v930_v55 = vsel %vm916_vm5, %v897_v9, %v638_v52 }
 0x1a5   : > { %v656_v62 = vpop.permute.xlu1 %655 }
 0x1a6   : > { %v640_v46 = vpop.permute.xlu0 %639  ;;  %v948_v3 = vsel %vm916_vm5, %v915_v12, %v656_v62 }
 0x1a7   : > { %v932_v21 = vsel %vm916_vm5, %v899_v24, %v640_v46 }
 0x1a9   : > { %v698_v31 = vpop.permute.xlu1 %697 }
 0x1aa   : > { %v682_v56 = vpop.permute.xlu0 %681  ;;  %v979_v13 = vsel %vm949_vm6, %v946_v8, %v698_v31 }
 0x1ab   : > { %v963_v41 = vsel %vm949_vm6, %v930_v55, %v682_v56 }
 0x1ad   : > { %v700_v0 = vpop.permute.xlu1 %699 }
 0x1ae   : > { %v684_v38 = vpop.permute.xlu0 %683  ;;  %v981_v14 = vsel %vm949_vm6, %v948_v3, %v700_v0 }
 0x1af   : > { %v965_v57 = vsel %vm949_vm6, %v932_v21, %v684_v38 }
 0x1b1   : > { %v734_v45 = vpop.permute.xlu1 %733 }
 0x1b2   : > { %v718_v58 = vpop.permute.xlu0 %717  ;;  %v1012_v43 = vsel %vm982_vm7, %v979_v13, %v734_v45 }
 0x1b3   : > { %v996_v37 = vsel %vm982_vm7, %v963_v41, %v718_v58 }
 0x1b5   : > { %v736_v10 = vpop.permute.xlu1 %735 }
 0x1b6   : > { %v720_v63 = vpop.permute.xlu0 %719  ;;  %v1014_v47 = vsel %vm982_vm7, %v981_v14, %v736_v10 }
 0x1b7   : > { %v998_v32 = vsel %vm982_vm7, %v965_v57, %v720_v63 }
 0x1b9   : > { %v767_v28 = vpop.permute.xlu1 %766 }
 0x1ba   : > { %v751_v36 = vpop.permute.xlu0 %750  ;;  %v1045_v17 = vsel %vm1015_vm8, %v1012_v43, %v767_v28 }
 0x1bb   : > { %v1029_v44 = vsel %vm1015_vm8, %v996_v37, %v751_v36 }
 0x1bd   : > { %v769_v7 = vpop.permute.xlu1 %768 }
 0x1be   : > { %v753_v30 = vpop.permute.xlu0 %752  ;;  %v1047_v53 = vsel %vm1015_vm8, %v1014_v47, %v769_v7 }
 0x1bf   : > { %v1031_v49 = vsel %vm1015_vm8, %v998_v32, %v753_v30 }
 0x1c1   : > { %v811_v20 = vpop.permute.xlu1 %810 }
 0x1c2   : > { %v795_v27 = vpop.permute.xlu0 %794  ;;  %v1078_v50 = vsel %vm1048_vm9, %v1045_v17, %v811_v20 }
 0x1c3   : > { %v1062_v60 = vsel %vm1048_vm9, %v1029_v44, %v795_v27 }
 0x1c5   : > { %v813_v34 = vpop.permute.xlu1 %812 }
 0x1c6   : > { %v797_v15 = vpop.permute.xlu0 %796  ;;  %v1080_v22 = vsel %vm1048_vm9, %v1047_v53, %v813_v34 }
 0x1c7   : > { %v1064_v35 = vsel %vm1048_vm9, %v1031_v49, %v797_v15 }
 0x1c9   : > { %v847_v5 = vpop.permute.xlu1 %846 }
 0x1ca   : > { %v1111_v1 = vsel %vm1081_vm10, %v1078_v50, %v847_v5  ;;  %v831_v18 = vpop.permute.xlu0 %830 }
 0x1cb   : > { %v1095_v23 = vsel %vm1081_vm10, %v1062_v60, %v831_v18  ;;  %1563 = vmatprep.mubr.msk.bf16.mxu1 %vm1134_vm11, %v1111_v1 }
 0x1cc   : > { %1547 = vmatprep.mubr.msk.bf16.mxu0 %vm1134_vm11, %v1095_v23 }
 0x1cd   : > { %v849_v6 = vpop.permute.xlu1 %848 }
 0x1ce   : > { %v1113_v39 = vsel %vm1081_vm10, %v1080_v22, %v849_v6  ;;  %v833_v48 = vpop.permute.xlu0 %832 }
 0x1cf   : > { %v1097_v61 = vsel %vm1081_vm10, %v1064_v35, %v833_v48  ;;  %1564 = vmatmul.mubr.msk.bf16.gmra.mrb[12].mxu1 %vm1134_vm11, %v1113_v39 }
 0x1d0   : > { %1548 = vmatmul.mubr.msk.bf16.gmra.mrb[12].mxu0 %vm1134_vm11, %v1097_v61 }
 0x1e6   : > { %v1553_v26 = vpop.f32.mrb[0].mxu1 }
 0x1e7   : > { %v1537_v25 = vpop.f32.mrb[0].mxu0  ;;  %1350 = vst.msk [vmem:[%s2718_s23 + $0x90] sm:$0xff] %vm883_vm4, %v1553_v26  ;;  %v1269_v2 = vpop.f32.mrb[1].mxu1 }
 0x1e8   : > { %1334 = vst.msk [vmem:[%s2718_s23 + $0x10] sm:$0xff] %vm883_vm4, %v1537_v25  ;;  %v1205_v11 = vpop.f32.mrb[1].mxu0  ;;  %1348 = vst.msk [vmem:[%s2718_s23 + $0x80] sm:$0xff] %vm883_vm4, %v1269_v2  ;;  %v1554_v33 = vpop.f32.mrb[2].mxu1 }
 0x1e9   : > { %1332 = vst.msk [vmem:[%s2718_s23] sm:$0xff] %vm883_vm4, %v1205_v11  ;;  %v1538_v59 = vpop.f32.mrb[2].mxu0  ;;  %1351 = vst.msk [vmem:[%s2718_s23 + $0x98] sm:$0xff] %vm883_vm4, %v1554_v33  ;;  %v1272_v16 = vpop.f32.mrb[3].mxu1 }
 0x1ea   : > { %1335 = vst.msk [vmem:[%s2718_s23 + $0x18] sm:$0xff] %vm883_vm4, %v1538_v59  ;;  %v1208_v29 = vpop.f32.mrb[3].mxu0  ;;  %1349 = vst.msk [vmem:[%s2718_s23 + $0x88] sm:$0xff] %vm883_vm4, %v1272_v16 }
 0x1eb   : > { %1333 = vst.msk [vmem:[%s2718_s23 + $0x8] sm:$0xff] %vm883_vm4, %v1208_v29 }
 0x226   : > { %v1557_v51 = vpop.f32.mrb[4].mxu1 }
 0x227   : > { %v1541_v52 = vpop.f32.mrb[4].mxu0  ;;  %1354 = vst.msk [vmem:[%s2718_s23 + $0xb0] sm:$0xff] %vm883_vm4, %v1557_v51  ;;  %v1285_v62 = vpop.f32.mrb[5].mxu1 }
 0x228   : > { %1338 = vst.msk [vmem:[%s2718_s23 + $0x30] sm:$0xff] %vm883_vm4, %v1541_v52  ;;  %v1221_v46 = vpop.f32.mrb[5].mxu0  ;;  %1352 = vst.msk [vmem:[%s2718_s23 + $0xa0] sm:$0xff] %vm883_vm4, %v1285_v62  ;;  %v1558_v31 = vpop.f32.mrb[6].mxu1 }
 0x229   : > { %1336 = vst.msk [vmem:[%s2718_s23 + $0x20] sm:$0xff] %vm883_vm4, %v1221_v46  ;;  %v1542_v56 = vpop.f32.mrb[6].mxu0  ;;  %1355 = vst.msk [vmem:[%s2718_s23 + $0xb8] sm:$0xff] %vm883_vm4, %v1558_v31  ;;  %v1288_v0 = vpop.f32.mrb[7].mxu1 }
 0x22a   : > { %1339 = vst.msk [vmem:[%s2718_s23 + $0x38] sm:$0xff] %vm883_vm4, %v1542_v56  ;;  %v1224_v38 = vpop.f32.mrb[7].mxu0  ;;  %1353 = vst.msk [vmem:[%s2718_s23 + $0xa8] sm:$0xff] %vm883_vm4, %v1288_v0 }
 0x22b   : > { %1337 = vst.msk [vmem:[%s2718_s23 + $0x28] sm:$0xff] %vm883_vm4, %v1224_v38 }
 0x266   : > { %v1561_v45 = vpop.f32.mrb[8].mxu1 }
 0x267   : > { %v1545_v58 = vpop.f32.mrb[8].mxu0  ;;  %1358 = vst.msk [vmem:[%s2718_s23 + $0xd0] sm:$0xff] %vm883_vm4, %v1561_v45  ;;  %v1301_v10 = vpop.f32.mrb[9].mxu1 }
 0x268   : > { %1342 = vst.msk [vmem:[%s2718_s23 + $0x50] sm:$0xff] %vm883_vm4, %v1545_v58  ;;  %v1237_v63 = vpop.f32.mrb[9].mxu0  ;;  %1356 = vst.msk [vmem:[%s2718_s23 + $0xc0] sm:$0xff] %vm883_vm4, %v1301_v10  ;;  %v1562_v28 = vpop.f32.mrb[10].mxu1 }
 0x269   : > { %1340 = vst.msk [vmem:[%s2718_s23 + $0x40] sm:$0xff] %vm883_vm4, %v1237_v63  ;;  %v1546_v36 = vpop.f32.mrb[10].mxu0  ;;  %1359 = vst.msk [vmem:[%s2718_s23 + $0xd8] sm:$0xff] %vm883_vm4, %v1562_v28  ;;  %v1304_v7 = vpop.f32.mrb[11].mxu1 }
 0x26a   : > { %1343 = vst.msk [vmem:[%s2718_s23 + $0x58] sm:$0xff] %vm883_vm4, %v1546_v36  ;;  %v1240_v30 = vpop.f32.mrb[11].mxu0  ;;  %1357 = vst.msk [vmem:[%s2718_s23 + $0xc8] sm:$0xff] %vm883_vm4, %v1304_v7 }
 0x26b   : > { %1341 = vst.msk [vmem:[%s2718_s23 + $0x48] sm:$0xff] %vm883_vm4, %v1240_v30 }
 0x2a2   : > { %v1565_v20 = vpop.f32.mrb[12].mxu1 }
 0x2a3   : > { %v1549_v27 = vpop.f32.mrb[12].mxu0  ;;  %1362 = vst.msk [vmem:[%s2718_s23 + $0xf0] sm:$0xff] %vm883_vm4, %v1565_v20  ;;  %v1317_v54 = vpop.f32.mrb[13].mxu1 }
 0x2a4   : > { %1346 = vst.msk [vmem:[%s2718_s23 + $0x70] sm:$0xff] %vm883_vm4, %v1549_v27  ;;  %v1253_v40 = vpop.f32.mrb[13].mxu0  ;;  %1360 = vst.msk [vmem:[%s2718_s23 + $0xe0] sm:$0xff] %vm883_vm4, %v1317_v54  ;;  %v1566_v4 = vpop.f32.mrb[14].mxu1 }
 0x2a5   : > { %1344 = vst.msk [vmem:[%s2718_s23 + $0x60] sm:$0xff] %vm883_vm4, %v1253_v40  ;;  %v1550_v9 = vpop.f32.mrb[14].mxu0  ;;  %1363 = vst.msk [vmem:[%s2718_s23 + $0xf8] sm:$0xff] %vm883_vm4, %v1566_v4  ;;  %v1320_v8 = vpop.f32.mrb[15].mxu1 }
 0x2a6   : > { %1347 = vst.msk [vmem:[%s2718_s23 + $0x78] sm:$0xff] %vm883_vm4, %v1550_v9  ;;  %v1256_v34 = vpop.f32.mrb[15].mxu0  ;;  %1361 = vst.msk [vmem:[%s2718_s23 + $0xe8] sm:$0xff] %vm883_vm4, %v1320_v8 }
 0x2a7   : > { %1345 = vst.msk [vmem:[%s2718_s23 + $0x68] sm:$0xff] %vm883_vm4, %v1256_v34 }
 0x2a8   : > { %1738 = shalt.err (!%p1735_p5)
}
 0x2a9   : > { %s1739_s30 = scalar_lea.hbm %s2779_s12, 4096  ;;  %s1743_s6 = scalar_lea.hbm %s2843_s2, 8192 }
 0x2aa   : > { %p1740_p9 = scmp.ne.s32.totalorder %s2779_s12, %s1739_s30  ;;  %p1744_p3 = scmp.lt.u32.totalorder %s2779_s12, %s2843_s2 }
 0x2ab   : > { %p1745_p7 = scmp.lt.u32.totalorder %s1743_s6, %s1739_s30  ;;  %p1747_p4 = scmp.lt.u32.totalorder %s1739_s30, %s2779_s12 }
 0x2ac   : > { %p1741_p1 = pnand %p1740_p9, %p1936_p10 }
 0x2ad   : > { %p1746_p11 = por %p1745_p7, %p1744_p3 }
 0x2ae   : > { %p1742_p2 = pneg %p1741_p1 }
 0x2af   : > { %p1748_p6 = por %p1747_p4, %p1746_p11 }
 0x2b1   : > { %p1749_p8 = pnand %p1748_p6, %p1742_p2 }
 0x2b3   : > { %1752 = shalt.err (!%p1749_p8)
}
 0x2b4   : > { %s1828_s23 = smov 128  }
 0x2b5   : > { %1584 = dma.vmem_to_hbm [thread:$0]  (%p1936_p10), %s2785_s4, 4096, %s2779_s12, %s1365_s15, %s1828_s23, %s1828_s23, %s1820_s19  }
 0x2b6 PF: > { %s1395_s29 = sand.u32 1, %s1791_s9   ;;  %p2860_p12 = scmp.ne.s32.totalorder %s2851_s20, 0 }
 0x2b7   : > { %p2861_p13 = scmp.ge.s32.totalorder %s1811_s14, 2  ;;  %s1396_s18 = scalar_lea.sflag [#allocation4], %s1395_s29 }
 0x2b9   : > { %p1595_p0 = pnand %p2861_p13, %p2860_p12 }
 0x2bb   : > { %1786 = dma.done.wait (!%p1595_p0), %s1396_s18, 4096  }
 0x2bc   : > { %1788 = vsyncadd (!%p1595_p0), %s1396_s18, 4294963200  ;;  %s19_s14 = sadd.s32 1, %s1811_s14   ;;  %s2862_s9 = smov %s1795_s10 }
 0x2bd   : > { %p16_p5 = scmp.ge.s32.totalorder %s19_s14, 4   ;;  %s2863_s10 = smov %s1799_s11 }
 0x2be   : > { %s2864_s11 = smov %s1945_s28  ;;  %s2865_s12 = smov %s1807_s13 }
 0x2bf   : > { %s2866_s13 = smov %s2868_s25  ;;  %18 = sbr.rel (!%p16_p5) target bundleno = 7 (0x7), region = 78 }
 0x2c6   :  { %1401 = vsyncpa [#allocation3], 1 }
 0x2c7   :  { %1403 = vsyncpa [#allocation3 + $0x1], 1 }
 0x2c8   :  { %1404 = vsyncpa [#allocation6], 1 }
 0x2c9   :  { %1405 = vsyncpa [#allocation4], 1 }
 0x2ca   :  { %1407 = vsyncpa [#allocation4 + $0x1], 1 }

// kernel: double_conv_bilin.4
= control target key start
LH: loop header
LB: loop body
LE: loop exit
PB: predicated region body
PF: predicated region fallthrough
CT: control target
= control target key end

     0   :  { %9 = vsyncpa [#allocation3], 0  ;;  %s3490_s0 = inlined_call_operand.hbm [shape: f32[2,18,18,8], index: 0, kind: input, shape index: {}]   ;;  %s3491_s1 = inlined_call_operand.hbm [shape: bf16[72,24], index: 1, kind: input, shape index: {}]   ;;  %s3492_s2 = inlined_call_operand.hbm [shape: f32[1,8], index: 2, kind: input, shape index: {}]   ;;  %s3493_s3 = inlined_call_operand.hbm [shape: f32[1,8], index: 3, kind: input, shape index: {}]   ;;  %s3494_s4 = inlined_call_operand.hbm [shape: f32[2,256,24], index: 4, kind: output, shape index: {}]  }
   0x1   :  { %11 = vsyncpa [#allocation3 + $0x1], 0 }
   0x2   :  { %12 = vsyncpa [#allocation6], 0 }
   0x3   :  { %13 = vsyncpa [#allocation9], 0 }
   0x4   :  { %14 = vsyncpa [#allocation4], 0 }
   0x5   :  { %16 = vsyncpa [#allocation4 + $0x1], 0  ;;  %s2248_s15 = smov 0   ;;  %s2250_s16 = smov 0  }
   0x6   :  { %s2252_s17 = smov 0   ;;  %s2254_s18 = smov 0  }
   0x7   :  { %s2256_s19 = smov 0   ;;  %s2258_s20 = smov 0  }
   0x8 LB: > { %s1766_s21 = sadd.s32 4294967295, %s2203_s20   ;;  %s1767_s22 = sadd.s32 4294967294, %s2203_s20   ;;  %s2203_s20 = sphi %s2258_s20, %s22_s20   ;;  %s2199_s19 = sphi %s2256_s19, %s3527_s19   ;;  %s2195_s18 = sphi %s2254_s18, %s3526_s18   ;;  %s2191_s17 = sphi %s2252_s17, %s3525_s17   ;;  %s2187_s16 = sphi %s2250_s16, %s3524_s16   ;;  %s2183_s15 = sphi %s2248_s15, %s3523_s15  }
   0x9   : > { %p54_p0 = scmp.ne.s32.totalorder %s2187_s16, %s2183_s15  ;;  %p2282_p1 = scmp.eq.s32.totalorder %s1766_s21, 0 }
   0xa   : > { %p2286_p2 = scmp.eq.s32.totalorder %s1766_s21, 1  ;;  %p149_p3 = scmp.eq.s32.totalorder %s1767_s22, 1 }
   0xb   : > { %s3502_s23 = scalar_select %p2282_p1, 1, 0 }
   0xc   : > { %s3503_s24 = scalar_select %p2286_p2, 1, 0 }
   0xd   : > { %p2292_p4 = por %p2282_p1, %p54_p0  ;;  %p1768_p5 = scmp.ge.s32.totalorder %s2203_s20, 1 }
   0xe   : > { %p2297_p6 = por %p149_p3, %p54_p0  ;;  %p156_p7 = scmp.lt.s32.totalorder %s2203_s20, 3 }
   0xf   : > { %s3504_s25 = scalar_select %p2292_p4, 1, 0 }
  0x10   : > { %s3505_s26 = scalar_select %p2297_p6, 1, 0 }
  0x11   : > { %p2302_p8 = pnand %p1768_p5, %p156_p7  ;;  %s2205_s28 = smov [#allocation5]  }
  0x12   : > { %3506 = sst [smem:[#allocation15_spill]] %s3505_s26  ;;  %s168_s29 = sshll.u32 %s2205_s28, 4  ;;  %s2306_s29 = int_to_ptr.vmem [resolvable:$true] %s168_s29 }
  0x13   : > { %s3507_s27 = scalar_select %p2302_p8, 1, 0 }
  0x14   : > { %p1902_p9 = pneg %p2302_p8  ;;  %s2206_s5 = smov [#allocation7]  }
  0x15   : > { %s182_s6 = sshll.u32 %s2206_s5, 4  ;;  %s2207_s7 = smov [#allocation8]   ;;  %s2317_s6 = int_to_ptr.vmem [resolvable:$true] %s182_s6 }
  0x16   : > { %p2313_p11 = pnand %p1902_p9, %p2282_p1  ;;  %s2319_s8 = sshll.u32 %s2207_s7, 4  ;;  %s194_s8 = int_to_ptr.vmem [resolvable:$true] %s2319_s8 }
  0x17   : > { %s1999_s11 = scalar_lea.hbm %s3491_s1, 576 }
  0x18   : > { %p2000_p12 = scmp.ne.s32.totalorder %s3491_s1, %s1999_s11  ;;  %p2329_p13 = pneg %p2313_p11 }
  0x19   : > { %p2006_p5 = scmp.lt.u32.totalorder %s1999_s11, %s3491_s1 }
  0x1a   : > { %p2002_p0 = pnand %p2329_p13, %p2000_p12 }
  0x1c   : > { %p2003_p3 = pneg %p2002_p0 }
  0x1e   : > { %p2008_p7 = pnand %p2006_p5, %p2003_p3 }
  0x20   : > { %2011 = shalt.err (!%p2008_p7)
}
  0x21   : > { %s2012_s28 = scalar_lea.vmem %s2306_s29, 576  ;;  %p2020_p1 = scmp.lt.s32.totalorder %s2306_s29, %s2306_s29 }
  0x22   : > { %p2013_p9 = scmp.ne.s32.totalorder %s2306_s29, %s2012_s28  ;;  %p2021_p4 = scmp.lt.s32.totalorder %s2012_s28, %s2012_s28 }
  0x24   : > { %p2015_p10 = pnand %p2013_p9, %p2329_p13  ;;  %p2022_p12 = por %p2021_p4, %p2020_p1 }
  0x26   : > { %p2016_p6 = pneg %p2015_p10 }
  0x28   : > { %p2023_p0 = pnand %p2022_p12, %p2016_p6 }
  0x2a   : > { %2026 = shalt.err (!%p2023_p0)
}
  0x2b   : > { %s2208_s5 = smov 64   ;;  %s2209_s7 = smov 4  }
  0x2c   : > { %1905 = dma.hbm_to_vmem [thread:$0]  (!%p2313_p11), %s3491_s1, 576, %s2306_s29, [#allocation6], %s2208_s5, %s2208_s5, %s2209_s7  }
  0x2d   : > { %s2027_s13 = scalar_lea.hbm %s3492_s2, 16 }
  0x2e   : > { %p2028_p1 = scmp.ne.s32.totalorder %s3492_s2, %s2027_s13  ;;  %p2034_p10 = scmp.lt.u32.totalorder %s2027_s13, %s3492_s2 }
  0x30   : > { %p2030_p4 = pnand %p2028_p1, %p2329_p13 }
  0x32   : > { %p2031_p6 = pneg %p2030_p4 }
  0x34   : > { %p2036_p3 = pnand %p2034_p10, %p2031_p6 }
  0x36   : > { %2039 = shalt.err (!%p2036_p3)
}
  0x37   : > { %s2040_s29 = scalar_lea.vmem %s2317_s6, 16  ;;  %s2047_s5 = scalar_lea.vmem %s2317_s6, 32 }
  0x38   : > { %p2041_p5 = scmp.ne.s32.totalorder %s2317_s6, %s2040_s29  ;;  %p2048_p12 = scmp.lt.s32.totalorder %s2317_s6, %s2317_s6 }
  0x39   : > { %p2049_p0 = scmp.lt.s32.totalorder %s2047_s5, %s2040_s29 }
  0x3a   : > { %p2043_p7 = pnand %p2041_p5, %p2329_p13 }
  0x3b   : > { %p2050_p1 = por %p2049_p0, %p2048_p12 }
  0x3c   : > { %p2044_p9 = pneg %p2043_p7 }
  0x3e   : > { %p2051_p4 = pnand %p2050_p1, %p2044_p9 }
  0x40   : > { %2054 = shalt.err (!%p2051_p4)
}
  0x41   : > { %1908 = dma.hbm_to_vmem [thread:$0]  (!%p2313_p11), %s3492_s2, 16, %s2317_s6, [#allocation6]  }
  0x42   : > { %s2055_s11 = scalar_lea.hbm %s3493_s3, 16 }
  0x43   : > { %p2056_p6 = scmp.ne.s32.totalorder %s3493_s3, %s2055_s11  ;;  %p2062_p5 = scmp.lt.u32.totalorder %s2055_s11, %s3493_s3 }
  0x45   : > { %p2058_p10 = pnand %p2056_p6, %p2329_p13 }
  0x47   : > { %p2059_p3 = pneg %p2058_p10 }
  0x49   : > { %p2064_p7 = pnand %p2062_p5, %p2059_p3 }
  0x4b   : > { %2067 = shalt.err (!%p2064_p7)
}
  0x4c   : > { %s2068_s28 = scalar_lea.vmem %s194_s8, 16  ;;  %s2075_s6 = scalar_lea.vmem %s194_s8, 32 }
  0x4d   : > { %p2069_p9 = scmp.ne.s32.totalorder %s194_s8, %s2068_s28  ;;  %p2076_p1 = scmp.lt.s32.totalorder %s194_s8, %s194_s8 }
  0x4e   : > { %p2077_p4 = scmp.lt.s32.totalorder %s2075_s6, %s2068_s28 }
  0x4f   : > { %p2071_p12 = pnand %p2069_p9, %p2329_p13 }
  0x50   : > { %p2078_p8 = por %p2077_p4, %p2076_p1 }
  0x51   : > { %p2072_p0 = pneg %p2071_p12 }
  0x53   : > { %p2079_p2 = pnand %p2078_p8, %p2072_p0 }
  0x55   : > { %2082 = shalt.err (!%p2079_p2)
}
  0x56   : > { %1911 = dma.hbm_to_vmem [thread:$0]  (!%p2313_p11), %s3493_s3, 16, %s194_s8, [#allocation9]  }
  0x57   : > { %s41_s14 = sadd.s32 1, %s2191_s17  ;;  %s34_s26 = sadd.s32 1, %s2199_s19 }
  0x58   : > { %p48_p2 = scmp.ne.s32.totalorder %s2191_s17, %s2187_s16  ;;  %p36_p8 = scmp.ge.s32.totalorder %s34_s26, 2 }
  0x59   : > { %p49_p13 = scmp.eq.s32.totalorder %s2203_s20, 0  ;;  %p3510_p6 = scmp.ne.s32.totalorder %s3503_s24, 0 }
  0x5a   : > { %p1923_p3 = scmp.lt.s32.totalorder %s2203_s20, 2  ;;  %s3529_s26 = smov (%p36_p8, %s34_s26), 0 }
  0x5b   : > { %p2400_p10 = por %p3510_p6, %p48_p2  ;;  %p50_p5 = por %p49_p13, %p48_p2 }
  0x5c   : > { %s204_s7 = sand.u32 1, %s2191_s17   ;;  %s38_s9 = ssub.s32 %s2199_s19, %s3529_s26 }
  0x5d   : > { %p39_p7 = scmp.eq.s32.totalorder %s38_s9, 0  ;;  %s1883_s8 = smul.u32 432, %s204_s7 }
  0x5e   : > { %s1884_s10 = smul.u32 6912, %s2199_s19  ;;  %p2411_p11 = pnand %p1923_p3, %p50_p5 }
  0x5f   : > { %s2416_s24 = scalar_select %p39_p7, %s2191_s17, %s41_s14  }
  0x60   : > { %s2421_s21 = scalar_lea.hbm %s3490_s0, %s1884_s10  ;;  %s208_s22 = scalar_lea.vmem [#allocation2], %s1883_s8 }
  0x61   : > { %s215_s28 = sshll.u32 %s208_s22, 4  ;;  %s2425_s6 = scalar_lea.sflag [#allocation3], %s204_s7  ;;  %s2423_s28 = int_to_ptr.vmem [resolvable:$true] %s215_s28 }
  0x62   : > { %s2083_s29 = scalar_lea.hbm %s2421_s21, 6912  ;;  %p2085_p12 = pneg %p2411_p11 }
  0x63   : > { %p2084_p9 = scmp.ne.s32.totalorder %s2421_s21, %s2083_s29  ;;  %s2088_s9 = scalar_lea.hbm %s3490_s0, 13824 }
  0x64   : > { %p2089_p4 = scmp.lt.u32.totalorder %s2421_s21, %s3490_s0  ;;  %p2090_p2 = scmp.lt.u32.totalorder %s2088_s9, %s2083_s29 }
  0x65   : > { %p2086_p0 = pnand %p2085_p12, %p2084_p9  ;;  %p2092_p13 = scmp.lt.u32.totalorder %s2083_s29, %s2421_s21 }
  0x66   : > { %p2091_p8 = por %p2090_p2, %p2089_p4 }
  0x67   : > { %p2087_p1 = pneg %p2086_p0 }
  0x68   : > { %p2093_p6 = por %p2092_p13, %p2091_p8 }
  0x6a   : > { %p2094_p3 = pnand %p2093_p6, %p2087_p1 }
  0x6c   : > { %2097 = shalt.err (!%p2094_p3)
}
  0x6d   : > { %s2098_s7 = scalar_lea.vmem %s2423_s28, 6912  ;;  %s2210_s8 = smov [#allocation2]  }
  0x6e   : > { %p2099_p5 = scmp.ne.s32.totalorder %s2423_s28, %s2098_s7  ;;  %s2103_s13 = sshll.u32 %s2210_s8, 4  ;;  %s2104_s13 = int_to_ptr.vmem [resolvable:$false] %s2103_s13 }
  0x6f   : > { %s2105_s22 = scalar_lea.vmem %s2104_s13, 13824  ;;  %p2106_p0 = scmp.lt.s32.totalorder %s2423_s28, %s2104_s13 }
  0x70   : > { %p2101_p7 = pnand %p2099_p5, %p2085_p12  ;;  %p2107_p4 = scmp.lt.s32.totalorder %s2105_s22, %s2098_s7 }
  0x72   : > { %p2102_p9 = pneg %p2101_p7  ;;  %p2108_p2 = por %p2107_p4, %p2106_p0 }
  0x74   : > { %p2109_p8 = pnand %p2108_p2, %p2102_p9 }
  0x76   : > { %2112 = shalt.err (!%p2109_p8)
}
  0x77   : > { %s2211_s29 = smov 128   ;;  %s2212_s5 = smov 8  }
  0x78   : > { %1915 = dma.hbm_to_vmem [thread:$0]  (!%p2411_p11), %s2421_s21, 6912, %s2423_s28, %s2425_s6, %s2211_s29, %s2211_s29, %s2212_s5  }
  0x79   : > { %p3513_p12 = scmp.ne.s32.totalorder %s3507_s27, 0 }
  0x7b   : > { %227 = sbr.rel (%p3513_p12) target bundleno = 752 (0x2f0), region = 36 }
  0x82   : > { %s2456_s14 = sand.u32 1, %s2187_s16   ;;  %p3514_p1 = scmp.ne.s32.totalorder %s3504_s25, 0 }
  0x83   : > { %s1885_s9 = smul.u32 432, %s2456_s14  ;;  %s230_s10 = scalar_lea.sflag [#allocation3], %s2456_s14 }
  0x85   : > { %s2460_s12 = scalar_lea.vmem [#allocation2], %s1885_s9 }
  0x86   : > { %2166 = dma.done.wait (%p3514_p1), %s230_s10, 6912  }
  0x87   : > { %2168 = vsyncadd (%p3514_p1), %s230_s10, 4294960384  ;;  %p3515_p11 = scmp.ne.s32.totalorder %s3502_s23, 0 }
  0x89   : > { %2170 = dma.done.wait (%p3515_p11), [#allocation6], 592  }
  0x8a   : > { %2172 = vsyncadd (%p3515_p11), [#allocation6], 4294966704 }
  0x8b   : > { %2174 = dma.done.wait (%p3515_p11), [#allocation9], 16  }
  0x8c   : > { %2176 = vsyncadd (%p3515_p11), [#allocation9], 4294967280  ;;  %v302_v0 = vld [vmem:[%s2460_s12 + $0xd8] sm:$0xff]  ;;  %v303_v1 = vld [vmem:[%s2460_s12 + $0xe0] sm:$0xff]  ;;  %vm798_vm0 = vcmask 1046528   ;;  %s2213_s23 = smov 24  }
  0x8d   : > { %v2476_v2 = vld [vmem:[#allocation7] ss:$0 sm:$0xff]  ;;  %v2480_v5 = vld [vmem:[#allocation8] ss:$0 sm:$0xff]  ;;  %v278_v6 = vld [vmem:[%s2460_s12 + $0x18] sm:$0xff]  ;;  %s2214_s25 = smov 16  }
  0x8e   : > { %v363_v3 = vmul.f32 %v2476_v2, %v302_v0  ;;  %v364_v4 = vmul.f32 %v2476_v2, %v303_v1  ;;  %v279_v7 = vld [vmem:[%s2460_s12 + $0x20] sm:$0xff]  ;;  %v339_v8 = vmul.f32 %v2476_v2, %v278_v6  ;;  %v305_v10 = vld [vmem:[%s2460_s12 + $0xf0] sm:$0xff]  ;;  %v306_v11 = vld [vmem:[%s2460_s12 + $0xf8] sm:$0xff]  ;;  %vm541_vm1 = vsmask.f32 7424  ;;  %s2215_s27 = smov 8  }
  0x8f   : > { %v340_v9 = vmul.f32 %v2476_v2, %v279_v7  ;;  %v281_v12 = vld [vmem:[%s2460_s12 + $0x30] sm:$0xff]  ;;  %v366_v15 = vmul.f32 %v2476_v2, %v305_v10  ;;  %v367_v16 = vmul.f32 %v2476_v2, %v306_v11  ;;  %v282_v17 = vld [vmem:[%s2460_s12 + $0x38] sm:$0xff]  ;;  %v299_v22 = vld [vmem:[%s2460_s12 + $0xc0] sm:$0xff]  ;;  %s2216_s11 = smov 32   ;;  %s2217_s21 = smov 40   ;;  %vm1438_vm2 = vcmask 1043456  }
  0x90   : > { %v424_v13 = vadd.f32 %v2480_v5, %v363_v3  ;;  %v425_v14 = vadd.f32 %v2480_v5, %v364_v4  ;;  %v400_v18 = vadd.f32 %v2480_v5, %v339_v8  ;;  %v342_v20 = vmul.f32 %v2476_v2, %v281_v12  ;;  %v300_v27 = vld [vmem:[%s2460_s12 + $0xc8] sm:$0xff]  ;;  %v301_v32 = vld [vmem:[%s2460_s12 + $0xd0] sm:$0x3]  ;;  %v275_v33 = vld [vmem:[%s2460_s12] sm:$0xff]  ;;  %s2218_s28 = smov 48   ;;  %s2219_s6 = smov 56  }
  0x91   : > { %v401_v19 = vadd.f32 %v2480_v5, %v340_v9  ;;  %v343_v21 = vmul.f32 %v2476_v2, %v282_v17  ;;  %v427_v25 = vadd.f32 %v2480_v5, %v366_v15  ;;  %v428_v26 = vadd.f32 %v2480_v5, %v367_v16  ;;  %v276_v38 = vld [vmem:[%s2460_s12 + $0x8] sm:$0xff]  ;;  %v277_v39 = vld [vmem:[%s2460_s12 + $0x10] sm:$0x3]  ;;  %s2220_s7 = smov 64   ;;  %s1778_s8 = sshll.u32 %s2456_s14, 8 }
  0x92   : > { %v478_v23 = vmax.f32 %v424_v13, 0.0  ;;  %v479_v24 = vmax.f32 %v425_v14, 0.0  ;;  %v454_v28 = vmax.f32 %v400_v18, 0.0  ;;  %v403_v30 = vadd.f32 %v2480_v5, %v342_v20  ;;  %v304_v44 = vld [vmem:[%s2460_s12 + $0xe8] sm:$0x3]  ;;  %s3367_s13 = scalar_lea.vmem [#allocation10], %s1778_s8 }
  0x93   : > { %v455_v29 = vmax.f32 %v401_v19, 0.0  ;;  %v404_v31 = vadd.f32 %v2480_v5, %v343_v21  ;;  %v481_v35 = vmax.f32 %v427_v25, 0.0  ;;  %v482_v36 = vmax.f32 %v428_v26, 0.0  ;;  %v280_v53 = vld [vmem:[%s2460_s12 + $0x28] sm:$0x3]  ;;  %s1807_s22 = sshll.u32 %s2195_s18, 12 }
  0x94   : > { %v2506_v34 = vpack.c.bf16 %v479_v24, %v478_v23  ;;  %v360_v37 = vmul.f32 %v2476_v2, %v299_v22  ;;  %v457_v41 = vmax.f32 %v403_v30, 0.0  ;;  %v361_v43 = vmul.f32 %v2476_v2, %v300_v27  ;;  %s1651_s29 = sshll.u32 %s3367_s13, 4  ;;  %s3428_s18 = scalar_lea.hbm %s3494_s4, %s1807_s22  ;;  %s3434_s29 = int_to_ptr.vmem [resolvable:$true] %s1651_s29 }
  0x95   : > { %v2511_v40 = vpack.c.bf16 %v455_v29, %v454_v28  ;;  %v458_v42 = vmax.f32 %v404_v31, 0.0  ;;  %v2517_v45 = vpack.c.bf16 %v482_v36, %v481_v35  ;;  %v362_v46 = vmul.f32 %v2476_v2, %v301_v32  ;;  %s1636_s10 = scalar_lea.sflag [#allocation4], %s2456_s14 }
  0x96   : > { %896 = vrot.lane.b32.xlu1 %v2506_v34, %s2213_s23  ;;  %v421_v47 = vadd.f32 %v2480_v5, %v360_v37  ;;  %v336_v48 = vmul.f32 %v2476_v2, %v275_v33  ;;  %v422_v50 = vadd.f32 %v2480_v5, %v361_v43  ;;  %v337_v51 = vmul.f32 %v2476_v2, %v276_v38  ;;  %v307_v37 = vld [vmem:[%s2460_s12 + $0x100] sm:$0x3] }
  0x97   : > { %880 = vrot.lane.b32.xlu0 %v2511_v40, %s2213_s23  ;;  %v2524_v49 = vpack.c.bf16 %v458_v42, %v457_v41  ;;  %v338_v52 = vmul.f32 %v2476_v2, %v277_v39  ;;  %v423_v54 = vadd.f32 %v2480_v5, %v362_v46  ;;  %v365_v57 = vmul.f32 %v2476_v2, %v304_v44 }
  0x98   : > { %v475_v55 = vmax.f32 %v421_v47, 0.0  ;;  %v397_v56 = vadd.f32 %v2480_v5, %v336_v48  ;;  %v476_v58 = vmax.f32 %v422_v50, 0.0  ;;  %v398_v59 = vadd.f32 %v2480_v5, %v337_v51  ;;  %v283_v51 = vld [vmem:[%s2460_s12 + $0x40] sm:$0x3] }
  0x99   : > { %v399_v60 = vadd.f32 %v2480_v5, %v338_v52  ;;  %v826_v61 = vrot.slane %v2506_v34, 1  ;;  %v477_v62 = vmax.f32 %v423_v54, 0.0  ;;  %v426_v0 = vadd.f32 %v2480_v5, %v365_v57 }
  0x9a   : > { %898 = vrot.lane.b32.xlu1 %v2517_v45, %s2213_s23  ;;  %v451_v63 = vmax.f32 %v397_v56, 0.0  ;;  %v341_v1 = vmul.f32 %v2476_v2, %v280_v53  ;;  %v2542_v3 = vpack.c.bf16 %v476_v58, %v475_v55  ;;  %v452_v4 = vmax.f32 %v398_v59, 0.0 }
  0x9b   : > { %882 = vrot.lane.b32.xlu0 %v2524_v49, %s2213_s23  ;;  %v453_v6 = vmax.f32 %v399_v60, 0.0  ;;  %v802_v7 = vrot.slane %v2511_v40, 1  ;;  %v522_v8 = vpack.c.bf16 %v477_v62, %v477_v62  ;;  %v480_v9 = vmax.f32 %v426_v0, 0.0 }
  0x9c   : > { %v402_v10 = vadd.f32 %v2480_v5, %v341_v1  ;;  %v555_v11 = vshrl.u32 %v2511_v40, 16  ;;  %v823_v12 = vrot.slane %v2542_v3, 1  ;;  %v2548_v13 = vpack.c.bf16 %v452_v4, %v451_v63 }
  0x9d   : > { %v506_v14 = vpack.c.bf16 %v453_v6, %v453_v6  ;;  %v557_v15 = vshll.u32 %v2511_v40, 16  ;;  %v824_v16 = vrot.slane %v522_v8, 1  ;;  %v524_v17 = vpack.c.bf16 %v480_v9, %v480_v9 }
  0x9e   : > { %v456_v18 = vmax.f32 %v402_v10, 0.0  ;;  %v651_v19 = vshrl.u32 %v2506_v34, 16  ;;  %v799_v20 = vrot.slane %v2548_v13, 1  ;;  %v543_v23 = vshrl.u32 %v2548_v13, 16  ;;  %v309_v10 = vld [vmem:[%s2460_s12 + $0x110] sm:$0xff] }
  0x9f   : > { %v800_v21 = vrot.slane %v506_v14, 1  ;;  %v559_v22 = vrot.slane %v557_v15, 1  ;;  %v2555_v24 = vsel %vm798_vm0, %v823_v12, %v824_v16  ;;  %v827_v25 = vrot.slane %v524_v17, 1  ;;  %v284_v15 = vld [vmem:[%s2460_s12 + $0x48] sm:$0xff]  ;;  %v285_v16 = vld [vmem:[%s2460_s12 + $0x50] sm:$0xff] }
  0xa0   : > { %v508_v26 = vpack.c.bf16 %v456_v18, %v456_v18  ;;  %v545_v27 = vshll.u32 %v2548_v13, 16  ;;  %863 = vrot.lane.b32.xlu1 %v2555_v24, %s2214_s25  ;;  %v550_v30 = vshll.u32 %v506_v14, 16  ;;  %v653_v31 = vshll.u32 %v2506_v34, 16 }
  0xa1   : > { %v801_v28 = vsel %vm798_vm0, %v799_v20, %v800_v21  ;;  %v560_v29 = vor.u32 %v559_v22, %v555_v11  ;;  %v2564_v32 = vsel %vm798_vm0, %v826_v61, %v827_v25  ;;  %v658_v41 = vshll.u32 %v524_v17, 16 }
  0xa2   : > { %847 = vrot.lane.b32.xlu0 %v801_v28, %s2214_s25  ;;  %v803_v33 = vrot.slane %v508_v26, 1  ;;  %v562_v35 = vshll.u32 %v508_v26, 16  ;;  %v547_v36 = vrot.slane %v545_v27, 1  ;;  %v552_v38 = vrot.slane %v550_v30, 1  ;;  %v310_v26 = vld [vmem:[%s2460_s12 + $0x118] sm:$0x3] }
  0xa3   : > { %v655_v39 = vrot.slane %v653_v31, 1  ;;  %v639_v42 = vshrl.u32 %v2542_v3, 16  ;;  %v641_v47 = vshll.u32 %v2542_v3, 16  ;;  %v646_v48 = vshll.u32 %v522_v8, 16 }
  0xa4   : > { %v2569_v43 = vsel %vm798_vm0, %v802_v7, %v803_v33  ;;  %v564_v44 = vrot.slane %v562_v35, 1  ;;  %v548_v46 = vor.u32 %v547_v36, %v543_v23  ;;  %865 = vrot.lane.b32.xlu1 %v2564_v32, %s2214_s25  ;;  %v368_v50 = vmul.f32 %v2476_v2, %v307_v37  ;;  %v308_v7 = vld [vmem:[%s2460_s12 + $0x108] sm:$0xff] }
  0xa5   : > { %v656_v53 = vor.u32 %v655_v39, %v651_v19  ;;  %v660_v54 = vrot.slane %v658_v41, 1  ;;  %v643_v55 = vrot.slane %v641_v47, 1  ;;  %v648_v57 = vrot.slane %v646_v48, 1 }
  0xa6   : > { %849 = vrot.lane.b32.xlu0 %v2569_v43, %s2214_s25  ;;  %v565_v52 = vsel %vm541_vm1, %v560_v29, %v564_v44  ;;  %v553_v56 = vsel %vm541_vm1, %v548_v46, %v552_v38  ;;  %v429_v58 = vadd.f32 %v2480_v5, %v368_v50  ;;  %v665_v59 = vshll.u32 %v2517_v45, 16  ;;  %v286_v29 = vld [vmem:[%s2460_s12 + $0x58] sm:$0x3] }
  0xa7   : > { %v644_v60 = vor.u32 %v643_v55, %v639_v42  ;;  %v344_v61 = vmul.f32 %v2476_v2, %v283_v51  ;;  %v569_v62 = vshll.u32 %v2524_v49, 16  ;;  %v2587_v0 = vsel %vm541_vm1, %v656_v53, %v660_v54  ;;  %v1992_v55 = vld [vmem:[#allocation5] sm:$0xff]  }
  0xa8   : > { %736 = vrot.lane.b32.xlu1 %v565_v52, %s2215_s27  ;;  %v483_v63 = vmax.f32 %v429_v58, 0.0  ;;  %v663_v1 = vshrl.u32 %v2517_v45, 16  ;;  %v667_v4 = vrot.slane %v665_v59, 1  ;;  %v567_v12 = vshrl.u32 %v2524_v49, 16  ;;  %1829 = vmatprep.subr.bf16.mxu0 %v1992_v55 }
  0xa9   : > { %v405_v6 = vadd.f32 %v2480_v5, %v344_v61  ;;  %v2593_v8 = vsel %vm541_vm1, %v644_v60, %v648_v57  ;;  %v571_v14 = vrot.slane %v569_v62, 1  ;;  %v369_v18 = vmul.f32 %v2476_v2, %v308_v7  ;;  %1871 = vmatprep.subr.bf16.mxu1 %v1992_v55  ;;  %1830 = vmatpush3.bf16.msra.mxu0 %v1992_v55  ;;  %v1993_v62 = vld [vmem:[#allocation5 + $0x8] sm:$0xff]  }
  0xaa   : > { %734 = vrot.lane.b32.xlu0 %v553_v56, %s2215_s27  ;;  %v526_v9 = vpack.c.bf16 %v483_v63, %v483_v63  ;;  %v668_v19 = vor.u32 %v667_v4, %v663_v1  ;;  %v370_v21 = vmul.f32 %v2476_v2, %v309_v10  ;;  %v345_v23 = vmul.f32 %v2476_v2, %v284_v15  ;;  %v1995_v15 = vld [vmem:[#allocation5 + $0x18] sm:$0xff]  }
  0xab   : > { %v459_v11 = vmax.f32 %v405_v6, 0.0  ;;  %v346_v25 = vmul.f32 %v2476_v2, %v285_v16  ;;  %v572_v27 = vor.u32 %v571_v14, %v567_v12  ;;  %v430_v30 = vadd.f32 %v2480_v5, %v369_v18  ;;  %1876 = vmatpush3.bf16.msra.mxu1 %v1992_v55  ;;  %1831 = vmatprep.subr.bf16.mxu0 %v1993_v62  ;;  %v1994_v6 = vld [vmem:[#allocation5 + $0x10] sm:$0xff]  }
  0xac   : > { %752 = vrot.lane.b32.xlu1 %v2587_v0, %s2215_s27  ;;  %v670_v17 = vshll.u32 %v526_v9, 16  ;;  %v431_v35 = vadd.f32 %v2480_v5, %v370_v21  ;;  %v371_v36 = vmul.f32 %v2476_v2, %v310_v26  ;;  %v406_v37 = vadd.f32 %v2480_v5, %v345_v23  ;;  %1872 = vmatprep.subr.bf16.mxu1 %v1993_v62 }
  0xad   : > { %v510_v20 = vpack.c.bf16 %v459_v11, %v459_v11  ;;  %v407_v38 = vadd.f32 %v2480_v5, %v346_v25  ;;  %v347_v39 = vmul.f32 %v2476_v2, %v286_v29  ;;  %v829_v42 = vrot.slane %v2517_v45, 1  ;;  %1832 = vmatpush3.bf16.msra.mxu0 %v1993_v62  ;;  %v287_v29 = vld [vmem:[%s2460_s12 + $0x60] sm:$0xff] }
  0xae   : > { %750 = vrot.lane.b32.xlu0 %v2593_v8, %s2215_s27  ;;  %v672_v22 = vrot.slane %v670_v17, 1  ;;  %v805_v44 = vrot.slane %v2524_v49, 1  ;;  %v830_v46 = vrot.slane %v526_v9, 1  ;;  %v484_v47 = vmax.f32 %v430_v30, 0.0  ;;  %1833 = vmatprep.subr.bf16.mxu0 %v1994_v6  ;;  %v288_v30 = vld [vmem:[%s2460_s12 + $0x68] sm:$0xff] }
  0xaf   : > { %v574_v28 = vshll.u32 %v510_v20, 16  ;;  %v485_v48 = vmax.f32 %v431_v35, 0.0  ;;  %v432_v50 = vadd.f32 %v2480_v5, %v371_v36  ;;  %v806_v51 = vrot.slane %v510_v20, 1  ;;  %1877 = vmatpush3.bf16.msra.mxu1 %v1993_v62 }
  0xb0   : > { %940 = vrot.lane.b32.xlu1 %v2587_v0, %s2216_s11  ;;  %v2614_v31 = vsel %vm541_vm1, %v668_v19, %v672_v22  ;;  %v461_v53 = vmax.f32 %v407_v38, 0.0  ;;  %v408_v54 = vadd.f32 %v2480_v5, %v347_v39  ;;  %v2637_v56 = vsel %vm798_vm0, %v829_v42, %v830_v46  ;;  %1873 = vmatprep.subr.bf16.mxu1 %v1994_v6  ;;  %v313_v42 = vld [vmem:[%s2460_s12 + $0x130] sm:$0x3] }
  0xb1   : > { %v576_v33 = vrot.slane %v574_v28, 1  ;;  %v2639_v57 = vpack.c.bf16 %v485_v48, %v484_v47  ;;  %v486_v58 = vmax.f32 %v432_v50, 0.0  ;;  %v2642_v59 = vsel %vm798_vm0, %v805_v44, %v806_v51  ;;  %1834 = vmatpush3.bf16.msra.mxu0 %v1994_v6  ;;  %v312_v28 = vld [vmem:[%s2460_s12 + $0x128] sm:$0xff]  ;;  %v289_v44 = vld [vmem:[%s2460_s12 + $0x70] sm:$0x3] }
  0xb2   : > { %924 = vrot.lane.b32.xlu0 %v565_v52, %s2216_s11  ;;  %v460_v52 = vmax.f32 %v406_v37, 0.0  ;;  %v462_v61 = vmax.f32 %v408_v54, 0.0  ;;  %1835 = vmatprep.subr.bf16.mxu0 %v1995_v15  ;;  %v373_v36 = vmul.f32 %v2476_v2, %v312_v28  ;;  %v348_v38 = vmul.f32 %v2476_v2, %v287_v29  ;;  %v1996_v47 = vld [vmem:[#allocation5 + $0x20] ss:$0 sps:$4 sm:$0xff]  }
  0xb3   : > { %v2622_v41 = vsel %vm541_vm1, %v572_v27, %v576_v33  ;;  %v677_v63 = vshll.u32 %v2639_v57, 16  ;;  %v675_v7 = vshrl.u32 %v2639_v57, 16  ;;  %1878 = vmatpush3.bf16.msra.mxu1 %v1994_v6  ;;  %v832_v22 = vrot.slane %v2639_v57, 1  ;;  %v311_v27 = vld [vmem:[%s2460_s12 + $0x120] sm:$0xff] }
  0xb4   : > { %942 = vrot.lane.b32.xlu1 %v2614_v31, %s2216_s11  ;;  %v2644_v60 = vpack.c.bf16 %v461_v53, %v460_v52  ;;  %v512_v1 = vpack.c.bf16 %v462_v61, %v462_v61  ;;  %1874 = vmatprep.subr.bf16.mxu1 %v1995_v15  ;;  %v372_v35 = vmul.f32 %v2476_v2, %v311_v27  ;;  %v1440_v55 = vsel %vm1438_vm2, %v1996_v47, 0 }
  0xb5   : > { %v679_v9 = vrot.slane %v677_v63, 1  ;;  %1836 = vmatpush3.bf16.msra.mxu0 %v1995_v15  ;;  %v349_v39 = vmul.f32 %v2476_v2, %v288_v30  ;;  %v374_v46 = vmul.f32 %v2476_v2, %v313_v42  ;;  %v409_v48 = vadd.f32 %v2480_v5, %v348_v38 }
  0xb6   : > { %926 = vrot.lane.b32.xlu0 %v2622_v41, %s2216_s11  ;;  %v581_v4 = vshll.u32 %v2644_v60, 16  ;;  %v579_v11 = vshrl.u32 %v2644_v60, 16  ;;  %v586_v14 = vshll.u32 %v512_v1, 16  ;;  %v808_v25 = vrot.slane %v2644_v60, 1  ;;  %1881 = vmatprep.subr.msk.bf16.mxu0 %vm1438_vm2, %v1996_v47 }
  0xb7   : > { %v680_v16 = vor.u32 %v679_v9, %v675_v7  ;;  %1879 = vmatpush3.bf16.msra.mxu1 %v1995_v15  ;;  %v809_v26 = vrot.slane %v512_v1, 1  ;;  %v410_v50 = vadd.f32 %v2480_v5, %v349_v39  ;;  %v350_v51 = vmul.f32 %v2476_v2, %v289_v44 }
  0xb8   : > { %976 = vrot.lane.b32.xlu1 %v2564_v32, %s2217_s21  ;;  %v583_v12 = vrot.slane %v581_v4, 1  ;;  %v588_v19 = vrot.slane %v586_v14, 1  ;;  %v435_v54 = vadd.f32 %v2480_v5, %v374_v46  ;;  %1882 = vmatprep.subr.msk.bf16.mxu1 %vm1438_vm2, %v1996_v47  ;;  %vm1105_vm3 = vcmask 64512  }
  0xb9   : > { %v2696_v37 = vsel %vm798_vm0, %v808_v25, %v809_v26  ;;  %v464_v61 = vmax.f32 %v410_v50, 0.0  ;;  %v411_v62 = vadd.f32 %v2480_v5, %v350_v51  ;;  %1838 = vmatpush3.bf16.msra.mxu0 %v1440_v55  ;;  %vm1138_vm4 = vcmask 130048  }
  0xba   : > { %960 = vrot.lane.b32.xlu0 %v2569_v43, %s2217_s21  ;;  %v528_v43 = vpack.c.bf16 %v486_v58, %v486_v58  ;;  %v584_v18 = vor.u32 %v583_v12, %v579_v11  ;;  %v463_v58 = vmax.f32 %v409_v48, 0.0  ;;  %v489_v63 = vmax.f32 %v435_v54, 0.0 }
  0xbb   : > { %1880 = vmatpush3.bf16.msra.mxu1 %v1440_v55  ;;  %v465_v4 = vmax.f32 %v411_v62, 0.0  ;;  %vm1171_vm5 = vcmask 195584   ;;  %vm1204_vm6 = vcmask 261120   ;;  %vm1237_vm7 = vcmask 326656  }
  0xbc   : > { %978 = vrot.lane.b32.xlu1 %v2637_v56, %s2217_s21  ;;  %v682_v10 = vshll.u32 %v528_v43, 16  ;;  %v2670_v21 = vsel %vm541_vm1, %v584_v18, %v588_v19  ;;  %v833_v23 = vrot.slane %v528_v43, 1  ;;  %v2724_v1 = vpack.c.bf16 %v464_v61, %v463_v58  ;;  %v290_v18 = vld [vmem:[%s2460_s12 + $0x78] sm:$0xff]  ;;  %v291_v19 = vld [vmem:[%s2460_s12 + $0x80] sm:$0xff] }
  0xbd   : > { %v351_v29 = vmul.f32 %v2476_v2, %v290_v18  ;;  %v352_v30 = vmul.f32 %v2476_v2, %v291_v19  ;;  %vm1270_vm8 = vcmask 392192   ;;  %vm1303_vm9 = vcmask 457728  }
  0xbe   : > { %962 = vrot.lane.b32.xlu0 %v2642_v59, %s2217_s21  ;;  %v684_v17 = vrot.slane %v682_v10, 1  ;;  %v2691_v33 = vsel %vm798_vm0, %v832_v22, %v833_v23  ;;  %v593_v7 = vshll.u32 %v2724_v1, 16  ;;  %v591_v12 = vshrl.u32 %v2724_v1, 16 }
  0xbf   : > { %v413_v46 = vadd.f32 %v2480_v5, %v352_v30  ;;  %v811_v47 = vrot.slane %v2724_v1, 1  ;;  %vm1336_vm10 = vcmask 523264   ;;  %vm1405_vm11 = vcmask 588800  }
  0xc0   : > { %1009 = vrot.lane.b32.xlu1 %v2517_v45, %s2218_s28  ;;  %v2667_v20 = vsel %vm541_vm1, %v680_v16, %v684_v17  ;;  %v595_v14 = vrot.slane %v593_v7, 1  ;;  %v314_v16 = vld [vmem:[%s2460_s12 + $0x138] sm:$0xff]  ;;  %v315_v17 = vld [vmem:[%s2460_s12 + $0x140] sm:$0xff] }
  0xc1   : > { %v375_v25 = vmul.f32 %v2476_v2, %v314_v16  ;;  %v376_v26 = vmul.f32 %v2476_v2, %v315_v17  ;;  %v467_v55 = vmax.f32 %v413_v46, 0.0  ;;  %v293_v46 = vld [vmem:[%s2460_s12 + $0x90] sm:$0xff] }
  0xc2   : > { %993 = vrot.lane.b32.xlu0 %v2524_v49, %s2218_s28  ;;  %v596_v27 = vor.u32 %v595_v14, %v591_v12 }
  0xc3   : > { %v436_v39 = vadd.f32 %v2480_v5, %v375_v25  ;;  %v437_v42 = vadd.f32 %v2480_v5, %v376_v26 }
  0xc4   : > { %1011 = vrot.lane.b32.xlu1 %v2639_v57, %s2218_s28 }
  0xc5   : > { %v490_v50 = vmax.f32 %v436_v39, 0.0  ;;  %v491_v51 = vmax.f32 %v437_v42, 0.0  ;;  %v317_v42 = vld [vmem:[%s2460_s12 + $0x150] sm:$0xff] }
  0xc6   : > { %995 = vrot.lane.b32.xlu0 %v2644_v60, %s2218_s28 }
  0xc7   : > { %v2783_v62 = vpack.c.bf16 %v491_v51, %v490_v50 }
  0xc8   : > { %1053 = vrot.lane.b32.xlu1 %v2614_v31, %s2219_s6 }
  0xc9   : > { %3516 = vst [vmem:[#allocation16_spill] sm:$0xff] %v2783_v62 }
  0xca   : > { %1037 = vrot.lane.b32.xlu0 %v2622_v41, %s2219_s6 }
  0xcc   : > { %1055 = vrot.lane.b32.xlu1 %v2667_v20, %s2219_s6 }
  0xce   : > { %1039 = vrot.lane.b32.xlu0 %v2670_v21, %s2219_s6 }
  0xd0   : > { %1089 = vrot.lane.b32.xlu1 %v2637_v56, %s2220_s7 }
  0xd2   : > { %1073 = vrot.lane.b32.xlu0 %v2642_v59, %s2220_s7 }
  0xd4   : > { %754 = vrot.lane.b32.xlu1 %v2614_v31, %s2215_s27  ;;  %v433_v31 = vadd.f32 %v2480_v5, %v372_v35  ;;  %v316_v35 = vld [vmem:[%s2460_s12 + $0x148] sm:$0x3] }
  0xd5   : > { %v377_v44 = vmul.f32 %v2476_v2, %v316_v35 }
  0xd6   : > { %738 = vrot.lane.b32.xlu0 %v2622_v41, %s2215_s27  ;;  %v434_v41 = vadd.f32 %v2480_v5, %v373_v36  ;;  %v487_v52 = vmax.f32 %v433_v31, 0.0  ;;  %v292_v36 = vld [vmem:[%s2460_s12 + $0x88] sm:$0x3] }
  0xd8   : > { %1091 = vrot.lane.b32.xlu1 %v2691_v33, %s2220_s7  ;;  %v488_v53 = vmax.f32 %v434_v41, 0.0  ;;  %v412_v41 = vadd.f32 %v2480_v5, %v351_v29  ;;  %v838_v29 = vrot.slane %v2783_v62, 1 }
  0xda   : > { %1075 = vrot.lane.b32.xlu0 %v2696_v37, %s2220_s7  ;;  %v2722_v43 = vpack.c.bf16 %v488_v53, %v487_v52  ;;  %v438_v52 = vadd.f32 %v2480_v5, %v377_v44  ;;  %v466_v54 = vmax.f32 %v412_v41, 0.0  ;;  %v318_v44 = vld [vmem:[%s2460_s12 + $0x158] sm:$0xff] }
  0xdc   : > { %756 = vrot.lane.b32.xlu1 %v2667_v20, %s2215_s27  ;;  %v689_v6 = vshll.u32 %v2722_v43, 16  ;;  %v687_v9 = vshrl.u32 %v2722_v43, 16 }
  0xde   : > { %740 = vrot.lane.b32.xlu0 %v2670_v21, %s2215_s27  ;;  %v691_v10 = vrot.slane %v689_v6, 1 }
  0xe0   : > { %867 = vrot.lane.b32.xlu1 %v2637_v56, %s2214_s25  ;;  %v530_v56 = vpack.c.bf16 %v489_v63, %v489_v63  ;;  %v692_v22 = vor.u32 %v691_v10, %v687_v9  ;;  %v492_v63 = vmax.f32 %v438_v52, 0.0  ;;  %v699_v9 = vshrl.u32 %v2783_v62, 16 }
  0xe1   : > { %v354_v52 = vmul.f32 %v2476_v2, %v293_v46 }
  0xe2   : > { %851 = vrot.lane.b32.xlu0 %v2642_v59, %s2214_s25  ;;  %v514_v59 = vpack.c.bf16 %v465_v4, %v465_v4  ;;  %v694_v11 = vshll.u32 %v530_v56, 16  ;;  %v836_v48 = vrot.slane %v530_v56, 1  ;;  %v2788_v56 = vpack.c.bf16 %v467_v55, %v466_v54 }
  0xe4   : > { %869 = vrot.lane.b32.xlu1 %v2691_v33, %s2214_s25  ;;  %v598_v15 = vshll.u32 %v514_v59, 16  ;;  %v696_v23 = vrot.slane %v694_v11, 1  ;;  %v812_v53 = vrot.slane %v514_v59, 1  ;;  %3517 = vst [vmem:[#allocation17_spill] sm:$0xff] %v2788_v56  ;;  %v605_v7 = vshll.u32 %v2788_v56, 16 }
  0xe5   : > { %v603_v12 = vshrl.u32 %v2788_v56, 16 }
  0xe6   : > { %853 = vrot.lane.b32.xlu0 %v2696_v37, %s2214_s25  ;;  %v600_v28 = vrot.slane %v598_v15, 1  ;;  %v2757_v38 = vsel %vm541_vm1, %v692_v22, %v696_v23  ;;  %v2786_v4 = vsel %vm798_vm0, %v811_v47, %v812_v53  ;;  %v607_v14 = vrot.slane %v605_v7, 1 }
  0xe7   : > { %v378_v47 = vmul.f32 %v2476_v2, %v317_v42 }
  0xe8   : > { %900 = vrot.lane.b32.xlu1 %v2639_v57, %s2213_s23  ;;  %v2763_v31 = vsel %vm541_vm1, %v596_v27, %v600_v28  ;;  %v608_v18 = vor.u32 %v607_v14, %v603_v12 }
  0xe9   : > { %v439_v55 = vadd.f32 %v2480_v5, %v378_v47  ;;  %v320_v47 = vld [vmem:[%s2460_s12 + $0x168] sm:$0xff] }
  0xea   : > { %884 = vrot.lane.b32.xlu0 %v2644_v60, %s2213_s23 }
  0xec   : > { %902 = vrot.lane.b32.xlu1 %v2722_v43, %s2213_s23 }
  0xee   : > { %886 = vrot.lane.b32.xlu0 %v2724_v1, %s2213_s23 }
  0xf0   : > { %944 = vrot.lane.b32.xlu1 %v2667_v20, %s2216_s11  ;;  %v353_v20 = vmul.f32 %v2476_v2, %v292_v36  ;;  %v814_v36 = vrot.slane %v2788_v56, 1 }
  0xf2   : > { %928 = vrot.lane.b32.xlu0 %v2670_v21, %s2216_s11  ;;  %v835_v21 = vrot.slane %v2722_v43, 1  ;;  %v414_v58 = vadd.f32 %v2480_v5, %v353_v20  ;;  %v294_v20 = vld [vmem:[%s2460_s12 + $0x98] sm:$0xff] }
  0xf3   : > { %v355_v53 = vmul.f32 %v2476_v2, %v294_v20 }
  0xf4   : > { %946 = vrot.lane.b32.xlu1 %v2757_v38, %s2216_s11  ;;  %v2781_v61 = vsel %vm798_vm0, %v835_v21, %v836_v48  ;;  %v468_v6 = vmax.f32 %v414_v58, 0.0  ;;  %v379_v48 = vmul.f32 %v2476_v2, %v318_v44 }
  0xf6   : > { %930 = vrot.lane.b32.xlu0 %v2763_v31, %s2216_s11  ;;  %v516_v59 = vpack.c.bf16 %v468_v6, %v468_v6  ;;  %v440_v58 = vadd.f32 %v2480_v5, %v379_v48  ;;  %v321_v48 = vld [vmem:[%s2460_s12 + $0x170] sm:$0xff] }
  0xf8   : > { %980 = vrot.lane.b32.xlu1 %v2691_v33, %s2217_s21  ;;  %v532_v33 = vpack.c.bf16 %v492_v63, %v492_v63  ;;  %v610_v15 = vshll.u32 %v516_v59, 16  ;;  %v815_v39 = vrot.slane %v516_v59, 1 }
  0xfa   : > { %964 = vrot.lane.b32.xlu0 %v2696_v37, %s2217_s21  ;;  %v701_v37 = vshll.u32 %v2783_v62, 16  ;;  %v706_v11 = vshll.u32 %v532_v33, 16  ;;  %v612_v19 = vrot.slane %v610_v15, 1  ;;  %v839_v30 = vrot.slane %v532_v33, 1 }
  0xfb   : > { %v2854_v51 = vsel %vm798_vm0, %v814_v36, %v815_v39  ;;  %v415_v33 = vadd.f32 %v2480_v5, %v354_v52 }
  0xfc   : > { %982 = vrot.lane.b32.xlu1 %v2781_v61, %s2217_s21  ;;  %v703_v10 = vrot.slane %v701_v37, 1  ;;  %v708_v17 = vrot.slane %v706_v11, 1  ;;  %v2818_v26 = vsel %vm541_vm1, %v608_v18, %v612_v19  ;;  %v2847_v21 = vsel %vm798_vm0, %v838_v29, %v839_v30 }
  0xfd   : > { %v416_v37 = vadd.f32 %v2480_v5, %v355_v53  ;;  %v469_v14 = vmax.f32 %v415_v33, 0.0 }
  0xfe   : > { %966 = vrot.lane.b32.xlu0 %v2786_v4, %s2217_s21  ;;  %v704_v16 = vor.u32 %v703_v10, %v699_v9  ;;  %v493_v9 = vmax.f32 %v439_v55, 0.0  ;;  %v494_v10 = vmax.f32 %v440_v58, 0.0 }
  0xff   : > { %v470_v15 = vmax.f32 %v416_v37, 0.0  ;;  %v381_v37 = vmul.f32 %v2476_v2, %v320_v47 }
 0x100   : > { %1013 = vrot.lane.b32.xlu1 %v2722_v43, %s2218_s28  ;;  %v2815_v25 = vsel %vm541_vm1, %v704_v16, %v708_v17  ;;  %v2890_v18 = vpack.c.bf16 %v494_v10, %v493_v9  ;;  %v296_v9 = vld [vmem:[%s2460_s12 + $0xa8] sm:$0xff]  ;;  %v297_v10 = vld [vmem:[%s2460_s12 + $0xb0] sm:$0xff] }
 0x101   : > { %v2894_v30 = vpack.c.bf16 %v470_v15, %v469_v14 }
 0x102   : > { %997 = vrot.lane.b32.xlu0 %v2724_v1, %s2218_s28  ;;  %v711_v52 = vshrl.u32 %v2890_v18, 16 }
 0x103   : > { %v617_v46 = vshll.u32 %v2894_v30, 16  ;;  %v615_v55 = vshrl.u32 %v2894_v30, 16 }
 0x104   : > { %1015 = vrot.lane.b32.xlu1 %v2783_v62, %s2218_s28 }
 0x105   : > { %v619_v58 = vrot.slane %v617_v46, 1  ;;  %v322_v46 = vld [vmem:[%s2460_s12 + $0x178] sm:$0x3] }
 0x106   : > { %999 = vrot.lane.b32.xlu0 %v2788_v56, %s2218_s28 }
 0x108   : > { %v2806_v22 = vpop.permute.xlu1 %896  ;;  %1057 = vrot.lane.b32.xlu1 %v2757_v38, %s2219_s6 }
 0x109   : > { %v2810_v23 = vpop.permute.xlu0 %880 }
 0x10a   : > { %1041 = vrot.lane.b32.xlu0 %v2763_v31, %s2219_s6 }
 0x10c   : > { %1059 = vrot.lane.b32.xlu1 %v2815_v25, %s2219_s6  ;;  %v2822_v27 = vpop.permute.xlu1 %898 }
 0x10d   : > { %v2826_v28 = vpop.permute.xlu0 %882 }
 0x10e   : > { %1043 = vrot.lane.b32.xlu0 %v2818_v26, %s2219_s6 }
 0x110   : > { %1093 = vrot.lane.b32.xlu1 %v2781_v61, %s2220_s7 }
 0x112   : > { %1077 = vrot.lane.b32.xlu0 %v2786_v4, %s2220_s7  ;;  %v2833_v35 = vpop.permute.xlu1 %863 }
 0x114   : > { %v2838_v41 = vpop.permute.xlu0 %847  ;;  %758 = vrot.lane.b32.xlu1 %v2757_v38, %s2215_s27  ;;  %v319_v38 = vld [vmem:[%s2460_s12 + $0x160] sm:$0x3] }
 0x115   : > { %v380_v63 = vmul.f32 %v2476_v2, %v319_v38 }
 0x116   : > { %742 = vrot.lane.b32.xlu0 %v2763_v31, %s2215_s27  ;;  %v2851_v50 = vpop.permute.xlu1 %865  ;;  %v295_v31 = vld [vmem:[%s2460_s12 + $0xa0] sm:$0x3] }
 0x117   : > { %v356_v59 = vmul.f32 %v2476_v2, %v295_v31  ;;  %v441_v11 = vadd.f32 %v2480_v5, %v380_v63 }
 0x118   : > { %v2859_v54 = vpop.permute.xlu0 %849  ;;  %1095 = vrot.lane.b32.xlu1 %v2847_v21, %s2220_s7 }
 0x119   : > { %v417_v16 = vadd.f32 %v2480_v5, %v356_v59  ;;  %v495_v19 = vmax.f32 %v441_v11, 0.0  ;;  %v382_v59 = vmul.f32 %v2476_v2, %v321_v48  ;;  %v442_v48 = vadd.f32 %v2480_v5, %v381_v37 }
 0x11a   : > { %1079 = vrot.lane.b32.xlu0 %v2854_v51, %s2220_s7  ;;  %v2869_v6 = vpop.permute.xlu1 %736 }
 0x11b   : > { %v471_v36 = vmax.f32 %v417_v16, 0.0  ;;  %v620_v16 = vor.u32 %v619_v58, %v615_v55 }
 0x11c   : > { %v2874_v7 = vpop.permute.xlu0 %734  ;;  %760 = vrot.lane.b32.xlu1 %v2815_v25, %s2215_s27 }
 0x11d   : > { %v2907_v44 = vpack.c.bf16 %v471_v36, %v471_v36  ;;  %v357_v36 = vmul.f32 %v2476_v2, %v296_v9 }
 0x11e   : > { %744 = vrot.lane.b32.xlu0 %v2818_v26, %s2215_s27  ;;  %v2881_v12 = vpop.permute.xlu1 %752 }
 0x11f   : > { %v622_v63 = vshll.u32 %v2907_v44, 16  ;;  %v418_v58 = vadd.f32 %v2480_v5, %v357_v36 }
 0x120   : > { %v2884_v17 = vpop.permute.xlu0 %750  ;;  %871 = vrot.lane.b32.xlu1 %v2781_v61, %s2214_s25  ;;  %v2902_v61 = vpack.c.bf16 %v495_v19, %v495_v19 }
 0x121   : > { %v624_v19 = vrot.slane %v622_v63, 1 }
 0x122   : > { %855 = vrot.lane.b32.xlu0 %v2786_v4, %s2214_s25  ;;  %v2892_v29 = vpop.permute.xlu1 %940  ;;  %v713_v4 = vshll.u32 %v2890_v18, 16  ;;  %v718_v38 = vshll.u32 %v2902_v61, 16 }
 0x123   : > { %v2955_v55 = vsel %vm541_vm1, %v620_v16, %v624_v19  ;;  %v472_v16 = vmax.f32 %v418_v58, 0.0 }
 0x124   : > { %v2896_v39 = vpop.permute.xlu0 %924  ;;  %873 = vrot.lane.b32.xlu1 %v2847_v21, %s2214_s25  ;;  %v715_v53 = vrot.slane %v713_v4, 1  ;;  %v720_v14 = vrot.slane %v718_v38, 1  ;;  %v358_v4 = vmul.f32 %v2476_v2, %v297_v10  ;;  %v842_v10 = vrot.slane %v2902_v61, 1 }
 0x125   : > { %v1107_v61 = vsel %vm1105_vm3, %v2548_v13, %v2874_v7 }
 0x126   : > { %857 = vrot.lane.b32.xlu0 %v2854_v51, %s2214_s25  ;;  %v2905_v42 = vpop.permute.xlu1 %942  ;;  %v716_v11 = vor.u32 %v715_v53, %v711_v52  ;;  %v383_v53 = vmul.f32 %v2476_v2, %v322_v46  ;;  %v419_v63 = vadd.f32 %v2480_v5, %v358_v4 }
 0x128   : > { %v2910_v20 = vpop.permute.xlu0 %926  ;;  %904 = vrot.lane.b32.xlu1 %v2783_v62, %s2213_s23  ;;  %v298_v62 = vld [vmem:[%s2460_s12 + $0xb8] sm:$0x3]  ;;  %v2949_v52 = vsel %vm541_vm1, %v716_v11, %v720_v14  ;;  %v817_v11 = vrot.slane %v2894_v30, 1  ;;  %v818_v14 = vrot.slane %v2907_v44, 1  ;;  %v473_v19 = vmax.f32 %v419_v63, 0.0 }
 0x129   : > { %v359_v37 = vmul.f32 %v2476_v2, %v298_v62  ;;  %v444_v2 = vadd.f32 %v2480_v5, %v383_v53  ;;  %v1123_v62 = vsel %vm1105_vm3, %v2542_v3, %v2884_v17 }
 0x12a   : > { %888 = vrot.lane.b32.xlu0 %v2788_v56, %s2213_s23  ;;  %v2920_v31 = vpop.permute.xlu1 %976  ;;  %v443_v56 = vadd.f32 %v2480_v5, %v382_v59  ;;  %v496_v59 = vmax.f32 %v442_v48, 0.0  ;;  %v1156_v17 = vsel %vm1138_vm4, %v1123_v62, %v2833_v35  ;;  %v2992_v53 = vsel %vm798_vm0, %v817_v11, %v818_v14 }
 0x12b   : > { %v420_v36 = vadd.f32 %v2480_v5, %v359_v37  ;;  %v498_v44 = vmax.f32 %v444_v2, 0.0  ;;  %v2994_v58 = vpack.c.bf16 %v473_v19, %v472_v16  ;;  %v1140_v35 = vsel %vm1138_vm4, %v1107_v61, %v2838_v41 }
 0x12c   : > { %v2924_v33 = vpop.permute.xlu0 %960  ;;  %906 = vrot.lane.b32.xlu1 %v2890_v18, %s2213_s23  ;;  %v497_v9 = vmax.f32 %v443_v56, 0.0  ;;  %v1125_v14 = vsel %vm1105_vm3, %v2506_v34, %v2881_v12 }
 0x12d   : > { %v3005_v7 = vpack.c.bf16 %v498_v44, %v498_v44  ;;  %v629_v41 = vshll.u32 %v2994_v58, 16 }
 0x12e   : > { %890 = vrot.lane.b32.xlu0 %v2894_v30, %s2213_s23  ;;  %v2934_v15 = vpop.permute.xlu1 %978  ;;  %v2977_v46 = vpack.c.bf16 %v497_v9, %v496_v59  ;;  %v1173_v9 = vsel %vm1171_vm5, %v1140_v35, %v2810_v23  ;;  %v1109_v23 = vsel %vm1105_vm3, %v2511_v40, %v2869_v6  ;;  %v1158_v40 = vsel %vm1138_vm4, %v1125_v14, %v2851_v50 }
 0x12f   : > { %v1206_v2 = vsel %vm1204_vm6, %v1173_v9, %v2896_v39  ;;  %v730_v39 = vshll.u32 %v3005_v7, 16  ;;  %v631_v61 = vrot.slane %v629_v41, 1  ;;  %v1142_v44 = vsel %vm1138_vm4, %v1109_v23, %v2859_v54 }
 0x130   : > { %v2939_v47 = vpop.permute.xlu0 %962  ;;  %948 = vrot.lane.b32.xlu1 %v2815_v25, %s2216_s11  ;;  %v725_v13 = vshll.u32 %v2977_v46, 16  ;;  %v1239_v16 = vsel %vm1237_vm7, %v1206_v2, %v2924_v33  ;;  %v820_v23 = vrot.slane %v2994_v58, 1 }
 0x132   : > { %932 = vrot.lane.b32.xlu0 %v2818_v26, %s2216_s11  ;;  %v2952_v38 = vpop.permute.xlu1 %1009  ;;  %v841_v26 = vrot.slane %v2890_v18, 1  ;;  %v727_v11 = vrot.slane %v725_v13, 1 }
 0x134   : > { %v994_v25 = vpop.permute.xlu0 %993  ;;  %950 = vrot.lane.b32.xlu1 %v2949_v52, %s2216_s11  ;;  %v2989_v5 = vsel %vm798_vm0, %v841_v26, %v842_v10  ;;  %v723_v10 = vshrl.u32 %v2977_v46, 16 }
 0x136   : > { %934 = vrot.lane.b32.xlu0 %v2955_v55, %s2216_s11  ;;  %v2972_v56 = vpop.permute.xlu1 %1011  ;;  %v728_v50 = vor.u32 %v727_v11, %v723_v10 }
 0x138   : > { %v2975_v4 = vpop.permute.xlu0 %995  ;;  %984 = vrot.lane.b32.xlu1 %v2847_v21, %s2217_s21  ;;  %v474_v21 = vmax.f32 %v420_v36, 0.0 }
 0x13a   : > { %968 = vrot.lane.b32.xlu0 %v2854_v51, %s2217_s21  ;;  %v1054_v48 = vpop.permute.xlu1 %1053  ;;  %v1189_v51 = vsel %vm1171_vm5, %v1156_v17, %v2806_v22  ;;  %v3007_v59 = vpack.c.bf16 %v474_v21, %v474_v21  ;;  %v1191_v21 = vsel %vm1171_vm5, %v1158_v40, %v2822_v27  ;;  %v325_v40 = vld [vmem:[%s2460_s12 + $0x190] sm:$0x3] }
 0x13b   : > { %v1222_v22 = vsel %vm1204_vm6, %v1189_v51, %v2892_v29  ;;  %v627_v29 = vshrl.u32 %v2994_v58, 16  ;;  %v1224_v35 = vsel %vm1204_vm6, %v1191_v21, %v2905_v42  ;;  %v1175_v51 = vsel %vm1171_vm5, %v1142_v44, %v2826_v28 }
 0x13c   : > { %v1038_v63 = vpop.permute.xlu0 %1037  ;;  %986 = vrot.lane.b32.xlu1 %v2989_v5, %s2217_s21  ;;  %v1255_v62 = vsel %vm1237_vm7, %v1222_v22, %v2920_v31  ;;  %v1272_v31 = vsel %vm1270_vm8, %v1239_v16, %v994_v25  ;;  %v634_v17 = vshll.u32 %v3007_v59, 16  ;;  %v1208_v22 = vsel %vm1204_vm6, %v1175_v51, %v2910_v20 }
 0x13d   : > { %v1288_v12 = vsel %vm1270_vm8, %v1255_v62, %v2952_v38  ;;  %v1305_v6 = vsel %vm1303_vm9, %v1272_v31, %v1038_v63  ;;  %v632_v54 = vor.u32 %v631_v61, %v627_v29  ;;  %v1257_v9 = vsel %vm1237_vm7, %v1224_v35, %v2934_v15 }
 0x13e   : > { %970 = vrot.lane.b32.xlu0 %v2992_v53, %s2217_s21  ;;  %v1056_v37 = vpop.permute.xlu1 %1055  ;;  %v1321_v19 = vsel %vm1303_vm9, %v1288_v12, %v1054_v48  ;;  %v732_v48 = vrot.slane %v730_v39, 1  ;;  %v636_v13 = vrot.slane %v634_v17, 1  ;;  %v1241_v27 = vsel %vm1237_vm7, %v1208_v22, %v2939_v47  ;;  %v323_v12 = vld [vmem:[%s2460_s12 + $0x180] sm:$0xff]  ;;  %v324_v39 = vld [vmem:[%s2460_s12 + $0x188] sm:$0xff] }
 0x13f   : > { %v1290_v42 = vsel %vm1270_vm8, %v1257_v9, %v2972_v56  ;;  %v1274_v20 = vsel %vm1270_vm8, %v1241_v27, %v2975_v4  ;;  %v845_v62 = vrot.slane %v3005_v7, 1  ;;  %v821_v16 = vrot.slane %v3007_v59, 1  ;;  %v1997_v7 = vld [vmem:[#allocation7] ss:$0 sm:$0xff] }
 0x140   : > { %v1040_v26 = vpop.permute.xlu0 %1039  ;;  %1017 = vrot.lane.b32.xlu1 %v2890_v18, %s2218_s28  ;;  %v3074_v28 = vsel %vm541_vm1, %v728_v50, %v732_v48  ;;  %v1323_v15 = vsel %vm1303_vm9, %v1290_v42, %v1056_v37  ;;  %v3080_v11 = vsel %vm541_vm1, %v632_v54, %v636_v13  ;;  %v385_v61 = vmul.f32 %v1997_v7, %v324_v39  ;;  %v328_v39 = vld [vmem:[%s2460_s12 + $0x1a8] sm:$0x3] }
 0x141   : > { %v1307_v47 = vsel %vm1303_vm9, %v1274_v20, %v1040_v26  ;;  %v844_v26 = vrot.slane %v2977_v46, 1  ;;  %v3119_v59 = vsel %vm798_vm0, %v820_v23, %v821_v16 }
 0x142   : > { %1001 = vrot.lane.b32.xlu0 %v2894_v30, %s2218_s28  ;;  %v1090_v36 = vpop.permute.xlu1 %1089 }
 0x143   : > { %v1354_v38 = vsel %vm1336_vm10, %v1321_v19, %v1090_v36  ;;  %v3114_v19 = vsel %vm798_vm0, %v844_v26, %v845_v62  ;;  %v384_v36 = vmul.f32 %v1997_v7, %v323_v12 }
 0x144   : > { %v1074_v33 = vpop.permute.xlu0 %1073  ;;  %1019 = vrot.lane.b32.xlu1 %v2977_v46, %s2218_s28  ;;  %1855 = vmatprep.mubr.msk.bf16.mxu1 %vm1405_vm11, %v1354_v38  ;;  %v386_v38 = vmul.f32 %v1997_v7, %v325_v40 }
 0x145   : > { %v1338_v25 = vsel %vm1336_vm10, %v1305_v6, %v1074_v33 }
 0x146   : > { %1003 = vrot.lane.b32.xlu0 %v2994_v58, %s2218_s28  ;;  %1839 = vmatprep.mubr.msk.bf16.mxu0 %vm1405_vm11, %v1338_v25  ;;  %v3053_v63 = vpop.permute.xlu1 %754 }
 0x148   : > { %v3059_v41 = vpop.permute.xlu0 %738  ;;  %1061 = vrot.lane.b32.xlu1 %v2949_v52, %s2219_s6 }
 0x14a   : > { %1045 = vrot.lane.b32.xlu0 %v2955_v55, %s2219_s6  ;;  %v1092_v10 = vpop.permute.xlu1 %1091 }
 0x14b   : > { %v1356_v14 = vsel %vm1336_vm10, %v1323_v15, %v1092_v10 }
 0x14c   : > { %v1076_v56 = vpop.permute.xlu0 %1075  ;;  %1063 = vrot.lane.b32.xlu1 %v3074_v28, %s2219_s6  ;;  %1856 = vmatmul.mubr.msk.bf16.vlgmr.msra.gmra.mrb[0].mxu1 %vm1405_vm11, %v1356_v14  ;;  %v326_v14 = vld [vmem:[%s2460_s12 + $0x198] sm:$0xff] }
 0x14d   : > { %v1340_v2 = vsel %vm1336_vm10, %v1307_v47, %v1076_v56  ;;  %v327_v56 = vld [vmem:[%s2460_s12 + $0x1a0] sm:$0xff]  ;;  %v387_v23 = vmul.f32 %v1997_v7, %v326_v14  ;;  %s2113_s12 = scalar_lea.vmem %s3434_s29, 4096 }
 0x14e   : > { %1047 = vrot.lane.b32.xlu0 %v3080_v11, %s2219_s6  ;;  %1840 = vmatmul.mubr.msk.bf16.vlgmr.msra.gmra.mrb[0].mxu0 %vm1405_vm11, %v1340_v2  ;;  %v3091_v4 = vpop.permute.xlu1 %756  ;;  %v388_v16 = vmul.f32 %v1997_v7, %v327_v56  ;;  %p2114_p13 = scmp.ne.s32.totalorder %s3434_s29, %s2113_s12 }
 0x150   : > { %v3093_v37 = vpop.permute.xlu0 %740  ;;  %1097 = vrot.lane.b32.xlu1 %v2989_v5, %s2220_s7  ;;  %p2115_p6 = pnand %p2114_p13, %p2400_p10 }
 0x152   : > { %1081 = vrot.lane.b32.xlu0 %v2992_v53, %s2220_s7  ;;  %v3101_v29 = vpop.permute.xlu1 %867  ;;  %p2116_p3 = pneg %p2115_p6 }
 0x154   : > { %v3107_v31 = vpop.permute.xlu0 %851  ;;  %762 = vrot.lane.b32.xlu1 %v2949_v52, %s2215_s27  ;;  %v1998_v52 = vld [vmem:[#allocation8] ss:$0 sm:$0xff] }
 0x155   : > { %v446_v33 = vadd.f32 %v1998_v52, %v385_v61  ;;  %v447_v21 = vadd.f32 %v1998_v52, %v386_v38  ;;  %v448_v40 = vadd.f32 %v1998_v52, %v387_v23 }
 0x156   : > { %746 = vrot.lane.b32.xlu0 %v2955_v55, %s2215_s27  ;;  %v3116_v17 = vpop.permute.xlu1 %869  ;;  %v445_v55 = vadd.f32 %v1998_v52, %v384_v36 }
 0x157   : > { %v500_v48 = vmax.f32 %v446_v33, 0.0  ;;  %v501_v51 = vmax.f32 %v447_v21, 0.0  ;;  %v389_v33 = vmul.f32 %v1997_v7, %v328_v39  ;;  %v502_v21 = vmax.f32 %v448_v40, 0.0 }
 0x158   : > { %v3122_v6 = vpop.permute.xlu0 %853  ;;  %1099 = vrot.lane.b32.xlu1 %v3114_v19, %s2220_s7  ;;  %v499_v50 = vmax.f32 %v445_v55, 0.0  ;;  %v449_v55 = vadd.f32 %v1998_v52, %v388_v16 }
 0x159   : > { %v538_v27 = vpack.c.bf16 %v501_v51, %v501_v51 }
 0x15a   : > { %1083 = vrot.lane.b32.xlu0 %v3119_v59, %s2220_s7  ;;  %v3128_v44 = vpop.permute.xlu1 %900  ;;  %v3144_v35 = vpack.c.bf16 %v500_v48, %v499_v50  ;;  %v503_v51 = vmax.f32 %v449_v55, 0.0 }
 0x15b   : > { %v920_v10 = vshll.u32 %v538_v27, 16 }
 0x15c   : > { %v3130_v25 = vpop.permute.xlu0 %884  ;;  %764 = vrot.lane.b32.xlu1 %v3074_v28, %s2215_s27  ;;  %v913_v20 = vshrl.u32 %v3144_v35, 16  ;;  %v957_v48 = vrot.slane %v3144_v35, 1 }
 0x15d   : > { %v922_v62 = vrot.slane %v920_v10, 1 }
 0x15e   : > { %748 = vrot.lane.b32.xlu0 %v3080_v11, %s2215_s27  ;;  %v3136_v54 = vpop.permute.xlu1 %902 }
 0x160   : > { %v3138_v13 = vpop.permute.xlu0 %886  ;;  %875 = vrot.lane.b32.xlu1 %v2989_v5, %s2214_s25  ;;  %v915_v5 = vshll.u32 %v3144_v35, 16 }
 0x162   : > { %859 = vrot.lane.b32.xlu0 %v2992_v53, %s2214_s25  ;;  %v945_v22 = vpop.permute.xlu1 %944  ;;  %v917_v15 = vrot.slane %v915_v5, 1 }
 0x164   : > { %v3146_v9 = vpop.permute.xlu0 %928  ;;  %877 = vrot.lane.b32.xlu1 %v3114_v19, %s2214_s25  ;;  %v918_v26 = vor.u32 %v917_v15, %v913_v20  ;;  %v3192_v15 = vpack.c.bf16 %v503_v51, %v502_v21 }
 0x166   : > { %861 = vrot.lane.b32.xlu0 %v3119_v59, %s2214_s25  ;;  %v3153_v42 = vpop.permute.xlu1 %946  ;;  %v3178_v61 = vsel %vm541_vm1, %v918_v26, %v922_v62  ;;  %v1028_v26 = vshll.u32 %v3192_v15, 16 }
 0x168   : > { %v3155_v53 = vpop.permute.xlu0 %930  ;;  %908 = vrot.lane.b32.xlu1 %v2977_v46, %s2213_s23 }
 0x16a   : > { %892 = vrot.lane.b32.xlu0 %v2994_v58, %s2213_s23  ;;  %v981_v47 = vpop.permute.xlu1 %980 }
 0x16c   : > { %v965_v2 = vpop.permute.xlu0 %964  ;;  %910 = vrot.lane.b32.xlu1 %v3144_v35, %s2213_s23 }
 0x16e   : > { %894 = vrot.lane.b32.xlu0 %v2542_v3, %s2213_s23  ;;  %v3168_v12 = vpop.permute.xlu1 %982  ;;  %s2221_s23 = smov [#allocation10]  }
 0x16f   : > { %s2117_s25 = sshll.u32 %s2221_s23, 4  ;;  %s2118_s25 = int_to_ptr.vmem [resolvable:$false] %s2117_s25 }
 0x170   : > { %v3171_v36 = vpop.permute.xlu0 %966  ;;  %952 = vrot.lane.b32.xlu1 %v3074_v28, %s2216_s11  ;;  %v958_v28 = vrot.slane %v538_v27, 1  ;;  %p2120_p5 = scmp.lt.s32.totalorder %s3434_s29, %s2118_s25 }
 0x172   : > { %936 = vrot.lane.b32.xlu0 %v3080_v11, %s2216_s11  ;;  %v1014_v38 = vpop.permute.xlu1 %1013  ;;  %v450_v11 = vadd.f32 %v1998_v52, %v389_v33  ;;  %v3190_v7 = vsel %vm798_vm0, %v957_v48, %v958_v28  ;;  %v1127_v52 = vsel %vm1105_vm3, %v2517_v45, %v3053_v63 }
 0x174   : > { %v998_v50 = vpop.permute.xlu0 %997  ;;  %954 = vrot.lane.b32.xlu1 %v3178_v61, %s2216_s11  ;;  %v504_v10 = vmax.f32 %v450_v11, 0.0 }
 0x176   : > { %938 = vrot.lane.b32.xlu0 %v2593_v8, %s2216_s11  ;;  %v1016_v5 = vpop.permute.xlu1 %1015  ;;  %v3206_v27 = vpack.c.bf16 %v504_v10, %v504_v10  ;;  %s2119_s11 = scalar_lea.vmem %s2118_s25, 8192 }
 0x177   : > { %p2121_p7 = scmp.lt.s32.totalorder %s2119_s11, %s2113_s12 }
 0x178   : > { %v1000_v20 = vpop.permute.xlu0 %999  ;;  %988 = vrot.lane.b32.xlu1 %v3114_v19, %s2217_s21  ;;  %v1111_v19 = vsel %vm1105_vm3, %v2524_v49, %v3059_v41 }
 0x179   : > { %v1144_v45 = vsel %vm1138_vm4, %v1111_v19, %v3107_v31  ;;  %v1026_v31 = vshrl.u32 %v3192_v15, 16  ;;  %p2122_p9 = por %p2121_p7, %p2120_p5 }
 0x17a   : > { %972 = vrot.lane.b32.xlu0 %v3119_v59, %s2217_s21  ;;  %v1058_v14 = vpop.permute.xlu1 %1057  ;;  %v1160_v59 = vsel %vm1138_vm4, %v1127_v52, %v3101_v29  ;;  %v1177_v49 = vsel %vm1171_vm5, %v1144_v45, %v3130_v25  ;;  %v1030_v25 = vrot.slane %v1028_v26, 1 }
 0x17b   : > { %v1193_v63 = vsel %vm1171_vm5, %v1160_v59, %v3128_v44  ;;  %v1210_v23 = vsel %vm1204_vm6, %v1177_v49, %v3146_v9  ;;  %p2123_p0 = pnand %p2122_p9, %p2116_p3 }
 0x17c   : > { %v1042_v56 = vpop.permute.xlu0 %1041  ;;  %990 = vrot.lane.b32.xlu1 %v3190_v7, %s2217_s21  ;;  %v1226_v41 = vsel %vm1204_vm6, %v1193_v63, %v945_v22  ;;  %v1243_v39 = vsel %vm1237_vm7, %v1210_v23, %v965_v2  ;;  %v1033_v22 = vshll.u32 %v3206_v27, 16  ;;  %v1129_v2 = vsel %vm1105_vm3, %v2639_v57, %v3091_v4 }
 0x17d   : > { %v1259_v16 = vsel %vm1237_vm7, %v1226_v41, %v981_v47  ;;  %v1276_v40 = vsel %vm1270_vm8, %v1243_v39, %v998_v50  ;;  %v1162_v50 = vsel %vm1138_vm4, %v1129_v2, %v3116_v17  ;;  %v1031_v57 = vor.u32 %v1030_v25, %v1026_v31 }
 0x17e   : > { %974 = vrot.lane.b32.xlu0 %v2555_v24, %s2217_s21  ;;  %v1060_v62 = vpop.permute.xlu1 %1059  ;;  %v1292_v44 = vsel %vm1270_vm8, %v1259_v16, %v1014_v38  ;;  %v1309_v55 = vsel %vm1303_vm9, %v1276_v40, %v1042_v56  ;;  %v1035_v4 = vrot.slane %v1033_v22, 1  ;;  %v1195_v28 = vsel %vm1171_vm5, %v1162_v50, %v3136_v54 }
 0x17f   : > { %v1325_v9 = vsel %vm1303_vm9, %v1292_v44, %v1058_v14 }
 0x180   : > { %v1044_v29 = vpop.permute.xlu0 %1043  ;;  %1021 = vrot.lane.b32.xlu1 %v3144_v35, %s2218_s28 }
 0x182   : > { %1005 = vrot.lane.b32.xlu0 %v2542_v3, %s2218_s28  ;;  %v1094_v47 = vpop.permute.xlu1 %1093  ;;  %v1113_v3 = vsel %vm1105_vm3, %v2644_v60, %v3093_v37  ;;  %v1228_v37 = vsel %vm1204_vm6, %v1195_v28, %v3153_v42 }
 0x183   : > { %v1358_v35 = vsel %vm1336_vm10, %v1325_v9, %v1094_v47  ;;  %v1146_v48 = vsel %vm1138_vm4, %v1113_v3, %v3122_v6  ;;  %v1261_v51 = vsel %vm1237_vm7, %v1228_v37, %v3168_v12  ;;  %v3518_v37 = vld [vmem:[#allocation16_spill] sm:$0xff] }
 0x184   : > { %v1078_v33 = vpop.permute.xlu0 %1077  ;;  %1023 = vrot.lane.b32.xlu1 %v3192_v15, %s2218_s28  ;;  %1859 = vmatprep.mubr.msk.bf16.mxu1 %vm1405_vm11, %v1358_v35  ;;  %v1179_v60 = vsel %vm1171_vm5, %v1146_v48, %v3138_v13  ;;  %v1294_v54 = vsel %vm1270_vm8, %v1261_v51, %v1016_v5  ;;  %v1036_v13 = vsel %vm541_vm1, %v1031_v57, %v1035_v4  ;;  %v3519_v51 = vld [vmem:[#allocation17_spill] sm:$0xff] }
 0x185   : > { %v1342_v38 = vsel %vm1336_vm10, %v1309_v55, %v1078_v33 }
 0x186   : > { %1007 = vrot.lane.b32.xlu0 %v2506_v34, %s2218_s28  ;;  %1843 = vmatprep.mubr.msk.bf16.mxu0 %vm1405_vm11, %v1342_v38  ;;  %v759_v21 = vpop.permute.xlu1 %758  ;;  %v1212_v34 = vsel %vm1204_vm6, %v1179_v60, %v3155_v53  ;;  %v1327_v53 = vsel %vm1303_vm9, %v1294_v54, %v1060_v62 }
 0x187   : > { %v1245_v6 = vsel %vm1237_vm7, %v1212_v34, %v3171_v36  ;;  %v1071_v36 = vrot.slane %v3206_v27, 1  ;;  %v1131_v22 = vsel %vm1105_vm3, %v2722_v43, %v759_v21 }
 0x188   : > { %v743_v17 = vpop.permute.xlu0 %742  ;;  %1065 = vrot.lane.b32.xlu1 %v3178_v61, %s2219_s6  ;;  %v1278_v42 = vsel %vm1270_vm8, %v1245_v6, %v1000_v20 }
 0x189   : > { %v1311_v12 = vsel %vm1303_vm9, %v1278_v42, %v1044_v29  ;;  %v1115_v40 = vsel %vm1105_vm3, %v2724_v1, %v743_v17 }
 0x18a   : > { %1049 = vrot.lane.b32.xlu0 %v2593_v8, %s2219_s6  ;;  %v1096_v11 = vpop.permute.xlu1 %1095  ;;  %v1070_v8 = vrot.slane %v3192_v15, 1 }
 0x18b   : > { %v1360_v10 = vsel %vm1336_vm10, %v1327_v53, %v1096_v11 }
 0x18c   : > { %v1080_v61 = vpop.permute.xlu0 %1079  ;;  %1067 = vrot.lane.b32.xlu1 %v1036_v13, %s2219_s6  ;;  %1860 = vmatmul.mubr.msk.bf16.gmra.mrb[4].mxu1 %vm1405_vm11, %v1360_v10  ;;  %v1072_v56 = vsel %vm798_vm0, %v1070_v8, %v1071_v36 }
 0x18d   : > { %v1344_v14 = vsel %vm1336_vm10, %v1311_v12, %v1080_v61 }
 0x18e   : > { %1051 = vrot.lane.b32.xlu0 %v2587_v0, %s2219_s6  ;;  %1844 = vmatmul.mubr.msk.bf16.gmra.mrb[4].mxu0 %vm1405_vm11, %v1344_v14  ;;  %v761_v5 = vpop.permute.xlu1 %760 }
 0x18f   : > { %v1133_v17 = vsel %vm1105_vm3, %v3518_v37, %v761_v5 }
 0x190   : > { %v745_v20 = vpop.permute.xlu0 %744  ;;  %1101 = vrot.lane.b32.xlu1 %v3190_v7, %s2220_s7 }
 0x191   : > { %v1117_v6 = vsel %vm1105_vm3, %v3519_v51, %v745_v20 }
 0x192   : > { %1085 = vrot.lane.b32.xlu0 %v2555_v24, %s2220_s7  ;;  %v872_v52 = vpop.permute.xlu1 %871 }
 0x193   : > { %v1164_v9 = vsel %vm1138_vm4, %v1131_v22, %v872_v52 }
 0x194   : > { %v856_v19 = vpop.permute.xlu0 %855  ;;  %1103 = vrot.lane.b32.xlu1 %v1072_v56, %s2220_s7 }
 0x195   : > { %v1148_v47 = vsel %vm1138_vm4, %v1115_v40, %v856_v19 }
 0x196   : > { %1087 = vrot.lane.b32.xlu0 %v2564_v32, %s2220_s7  ;;  %v874_v0 = vpop.permute.xlu1 %873 }
 0x197   : > { %v1166_v54 = vsel %vm1138_vm4, %v1133_v17, %v874_v0 }
 0x198   : > { %v858_v15 = vpop.permute.xlu0 %857 }
 0x199   : > { %v1150_v13 = vsel %vm1138_vm4, %v1117_v6, %v858_v15 }
 0x19a   : > { %v905_v59 = vpop.permute.xlu1 %904 }
 0x19b   : > { %v1197_v55 = vsel %vm1171_vm5, %v1164_v9, %v905_v59 }
 0x19c   : > { %v889_v27 = vpop.permute.xlu0 %888 }
 0x19d   : > { %v1181_v33 = vsel %vm1171_vm5, %v1148_v47, %v889_v27 }
 0x19e   : > { %v907_v26 = vpop.permute.xlu1 %906 }
 0x19f   : > { %v1199_v42 = vsel %vm1171_vm5, %v1166_v54, %v907_v26 }
 0x1a0   : > { %v891_v45 = vpop.permute.xlu0 %890 }
 0x1a1   : > { %v1183_v11 = vsel %vm1171_vm5, %v1150_v13, %v891_v45 }
 0x1a2   : > { %v949_v63 = vpop.permute.xlu1 %948 }
 0x1a3   : > { %v1230_v2 = vsel %vm1204_vm6, %v1197_v55, %v949_v63 }
 0x1a4   : > { %v933_v7 = vpop.permute.xlu0 %932 }
 0x1a5   : > { %v1214_v3 = vsel %vm1204_vm6, %v1181_v33, %v933_v7 }
 0x1a6   : > { %v951_v62 = vpop.permute.xlu1 %950 }
 0x1a7   : > { %v1232_v12 = vsel %vm1204_vm6, %v1199_v42, %v951_v62 }
 0x1a8   : > { %v935_v49 = vpop.permute.xlu0 %934 }
 0x1a9   : > { %v1216_v61 = vsel %vm1204_vm6, %v1183_v11, %v935_v49 }
 0x1aa   : > { %v985_v24 = vpop.permute.xlu1 %984 }
 0x1ab   : > { %v1263_v50 = vsel %vm1237_vm7, %v1230_v2, %v985_v24 }
 0x1ac   : > { %v969_v41 = vpop.permute.xlu0 %968 }
 0x1ad   : > { %v1247_v43 = vsel %vm1237_vm7, %v1214_v3, %v969_v41 }
 0x1ae   : > { %v987_v29 = vpop.permute.xlu1 %986 }
 0x1af   : > { %v1265_v14 = vsel %vm1237_vm7, %v1232_v12, %v987_v29 }
 0x1b0   : > { %v971_v23 = vpop.permute.xlu0 %970 }
 0x1b1   : > { %v1249_v8 = vsel %vm1237_vm7, %v1216_v61, %v971_v23 }
 0x1b2   : > { %v1018_v16 = vpop.permute.xlu1 %1017 }
 0x1b3   : > { %v1296_v1 = vsel %vm1270_vm8, %v1263_v50, %v1018_v16 }
 0x1b4   : > { %v1002_v31 = vpop.permute.xlu0 %1001 }
 0x1b5   : > { %v1280_v57 = vsel %vm1270_vm8, %v1247_v43, %v1002_v31 }
 0x1b6   : > { %v1020_v39 = vpop.permute.xlu1 %1019 }
 0x1b7   : > { %v1298_v36 = vsel %vm1270_vm8, %v1265_v14, %v1020_v39 }
 0x1b8   : > { %v1004_v44 = vpop.permute.xlu0 %1003 }
 0x1b9   : > { %v1282_v5 = vsel %vm1270_vm8, %v1249_v8, %v1004_v44 }
 0x1ba   : > { %v1062_v25 = vpop.permute.xlu1 %1061 }
 0x1bb   : > { %v1329_v4 = vsel %vm1303_vm9, %v1296_v1, %v1062_v25 }
 0x1bc   : > { %v1046_v32 = vpop.permute.xlu0 %1045 }
 0x1bd   : > { %v1313_v28 = vsel %vm1303_vm9, %v1280_v57, %v1046_v32 }
 0x1be   : > { %v1064_v35 = vpop.permute.xlu1 %1063 }
 0x1bf   : > { %v1331_v20 = vsel %vm1303_vm9, %v1298_v36, %v1064_v35 }
 0x1c0   : > { %v1048_v38 = vpop.permute.xlu0 %1047 }
 0x1c1   : > { %v1315_v52 = vsel %vm1303_vm9, %v1282_v5, %v1048_v38 }
 0x1c2   : > { %v1098_v48 = vpop.permute.xlu1 %1097 }
 0x1c3   : > { %v1362_v21 = vsel %vm1336_vm10, %v1329_v4, %v1098_v48 }
 0x1c4   : > { %v1082_v60 = vpop.permute.xlu0 %1081  ;;  %1863 = vmatprep.mubr.msk.bf16.mxu1 %vm1405_vm11, %v1362_v21 }
 0x1c5   : > { %v1346_v34 = vsel %vm1336_vm10, %v1313_v28, %v1082_v60 }
 0x1c6   : > { %1847 = vmatprep.mubr.msk.bf16.mxu0 %vm1405_vm11, %v1346_v34  ;;  %v763_v53 = vpop.permute.xlu1 %762 }
 0x1c7   : > { %v1135_v33 = vsel %vm1105_vm3, %v2890_v18, %v763_v53 }
 0x1c8   : > { %v747_v10 = vpop.permute.xlu0 %746 }
 0x1c9   : > { %v1119_v2 = vsel %vm1105_vm3, %v2894_v30, %v747_v10 }
 0x1ca   : > { %v1100_v56 = vpop.permute.xlu1 %1099 }
 0x1cb   : > { %v1364_v19 = vsel %vm1336_vm10, %v1331_v20, %v1100_v56 }
 0x1cc   : > { %v1084_v0 = vpop.permute.xlu0 %1083  ;;  %1864 = vmatmul.mubr.msk.bf16.gmra.mrb[8].mxu1 %vm1405_vm11, %v1364_v19 }
 0x1cd   : > { %v1348_v15 = vsel %vm1336_vm10, %v1315_v52, %v1084_v0 }
 0x1ce   : > { %1848 = vmatmul.mubr.msk.bf16.gmra.mrb[8].mxu0 %vm1405_vm11, %v1348_v15  ;;  %v765_v59 = vpop.permute.xlu1 %764 }
 0x1cf   : > { %v1137_v48 = vsel %vm1105_vm3, %v2977_v46, %v765_v59 }
 0x1d0   : > { %v749_v27 = vpop.permute.xlu0 %748 }
 0x1d1   : > { %v1121_v30 = vsel %vm1105_vm3, %v2994_v58, %v749_v27 }
 0x1d2   : > { %v876_v26 = vpop.permute.xlu1 %875 }
 0x1d3   : > { %v1168_v38 = vsel %vm1138_vm4, %v1135_v33, %v876_v26 }
 0x1d4   : > { %v860_v45 = vpop.permute.xlu0 %859 }
 0x1d5   : > { %v1152_v3 = vsel %vm1138_vm4, %v1119_v2, %v860_v45 }
 0x1d6   : > { %v878_v63 = vpop.permute.xlu1 %877 }
 0x1d7   : > { %v1170_v21 = vsel %vm1138_vm4, %v1137_v48, %v878_v63 }
 0x1d8   : > { %v862_v7 = vpop.permute.xlu0 %861 }
 0x1d9   : > { %v1154_v17 = vsel %vm1138_vm4, %v1121_v30, %v862_v7 }
 0x1da   : > { %v909_v62 = vpop.permute.xlu1 %908 }
 0x1db   : > { %v1201_v50 = vsel %vm1171_vm5, %v1168_v38, %v909_v62 }
 0x1dc   : > { %v893_v49 = vpop.permute.xlu0 %892 }
 0x1dd   : > { %v1185_v1 = vsel %vm1171_vm5, %v1152_v3, %v893_v49 }
 0x1de   : > { %v911_v24 = vpop.permute.xlu1 %910 }
 0x1df   : > { %v1203_v34 = vsel %vm1171_vm5, %v1170_v21, %v911_v24 }
 0x1e0   : > { %v895_v41 = vpop.permute.xlu0 %894 }
 0x1e1   : > { %v1187_v54 = vsel %vm1171_vm5, %v1154_v17, %v895_v41 }
 0x1e2   : > { %v953_v29 = vpop.permute.xlu1 %952 }
 0x1e3   : > { %v1234_v57 = vsel %vm1204_vm6, %v1201_v50, %v953_v29 }
 0x1e4   : > { %v937_v23 = vpop.permute.xlu0 %936 }
 0x1e5   : > { %v1218_v18 = vsel %vm1204_vm6, %v1185_v1, %v937_v23 }
 0x1e6   : > { %v955_v16 = vpop.permute.xlu1 %954 }
 0x1e7   : > { %v1236_v13 = vsel %vm1204_vm6, %v1203_v34, %v955_v16 }
 0x1e8   : > { %v939_v31 = vpop.permute.xlu0 %938 }
 0x1e9   : > { %v1220_v11 = vsel %vm1204_vm6, %v1187_v54, %v939_v31 }
 0x1ea   : > { %v989_v39 = vpop.permute.xlu1 %988 }
 0x1eb   : > { %v1267_v28 = vsel %vm1237_vm7, %v1234_v57, %v989_v39 }
 0x1ec   : > { %v973_v44 = vpop.permute.xlu0 %972 }
 0x1ed   : > { %v1251_v60 = vsel %vm1237_vm7, %v1218_v18, %v973_v44 }
 0x1ee   : > { %v991_v25 = vpop.permute.xlu1 %990 }
 0x1ef   : > { %v1269_v12 = vsel %vm1237_vm7, %v1236_v13, %v991_v25 }
 0x1f0   : > { %v975_v32 = vpop.permute.xlu0 %974 }
 0x1f1   : > { %v1253_v61 = vsel %vm1237_vm7, %v1220_v11, %v975_v32 }
 0x1f2   : > { %v1022_v22 = vpop.permute.xlu1 %1021 }
 0x1f3   : > { %v1300_v37 = vsel %vm1270_vm8, %v1267_v28, %v1022_v22 }
 0x1f4   : > { %v1006_v40 = vpop.permute.xlu0 %1005 }
 0x1f5   : > { %v1284_v51 = vsel %vm1270_vm8, %v1251_v60, %v1006_v40 }
 0x1f6   : > { %v1024_v9 = vpop.permute.xlu1 %1023 }
 0x1f7   : > { %v1302_v14 = vsel %vm1270_vm8, %v1269_v12, %v1024_v9 }
 0x1f8   : > { %v1008_v47 = vpop.permute.xlu0 %1007 }
 0x1f9   : > { %v1286_v8 = vsel %vm1270_vm8, %v1253_v61, %v1008_v47 }
 0x1fa   : > { %v1066_v55 = vpop.permute.xlu1 %1065 }
 0x1fb   : > { %v1333_v46 = vsel %vm1303_vm9, %v1300_v37, %v1066_v55 }
 0x1fc   : > { %v1050_v35 = vpop.permute.xlu0 %1049 }
 0x1fd   : > { %v1317_v58 = vsel %vm1303_vm9, %v1284_v51, %v1050_v35 }
 0x1fe   : > { %v1068_v43 = vpop.permute.xlu1 %1067 }
 0x1ff   : > { %v1335_v36 = vsel %vm1303_vm9, %v1302_v14, %v1068_v43 }
 0x200   : > { %v1052_v4 = vpop.permute.xlu0 %1051 }
 0x201   : > { %v1319_v20 = vsel %vm1303_vm9, %v1286_v8, %v1052_v4 }
 0x202   : > { %v1102_v6 = vpop.permute.xlu1 %1101 }
 0x203   : > { %v1366_v42 = vsel %vm1336_vm10, %v1333_v46, %v1102_v6 }
 0x204   : > { %v1086_v53 = vpop.permute.xlu0 %1085  ;;  %1867 = vmatprep.mubr.msk.bf16.mxu1 %vm1405_vm11, %v1366_v42 }
 0x205   : > { %v1350_v10 = vsel %vm1336_vm10, %v1317_v58, %v1086_v53 }
 0x206   : > { %1851 = vmatprep.mubr.msk.bf16.mxu0 %vm1405_vm11, %v1350_v10  ;;  %v1104_v5 = vpop.permute.xlu1 %1103 }
 0x207   : > { %v1368_v56 = vsel %vm1336_vm10, %v1335_v36, %v1104_v5 }
 0x208   : > { %v1088_v52 = vpop.permute.xlu0 %1087  ;;  %1868 = vmatmul.mubr.msk.bf16.gmra.mrb[12].mxu1 %vm1405_vm11, %v1368_v56 }
 0x209   : > { %v1352_v19 = vsel %vm1336_vm10, %v1319_v20, %v1088_v52 }
 0x20a   : > { %1852 = vmatmul.mubr.msk.bf16.gmra.mrb[12].mxu0 %vm1405_vm11, %v1352_v19 }
 0x21f   : > { %v1857_v0 = vpop.f32.mrb[0].mxu1 }
 0x220   : > { %1621 = vst.msk [vmem:[%s3367_s13 + $0x90] sm:$0xff] %vm1171_vm5, %v1857_v0  ;;  %v1540_v59 = vpop.f32.mrb[1].mxu1 }
 0x221   : > { %v1841_v15 = vpop.f32.mrb[0].mxu0  ;;  %1619 = vst.msk [vmem:[%s3367_s13 + $0x80] sm:$0xff] %vm1171_vm5, %v1540_v59  ;;  %v1858_v26 = vpop.f32.mrb[2].mxu1 }
 0x222   : > { %1605 = vst.msk [vmem:[%s3367_s13 + $0x10] sm:$0xff] %vm1171_vm5, %v1841_v15  ;;  %v1476_v27 = vpop.f32.mrb[1].mxu0  ;;  %1622 = vst.msk [vmem:[%s3367_s13 + $0x98] sm:$0xff] %vm1171_vm5, %v1858_v26  ;;  %v1543_v63 = vpop.f32.mrb[3].mxu1 }
 0x223   : > { %1603 = vst.msk [vmem:[%s3367_s13] sm:$0xff] %vm1171_vm5, %v1476_v27  ;;  %v1842_v45 = vpop.f32.mrb[2].mxu0  ;;  %1620 = vst.msk [vmem:[%s3367_s13 + $0x88] sm:$0xff] %vm1171_vm5, %v1543_v63 }
 0x224   : > { %1606 = vst.msk [vmem:[%s3367_s13 + $0x18] sm:$0xff] %vm1171_vm5, %v1842_v45  ;;  %v1479_v7 = vpop.f32.mrb[3].mxu0 }
 0x225   : > { %1604 = vst.msk [vmem:[%s3367_s13 + $0x8] sm:$0xff] %vm1171_vm5, %v1479_v7 }
 0x25f   : > { %v1861_v62 = vpop.f32.mrb[4].mxu1 }
 0x260   : > { %1625 = vst.msk [vmem:[%s3367_s13 + $0xb0] sm:$0xff] %vm1171_vm5, %v1861_v62  ;;  %v1556_v24 = vpop.f32.mrb[5].mxu1 }
 0x261   : > { %v1845_v49 = vpop.f32.mrb[4].mxu0  ;;  %1623 = vst.msk [vmem:[%s3367_s13 + $0xa0] sm:$0xff] %vm1171_vm5, %v1556_v24  ;;  %v1862_v29 = vpop.f32.mrb[6].mxu1 }
 0x262   : > { %1609 = vst.msk [vmem:[%s3367_s13 + $0x30] sm:$0xff] %vm1171_vm5, %v1845_v49  ;;  %v1492_v41 = vpop.f32.mrb[5].mxu0  ;;  %1626 = vst.msk [vmem:[%s3367_s13 + $0xb8] sm:$0xff] %vm1171_vm5, %v1862_v29  ;;  %v1559_v16 = vpop.f32.mrb[7].mxu1 }
 0x263   : > { %1607 = vst.msk [vmem:[%s3367_s13 + $0x20] sm:$0xff] %vm1171_vm5, %v1492_v41  ;;  %v1846_v23 = vpop.f32.mrb[6].mxu0  ;;  %1624 = vst.msk [vmem:[%s3367_s13 + $0xa8] sm:$0xff] %vm1171_vm5, %v1559_v16 }
 0x264   : > { %1610 = vst.msk [vmem:[%s3367_s13 + $0x38] sm:$0xff] %vm1171_vm5, %v1846_v23  ;;  %v1495_v31 = vpop.f32.mrb[7].mxu0 }
 0x265   : > { %1608 = vst.msk [vmem:[%s3367_s13 + $0x28] sm:$0xff] %vm1171_vm5, %v1495_v31 }
 0x29f   : > { %v1865_v39 = vpop.f32.mrb[8].mxu1 }
 0x2a0   : > { %1629 = vst.msk [vmem:[%s3367_s13 + $0xd0] sm:$0xff] %vm1171_vm5, %v1865_v39  ;;  %v1572_v25 = vpop.f32.mrb[9].mxu1 }
 0x2a1   : > { %v1849_v44 = vpop.f32.mrb[8].mxu0  ;;  %1627 = vst.msk [vmem:[%s3367_s13 + $0xc0] sm:$0xff] %vm1171_vm5, %v1572_v25  ;;  %v1866_v22 = vpop.f32.mrb[10].mxu1 }
 0x2a2   : > { %1613 = vst.msk [vmem:[%s3367_s13 + $0x50] sm:$0xff] %vm1171_vm5, %v1849_v44  ;;  %v1508_v32 = vpop.f32.mrb[9].mxu0  ;;  %1630 = vst.msk [vmem:[%s3367_s13 + $0xd8] sm:$0xff] %vm1171_vm5, %v1866_v22  ;;  %v1575_v9 = vpop.f32.mrb[11].mxu1 }
 0x2a3   : > { %1611 = vst.msk [vmem:[%s3367_s13 + $0x40] sm:$0xff] %vm1171_vm5, %v1508_v32  ;;  %v1850_v40 = vpop.f32.mrb[10].mxu0  ;;  %1628 = vst.msk [vmem:[%s3367_s13 + $0xc8] sm:$0xff] %vm1171_vm5, %v1575_v9 }
 0x2a4   : > { %1614 = vst.msk [vmem:[%s3367_s13 + $0x58] sm:$0xff] %vm1171_vm5, %v1850_v40  ;;  %v1511_v47 = vpop.f32.mrb[11].mxu0 }
 0x2a5   : > { %1612 = vst.msk [vmem:[%s3367_s13 + $0x48] sm:$0xff] %vm1171_vm5, %v1511_v47 }
 0x2db   : > { %v1869_v55 = vpop.f32.mrb[12].mxu1 }
 0x2dc   : > { %1633 = vst.msk [vmem:[%s3367_s13 + $0xf0] sm:$0xff] %vm1171_vm5, %v1869_v55  ;;  %v1588_v33 = vpop.f32.mrb[13].mxu1 }
 0x2dd   : > { %v1853_v35 = vpop.f32.mrb[12].mxu0  ;;  %1631 = vst.msk [vmem:[%s3367_s13 + $0xe0] sm:$0xff] %vm1171_vm5, %v1588_v33  ;;  %v1870_v38 = vpop.f32.mrb[14].mxu1 }
 0x2de   : > { %1617 = vst.msk [vmem:[%s3367_s13 + $0x70] sm:$0xff] %vm1171_vm5, %v1853_v35  ;;  %v1524_v2 = vpop.f32.mrb[13].mxu0  ;;  %1634 = vst.msk [vmem:[%s3367_s13 + $0xf8] sm:$0xff] %vm1171_vm5, %v1870_v38  ;;  %v1591_v50 = vpop.f32.mrb[15].mxu1 }
 0x2df   : > { %1615 = vst.msk [vmem:[%s3367_s13 + $0x60] sm:$0xff] %vm1171_vm5, %v1524_v2  ;;  %v1854_v3 = vpop.f32.mrb[14].mxu0  ;;  %1632 = vst.msk [vmem:[%s3367_s13 + $0xe8] sm:$0xff] %vm1171_vm5, %v1591_v50 }
 0x2e0   : > { %1618 = vst.msk [vmem:[%s3367_s13 + $0x78] sm:$0xff] %vm1171_vm5, %v1854_v3  ;;  %v1527_v43 = vpop.f32.mrb[15].mxu0 }
 0x2e1   : > { %1616 = vst.msk [vmem:[%s3367_s13 + $0x68] sm:$0xff] %vm1171_vm5, %v1527_v43 }
 0x2e2   : > { %2126 = shalt.err (!%p2123_p0)
}
 0x2e3   : > { %s2127_s21 = scalar_lea.hbm %s3428_s18, 4096  ;;  %s2131_s7 = scalar_lea.hbm %s3494_s4, 8192 }
 0x2e4   : > { %p2128_p4 = scmp.ne.s32.totalorder %s3428_s18, %s2127_s21  ;;  %p2132_p12 = scmp.lt.u32.totalorder %s3428_s18, %s3494_s4 }
 0x2e5   : > { %p2133_p1 = scmp.lt.u32.totalorder %s2131_s7, %s2127_s21  ;;  %p2135_p13 = scmp.lt.u32.totalorder %s2127_s21, %s3428_s18 }
 0x2e6   : > { %p2129_p2 = pnand %p2128_p4, %p2400_p10 }
 0x2e7   : > { %p2134_p11 = por %p2133_p1, %p2132_p12 }
 0x2e8   : > { %p2130_p8 = pneg %p2129_p2 }
 0x2e9   : > { %p2136_p6 = por %p2135_p13, %p2134_p11 }
 0x2eb   : > { %p2137_p3 = pnand %p2136_p6, %p2130_p8 }
 0x2ed   : > { %2140 = shalt.err (!%p2137_p3)
}
 0x2ee   : > { %s2222_s22 = smov 128  }
 0x2ef   : > { %1900 = dma.vmem_to_hbm [thread:$0]  (%p2400_p10), %s3434_s29, 4096, %s3428_s18, %s1636_s10, %s2222_s22, %s2222_s22, %s2215_s27  }
 0x2f0 PF: > { %s3520_s5 = sld [smem:[#allocation15_spill]]  ;;  %s1666_s9 = sand.u32 1, %s2183_s15  }
 0x2f1   : > { %p3522_p7 = scmp.ge.s32.totalorder %s2203_s20, 2  ;;  %s1667_s12 = scalar_lea.sflag [#allocation4], %s1666_s9 }
 0x2f6   : > { %p3521_p5 = scmp.ne.s32.totalorder %s3520_s5, 0 }
 0x2f8   : > { %p1917_p9 = pnand %p3522_p7, %p3521_p5 }
 0x2fa   : > { %2178 = dma.done.wait (!%p1917_p9), %s1667_s12, 4096  }
 0x2fb   : > { %2180 = vsyncadd (!%p1917_p9), %s1667_s12, 4294963200  ;;  %s22_s20 = sadd.s32 1, %s2203_s20   ;;  %s3523_s15 = smov %s2187_s16 }
 0x2fc   : > { %p19_p0 = scmp.ge.s32.totalorder %s22_s20, 4   ;;  %s3524_s16 = smov %s2191_s17 }
 0x2fd   : > { %s3525_s17 = smov %s2416_s24  ;;  %s3526_s18 = smov %s2199_s19 }
 0x2fe   : > { %s3527_s19 = smov %s3529_s26  ;;  %21 = sbr.rel (!%p19_p0) target bundleno = 8 (0x8), region = 94 }
 0x305   :  { %1672 = vsyncpa [#allocation3], 1 }
 0x306   :  { %1674 = vsyncpa [#allocation3 + $0x1], 1 }
 0x307   :  { %1675 = vsyncpa [#allocation6], 1 }
 0x308   :  { %1676 = vsyncpa [#allocation9], 1 }
 0x309   :  { %1677 = vsyncpa [#allocation4], 1 }
 0x30a   :  { %1679 = vsyncpa [#allocation4 + $0x1], 1 }

// kernel: double_conv_bilin.5
= control target key start
LH: loop header
LB: loop body
LE: loop exit
PB: predicated region body
PF: predicated region fallthrough
CT: control target
= control target key end

     0   :  { %7 = vsyncpa [#allocation3], 0  ;;  %s5326_s0 = inlined_call_operand.hbm [shape: f32[2,18,18,24], index: 0, kind: input, shape index: {}]   ;;  %s5327_s1 = inlined_call_operand.hbm [shape: bf16[144,8], index: 1, kind: input, shape index: {}]   ;;  %s5328_s2 = inlined_call_operand.hbm [shape: f32[2,256,8], index: 2, kind: output, shape index: {}]  }
   0x1   :  { %9 = vsyncpa [#allocation3 + $0x1], 0 }
   0x2   :  { %10 = vsyncpa [#allocation6], 0 }
   0x3   :  { %11 = vsyncpa [#allocation4], 0 }
   0x4   :  { %13 = vsyncpa [#allocation4 + $0x1], 0  ;;  %s3007_s9 = smov 0   ;;  %s3009_s10 = smov 0  }
   0x5   :  { %s3011_s11 = smov 0   ;;  %s3013_s12 = smov 0  }
   0x6   :  { %s3015_s13 = smov 0   ;;  %s3017_s14 = smov 0  }
   0x7 LB: > { %s2664_s15 = sadd.s32 4294967295, %s2972_s14   ;;  %s2665_s16 = sadd.s32 4294967294, %s2972_s14   ;;  %s2972_s14 = sphi %s3017_s14, %s19_s14   ;;  %s2968_s13 = sphi %s3015_s13, %s5799_s13   ;;  %s2964_s12 = sphi %s3013_s12, %s5798_s12   ;;  %s2960_s11 = sphi %s3011_s11, %s5797_s11   ;;  %s2956_s10 = sphi %s3009_s10, %s5796_s10   ;;  %s2952_s9 = sphi %s3007_s9, %s5795_s9  }
   0x8   : > { %p51_p0 = scmp.ne.s32.totalorder %s2956_s10, %s2952_s9  ;;  %p3041_p1 = scmp.eq.s32.totalorder %s2664_s15, 0 }
   0x9   : > { %p3045_p2 = scmp.eq.s32.totalorder %s2664_s15, 1  ;;  %p104_p3 = scmp.eq.s32.totalorder %s2665_s16, 1 }
   0xa   : > { %s5485_s17 = scalar_select %p3041_p1, 1, 0 }
   0xb   : > { %s5486_s18 = scalar_select %p3045_p2, 1, 0 }
   0xc   : > { %p3051_p4 = por %p3041_p1, %p51_p0  ;;  %p2666_p5 = scmp.ge.s32.totalorder %s2972_s14, 1 }
   0xd   : > { %p3056_p6 = por %p104_p3, %p51_p0  ;;  %p111_p7 = scmp.lt.s32.totalorder %s2972_s14, 3 }
   0xe   : > { %s5487_s19 = scalar_select %p3051_p4, 1, 0 }
   0xf   : > { %s5488_s20 = scalar_select %p3056_p6, 1, 0 }
  0x10   : > { %p3061_p8 = pnand %p2666_p5, %p111_p7  ;;  %s2974_s22 = smov [#allocation5]  }
  0x11   : > { %s123_s23 = sshll.u32 %s2974_s22, 4  ;;  %s31_s25 = sadd.s32 1, %s2968_s13  ;;  %s124_s23 = int_to_ptr.vmem [resolvable:$true] %s123_s23 }
  0x12   : > { %s5489_s21 = scalar_select %p3061_p8, 1, 0 }
  0x13   : > { %p2733_p9 = pneg %p3061_p8  ;;  %s2828_s28 = scalar_lea.hbm %s5327_s1, 1152 }
  0x14   : > { %p2829_p12 = scmp.ne.s32.totalorder %s5327_s1, %s2828_s28  ;;  %p2835_p5 = scmp.lt.u32.totalorder %s2828_s28, %s5327_s1 }
  0x15   : > { %p3070_p11 = pnand %p2733_p9, %p3041_p1 }
  0x17   : > { %p2830_p13 = pneg %p3070_p11 }
  0x19   : > { %p2831_p0 = pnand %p2830_p13, %p2829_p12 }
  0x1b   : > { %p2832_p3 = pneg %p2831_p0 }
  0x1d   : > { %p2837_p7 = pnand %p2835_p5, %p2832_p3 }
  0x1f   : > { %2840 = shalt.err (!%p2837_p7)
}
  0x20   : > { %s2841_s5 = scalar_lea.vmem %s124_s23, 1152  ;;  %p2849_p1 = scmp.lt.s32.totalorder %s124_s23, %s124_s23 }
  0x21   : > { %p2842_p9 = scmp.ne.s32.totalorder %s124_s23, %s2841_s5  ;;  %p2850_p4 = scmp.lt.s32.totalorder %s2841_s5, %s2841_s5 }
  0x23   : > { %p2844_p10 = pnand %p2842_p9, %p2830_p13  ;;  %p2851_p8 = por %p2850_p4, %p2849_p1 }
  0x25   : > { %p2845_p6 = pneg %p2844_p10 }
  0x27   : > { %p2852_p2 = pnand %p2851_p8, %p2845_p6 }
  0x29   : > { %2855 = shalt.err (!%p2852_p2)
}
  0x2a   : > { %s2975_s6 = smov 64   ;;  %s2976_s7 = smov 4  }
  0x2b   : > { %2736 = dma.hbm_to_vmem [thread:$0]  (!%p3070_p11), %s5327_s1, 1152, %s124_s23, [#allocation6], %s2975_s6, %s2975_s6, %s2976_s7  }
  0x2c   : > { %p33_p1 = scmp.ge.s32.totalorder %s31_s25, 2  ;;  %s38_s16 = sadd.s32 1, %s2960_s11 }
  0x2d   : > { %p45_p2 = scmp.ne.s32.totalorder %s2960_s11, %s2956_s10  ;;  %p46_p4 = scmp.eq.s32.totalorder %s2972_s14, 0 }
  0x2e   : > { %s5801_s25 = smov (%p33_p1, %s31_s25), 0  ;;  %p5491_p8 = scmp.ne.s32.totalorder %s5486_s18, 0 }
  0x2f   : > { %p47_p6 = por %p46_p4, %p45_p2  ;;  %s35_s26 = ssub.s32 %s2968_s13, %s5801_s25 }
  0x30   : > { %p3099_p10 = por %p5491_p8, %p45_p2  ;;  %p2746_p12 = scmp.lt.s32.totalorder %s2972_s14, 2 }
  0x31   : > { %p36_p13 = scmp.eq.s32.totalorder %s35_s26, 0  ;;  %s137_s24 = sand.u32 1, %s2960_s11  }
  0x32   : > { %s2722_s27 = smul.u32 432, %s137_s24  ;;  %p3111_p11 = pnand %p2746_p12, %p47_p6 }
  0x33   : > { %s3108_s28 = scalar_select %p36_p13, %s2960_s11, %s38_s16  }
  0x34   : > { %s2723_s23 = smul.u32 6912, %s2968_s13  ;;  %s141_s29 = scalar_lea.vmem [#allocation2], %s2722_s27 }
  0x35   : > { %s148_s30 = sshll.u32 %s141_s29, 4  ;;  %s3122_s6 = scalar_lea.sflag [#allocation3], %s137_s24  ;;  %s3120_s30 = int_to_ptr.vmem [resolvable:$true] %s148_s30 }
  0x36   : > { %s3118_s5 = scalar_lea.hbm %s5326_s0, %s2723_s23  ;;  %p2858_p3 = pneg %p3111_p11 }
  0x37   : > { %s2856_s7 = scalar_lea.hbm %s3118_s5, 6912  ;;  %s2861_s16 = scalar_lea.hbm %s5326_s0, 13824 }
  0x38   : > { %p2857_p0 = scmp.ne.s32.totalorder %s3118_s5, %s2856_s7  ;;  %p2862_p9 = scmp.lt.u32.totalorder %s3118_s5, %s5326_s0 }
  0x39   : > { %p2863_p1 = scmp.lt.u32.totalorder %s2861_s16, %s2856_s7  ;;  %p2865_p4 = scmp.lt.u32.totalorder %s2856_s7, %s3118_s5 }
  0x3a   : > { %p2859_p5 = pnand %p2858_p3, %p2857_p0 }
  0x3b   : > { %p2864_p2 = por %p2863_p1, %p2862_p9 }
  0x3c   : > { %p2860_p7 = pneg %p2859_p5 }
  0x3d   : > { %p2866_p6 = por %p2865_p4, %p2864_p2 }
  0x3f   : > { %p2867_p8 = pnand %p2866_p6, %p2860_p7 }
  0x41   : > { %2870 = shalt.err (!%p2867_p8)
}
  0x42   : > { %s2871_s24 = scalar_lea.vmem %s3120_s30, 6912  ;;  %s2977_s23 = smov [#allocation2]  }
  0x43   : > { %p2872_p12 = scmp.ne.s32.totalorder %s3120_s30, %s2871_s24  ;;  %s2876_s29 = sshll.u32 %s2977_s23, 4  ;;  %s2877_s29 = int_to_ptr.vmem [resolvable:$false] %s2876_s29 }
  0x44   : > { %s2878_s4 = scalar_lea.vmem %s2877_s29, 13824  ;;  %p2879_p5 = scmp.lt.s32.totalorder %s3120_s30, %s2877_s29 }
  0x45   : > { %p2874_p13 = pnand %p2872_p12, %p2858_p3  ;;  %p2880_p9 = scmp.lt.s32.totalorder %s2878_s4, %s2871_s24 }
  0x47   : > { %p2875_p0 = pneg %p2874_p13  ;;  %p2881_p1 = por %p2880_p9, %p2879_p5 }
  0x49   : > { %p2882_p2 = pnand %p2881_p1, %p2875_p0 }
  0x4b   : > { %2885 = shalt.err (!%p2882_p2)
}
  0x4c   : > { %s2978_s18 = smov 128   ;;  %s2979_s7 = smov 8  }
  0x4d   : > { %2740 = dma.hbm_to_vmem [thread:$0]  (!%p3111_p11), %s3118_s5, 6912, %s3120_s30, %s3122_s6, %s2978_s18, %s2978_s18, %s2979_s7  }
  0x4e   : > { %p5494_p3 = scmp.ne.s32.totalorder %s5489_s21, 0 }
  0x50   : > { %160 = sbr.rel (%p5494_p3) target bundleno = 1043 (0x413), region = 28 }
  0x57   : > { %s3153_s8 = sand.u32 1, %s2956_s10   ;;  %p5495_p7 = scmp.ne.s32.totalorder %s5487_s19, 0 }
  0x58   : > { %s2724_s15 = smul.u32 432, %s3153_s8  ;;  %s163_s16 = scalar_lea.sflag [#allocation3], %s3153_s8 }
  0x5a   : > { %s3157_s26 = scalar_lea.vmem [#allocation2], %s2724_s15 }
  0x5b   : > { %2939 = dma.done.wait (%p5495_p7), %s163_s16, 6912  }
  0x5c   : > { %2941 = vsyncadd (%p5495_p7), %s163_s16, 4294960384  ;;  %p5496_p11 = scmp.ne.s32.totalorder %s5485_s17, 0 }
  0x5e   : > { %2943 = dma.done.wait (%p5496_p11), [#allocation6], 1152  }
  0x5f   : > { %2945 = vsyncadd (%p5496_p11), [#allocation6], 4294966144  ;;  %v3168_v0 = vld [vmem:[%s3157_s26 + $0x10] sm:$0x3]  ;;  %v3171_v1 = vld [vmem:[%s3157_s26] sm:$0xff]  ;;  %s2980_s19 = smov 120  }
  0x60   : > { %308 = vrot.lane.b32.xlu1 %v3168_v0, %s2980_s19  ;;  %304 = vrot.lane.b32.xlu0 %v3171_v1, %s2980_s19  ;;  %v3178_v2 = vld [vmem:[%s3157_s26 + $0x18] sm:$0xff]  ;;  %v3181_v3 = vld [vmem:[%s3157_s26 + $0x8] sm:$0xff]  ;;  %v3407_v49 = vpack.c.bf16 %v3168_v0, %v3168_v0  ;;  %vm5482_vm0 = vsmask.f32 7424  ;;  %s2981_s17 = smov 16   ;;  %vm1073_vm1 = vcmask 1046528  }
  0x61   : > { %v3188_v4 = vld [vmem:[%s3157_s26 + $0x28] sm:$0x3]  ;;  %v3191_v5 = vld [vmem:[%s3157_s26 + $0x20] sm:$0xff]  ;;  %v3198_v6 = vld [vmem:[%s3157_s26 + $0x38] sm:$0xff]  ;;  %v3397_v46 = vpack.c.bf16 %v3181_v3, %v3171_v1  ;;  %vm1646_vm2 = vcmask 64512   ;;  %vm1663_vm3 = vcmask 130048  }
  0x62   : > { %v3201_v7 = vld [vmem:[%s3157_s26 + $0x30] sm:$0xff]  ;;  %v3208_v8 = vld [vmem:[%s3157_s26 + $0x48] sm:$0xff]  ;;  %v3211_v9 = vld [vmem:[%s3157_s26 + $0x40] sm:$0x3]  ;;  %v3385_v44 = vpack.c.bf16 %v3191_v5, %v3178_v2  ;;  %v3389_v45 = vpack.c.bf16 %v3188_v4, %v3188_v4  ;;  %5528 = vst [vmem:[#allocation42_spill] sm:$0xff] %v3407_v49  ;;  %v601_v57 = vshll.u32 %v3407_v49, 16 }
  0x63   : > { %v3218_v10 = vld [vmem:[%s3157_s26 + $0x58] sm:$0x3]  ;;  %v3221_v11 = vld [vmem:[%s3157_s26 + $0x50] sm:$0xff]  ;;  %v3228_v12 = vld [vmem:[%s3157_s26 + $0x68] sm:$0xff]  ;;  %5527 = vst [vmem:[#allocation41_spill] sm:$0xff] %v3397_v46  ;;  %v596_v55 = vshll.u32 %v3397_v46, 16  ;;  %v3428_v56 = vpack.c.bf16 %v3198_v6, %v3201_v7  ;;  %v3433_v58 = vpack.c.bf16 %v3211_v9, %v3211_v9 }
  0x64   : > { %310 = vrot.lane.b32.xlu1 %v3178_v2, %s2980_s19  ;;  %306 = vrot.lane.b32.xlu0 %v3181_v3, %s2980_s19  ;;  %5497 = vst [vmem:[#allocation11_spill] sm:$0xff] %v3218_v10  ;;  %5498 = vst [vmem:[#allocation12_spill] sm:$0xff] %v3221_v11  ;;  %v3231_v13 = vld [vmem:[%s3157_s26 + $0x60] sm:$0xff]  ;;  %v3238_v14 = vld [vmem:[%s3157_s26 + $0x78] sm:$0xff]  ;;  %v608_v50 = vshll.u32 %v3385_v44, 16  ;;  %v613_v51 = vshll.u32 %v3389_v45, 16  ;;  %v3417_v52 = vpack.c.bf16 %v3221_v11, %v3208_v8 }
  0x65   : > { %5499 = vst [vmem:[#allocation13_spill] sm:$0xff] %v3228_v12  ;;  %5500 = vst [vmem:[#allocation14_spill] sm:$0xff] %v3231_v13  ;;  %v3241_v15 = vld [vmem:[%s3157_s26 + $0x70] sm:$0x3]  ;;  %v3248_v16 = vld [vmem:[%s3157_s26 + $0x88] sm:$0x3]  ;;  %v3438_v61 = vpack.c.bf16 %v3218_v10, %v3218_v10  ;;  %v3442_v62 = vpack.c.bf16 %v3228_v12, %v3231_v13 }
  0x66   : > { %5501 = vst [vmem:[#allocation15_spill] sm:$0xff] %v3238_v14  ;;  %5502 = vst [vmem:[#allocation16_spill] sm:$0xff] %v3241_v15  ;;  %v3251_v17 = vld [vmem:[%s3157_s26 + $0x80] sm:$0xff]  ;;  %v3258_v18 = vld [vmem:[%s3157_s26 + $0x98] sm:$0xff]  ;;  %v606_v59 = vshrl.u32 %v3385_v44, 16  ;;  %v610_v60 = vrot.slane %v608_v50, 1  ;;  %v3446_v63 = vpack.c.bf16 %v3241_v15, %v3241_v15  ;;  %v3454_v50 = vpack.c.bf16 %v3248_v16, %v3248_v16 }
  0x67   : > { %5503 = vst [vmem:[#allocation17_spill] sm:$0xff] %v3248_v16  ;;  %5504 = vst [vmem:[#allocation18_spill] sm:$0xff] %v3251_v17  ;;  %v3261_v19 = vld [vmem:[%s3157_s26 + $0x90] sm:$0xff]  ;;  %v3268_v20 = vld [vmem:[%s3157_s26 + $0xa8] sm:$0xff]  ;;  %s2982_s21 = smov 32   ;;  %s2984_s30 = smov 48  }
  0x68   : > { %314 = vrot.lane.b32.xlu1 %v3188_v4, %s2980_s19  ;;  %312 = vrot.lane.b32.xlu0 %v3191_v5, %s2980_s19  ;;  %5505 = vst [vmem:[#allocation19_spill] sm:$0xff] %v3258_v18  ;;  %5506 = vst [vmem:[#allocation20_spill] sm:$0xff] %v3261_v19  ;;  %v3271_v21 = vld [vmem:[%s3157_s26 + $0xa0] sm:$0x3]  ;;  %v3278_v22 = vld [vmem:[%s3157_s26 + $0xb8] sm:$0x3] }
  0x69   : > { %5507 = vst [vmem:[#allocation21_spill] sm:$0xff] %v3268_v20  ;;  %5508 = vst [vmem:[#allocation22_spill] sm:$0xff] %v3271_v21  ;;  %v3281_v23 = vld [vmem:[%s3157_s26 + $0xb0] sm:$0xff]  ;;  %v3288_v24 = vld [vmem:[%s3157_s26 + $0xc8] sm:$0xff]  ;;  %s2985_s3 = smov 64   ;;  %s2986_s5 = smov 80  }
  0x6a   : > { %5509 = vst [vmem:[#allocation23_spill] sm:$0xff] %v3278_v22  ;;  %5510 = vst [vmem:[#allocation24_spill] sm:$0xff] %v3281_v23  ;;  %v3291_v25 = vld [vmem:[%s3157_s26 + $0xc0] sm:$0xff]  ;;  %v3298_v26 = vld [vmem:[%s3157_s26 + $0xd8] sm:$0xff]  ;;  %s2987_s6 = smov 96   ;;  %s2988_s27 = smov 112  }
  0x6b   : > { %5511 = vst [vmem:[#allocation25_spill] sm:$0xff] %v3288_v24  ;;  %5512 = vst [vmem:[#allocation26_spill] sm:$0xff] %v3291_v25  ;;  %v3301_v27 = vld [vmem:[%s3157_s26 + $0xd0] sm:$0x3]  ;;  %v3308_v28 = vld [vmem:[%s3157_s26 + $0xe8] sm:$0x3] }
  0x6c   : > { %318 = vrot.lane.b32.xlu1 %v3198_v6, %s2980_s19  ;;  %316 = vrot.lane.b32.xlu0 %v3201_v7, %s2980_s19  ;;  %5513 = vst [vmem:[#allocation27_spill] sm:$0xff] %v3298_v26  ;;  %5514 = vst [vmem:[#allocation28_spill] sm:$0xff] %v3301_v27  ;;  %v3311_v29 = vld [vmem:[%s3157_s26 + $0xe0] sm:$0xff]  ;;  %v3318_v30 = vld [vmem:[%s3157_s26 + $0xf8] sm:$0xff]  ;;  %vm1696_vm4 = vcmask 195584   ;;  %vm1729_vm5 = vcmask 261120  }
  0x6d   : > { %5515 = vst [vmem:[#allocation29_spill] sm:$0xff] %v3308_v28  ;;  %5516 = vst [vmem:[#allocation30_spill] sm:$0xff] %v3311_v29  ;;  %v3321_v31 = vld [vmem:[%s3157_s26 + $0xf0] sm:$0xff]  ;;  %v3328_v32 = vld [vmem:[%s3157_s26 + $0x108] sm:$0xff]  ;;  %vm1762_vm6 = vcmask 326656   ;;  %vm1795_vm7 = vcmask 392192  }
  0x6e   : > { %5517 = vst [vmem:[#allocation31_spill] sm:$0xff] %v3318_v30  ;;  %5518 = vst [vmem:[#allocation32_spill] sm:$0xff] %v3321_v31  ;;  %v3331_v33 = vld [vmem:[%s3157_s26 + $0x100] sm:$0x3]  ;;  %v3338_v34 = vld [vmem:[%s3157_s26 + $0x118] sm:$0x3] }
  0x6f   : > { %5519 = vst [vmem:[#allocation33_spill] sm:$0xff] %v3328_v32  ;;  %5520 = vst [vmem:[#allocation34_spill] sm:$0xff] %v3331_v33  ;;  %v3341_v35 = vld [vmem:[%s3157_s26 + $0x110] sm:$0xff]  ;;  %v3348_v36 = vld [vmem:[%s3157_s26 + $0x128] sm:$0xff]  ;;  %vm1828_vm8 = vcmask 457728   ;;  %vm1861_vm9 = vcmask 523264  }
  0x70   : > { %322 = vrot.lane.b32.xlu1 %v3208_v8, %s2980_s19  ;;  %320 = vrot.lane.b32.xlu0 %v3211_v9, %s2980_s19  ;;  %5521 = vst [vmem:[#allocation35_spill] sm:$0xff] %v3338_v34  ;;  %5522 = vst [vmem:[#allocation36_spill] sm:$0xff] %v3341_v35  ;;  %v3351_v37 = vld [vmem:[%s3157_s26 + $0x120] sm:$0xff]  ;;  %v3358_v38 = vld [vmem:[%s3157_s26 + $0x138] sm:$0xff]  ;;  %vm1894_vm10 = vcmask 588800   ;;  %vm1927_vm11 = vcmask 654336  }
  0x71   : > { %5523 = vst [vmem:[#allocation37_spill] sm:$0xff] %v3348_v36  ;;  %5524 = vst [vmem:[#allocation38_spill] sm:$0xff] %v3351_v37  ;;  %v3361_v39 = vld [vmem:[%s3157_s26 + $0x130] sm:$0x3]  ;;  %v3368_v40 = vld [vmem:[%s3157_s26 + $0x148] sm:$0x3] }
  0x72   : > { %v3371_v41 = vld [vmem:[%s3157_s26 + $0x140] sm:$0xff]  ;;  %v3378_v42 = vld [vmem:[%s3157_s26 + $0x158] sm:$0xff]  ;;  %v3381_v43 = vld [vmem:[%s3157_s26 + $0x150] sm:$0xff]  ;;  %5525 = vst [vmem:[#allocation39_spill] sm:$0xff] %v3385_v44  ;;  %v615_v44 = vrot.slane %v613_v51, 1  ;;  %v3466_v51 = vpack.c.bf16 %v3258_v18, %v3261_v19  ;;  %vm5484_vm12 = vcmask 719872  }
  0x73   : > { %5526 = vst [vmem:[#allocation40_spill] sm:$0xff] %v3389_v45  ;;  %v3400_v47 = vld [vmem:[%s3157_s26 + $0x168] sm:$0xff]  ;;  %v3403_v48 = vld [vmem:[%s3157_s26 + $0x160] sm:$0x3]  ;;  %5529 = vst [vmem:[#allocation43_spill] sm:$0xff] %v3417_v52  ;;  %vm1993_vm13 = vcmask 785408  }
  0x74   : > { %326 = vrot.lane.b32.xlu1 %v3218_v10, %s2980_s19  ;;  %324 = vrot.lane.b32.xlu0 %v3221_v11, %s2980_s19  ;;  %v3420_v53 = vld [vmem:[%s3157_s26 + $0x178] sm:$0x3]  ;;  %v3423_v54 = vld [vmem:[%s3157_s26 + $0x170] sm:$0xff]  ;;  %5530 = vst [vmem:[#allocation44_spill] sm:$0xff] %v3433_v58  ;;  %5531 = vst [vmem:[#allocation45_spill] sm:$0xff] %v3438_v61  ;;  %v3462_v11 = vpack.c.bf16 %v3251_v17, %v3238_v14  ;;  %v620_v10 = vshll.u32 %v3428_v56, 16 }
  0x75   : > { %5532 = vst [vmem:[#allocation46_spill] sm:$0xff] %v3446_v63  ;;  %5533 = vst [vmem:[#allocation47_spill] sm:$0xff] %v3454_v50  ;;  %v245_v45 = vld [vmem:[%s3157_s26 + $0x188] sm:$0xff]  ;;  %v244_v49 = vld [vmem:[%s3157_s26 + $0x180] sm:$0xff]  ;;  %vm2026_vm14 = vcmask 850944   ;;  %vm2059_vm15 = vcmask 916480  }
  0x76   : > { %5534 = vst [vmem:[#allocation48_spill] sm:$0xff] %v3462_v11  ;;  %5535 = vst [vmem:[#allocation49_spill] sm:$0xff] %v3466_v51  ;;  %s2672_s24 = sshll.u32 %s3153_s8, 8  ;;  %s2703_s29 = sshll.u32 %s2964_s12, 12 }
  0x77   : > { %s5108_s23 = scalar_lea.vmem [#allocation7], %s2672_s24  ;;  %s5271_s15 = scalar_lea.hbm %s5328_s2, %s2703_s29 }
  0x78   : > { %330 = vrot.lane.b32.xlu1 %v3228_v12, %s2980_s19  ;;  %328 = vrot.lane.b32.xlu0 %v3231_v13, %s2980_s19  ;;  %v594_v13 = vshrl.u32 %v3397_v46, 16  ;;  %v598_v12 = vrot.slane %v596_v55, 1  ;;  %v3475_v55 = vpack.c.bf16 %v3278_v22, %v3278_v22  ;;  %v3479_v46 = vpack.c.bf16 %v3281_v23, %v3268_v20  ;;  %s2568_s4 = sshll.u32 %s5108_s23, 4  ;;  %s2553_s12 = scalar_lea.sflag [#allocation4], %s3153_s8  ;;  %s5273_s4 = int_to_ptr.vmem [resolvable:$true] %s2568_s4 }
  0x79   : > { %s2886_s16 = scalar_lea.vmem %s5273_s4, 4096 }
  0x7a   : > { %5537 = vst [vmem:[#allocation51_spill] sm:$0xff] %v3475_v55  ;;  %5538 = vst [vmem:[#allocation52_spill] sm:$0xff] %v3479_v46  ;;  %p2887_p4 = scmp.ne.s32.totalorder %s5273_s4, %s2886_s16 }
  0x7c   : > { %334 = vrot.lane.b32.xlu1 %v3238_v14, %s2980_s19  ;;  %332 = vrot.lane.b32.xlu0 %v3241_v15, %s2980_s19  ;;  %v632_v15 = vshll.u32 %v3417_v52, 16  ;;  %v603_v14 = vrot.slane %v601_v57, 1  ;;  %v246_v57 = vld [vmem:[%s3157_s26 + $0x190] sm:$0x3]  ;;  %p2888_p6 = pnand %p2887_p4, %p3099_p10 }
  0x7e   : > { %p2889_p8 = pneg %p2888_p6 }
  0x80   : > { %338 = vrot.lane.b32.xlu1 %v3248_v16, %s2980_s19  ;;  %336 = vrot.lane.b32.xlu0 %v3251_v17, %s2980_s19  ;;  %v3470_v16 = vpack.c.bf16 %v3271_v21, %v3271_v21  ;;  %v611_v17 = vor.u32 %v610_v60, %v606_v59  ;;  %v247_v59 = vld [vmem:[%s3157_s26 + $0x198] sm:$0xff]  ;;  %v599_v60 = vor.u32 %v598_v12, %v594_v13 }
  0x81   : > { %v3512_v12 = vpack.c.bf16 %v3331_v33, %v3331_v33 }
  0x82   : > { %5536 = vst [vmem:[#allocation50_spill] sm:$0xff] %v3470_v16  ;;  %v3515_v13 = vsel %vm5482_vm0, %v611_v17, %v615_v44  ;;  %v249_v17 = vld [vmem:[%s3157_s26 + $0x1a8] sm:$0x3]  ;;  %v248_v44 = vld [vmem:[%s3157_s26 + $0x1a0] sm:$0xff] }
  0x83   : > { %5542 = vst [vmem:[#allocation56_spill] sm:$0xff] %v3515_v13 }
  0x84   : > { %342 = vrot.lane.b32.xlu1 %v3258_v18, %s2980_s19  ;;  %340 = vrot.lane.b32.xlu0 %v3261_v19, %s2980_s19  ;;  %v3483_v19 = vpack.c.bf16 %v3288_v24, %v3291_v25  ;;  %v3491_v18 = vpack.c.bf16 %v3308_v28, %v3308_v28 }
  0x86   : > { %5539 = vst [vmem:[#allocation53_spill] sm:$0xff] %v3483_v19 }
  0x88   : > { %346 = vrot.lane.b32.xlu1 %v3268_v20, %s2980_s19  ;;  %344 = vrot.lane.b32.xlu0 %v3271_v21, %s2980_s19  ;;  %v3487_v21 = vpack.c.bf16 %v3301_v27, %v3301_v27  ;;  %v654_v20 = vshrl.u32 %v3462_v11, 16 }
  0x8a   : > { %5540 = vst [vmem:[#allocation54_spill] sm:$0xff] %v3487_v21 }
  0x8c   : > { %350 = vrot.lane.b32.xlu1 %v3278_v22, %s2980_s19  ;;  %348 = vrot.lane.b32.xlu0 %v3281_v23, %s2980_s19  ;;  %v630_v23 = vshrl.u32 %v3417_v52, 16  ;;  %v634_v22 = vrot.slane %v632_v15, 1  ;;  %v3508_v52 = vpack.c.bf16 %v3318_v30, %v3321_v31  ;;  %v644_v15 = vshll.u32 %v3442_v62, 16 }
  0x90   : > { %354 = vrot.lane.b32.xlu1 %v3288_v24, %s2980_s19  ;;  %352 = vrot.lane.b32.xlu0 %v3291_v25, %s2980_s19  ;;  %v637_v25 = vshll.u32 %v3438_v61, 16  ;;  %v622_v24 = vrot.slane %v620_v10, 1  ;;  %v3520_v61 = vpack.c.bf16 %v3338_v34, %v3338_v34  ;;  %v3524_v10 = vpack.c.bf16 %v3341_v35, %v3328_v32 }
  0x92   : > { %5543 = vst [vmem:[#allocation57_spill] sm:$0xff] %v3520_v61 }
  0x94   : > { %358 = vrot.lane.b32.xlu1 %v3298_v26, %s2980_s19  ;;  %356 = vrot.lane.b32.xlu0 %v3301_v27, %s2980_s19  ;;  %v625_v27 = vshll.u32 %v3433_v58, 16  ;;  %v3542_v58 = vpack.c.bf16 %v3361_v39, %v3361_v39 }
  0x96   : > { %5544 = vst [vmem:[#allocation58_spill] sm:$0xff] %v3542_v58 }
  0x98   : > { %362 = vrot.lane.b32.xlu1 %v3308_v28, %s2980_s19  ;;  %360 = vrot.lane.b32.xlu0 %v3311_v29, %s2980_s19  ;;  %v3502_v28 = vpack.c.bf16 %v3311_v29, %v3298_v26  ;;  %v639_v29 = vrot.slane %v637_v25, 1  ;;  %v668_v25 = vshll.u32 %v3466_v51, 16 }
  0x9a   : > { %5541 = vst [vmem:[#allocation55_spill] sm:$0xff] %v3502_v28 }
  0x9c   : > { %366 = vrot.lane.b32.xlu1 %v3318_v30, %s2980_s19  ;;  %364 = vrot.lane.b32.xlu0 %v3321_v31, %s2980_s19  ;;  %v3528_v31 = vpack.c.bf16 %v3348_v36, %v3351_v37  ;;  %v635_v30 = vor.u32 %v634_v22, %v630_v23  ;;  %v3550_v22 = vpack.c.bf16 %v3371_v41, %v3358_v38 }
  0x9d   : > { %v3556_v23 = vpack.c.bf16 %v3378_v42, %v3381_v43 }
  0xa0   : > { %370 = vrot.lane.b32.xlu1 %v3328_v32, %s2980_s19  ;;  %368 = vrot.lane.b32.xlu0 %v3331_v33, %s2980_s19  ;;  %v604_v33 = vsel %vm5482_vm0, %v599_v60, %v603_v14  ;;  %v661_v32 = vshll.u32 %v3454_v50, 16  ;;  %v3546_v14 = vpack.c.bf16 %v3368_v40, %v3368_v40  ;;  %v678_v50 = vshrl.u32 %v3479_v46, 16 }
  0xa2   : > { %5545 = vst [vmem:[#allocation59_spill] sm:$0xff] %v3546_v14 }
  0xa4   : > { %374 = vrot.lane.b32.xlu1 %v3338_v34, %s2980_s19  ;;  %372 = vrot.lane.b32.xlu0 %v3341_v35, %s2980_s19  ;;  %v627_v34 = vrot.slane %v625_v27, 1  ;;  %v704_v27 = vshll.u32 %v3502_v28, 16 }
  0xa8   : > { %378 = vrot.lane.b32.xlu1 %v3348_v36, %s2980_s19  ;;  %376 = vrot.lane.b32.xlu0 %v3351_v37, %s2980_s19  ;;  %v642_v37 = vshrl.u32 %v3442_v62, 16  ;;  %v646_v36 = vrot.slane %v644_v15, 1  ;;  %v685_v15 = vshll.u32 %v3475_v55, 16 }
  0xac   : > { %382 = vrot.lane.b32.xlu1 %v3358_v38, %s2980_s19  ;;  %380 = vrot.lane.b32.xlu0 %v3361_v39, %s2980_s19 }
  0xb0   : > { %386 = vrot.lane.b32.xlu1 %v3368_v40, %s2980_s19  ;;  %384 = vrot.lane.b32.xlu0 %v3371_v41, %s2980_s19 }
  0xb4   : > { %390 = vrot.lane.b32.xlu1 %v3378_v42, %s2980_s19  ;;  %388 = vrot.lane.b32.xlu0 %v3381_v43, %s2980_s19 }
  0xb8   : > { %394 = vrot.lane.b32.xlu1 %v3400_v47, %s2980_s19  ;;  %392 = vrot.lane.b32.xlu0 %v3403_v48, %s2980_s19 }
  0xbc   : > { %398 = vrot.lane.b32.xlu1 %v3420_v53, %s2980_s19  ;;  %396 = vrot.lane.b32.xlu0 %v3423_v54, %s2980_s19 }
  0xc0   : > { %402 = vrot.lane.b32.xlu1 %v245_v45, %s2980_s19  ;;  %400 = vrot.lane.b32.xlu0 %v244_v49, %s2980_s19  ;;  %v618_v45 = vshrl.u32 %v3428_v56, 16  ;;  %v656_v49 = vshll.u32 %v3462_v11, 16 }
  0xc2   : > { %v623_v26 = vor.u32 %v622_v24, %v618_v45  ;;  %v658_v35 = vrot.slane %v656_v49, 1  ;;  %v3559_v24 = vsel %vm5482_vm0, %v635_v30, %v639_v29  ;;  %v663_v49 = vrot.slane %v661_v32, 1 }
  0xc3   : > { %5546 = vst [vmem:[#allocation60_spill] sm:$0xff] %v3559_v24  ;;  %v666_v29 = vshrl.u32 %v3466_v51, 16  ;;  %v728_v30 = vshll.u32 %v3524_v10, 16  ;;  %v670_v32 = vrot.slane %v668_v25, 1  ;;  %v690_v25 = vshrl.u32 %v3483_v19, 16 }
  0xc4   : > { %406 = vrot.lane.b32.xlu1 %v247_v59, %s2980_s19  ;;  %404 = vrot.lane.b32.xlu0 %v246_v57, %s2980_s19  ;;  %v649_v59 = vshll.u32 %v3446_v63, 16  ;;  %v680_v57 = vshll.u32 %v3479_v46, 16  ;;  %v3564_v60 = vsel %vm5482_vm0, %v623_v26, %v627_v34  ;;  %v659_v45 = vor.u32 %v658_v35, %v654_v20 }
  0xc5   : > { %5547 = vst [vmem:[#allocation61_spill] sm:$0xff] %v3564_v60  ;;  %v673_v26 = vshll.u32 %v3470_v16, 16  ;;  %v692_v20 = vshll.u32 %v3483_v19, 16  ;;  %v702_v34 = vshrl.u32 %v3502_v28, 16  ;;  %v706_v35 = vrot.slane %v704_v27, 1 }
  0xc6   : > { %v682_v11 = vrot.slane %v680_v57, 1  ;;  %v716_v57 = vshll.u32 %v3508_v52, 16  ;;  %v697_v27 = vshll.u32 %v3487_v21, 16  ;;  %v671_v16 = vor.u32 %v670_v32, %v666_v29 }
  0xc7   : > { %v694_v46 = vrot.slane %v692_v20, 1  ;;  %v714_v21 = vshrl.u32 %v3508_v52, 16  ;;  %v752_v63 = vshll.u32 %v3550_v22, 16  ;;  %v3601_v20 = vpack.c.bf16 %v3420_v53, %v3420_v53 }
  0xc8   : > { %410 = vrot.lane.b32.xlu1 %v249_v17, %s2980_s19  ;;  %408 = vrot.lane.b32.xlu0 %v248_v44, %s2980_s19  ;;  %v647_v17 = vor.u32 %v646_v36, %v642_v37  ;;  %v651_v44 = vrot.slane %v649_v59, 1  ;;  %v709_v36 = vshll.u32 %v3491_v18, 16  ;;  %v3579_v37 = vpack.c.bf16 %v3403_v48, %v3403_v48 }
  0xc9   : > { %v687_v59 = vrot.slane %v685_v15, 1  ;;  %v683_v55 = vor.u32 %v682_v11, %v678_v50  ;;  %v733_v15 = vshll.u32 %v3520_v61, 16  ;;  %v718_v51 = vrot.slane %v716_v57, 1  ;;  %5551 = vst [vmem:[#allocation65_spill] sm:$0xff] %v3601_v20 }
  0xca   : > { %5548 = vst [vmem:[#allocation62_spill] sm:$0xff] %v3579_v37  ;;  %v711_v11 = vrot.slane %v709_v36, 1  ;;  %v750_v61 = vshrl.u32 %v3550_v22, 16 }
  0xcb   : > { %v3608_v29 = vsel %vm5482_vm0, %v683_v55, %v687_v59  ;;  %v735_v36 = vrot.slane %v733_v15, 1  ;;  %v757_v55 = vshll.u32 %v3546_v14, 16  ;;  %v740_v59 = vshll.u32 %v3528_v31, 16 }
  0xcc   : > { %787 = vrot.lane.b32.xlu1 %v3515_v13, %s2981_s17  ;;  %785 = vrot.lane.b32.xlu0 %v604_v33, %s2981_s17  ;;  %v3582_v33 = vsel %vm5482_vm0, %v659_v45, %v663_v49  ;;  %v3586_v13 = vsel %vm5482_vm0, %v647_v17, %v651_v44  ;;  %v726_v45 = vshrl.u32 %v3524_v10, 16  ;;  %v730_v49 = vrot.slane %v728_v30, 1  ;;  %5552 = vst [vmem:[#allocation66_spill] sm:$0xff] %v3608_v29 }
  0xcd   : > { %5549 = vst [vmem:[#allocation63_spill] sm:$0xff] %v3582_v33  ;;  %5550 = vst [vmem:[#allocation64_spill] sm:$0xff] %v3586_v13  ;;  %v675_v17 = vrot.slane %v673_v26, 1  ;;  %v707_v44 = vor.u32 %v706_v35, %v702_v34  ;;  %v3605_v30 = vpack.c.bf16 %v3423_v54, %v3400_v47  ;;  %v699_v26 = vrot.slane %v697_v27, 1 }
  0xce   : > { %v695_v34 = vor.u32 %v694_v46, %v690_v25  ;;  %v731_v35 = vor.u32 %v730_v49, %v726_v45 }
  0xcf   : > { %v3616_v57 = vsel %vm5482_vm0, %v671_v16, %v675_v17  ;;  %v745_v16 = vshll.u32 %v3542_v58, 16  ;;  %v776_v45 = vshll.u32 %v3605_v30, 16 }
  0xd0   : > { %791 = vrot.lane.b32.xlu1 %v3559_v24, %s2981_s17  ;;  %789 = vrot.lane.b32.xlu0 %v3564_v60, %s2981_s17  ;;  %v721_v24 = vshll.u32 %v3512_v12, 16  ;;  %5553 = vst [vmem:[#allocation67_spill] sm:$0xff] %v3616_v57  ;;  %v3619_v60 = vsel %vm5482_vm0, %v707_v44, %v711_v11 }
  0xd1   : > { %5554 = vst [vmem:[#allocation68_spill] sm:$0xff] %v3619_v60 }
  0xd2   : > { %v309_v50 = vpop.permute.xlu1 %308  ;;  %v305_v19 = vpop.permute.xlu0 %304 }
  0xd3   : > { %v468_v32 = vmul.f32 %v309_v50, %v3168_v0  ;;  %v719_v50 = vor.u32 %v718_v51, %v714_v21  ;;  %v466_v46 = vmul.f32 %v305_v19, %v3171_v1  ;;  %v3635_v21 = vsel %vm5482_vm0, %v695_v34, %v699_v26 }
  0xd4   : > { %795 = vrot.lane.b32.xlu1 %v3582_v33, %s2981_s17  ;;  %793 = vrot.lane.b32.xlu0 %v3586_v13, %s2981_s17  ;;  %v723_v33 = vrot.slane %v721_v24, 1  ;;  %v754_v13 = vrot.slane %v752_v63, 1  ;;  %5555 = vst [vmem:[#allocation69_spill] sm:$0xff] %v3635_v21  ;;  %v3638_v63 = vsel %vm5482_vm0, %v731_v35, %v735_v36  ;;  %v738_v1 = vshrl.u32 %v3528_v31, 16 }
  0xd5   : > { %v3628_v49 = vpack.c.bf16 %v468_v32, %v468_v32  ;;  %5556 = vst [vmem:[#allocation70_spill] sm:$0xff] %v3638_v63  ;;  %v759_v19 = vrot.slane %v757_v55, 1  ;;  %v742_v51 = vrot.slane %v740_v59, 1  ;;  %v764_v24 = vshll.u32 %v3556_v23, 16 }
  0xd6   : > { %v311_v0 = vpop.permute.xlu1 %310  ;;  %v307_v27 = vpop.permute.xlu0 %306  ;;  %v3645_v44 = vsel %vm5482_vm0, %v719_v50, %v723_v33  ;;  %v755_v11 = vor.u32 %v754_v13, %v750_v61  ;;  %v774_v26 = vshrl.u32 %v3605_v30, 16  ;;  %v781_v32 = vshll.u32 %v3601_v20, 16 }
  0xd7   : > { %v467_v25 = vmul.f32 %v307_v27, %v3181_v3  ;;  %5558 = vst [vmem:[#allocation72_spill] sm:$0xff] %v3645_v44  ;;  %v469_v34 = vmul.f32 %v311_v0, %v3178_v2  ;;  %v747_v36 = vrot.slane %v745_v16, 1  ;;  %v778_v27 = vrot.slane %v776_v45, 1 }
  0xd8   : > { %799 = vrot.lane.b32.xlu1 %v3608_v29, %s2981_s17  ;;  %797 = vrot.lane.b32.xlu0 %v3616_v57, %s2981_s17  ;;  %v1187_v55 = vrot.slane %v3628_v49, 1  ;;  %v762_v61 = vshrl.u32 %v3556_v23, 16  ;;  %v743_v2 = vor.u32 %v742_v51, %v738_v1  ;;  %v769_v0 = vshll.u32 %v3579_v37, 16 }
  0xd9   : > { %v3641_v3 = vpack.c.bf16 %v467_v25, %v466_v46  ;;  %v779_v1 = vor.u32 %v778_v27, %v774_v26  ;;  %v783_v51 = vrot.slane %v781_v32, 1  ;;  %v825_v26 = vshll.u32 %v3628_v49, 16 }
  0xda   : > { %v315_v15 = vpop.permute.xlu1 %314  ;;  %v313_v17 = vpop.permute.xlu0 %312 }
  0xdb   : > { %5557 = vst [vmem:[#allocation71_spill] sm:$0xff] %v3641_v3  ;;  %v470_v35 = vmul.f32 %v313_v17, %v3191_v5  ;;  %v471_v59 = vmul.f32 %v315_v15, %v3188_v4  ;;  %v1186_v13 = vrot.slane %v3641_v3, 1  ;;  %v766_v5 = vrot.slane %v764_v24, 1 }
  0xdc   : > { %803 = vrot.lane.b32.xlu1 %v3619_v60, %s2981_s17  ;;  %801 = vrot.lane.b32.xlu0 %v3635_v21, %s2981_s17  ;;  %v820_v4 = vshll.u32 %v3641_v3, 16  ;;  %v3669_v15 = vsel %vm5482_vm0, %v755_v11, %v759_v19  ;;  %v771_v19 = vrot.slane %v769_v0, 1  ;;  %v3691_v32 = vsel %vm5482_vm0, %v779_v1, %v783_v51  ;;  %v5564_v1 = vld [vmem:[#allocation11_spill] sm:$0xff]  ;;  %v5568_v21 = vld [vmem:[#allocation13_spill] sm:$0xff] }
  0xdd   : > { %v3659_v33 = vpack.c.bf16 %v470_v35, %v469_v34  ;;  %v3664_v25 = vsel %vm1073_vm1, %v1186_v13, %v1187_v55  ;;  %5559 = vst [vmem:[#allocation73_spill] sm:$0xff] %v3669_v15  ;;  %v3671_v17 = vpack.c.bf16 %v471_v59, %v471_v59  ;;  %5561 = vst [vmem:[#allocation75_spill] sm:$0xff] %v3691_v32  ;;  %v818_v27 = vshrl.u32 %v3641_v3, 16 }
  0xde   : > { %v319_v50 = vpop.permute.xlu1 %318  ;;  %v317_v46 = vpop.permute.xlu0 %316  ;;  %v822_v13 = vrot.slane %v820_v4, 1 }
  0xdf   : > { %v473_v16 = vmul.f32 %v319_v50, %v3198_v6  ;;  %v472_v45 = vmul.f32 %v317_v46, %v3201_v7  ;;  %v832_v24 = vshll.u32 %v3659_v33, 16  ;;  %v3681_v6 = vsel %vm5482_vm0, %v743_v2, %v747_v36 }
  0xe0   : > { %807 = vrot.lane.b32.xlu1 %v3638_v63, %s2981_s17  ;;  %805 = vrot.lane.b32.xlu0 %v3645_v44, %s2981_s17  ;;  %5560 = vst [vmem:[#allocation74_spill] sm:$0xff] %v3681_v6  ;;  %v767_v7 = vor.u32 %v766_v5, %v762_v61  ;;  %v837_v11 = vshll.u32 %v3671_v17, 16  ;;  %v830_v36 = vshrl.u32 %v3659_v33, 16 }
  0xe1   : > { %v3678_v34 = vpack.c.bf16 %v473_v16, %v472_v45  ;;  %v834_v59 = vrot.slane %v832_v24, 1  ;;  %v823_v16 = vor.u32 %v822_v13, %v818_v27  ;;  %v5565_v24 = vld [vmem:[#allocation12_spill] sm:$0xff] }
  0xe2   : > { %v323_v35 = vpop.permute.xlu1 %322  ;;  %v321_v55 = vpop.permute.xlu0 %320  ;;  %v839_v5 = vrot.slane %v837_v11, 1 }
  0xe3   : > { %v474_v50 = vmul.f32 %v321_v55, %v3211_v9  ;;  %v3698_v9 = vsel %vm5482_vm0, %v767_v7, %v771_v19  ;;  %v3703_v49 = vsel %vm1646_vm2, %v3428_v56, %v3678_v34  ;;  %v844_v2 = vshll.u32 %v3678_v34, 16  ;;  %v5566_v19 = vld [vmem:[#allocation44_spill] sm:$0xff] }
  0xe4   : > { %811 = vrot.lane.b32.xlu1 %v3669_v15, %s2981_s17  ;;  %809 = vrot.lane.b32.xlu0 %v3681_v6, %s2981_s17  ;;  %5562 = vst [vmem:[#allocation76_spill] sm:$0xff] %v3698_v9  ;;  %5563 = vst [vmem:[#allocation77_spill] sm:$0xff] %v3703_v49  ;;  %v835_v4 = vor.u32 %v834_v59, %v830_v36  ;;  %v475_v45 = vmul.f32 %v323_v35, %v3208_v8  ;;  %v2191_v11 = vrot.slane %v3703_v49, 1  ;;  %v5585_v15 = vld [vmem:[#allocation21_spill] sm:$0xff] }
  0xe5   : > { %v3695_v61 = vpack.c.bf16 %v474_v50, %v474_v50  ;;  %v827_v50 = vrot.slane %v825_v26, 1  ;;  %v846_v13 = vrot.slane %v844_v2, 1 }
  0xe6   : > { %v327_v0 = vpop.permute.xlu1 %326  ;;  %v325_v46 = vpop.permute.xlu0 %324  ;;  %v3722_v26 = vsel %vm5482_vm0, %v835_v4, %v839_v5 }
  0xe7   : > { %v477_v51 = vmul.f32 %v327_v0, %v5564_v1  ;;  %v476_v7 = vmul.f32 %v325_v46, %v5565_v24  ;;  %v2141_v55 = vsel %vm1646_vm2, %v5566_v19, %v3695_v61  ;;  %v849_v8 = vshll.u32 %v3695_v61, 16  ;;  %5567 = vst [vmem:[#allocation11_spill] sm:$0xff] %v3722_v26 }
  0xe8   : > { %815 = vrot.lane.b32.xlu1 %v3691_v32, %s2981_s17  ;;  %813 = vrot.lane.b32.xlu0 %v3698_v9, %s2981_s17  ;;  %v2192_v59 = vrot.slane %v2141_v55, 1  ;;  %v828_v46 = vsel %vm5482_vm0, %v823_v16, %v827_v50  ;;  %v842_v1 = vshrl.u32 %v3678_v34, 16  ;;  %v5569_v32 = vld [vmem:[#allocation14_spill] sm:$0xff]  ;;  %v5570_v50 = vld [vmem:[#allocation16_spill] sm:$0xff] }
  0xe9   : > { %v3718_v35 = vpack.c.bf16 %v476_v7, %v475_v45  ;;  %v3726_v24 = vpack.c.bf16 %v477_v51, %v477_v51  ;;  %v851_v2 = vrot.slane %v849_v8, 1 }
  0xea   : > { %v331_v36 = vpop.permute.xlu1 %330  ;;  %v329_v27 = vpop.permute.xlu0 %328  ;;  %v2193_v0 = vsel %vm1073_vm1, %v2191_v11, %v2192_v59  ;;  %v847_v16 = vor.u32 %v846_v13, %v842_v1 }
  0xeb   : > { %v479_v55 = vmul.f32 %v331_v36, %v5568_v21  ;;  %v478_v29 = vmul.f32 %v329_v27, %v5569_v32  ;;  %2682 = vmatprep.mubr.msk.bf16.mxu0 %vm1663_vm3, %v2193_v0  ;;  %v856_v5 = vshll.u32 %v3718_v35, 16  ;;  %v861_v45 = vshll.u32 %v3726_v24, 16 }
  0xec   : > { %1011 = vrot.lane.b32.xlu1 %v3722_v26, %s2981_s17  ;;  %1009 = vrot.lane.b32.xlu0 %v828_v46, %s2981_s17  ;;  %v854_v21 = vshrl.u32 %v3718_v35, 16  ;;  %v3741_v59 = vsel %vm5482_vm0, %v847_v16, %v851_v2  ;;  %v5576_v16 = vld [vmem:[#allocation18_spill] sm:$0xff] }
  0xed   : > { %v3735_v4 = vpack.c.bf16 %v479_v55, %v478_v29  ;;  %v858_v32 = vrot.slane %v856_v5, 1  ;;  %5571 = vst [vmem:[#allocation12_spill] sm:$0xff] %v3741_v59  ;;  %v863_v8 = vrot.slane %v861_v45, 1  ;;  %v5574_v55 = vld [vmem:[#allocation15_spill] sm:$0xff]  ;;  %v5613_v26 = vld [vmem:[#allocation38_spill] sm:$0xff] }
  0xee   : > { %v335_v51 = vpop.permute.xlu1 %334  ;;  %v333_v7 = vpop.permute.xlu0 %332 }
  0xef   : > { %v480_v11 = vmul.f32 %v333_v7, %v5570_v50  ;;  %v859_v36 = vor.u32 %v858_v32, %v854_v21  ;;  %v868_v29 = vshll.u32 %v3735_v4, 16  ;;  %v481_v5 = vmul.f32 %v335_v51, %v5574_v55  ;;  %v5575_v7 = vld [vmem:[#allocation17_spill] sm:$0xff]  ;;  %v5578_v51 = vld [vmem:[#allocation19_spill] sm:$0xff] }
  0xf0   : > { %1013 = vrot.lane.b32.xlu0 %v3741_v59, %s2981_s17  ;;  %v866_v21 = vshrl.u32 %v3735_v4, 16 }
  0xf1   : > { %v3746_v13 = vpack.c.bf16 %v480_v11, %v480_v11  ;;  %v3749_v0 = vsel %vm5482_vm0, %v859_v36, %v863_v8  ;;  %v870_v1 = vrot.slane %v868_v29, 1 }
  0xf2   : > { %v339_v27 = vpop.permute.xlu1 %338  ;;  %5573 = vst [vmem:[#allocation13_spill] sm:$0xff] %v3749_v0  ;;  %v337_v46 = vpop.permute.xlu0 %336  ;;  %1015 = vrot.lane.b32.xlu1 %v3749_v0, %s2981_s17 }
  0xf3   : > { %5572 = vst [vmem:[#allocation44_spill] sm:$0xff] %v3746_v13  ;;  %v483_v2 = vmul.f32 %v339_v27, %v5575_v7  ;;  %v482_v45 = vmul.f32 %v337_v46, %v5576_v16  ;;  %v873_v32 = vshll.u32 %v3746_v13, 16  ;;  %v871_v36 = vor.u32 %v870_v1, %v866_v21  ;;  %v5579_v27 = vld [vmem:[#allocation20_spill] sm:$0xff] }
  0xf5   : > { %v3758_v50 = vpack.c.bf16 %v482_v45, %v481_v5  ;;  %v875_v49 = vrot.slane %v873_v32, 1  ;;  %v3760_v29 = vpack.c.bf16 %v483_v2, %v483_v2  ;;  %v5582_v32 = vld [vmem:[#allocation22_spill] sm:$0xff] }
  0xf6   : > { %v343_v11 = vpop.permute.xlu1 %342  ;;  %v341_v8 = vpop.permute.xlu0 %340 }
  0xf7   : > { %5577 = vst [vmem:[#allocation14_spill] sm:$0xff] %v3760_v29  ;;  %v485_v55 = vmul.f32 %v343_v11, %v5578_v51  ;;  %v484_v7 = vmul.f32 %v341_v8, %v5579_v27  ;;  %v3765_v9 = vsel %vm5482_vm0, %v871_v36, %v875_v49  ;;  %v880_v46 = vshll.u32 %v3758_v50, 16 }
  0xf8   : > { %5580 = vst [vmem:[#allocation16_spill] sm:$0xff] %v3765_v9  ;;  %1017 = vrot.lane.b32.xlu0 %v3765_v9, %s2981_s17  ;;  %v885_v5 = vshll.u32 %v3760_v29, 16  ;;  %v878_v2 = vshrl.u32 %v3758_v50, 16  ;;  %v5586_v9 = vld [vmem:[#allocation23_spill] sm:$0xff] }
  0xf9   : > { %v3768_v16 = vpack.c.bf16 %v485_v55, %v484_v7  ;;  %v882_v21 = vrot.slane %v880_v46, 1  ;;  %v5587_v46 = vld [vmem:[#allocation24_spill] sm:$0xff] }
  0xfa   : > { %v347_v1 = vpop.permute.xlu1 %346  ;;  %v345_v45 = vpop.permute.xlu0 %344  ;;  %v887_v8 = vrot.slane %v885_v5, 1 }
  0xfb   : > { %5581 = vst [vmem:[#allocation15_spill] sm:$0xff] %v3768_v16  ;;  %v486_v11 = vmul.f32 %v345_v45, %v5582_v32  ;;  %v883_v51 = vor.u32 %v882_v21, %v878_v2  ;;  %v892_v49 = vshll.u32 %v3768_v16, 16  ;;  %v487_v3 = vmul.f32 %v347_v1, %v5585_v15  ;;  %v5590_v15 = vld [vmem:[#allocation25_spill] sm:$0xff] }
  0xfc   : > { %v890_v45 = vshrl.u32 %v3768_v16, 16  ;;  %v5597_v16 = vld [vmem:[#allocation29_spill] sm:$0xff] }
  0xfd   : > { %v3776_v36 = vpack.c.bf16 %v486_v11, %v486_v11  ;;  %v3779_v27 = vsel %vm5482_vm0, %v883_v51, %v887_v8  ;;  %v894_v57 = vrot.slane %v892_v49, 1 }
  0xfe   : > { %v351_v55 = vpop.permute.xlu1 %350  ;;  %5584 = vst [vmem:[#allocation18_spill] sm:$0xff] %v3779_v27  ;;  %v349_v7 = vpop.permute.xlu0 %348  ;;  %1019 = vrot.lane.b32.xlu1 %v3779_v27, %s2981_s17 }
  0xff   : > { %5583 = vst [vmem:[#allocation17_spill] sm:$0xff] %v3776_v36  ;;  %v489_v6 = vmul.f32 %v351_v55, %v5586_v9  ;;  %v488_v5 = vmul.f32 %v349_v7, %v5587_v46  ;;  %v897_v2 = vshll.u32 %v3776_v36, 16  ;;  %v895_v8 = vor.u32 %v894_v57, %v890_v45  ;;  %v5591_v9 = vld [vmem:[#allocation26_spill] sm:$0xff] }
 0x101   : > { %v3788_v21 = vpack.c.bf16 %v488_v5, %v487_v3  ;;  %v899_v51 = vrot.slane %v897_v2, 1  ;;  %v3790_v49 = vpack.c.bf16 %v489_v6, %v489_v6  ;;  %v5593_v2 = vld [vmem:[#allocation28_spill] sm:$0xff] }
 0x102   : > { %v355_v32 = vpop.permute.xlu1 %354  ;;  %v353_v11 = vpop.permute.xlu0 %352 }
 0x103   : > { %5588 = vst [vmem:[#allocation19_spill] sm:$0xff] %v3788_v21  ;;  %5589 = vst [vmem:[#allocation20_spill] sm:$0xff] %v3790_v49  ;;  %v491_v1 = vmul.f32 %v355_v32, %v5590_v15  ;;  %v490_v55 = vmul.f32 %v353_v11, %v5591_v9  ;;  %v3795_v27 = vsel %vm5482_vm0, %v895_v8, %v899_v51  ;;  %v904_v7 = vshll.u32 %v3788_v21, 16 }
 0x104   : > { %5592 = vst [vmem:[#allocation22_spill] sm:$0xff] %v3795_v27  ;;  %1021 = vrot.lane.b32.xlu0 %v3795_v27, %s2981_s17  ;;  %v909_v3 = vshll.u32 %v3790_v49, 16  ;;  %v902_v6 = vshrl.u32 %v3788_v21, 16  ;;  %v5596_v49 = vld [vmem:[#allocation27_spill] sm:$0xff] }
 0x105   : > { %v3798_v46 = vpack.c.bf16 %v491_v1, %v490_v55  ;;  %v906_v45 = vrot.slane %v904_v7, 1  ;;  %v5598_v7 = vld [vmem:[#allocation30_spill] sm:$0xff] }
 0x106   : > { %v359_v57 = vpop.permute.xlu1 %358  ;;  %v357_v5 = vpop.permute.xlu0 %356  ;;  %v911_v11 = vrot.slane %v909_v3, 1 }
 0x107   : > { %v492_v32 = vmul.f32 %v357_v5, %v5593_v2  ;;  %v907_v15 = vor.u32 %v906_v45, %v902_v6  ;;  %v916_v8 = vshll.u32 %v3798_v46, 16  ;;  %v493_v27 = vmul.f32 %v359_v57, %v5596_v49  ;;  %v5601_v49 = vld [vmem:[#allocation31_spill] sm:$0xff] }
 0x108   : > { %v914_v5 = vshrl.u32 %v3798_v46, 16 }
 0x109   : > { %v3806_v51 = vpack.c.bf16 %v492_v32, %v492_v32  ;;  %v3809_v9 = vsel %vm5482_vm0, %v907_v15, %v911_v11  ;;  %v918_v36 = vrot.slane %v916_v8, 1 }
 0x10a   : > { %v363_v1 = vpop.permute.xlu1 %362  ;;  %5595 = vst [vmem:[#allocation23_spill] sm:$0xff] %v3809_v9  ;;  %v361_v55 = vpop.permute.xlu0 %360  ;;  %1023 = vrot.lane.b32.xlu1 %v3809_v9, %s2981_s17 }
 0x10b   : > { %5594 = vst [vmem:[#allocation21_spill] sm:$0xff] %v3806_v51  ;;  %v495_v0 = vmul.f32 %v363_v1, %v5597_v16  ;;  %v494_v3 = vmul.f32 %v361_v55, %v5598_v7  ;;  %v921_v6 = vshll.u32 %v3806_v51, 16  ;;  %v919_v15 = vor.u32 %v918_v36, %v914_v5  ;;  %v5602_v1 = vld [vmem:[#allocation32_spill] sm:$0xff] }
 0x10d   : > { %v3818_v45 = vpack.c.bf16 %v495_v0, %v495_v0  ;;  %v3820_v2 = vpack.c.bf16 %v494_v3, %v493_v27  ;;  %v923_v8 = vrot.slane %v921_v6, 1 }
 0x10e   : > { %v367_v32 = vpop.permute.xlu1 %366  ;;  %v365_v11 = vpop.permute.xlu0 %364 }
 0x10f   : > { %5599 = vst [vmem:[#allocation24_spill] sm:$0xff] %v3818_v45  ;;  %5600 = vst [vmem:[#allocation25_spill] sm:$0xff] %v3820_v2  ;;  %v2148_v16 = vsel %vm1646_vm2, %v3491_v18, %v3818_v45  ;;  %v497_v57 = vmul.f32 %v367_v32, %v5601_v49  ;;  %v496_v55 = vmul.f32 %v365_v11, %v5602_v1  ;;  %v928_v0 = vshll.u32 %v3820_v2, 16 }
 0x110   : > { %v3828_v7 = vsel %vm5482_vm0, %v919_v15, %v923_v8  ;;  %v2213_v9 = vrot.slane %v2148_v16, 1  ;;  %v933_v36 = vshll.u32 %v3818_v45, 16  ;;  %v3839_v3 = vsel %vm1646_vm2, %v3502_v28, %v3820_v2  ;;  %v5605_v8 = vld [vmem:[#allocation34_spill] sm:$0xff] }
 0x111   : > { %5603 = vst [vmem:[#allocation26_spill] sm:$0xff] %v3828_v7  ;;  %v3831_v27 = vpack.c.bf16 %v497_v57, %v496_v55  ;;  %1025 = vrot.lane.b32.xlu0 %v3828_v7, %s2981_s17  ;;  %5604 = vst [vmem:[#allocation28_spill] sm:$0xff] %v3839_v3  ;;  %v926_v32 = vshrl.u32 %v3820_v2, 16  ;;  %v930_v11 = vrot.slane %v928_v0, 1  ;;  %v2212_v15 = vrot.slane %v3839_v3, 1 }
 0x112   : > { %v371_v5 = vpop.permute.xlu1 %370  ;;  %v369_v6 = vpop.permute.xlu0 %368  ;;  %v935_v49 = vrot.slane %v933_v36, 1  ;;  %v5608_v36 = vld [vmem:[#allocation33_spill] sm:$0xff] }
 0x113   : > { %v498_v16 = vmul.f32 %v369_v6, %v5605_v8  ;;  %v931_v57 = vor.u32 %v930_v11, %v926_v32  ;;  %v940_v1 = vshll.u32 %v3831_v27, 16  ;;  %v3850_v7 = vsel %vm1646_vm2, %v3508_v52, %v3831_v27  ;;  %v5609_v11 = vld [vmem:[#allocation35_spill] sm:$0xff] }
 0x114   : > { %v3853_v21 = vsel %vm1073_vm1, %v2212_v15, %v2213_v9  ;;  %v499_v32 = vmul.f32 %v371_v5, %v5608_v36  ;;  %v2215_v15 = vrot.slane %v3850_v7, 1 }
 0x115   : > { %v3845_v55 = vpack.c.bf16 %v498_v16, %v498_v16  ;;  %5606 = vst [vmem:[#allocation27_spill] sm:$0xff] %v3853_v21  ;;  %v3856_v0 = vsel %vm5482_vm0, %v931_v57, %v935_v49  ;;  %v942_v6 = vrot.slane %v940_v1, 1  ;;  %v5610_v16 = vld [vmem:[#allocation36_spill] sm:$0xff]  ;;  %v938_v49 = vshrl.u32 %v3831_v27, 16 }
 0x116   : > { %v375_v63 = vpop.permute.xlu1 %374  ;;  %5607 = vst [vmem:[#allocation29_spill] sm:$0xff] %v3856_v0  ;;  %v373_v3 = vpop.permute.xlu0 %372  ;;  %1027 = vrot.lane.b32.xlu1 %v3856_v0, %s2981_s17 }
 0x117   : > { %v501_v8 = vmul.f32 %v375_v63, %v5609_v11  ;;  %v500_v59 = vmul.f32 %v373_v3, %v5610_v16  ;;  %v2149_v9 = vsel %vm1646_vm2, %v3512_v12, %v3845_v55  ;;  %v945_v57 = vshll.u32 %v3845_v55, 16  ;;  %v5612_v16 = vld [vmem:[#allocation37_spill] sm:$0xff] }
 0x118   : > { %v2216_v21 = vrot.slane %v2149_v9, 1  ;;  %v943_v11 = vor.u32 %v942_v6, %v938_v49 }
 0x119   : > { %v3869_v1 = vpack.c.bf16 %v500_v59, %v499_v32  ;;  %v947_v44 = vrot.slane %v945_v57, 1  ;;  %v3872_v3 = vpack.c.bf16 %v501_v8, %v501_v8 }
 0x11a   : > { %v379_v5 = vpop.permute.xlu1 %378  ;;  %v377_v63 = vpop.permute.xlu0 %376  ;;  %v2217_v36 = vsel %vm1073_vm1, %v2215_v15, %v2216_v21 }
 0x11b   : > { %5611 = vst [vmem:[#allocation30_spill] sm:$0xff] %v3872_v3  ;;  %v503_v45 = vmul.f32 %v379_v5, %v5612_v16  ;;  %v502_v0 = vmul.f32 %v377_v63, %v5613_v26  ;;  %2690 = vmatprep.mubr.msk.bf16.mxu1 %vm1663_vm3, %v2217_v36  ;;  %v3878_v9 = vsel %vm5482_vm0, %v943_v11, %v947_v44  ;;  %v952_v59 = vshll.u32 %v3869_v1, 16 }
 0x11c   : > { %1029 = vrot.lane.b32.xlu0 %v3878_v9, %s2981_s17  ;;  %v957_v21 = vshll.u32 %v3872_v3, 16  ;;  %v950_v15 = vshrl.u32 %v3869_v1, 16 }
 0x11d   : > { %v3881_v32 = vpack.c.bf16 %v503_v45, %v502_v0  ;;  %v954_v49 = vrot.slane %v952_v59, 1 }
 0x11e   : > { %v383_v6 = vpop.permute.xlu1 %382  ;;  %v381_v8 = vpop.permute.xlu0 %380  ;;  %v959_v57 = vrot.slane %v957_v21, 1 }
 0x11f   : > { %v504_v26 = vmul.f32 %v381_v8, %v3361_v39  ;;  %v955_v5 = vor.u32 %v954_v49, %v950_v15  ;;  %v964_v44 = vshll.u32 %v3881_v32, 16  ;;  %v505_v16 = vmul.f32 %v383_v6, %v3358_v38 }
 0x120   : > { %v962_v59 = vshrl.u32 %v3881_v32, 16 }
 0x121   : > { %v3889_v63 = vpack.c.bf16 %v504_v26, %v504_v26  ;;  %v3892_v0 = vsel %vm5482_vm0, %v955_v5, %v959_v57  ;;  %v966_v11 = vrot.slane %v964_v44, 1 }
 0x122   : > { %v387_v45 = vpop.permute.xlu1 %386  ;;  %v385_v36 = vpop.permute.xlu0 %384  ;;  %1031 = vrot.lane.b32.xlu1 %v3892_v0, %s2981_s17 }
 0x123   : > { %v507_v3 = vmul.f32 %v387_v45, %v3368_v40  ;;  %v506_v39 = vmul.f32 %v385_v36, %v3371_v41  ;;  %v969_v21 = vshll.u32 %v3889_v63, 16  ;;  %v967_v26 = vor.u32 %v966_v11, %v962_v59 }
 0x125   : > { %v3901_v8 = vpack.c.bf16 %v506_v39, %v505_v16  ;;  %v971_v57 = vrot.slane %v969_v21, 1  ;;  %v3903_v5 = vpack.c.bf16 %v507_v3, %v507_v3 }
 0x126   : > { %v391_v15 = vpop.permute.xlu1 %390  ;;  %v389_v49 = vpop.permute.xlu0 %388 }
 0x127   : > { %5614 = vst [vmem:[#allocation31_spill] sm:$0xff] %v3903_v5  ;;  %v509_v38 = vmul.f32 %v391_v15, %v3378_v42  ;;  %v508_v40 = vmul.f32 %v389_v49, %v3381_v43  ;;  %v3908_v6 = vsel %vm5482_vm0, %v967_v26, %v971_v57  ;;  %v976_v41 = vshll.u32 %v3901_v8, 16 }
 0x128   : > { %1033 = vrot.lane.b32.xlu0 %v3908_v6, %s2981_s17  ;;  %v981_v45 = vshll.u32 %v3903_v5, 16  ;;  %v974_v3 = vshrl.u32 %v3901_v8, 16  ;;  %v5633_v5 = vld [vmem:[#allocation54_spill] sm:$0xff] }
 0x129   : > { %v3911_v44 = vpack.c.bf16 %v509_v38, %v508_v40  ;;  %v978_v16 = vrot.slane %v976_v41, 1 }
 0x12a   : > { %v395_v36 = vpop.permute.xlu1 %394  ;;  %v393_v11 = vpop.permute.xlu0 %392  ;;  %v983_v43 = vrot.slane %v981_v45, 1 }
 0x12b   : > { %v510_v42 = vmul.f32 %v393_v11, %v3403_v48  ;;  %v979_v39 = vor.u32 %v978_v16, %v974_v3  ;;  %v988_v59 = vshll.u32 %v3911_v44, 16  ;;  %v511_v38 = vmul.f32 %v395_v36, %v3400_v47  ;;  %v5617_v11 = vld [vmem:[#allocation42_spill] sm:$0xff] }
 0x12c   : > { %v986_v41 = vshrl.u32 %v3911_v44, 16  ;;  %v1075_v3 = vrot.slane %v5617_v11, 1 }
 0x12d   : > { %v3919_v21 = vpack.c.bf16 %v510_v42, %v510_v42  ;;  %v3922_v49 = vsel %vm5482_vm0, %v979_v39, %v983_v43  ;;  %v990_v57 = vrot.slane %v988_v59, 1  ;;  %v5618_v42 = vld [vmem:[#allocation41_spill] sm:$0xff] }
 0x12e   : > { %v399_v15 = vpop.permute.xlu1 %398  ;;  %5616 = vst [vmem:[#allocation34_spill] sm:$0xff] %v3922_v49  ;;  %v397_v26 = vpop.permute.xlu0 %396  ;;  %1035 = vrot.lane.b32.xlu1 %v3922_v49, %s2981_s17  ;;  %v1074_v43 = vrot.slane %v5618_v42, 1 }
 0x12f   : > { %5615 = vst [vmem:[#allocation32_spill] sm:$0xff] %v3919_v21  ;;  %v513_v40 = vmul.f32 %v399_v15, %v3420_v53  ;;  %v512_v48 = vmul.f32 %v397_v26, %v3423_v54  ;;  %v993_v45 = vshll.u32 %v3919_v21, 16  ;;  %v991_v39 = vor.u32 %v990_v57, %v986_v41  ;;  %v5621_v41 = vld [vmem:[#allocation40_spill] sm:$0xff] }
 0x130   : > { %v1076_v54 = vsel %vm1073_vm1, %v1074_v43, %v1075_v3  ;;  %v1080_v57 = vrot.slane %v3428_v56, 1 }
 0x131   : > { %v3932_v16 = vpack.c.bf16 %v512_v48, %v511_v38  ;;  %v995_v59 = vrot.slane %v993_v45, 1  ;;  %v3935_v47 = vpack.c.bf16 %v513_v40, %v513_v40  ;;  %v1081_v40 = vrot.slane %v5566_v19, 1 }
 0x132   : > { %v1078_v45 = vrot.slane %v5621_v41, 1  ;;  %v5628_v41 = vld [vmem:[#allocation50_spill] sm:$0xff] }
 0x133   : > { %5619 = vst [vmem:[#allocation33_spill] sm:$0xff] %v3935_v47  ;;  %v3938_v53 = vsel %vm5482_vm0, %v991_v39, %v995_v59  ;;  %v1000_v36 = vshll.u32 %v3932_v16, 16  ;;  %v1005_v15 = vshll.u32 %v3935_v47, 16  ;;  %v998_v26 = vshrl.u32 %v3932_v16, 16  ;;  %v5622_v39 = vld [vmem:[#allocation39_spill] sm:$0xff]  ;;  %v5624_v47 = vld [vmem:[#allocation46_spill] sm:$0xff] }
 0x134   : > { %5620 = vst [vmem:[#allocation35_spill] sm:$0xff] %v3938_v53  ;;  %1037 = vrot.lane.b32.xlu0 %v3938_v53, %s2981_s17  ;;  %v1077_v59 = vrot.slane %v5622_v39, 1  ;;  %v3955_v43 = vsel %vm1073_vm1, %v1080_v57, %v1081_v40  ;;  %v1087_v21 = vrot.slane %v5624_v47, 1  ;;  %v5627_v40 = vld [vmem:[#allocation49_spill] sm:$0xff]  ;;  %v5630_v53 = vld [vmem:[#allocation47_spill] sm:$0xff] }
 0x135   : > { %v1002_v38 = vrot.slane %v1000_v36, 1  ;;  %v1007_v48 = vrot.slane %v1005_v15, 1  ;;  %v1086_v36 = vrot.slane %v3442_v62, 1  ;;  %v5625_v15 = vld [vmem:[#allocation43_spill] sm:$0xff]  ;;  %v1090_v47 = vrot.slane %v5630_v53, 1 }
 0x136   : > { %v3962_v19 = vsel %vm1073_vm1, %v1077_v59, %v1078_v45  ;;  %v5629_v59 = vld [vmem:[#allocation48_spill] sm:$0xff] }
 0x137   : > { %v1003_v11 = vor.u32 %v1002_v38, %v998_v26  ;;  %v1083_v26 = vrot.slane %v5625_v15, 1  ;;  %v5626_v38 = vld [vmem:[#allocation45_spill] sm:$0xff]  ;;  %v3969_v57 = vsel %vm1073_vm1, %v1086_v36, %v1087_v21 }
 0x138   : > { %1122 = vrot.lane.b32.xlu0 %v1076_v54, %s2982_s21  ;;  %v1084_v54 = vrot.slane %v5626_v38, 1  ;;  %v5632_v36 = vld [vmem:[#allocation53_spill] sm:$0xff]  ;;  %v5635_v38 = vld [vmem:[#allocation51_spill] sm:$0xff] }
 0x139   : > { %v3952_v3 = vsel %vm5482_vm0, %v1003_v11, %v1007_v48  ;;  %v1092_v48 = vrot.slane %v5627_v40, 1  ;;  %v1093_v11 = vrot.slane %v5628_v41, 1  ;;  %v1098_v40 = vrot.slane %v5632_v36, 1  ;;  %v4001_v36 = vpop.permute.xlu0 %400 }
 0x13a   : > { %5623 = vst [vmem:[#allocation36_spill] sm:$0xff] %v3952_v3  ;;  %1039 = vrot.lane.b32.xlu1 %v3952_v3, %s2981_s17  ;;  %v3976_v45 = vsel %vm1073_vm1, %v1083_v26, %v1084_v54  ;;  %v1089_v3 = vrot.slane %v5629_v59, 1  ;;  %v1099_v41 = vrot.slane %v5633_v5, 1  ;;  %v5634_v54 = vld [vmem:[#allocation52_spill] sm:$0xff]  ;;  %v1096_v53 = vrot.slane %v5635_v38, 1  ;;  %5637 = vst [vmem:[#allocation42_spill] sm:$0xff] %v4001_v36 }
 0x13b   : > { %v3983_v21 = vsel %vm1073_vm1, %v1092_v48, %v1093_v11  ;;  %v1095_v49 = vrot.slane %v5634_v54, 1  ;;  %v1104_v11 = vrot.slane %v3508_v52, 1  ;;  %v1105_v5 = vrot.slane %v3512_v12, 1  ;;  %v5639_v36 = vld [vmem:[#allocation57_spill] sm:$0xff] }
 0x13c   : > { %1126 = vrot.lane.b32.xlu0 %v3955_v43, %s2982_s21  ;;  %5631 = vst [vmem:[#allocation37_spill] sm:$0xff] %v3983_v21  ;;  %v3990_v26 = vsel %vm1073_vm1, %v1089_v3, %v1090_v47  ;;  %v3997_v48 = vsel %vm1073_vm1, %v1098_v40, %v1099_v41  ;;  %v1101_v3 = vrot.slane %v3502_v28, 1  ;;  %v1102_v38 = vrot.slane %v3491_v18, 1 }
 0x13d   : > { %5636 = vst [vmem:[#allocation38_spill] sm:$0xff] %v3997_v48  ;;  %v4006_v47 = vsel %vm1073_vm1, %v1095_v49, %v1096_v53  ;;  %v4013_v40 = vsel %vm1073_vm1, %v1104_v11, %v1105_v5  ;;  %v1110_v12 = vrot.slane %v3528_v31, 1  ;;  %v1111_v41 = vrot.slane %v3542_v58, 1  ;;  %v4024_v54 = vpop.permute.xlu0 %404 }
 0x13e   : > { %1124 = vrot.lane.b32.xlu1 %v3962_v19, %s2982_s21  ;;  %5638 = vst [vmem:[#allocation41_spill] sm:$0xff] %v4006_v47  ;;  %v4020_v49 = vsel %vm1073_vm1, %v1101_v3, %v1102_v38  ;;  %v1107_v53 = vrot.slane %v3524_v10, 1  ;;  %v1108_v18 = vrot.slane %v5639_v36, 1  ;;  %5640 = vst [vmem:[#allocation40_spill] sm:$0xff] %v4024_v54  ;;  %v1116_v11 = vrot.slane %v3556_v23, 1 }
 0x13f   : > { %v4029_v5 = vsel %vm1073_vm1, %v1110_v12, %v1111_v41  ;;  %v1113_v3 = vrot.slane %v3550_v22, 1  ;;  %v1114_v54 = vrot.slane %v3546_v14, 1  ;;  %vm5483_vm0 = vcmask 982016  }
 0x140   : > { %1130 = vrot.lane.b32.xlu0 %v3969_v57, %s2982_s21  ;;  %v4038_v38 = vsel %vm1073_vm1, %v1107_v53, %v1108_v18  ;;  %v1119_v53 = vrot.slane %v3605_v30, 1  ;;  %v1120_v18 = vrot.slane %v3601_v20, 1  ;;  %v1189_v20 = vrot.slane %v3659_v33, 1 }
 0x141   : > { %v4047_v41 = vpop.permute.xlu0 %408 }
 0x142   : > { %1128 = vrot.lane.b32.xlu1 %v3976_v45, %s2982_s21  ;;  %5643 = vst [vmem:[#allocation48_spill] sm:$0xff] %v4047_v41 }
 0x144   : > { %1134 = vrot.lane.b32.xlu0 %v3983_v21, %s2982_s21 }
 0x145   : > { %v4066_v41 = vpop.permute.xlu0 %785 }
 0x146   : > { %1132 = vrot.lane.b32.xlu1 %v3990_v26, %s2982_s21 }
 0x148   : > { %1138 = vrot.lane.b32.xlu0 %v3997_v48, %s2982_s21  ;;  %v1117_v48 = vrot.slane %v3579_v37, 1 }
 0x149   : > { %v4089_v14 = vpop.permute.xlu0 %789 }
 0x14a   : > { %1136 = vrot.lane.b32.xlu1 %v4006_v47, %s2982_s21  ;;  %v4033_v47 = vpop.permute.xlu1 %402  ;;  %v4045_v12 = vsel %vm1073_vm1, %v1116_v11, %v1117_v48  ;;  %v1193_v48 = vrot.slane %v3695_v61, 1  ;;  %v4064_v11 = vsel %vm1073_vm1, %v1119_v53, %v1120_v18  ;;  %v1199_v61 = vrot.slane %v3746_v13, 1  ;;  %5647 = vst [vmem:[#allocation80_spill] sm:$0xff] %v4089_v14 }
 0x14b   : > { %5641 = vst [vmem:[#allocation39_spill] sm:$0xff] %v4033_v47  ;;  %5642 = vst [vmem:[#allocation43_spill] sm:$0xff] %v4045_v12  ;;  %v4052_v47 = vsel %vm1073_vm1, %v1113_v3, %v1114_v54  ;;  %v1190_v54 = vrot.slane %v3671_v17, 1  ;;  %v1192_v3 = vrot.slane %v3678_v34, 1  ;;  %v1198_v18 = vrot.slane %v3735_v4, 1 }
 0x14c   : > { %1142 = vrot.lane.b32.xlu0 %v4013_v40, %s2982_s21  ;;  %5645 = vst [vmem:[#allocation78_spill] sm:$0xff] %v4064_v11  ;;  %v1201_v14 = vrot.slane %v3758_v50, 1 }
 0x14d   : > { %v4079_v53 = vsel %vm1073_vm1, %v1192_v3, %v1193_v48  ;;  %v4085_v17 = vsel %vm1073_vm1, %v1189_v20, %v1190_v54  ;;  %v1211_v48 = vrot.slane %v3806_v51, 1  ;;  %v4095_v3 = vsel %vm1073_vm1, %v1198_v18, %v1199_v61  ;;  %v4112_v18 = vpop.permute.xlu0 %793 }
 0x14e   : > { %1140 = vrot.lane.b32.xlu1 %v4020_v49, %s2982_s21  ;;  %v4056_v37 = vpop.permute.xlu1 %406  ;;  %v1202_v20 = vrot.slane %v3760_v29, 1  ;;  %5649 = vst [vmem:[#allocation82_spill] sm:$0xff] %v4112_v18  ;;  %v2983_v51 = vmov 0   ;;  %v5657_v18 = vld [vmem:[#allocation24_spill] sm:$0xff] }
 0x14f   : > { %5644 = vst [vmem:[#allocation57_spill] sm:$0xff] %v4056_v37  ;;  %2359 = vmatprep.subr.bf16.mxu0 %v2983_v51  ;;  %2704 = vmatprep.subr.bf16.mxu1 %v2983_v51 }
 0x150   : > { %1146 = vrot.lane.b32.xlu0 %v4029_v5, %s2982_s21 }
 0x152   : > { %1144 = vrot.lane.b32.xlu1 %v4038_v38, %s2982_s21  ;;  %v4073_v37 = vpop.permute.xlu1 %410 }
 0x153   : > { %5646 = vst [vmem:[#allocation79_spill] sm:$0xff] %v4073_v37  ;;  %v1195_v37 = vrot.slane %v3718_v35, 1 }
 0x154   : > { %1150 = vrot.lane.b32.xlu0 %v4045_v12, %s2982_s21  ;;  %v1210_v12 = vrot.slane %v3798_v46, 1 }
 0x156   : > { %1148 = vrot.lane.b32.xlu1 %v4052_v47, %s2982_s21  ;;  %v4110_v61 = vsel %vm1073_vm1, %v1210_v12, %v1211_v48  ;;  %v2814_v12 = vld [vmem:[#allocation5 + $0x8] sm:$0xff]  }
 0x157   : > { %5648 = vst [vmem:[#allocation81_spill] sm:$0xff] %v4110_v61 }
 0x158   : > { %1234 = vrot.lane.b32.xlu0 %v3664_v25, %s2982_s21  ;;  %v1196_v25 = vrot.slane %v3726_v24, 1 }
 0x15a   : > { %1152 = vrot.lane.b32.xlu1 %v4064_v11, %s2982_s21  ;;  %v4097_v11 = vpop.permute.xlu1 %787  ;;  %v4103_v54 = vsel %vm1073_vm1, %v1195_v37, %v1196_v25  ;;  %v4118_v37 = vsel %vm1073_vm1, %v1201_v14, %v1202_v20  ;;  %v2813_v25 = vld [vmem:[#allocation5] sm:$0xff]   ;;  %v4129_v14 = vpop.permute.xlu0 %797  ;;  %v2815_v20 = vld [vmem:[#allocation5 + $0x10] sm:$0xff]  }
 0x15b   : > { %2360 = vmatpush1.bf16.msra.mxu0 %v2813_v25  ;;  %2713 = vmatpush1.bf16.msra.mxu1 %v2813_v25  ;;  %5651 = vst [vmem:[#allocation84_spill] sm:$0xff] %v4129_v14 }
 0x15c   : > { %1238 = vrot.lane.b32.xlu0 %v4079_v53, %s2982_s21  ;;  %2361 = vmatprep.subr.bf16.mxu0 %v2983_v51 }
 0x15d   : > { %2705 = vmatprep.subr.bf16.mxu1 %v2983_v51 }
 0x15e   : > { %1236 = vrot.lane.b32.xlu1 %v4085_v17, %s2982_s21  ;;  %v4121_v29 = vpop.permute.xlu1 %791  ;;  %v4141_v25 = vpop.permute.xlu0 %801 }
 0x15f   : > { %5650 = vst [vmem:[#allocation83_spill] sm:$0xff] %v4121_v29  ;;  %2362 = vmatpush1.bf16.msra.mxu0 %v2814_v12  ;;  %2714 = vmatpush1.bf16.msra.mxu1 %v2814_v12  ;;  %v2816_v12 = vld [vmem:[#allocation5 + $0x18] sm:$0xff]   ;;  %v1213_v29 = vrot.slane %v3820_v2, 1 }
 0x160   : > { %1242 = vrot.lane.b32.xlu0 %v4095_v3, %s2982_s21  ;;  %2363 = vmatprep.subr.bf16.mxu0 %v2983_v51 }
 0x161   : > { %2706 = vmatprep.subr.bf16.mxu1 %v2983_v51 }
 0x162   : > { %1240 = vrot.lane.b32.xlu1 %v4103_v54, %s2982_s21  ;;  %v4133_v48 = vpop.permute.xlu1 %795 }
 0x163   : > { %5652 = vst [vmem:[#allocation85_spill] sm:$0xff] %v4133_v48  ;;  %2364 = vmatpush1.bf16.msra.mxu0 %v2815_v20  ;;  %2715 = vmatpush1.bf16.msra.mxu1 %v2815_v20  ;;  %v5654_v48 = vld [vmem:[#allocation56_spill] sm:$0xff]  ;;  %v5655_v20 = vld [vmem:[#allocation29_spill] sm:$0xff] }
 0x164   : > { %1250 = vrot.lane.b32.xlu0 %v4110_v61, %s2982_s21  ;;  %2365 = vmatprep.subr.bf16.mxu0 %v2983_v51  ;;  %v5656_v61 = vld [vmem:[#allocation11_spill] sm:$0xff] }
 0x165   : > { %2707 = vmatprep.subr.bf16.mxu1 %v2983_v51 }
 0x166   : > { %1244 = vrot.lane.b32.xlu1 %v4118_v37, %s2982_s21  ;;  %v4147_v14 = vpop.permute.xlu1 %799 }
 0x167   : > { %5653 = vst [vmem:[#allocation86_spill] sm:$0xff] %v4147_v14  ;;  %2366 = vmatpush1.bf16.msra.mxu0 %v2816_v12  ;;  %2716 = vmatpush1.bf16.msra.mxu1 %v2816_v12  ;;  %v1214_v14 = vrot.slane %v5657_v18, 1  ;;  %v2818_v12 = vld [vmem:[#allocation5 + $0x28] sm:$0xff]  }
 0x168   : > { %1283 = vrot.lane.b32.xlu0 %v3502_v28, %s2984_s30  ;;  %2367 = vmatprep.subr.bf16.mxu0 %v2983_v51  ;;  %v2817_v28 = vld [vmem:[#allocation5 + $0x20] sm:$0xff]  }
 0x169   : > { %2708 = vmatprep.subr.bf16.mxu1 %v2983_v51 }
 0x16a   : > { %1267 = vrot.lane.b32.xlu1 %v5622_v39, %s2984_s30 }
 0x16b   : > { %2368 = vmatpush1.bf16.msra.mxu0 %v2817_v28  ;;  %2717 = vmatpush1.bf16.msra.mxu1 %v2817_v28  ;;  %v2819_v28 = vld [vmem:[#allocation5 + $0x30] sm:$0xff]  }
 0x16c   : > { %1316 = vrot.lane.b32.xlu0 %v3820_v2, %s2984_s30  ;;  %2369 = vmatprep.subr.bf16.mxu0 %v2983_v51  ;;  %v5664_v2 = vld [vmem:[#allocation12_spill] sm:$0xff] }
 0x16d   : > { %2709 = vmatprep.subr.bf16.mxu1 %v2983_v51 }
 0x16e   : > { %1300 = vrot.lane.b32.xlu1 %v3659_v33, %s2984_s30 }
 0x16f   : > { %2370 = vmatpush1.bf16.msra.mxu0 %v2818_v12  ;;  %2718 = vmatpush1.bf16.msra.mxu1 %v2818_v12 }
 0x170   : > { %1360 = vrot.lane.b32.xlu0 %v3619_v60, %s2985_s3  ;;  %v4155_v60 = vpop.permute.xlu0 %805  ;;  %2371 = vmatprep.subr.bf16.mxu0 %v2983_v51 }
 0x171   : > { %2710 = vmatprep.subr.bf16.mxu1 %v2983_v51 }
 0x172   : > { %1344 = vrot.lane.b32.xlu1 %v5654_v48, %s2985_s3  ;;  %v4161_v48 = vpop.permute.xlu1 %803 }
 0x173   : > { %2372 = vmatpush1.bf16.msra.mxu0 %v2819_v28  ;;  %2719 = vmatpush1.bf16.msra.mxu1 %v2819_v28 }
 0x174   : > { %1404 = vrot.lane.b32.xlu0 %v5655_v20, %s2985_s3  ;;  %v4170_v18 = vpop.permute.xlu0 %809  ;;  %2373 = vmatprep.subr.bf16.mxu0 %v2983_v51 }
 0x175   : > { %2711 = vmatprep.subr.bf16.mxu1 %v2983_v51 }
 0x176   : > { %1388 = vrot.lane.b32.xlu1 %v5656_v61, %s2985_s3  ;;  %v1215_v61 = vsel %vm1073_vm1, %v1213_v29, %v1214_v14  ;;  %v2820_v29 = vld [vmem:[#allocation5 + $0x38] sm:$0xff]  }
 0x177   : > { %2374 = vmatpush1.bf16.msra.mxu0 %v2820_v29  ;;  %2720 = vmatpush1.bf16.msra.mxu1 %v2820_v29  ;;  %v5658_v29 = vld [vmem:[#allocation61_spill] sm:$0xff] }
 0x178   : > { %1440 = vrot.lane.b32.xlu0 %v4020_v49, %s2986_s5  ;;  %v4175_v49 = vpop.permute.xlu1 %807  ;;  %2375 = vmatprep.subr.bf16.mxu0 %v2983_v51 }
 0x179   : > { %2712 = vmatprep.subr.bf16.mxu1 %v2983_v51 }
 0x17a   : > { %1424 = vrot.lane.b32.xlu1 %v3962_v19, %s2986_s5  ;;  %v4183_v19 = vpop.permute.xlu0 %813 }
 0x17c   : > { %1476 = vrot.lane.b32.xlu0 %v1215_v61, %s2986_s5  ;;  %v4187_v14 = vpop.permute.xlu1 %811 }
 0x17e   : > { %1460 = vrot.lane.b32.xlu1 %v4085_v17, %s2986_s5  ;;  %v2821_v17 = vld [vmem:[#allocation5 + $0x40] sm:$0xff]   ;;  %v4194_v12 = vpop.permute.xlu0 %1009 }
 0x17f   : > { %2376 = vmatpush1.bf16.msra.mxu0 %v2821_v17  ;;  %2721 = vmatpush1.bf16.msra.mxu1 %v2821_v17 }
 0x180   : > { %1509 = vrot.lane.b32.xlu0 %v3508_v52, %s2987_s6  ;;  %v4198_v28 = vpop.permute.xlu1 %815 }
 0x182   : > { %1493 = vrot.lane.b32.xlu1 %v3428_v56, %s2987_s6  ;;  %v4204_v20 = vpop.permute.xlu0 %1013 }
 0x183   : > { %5659 = vst [vmem:[#allocation56_spill] sm:$0xff] %v4204_v20 }
 0x184   : > { %1526 = vrot.lane.b32.xlu0 %v3678_v34, %s2987_s6  ;;  %v4208_v51 = vpop.permute.xlu1 %1011 }
 0x185   : > { %5660 = vst [vmem:[#allocation11_spill] sm:$0xff] %v4208_v51 }
 0x186   : > { %1252 = vrot.lane.b32.xlu1 %v1215_v61, %s2982_s21  ;;  %v5662_v61 = vld [vmem:[#allocation72_spill] sm:$0xff] }
 0x188   : > { %1269 = vrot.lane.b32.xlu0 %v3428_v56, %s2984_s30  ;;  %v4212_v56 = vpop.permute.xlu0 %1017  ;;  %v4216_v17 = vpop.permute.xlu1 %1015 }
 0x189   : > { %5661 = vst [vmem:[#allocation24_spill] sm:$0xff] %v4212_v56  ;;  %5663 = vst [vmem:[#allocation61_spill] sm:$0xff] %v4216_v17 }
 0x18a   : > { %1542 = vrot.lane.b32.xlu1 %v3831_v27, %s2987_s6 }
 0x18c   : > { %1570 = vrot.lane.b32.xlu0 %v5658_v29, %s2988_s27  ;;  %v4220_v21 = vpop.permute.xlu0 %1021 }
 0x18d   : > { %5665 = vst [vmem:[#allocation72_spill] sm:$0xff] %v4220_v21 }
 0x18e   : > { %1285 = vrot.lane.b32.xlu1 %v3508_v52, %s2984_s30  ;;  %v4224_v52 = vpop.permute.xlu1 %1019 }
 0x18f   : > { %5666 = vst [vmem:[#allocation12_spill] sm:$0xff] %v4224_v52 }
 0x190   : > { %1302 = vrot.lane.b32.xlu0 %v3678_v34, %s2984_s30  ;;  %v4228_v34 = vpop.permute.xlu0 %1025 }
 0x192   : > { %1586 = vrot.lane.b32.xlu1 %v5662_v61, %s2988_s27  ;;  %v4232_v56 = vpop.permute.xlu1 %1023 }
 0x193   : > { %5667 = vst [vmem:[#allocation87_spill] sm:$0xff] %v4232_v56  ;;  %v1217_v56 = vrot.slane %v3845_v55, 1 }
 0x194   : > { %1614 = vrot.lane.b32.xlu0 %v5664_v2, %s2988_s27  ;;  %v1030_v17 = vpop.permute.xlu0 %1029 }
 0x196   : > { %1318 = vrot.lane.b32.xlu1 %v3831_v27, %s2984_s30  ;;  %v4238_v21 = vpop.permute.xlu1 %1027 }
 0x198   : > { %1346 = vrot.lane.b32.xlu0 %v5658_v29, %s2985_s3 }
 0x19a   : > { %1630 = vrot.lane.b32.xlu1 %v3878_v9, %s2988_s27  ;;  %v1034_v29 = vpop.permute.xlu0 %1033  ;;  %v1032_v52 = vpop.permute.xlu1 %1031 }
 0x19c   : > { %1390 = vrot.lane.b32.xlu0 %v5664_v2, %s2985_s3 }
 0x19e   : > { %1362 = vrot.lane.b32.xlu1 %v5662_v61, %s2985_s3  ;;  %v1216_v61 = vrot.slane %v3831_v27, 1 }
 0x1a0   : > { %1426 = vrot.lane.b32.xlu0 %v3955_v43, %s2986_s5  ;;  %v1036_v20 = vpop.permute.xlu1 %1035  ;;  %v1218_v43 = vsel %vm1073_vm1, %v1216_v61, %v1217_v56 }
 0x1a2   : > { %1406 = vrot.lane.b32.xlu1 %v3878_v9, %s2985_s3 }
 0x1a4   : > { %1462 = vrot.lane.b32.xlu0 %v4079_v53, %s2986_s5 }
 0x1a6   : > { %1442 = vrot.lane.b32.xlu1 %v4013_v40, %s2986_s5  ;;  %v1038_v2 = vpop.permute.xlu0 %1037 }
 0x1a8   : > { %1495 = vrot.lane.b32.xlu0 %v5625_v15, %s2987_s6 }
 0x1aa   : > { %1478 = vrot.lane.b32.xlu1 %v1218_v43, %s2986_s5  ;;  %v4254_v9 = vpop.permute.xlu0 %1122 }
 0x1ac   : > { %v1040_v13 = vpop.permute.xlu1 %1039  ;;  %1254 = vrot.lane.b32.xlu0 %v1218_v43, %s2982_s21  ;;  %v5674_v43 = vld [vmem:[#allocation70_spill] sm:$0xff] }
 0x1ae   : > { %1511 = vrot.lane.b32.xlu1 %v3524_v10, %s2987_s6  ;;  %v4259_v55 = vpop.permute.xlu0 %1126 }
 0x1af   : > { %5668 = vst [vmem:[#allocation88_spill] sm:$0xff] %v4259_v55  ;;  %v5675_v55 = vld [vmem:[#allocation60_spill] sm:$0xff] }
 0x1b0   : > { %v4261_v40 = vpop.permute.xlu1 %1124  ;;  %1544 = vrot.lane.b32.xlu0 %v3869_v1, %s2987_s6 }
 0x1b1   : > { %5669 = vst [vmem:[#allocation89_spill] sm:$0xff] %v4261_v40 }
 0x1b2   : > { %1528 = vrot.lane.b32.xlu1 %v3718_v35, %s2987_s6  ;;  %v4267_v27 = vpop.permute.xlu0 %1130 }
 0x1b3   : > { %5670 = vst [vmem:[#allocation90_spill] sm:$0xff] %v4267_v27 }
 0x1b4   : > { %v4269_v53 = vpop.permute.xlu1 %1128  ;;  %1287 = vrot.lane.b32.xlu0 %v3524_v10, %s2984_s30 }
 0x1b5   : > { %5671 = vst [vmem:[#allocation91_spill] sm:$0xff] %v4269_v53  ;;  %v1685_v53 = vsel %vm1663_vm3, %v3850_v7, %v4155_v60  ;;  %v4313_v7 = vsel %vm1646_vm2, %v3524_v10, %v3869_v1 }
 0x1b6   : > { %1271 = vrot.lane.b32.xlu1 %v5625_v15, %s2984_s30  ;;  %v4275_v56 = vpop.permute.xlu0 %1134 }
 0x1b7   : > { %5672 = vst [vmem:[#allocation92_spill] sm:$0xff] %v4275_v56  ;;  %v1718_v56 = vsel %vm1696_vm4, %v1685_v53, %v1030_v17  ;;  %v5679_v53 = vld [vmem:[#allocation13_spill] sm:$0xff] }
 0x1b8   : > { %v4277_v61 = vpop.permute.xlu1 %1132  ;;  %1588 = vrot.lane.b32.xlu0 %v5674_v43, %s2988_s27 }
 0x1b9   : > { %5673 = vst [vmem:[#allocation93_spill] sm:$0xff] %v4277_v61 }
 0x1ba   : > { %1572 = vrot.lane.b32.xlu1 %v5675_v55, %s2988_s27  ;;  %v4283_v58 = vpop.permute.xlu0 %1138 }
 0x1bc   : > { %v4285_v27 = vpop.permute.xlu1 %1136  ;;  %1320 = vrot.lane.b32.xlu0 %v3869_v1, %s2984_s30 }
 0x1bd   : > { %5676 = vst [vmem:[#allocation70_spill] sm:$0xff] %v4285_v27  ;;  %v4301_v27 = vsel %vm1646_vm2, %v3528_v31, %v3881_v32 }
 0x1be   : > { %1304 = vrot.lane.b32.xlu1 %v3718_v35, %s2984_s30  ;;  %v1143_v61 = vpop.permute.xlu0 %1142  ;;  %5678 = vst [vmem:[#allocation94_spill] sm:$0xff] %v4301_v27  ;;  %v1689_v60 = vsel %vm1663_vm3, %v4301_v27, %v4170_v18  ;;  %v4327_v18 = vsel %vm1646_vm2, %v3556_v23, %v3911_v44 }
 0x1bf   : > { %v4296_v40 = vsel %vm1729_vm5, %v1718_v56, %v1143_v61  ;;  %v1722_v17 = vsel %vm1696_vm4, %v1689_v60, %v1034_v29  ;;  %v1687_v61 = vsel %vm1663_vm3, %v4313_v7, %v4175_v49  ;;  %5681 = vst [vmem:[#allocation95_spill] sm:$0xff] %v4327_v18  ;;  %v1693_v29 = vsel %vm1663_vm3, %v4327_v18, %v4183_v19  ;;  %v5694_v18 = vld [vmem:[#allocation71_spill] sm:$0xff] }
 0x1c0   : > { %5677 = vst [vmem:[#allocation60_spill] sm:$0xff] %v4296_v40  ;;  %v4303_v51 = vpop.permute.xlu1 %1140  ;;  %1632 = vrot.lane.b32.xlu0 %v3892_v0, %s2988_s27  ;;  %v1720_v10 = vsel %vm1696_vm4, %v1687_v61, %v1032_v52  ;;  %v4341_v60 = vsel %vm1646_vm2, %v3550_v22, %v3901_v8 }
 0x1c2   : > { %1616 = vrot.lane.b32.xlu1 %v5679_v53, %s2988_s27  ;;  %v1147_v56 = vpop.permute.xlu0 %1146 }
 0x1c3   : > { %v4322_v40 = vsel %vm1729_vm5, %v1722_v17, %v1147_v56  ;;  %v1726_v17 = vsel %vm1696_vm4, %v1693_v29, %v1038_v2  ;;  %v4361_v2 = vsel %vm1646_vm2, %v3605_v30, %v3932_v16 }
 0x1c4   : > { %5680 = vst [vmem:[#allocation13_spill] sm:$0xff] %v4322_v40  ;;  %v1145_v27 = vpop.permute.xlu1 %1144  ;;  %1364 = vrot.lane.b32.xlu0 %v5674_v43, %s2985_s3  ;;  %v1691_v43 = vsel %vm1663_vm3, %v4341_v60, %v4187_v14  ;;  %5685 = vst [vmem:[#allocation99_spill] sm:$0xff] %v4361_v2 }
 0x1c5   : > { %v4336_v49 = vsel %vm1729_vm5, %v1720_v10, %v1145_v27  ;;  %v1724_v27 = vsel %vm1696_vm4, %v1691_v43, %v1036_v20  ;;  %v1695_v20 = vsel %vm1663_vm3, %v4361_v2, %v4198_v28 }
 0x1c6   : > { %5682 = vst [vmem:[#allocation96_spill] sm:$0xff] %v4336_v49  ;;  %1348 = vrot.lane.b32.xlu1 %v5675_v55, %s2985_s3  ;;  %v1151_v52 = vpop.permute.xlu0 %1150  ;;  %v5686_v55 = vld [vmem:[#allocation30_spill] sm:$0xff]  ;;  %v1728_v29 = vsel %vm1696_vm4, %v1695_v20, %v1040_v13  ;;  %v5691_v20 = vld [vmem:[#allocation64_spill] sm:$0xff] }
 0x1c7   : > { %v4350_v19 = vsel %vm1729_vm5, %v1726_v17, %v1151_v52  ;;  %v1220_v10 = vrot.slane %v5686_v55, 1 }
 0x1c8   : > { %5683 = vst [vmem:[#allocation97_spill] sm:$0xff] %v4350_v19  ;;  %v1149_v56 = vpop.permute.xlu1 %1148  ;;  %1408 = vrot.lane.b32.xlu0 %v3892_v0, %s2985_s3  ;;  %v1219_v0 = vrot.slane %v3869_v1, 1  ;;  %v5693_v19 = vld [vmem:[#allocation16_spill] sm:$0xff] }
 0x1c9   : > { %v4356_v61 = vsel %vm1729_vm5, %v1724_v27, %v1149_v56 }
 0x1ca   : > { %5684 = vst [vmem:[#allocation98_spill] sm:$0xff] %v4356_v61  ;;  %1392 = vrot.lane.b32.xlu1 %v5679_v53, %s2985_s3  ;;  %v1235_v14 = vpop.permute.xlu0 %1234  ;;  %v1221_v43 = vsel %vm1073_vm1, %v1219_v0, %v1220_v10 }
 0x1cc   : > { %v1153_v17 = vpop.permute.xlu1 %1152  ;;  %1444 = vrot.lane.b32.xlu0 %v4038_v38, %s2986_s5 }
 0x1cd   : > { %v4374_v52 = vsel %vm1729_vm5, %v1728_v29, %v1153_v17  ;;  %v5692_v17 = vld [vmem:[#allocation74_spill] sm:$0xff] }
 0x1ce   : > { %5687 = vst [vmem:[#allocation30_spill] sm:$0xff] %v4374_v52  ;;  %1428 = vrot.lane.b32.xlu1 %v3976_v45, %s2986_s5  ;;  %v4378_v53 = vpop.permute.xlu0 %1238 }
 0x1d0   : > { %v4381_v27 = vpop.permute.xlu1 %1236  ;;  %1480 = vrot.lane.b32.xlu0 %v1221_v43, %s2986_s5 }
 0x1d2   : > { %1464 = vrot.lane.b32.xlu1 %v4103_v54, %s2986_s5  ;;  %v4386_v13 = vpop.permute.xlu0 %1242 }
 0x1d3   : > { %5688 = vst [vmem:[#allocation100_spill] sm:$0xff] %v4386_v13 }
 0x1d4   : > { %v4388_v1 = vpop.permute.xlu1 %1240  ;;  %1513 = vrot.lane.b32.xlu0 %v3528_v31, %s2987_s6 }
 0x1d5   : > { %5689 = vst [vmem:[#allocation101_spill] sm:$0xff] %v4388_v1  ;;  %v1647_v1 = vsel %vm1646_vm2, %v5618_v42, %v5694_v18  ;;  %v1222_v18 = vrot.slane %v3881_v32, 1 }
 0x1d6   : > { %1497 = vrot.lane.b32.xlu1 %v3442_v62, %s2987_s6  ;;  %v4394_v45 = vpop.permute.xlu0 %1250 }
 0x1d8   : > { %v4396_v38 = vpop.permute.xlu1 %1244  ;;  %1530 = vrot.lane.b32.xlu0 %v3735_v4, %s2987_s6 }
 0x1d9   : > { %5690 = vst [vmem:[#allocation102_spill] sm:$0xff] %v4396_v38 }
 0x1da   : > { %1256 = vrot.lane.b32.xlu1 %v1221_v43, %s2982_s21  ;;  %v4401_v54 = vpop.permute.xlu0 %1283 }
 0x1dc   : > { %v1268_v28 = vpop.permute.xlu1 %1267  ;;  %1273 = vrot.lane.b32.xlu0 %v3442_v62, %s2984_s30 }
 0x1de   : > { %1546 = vrot.lane.b32.xlu1 %v3881_v32, %s2987_s6  ;;  %v4407_v56 = vpop.permute.xlu0 %1316 }
 0x1e0   : > { %v1301_v10 = vpop.permute.xlu1 %1300  ;;  %1574 = vrot.lane.b32.xlu0 %v5691_v20, %s2988_s27 }
 0x1e2   : > { %1289 = vrot.lane.b32.xlu1 %v3528_v31, %s2984_s30  ;;  %v4413_v0 = vpop.permute.xlu0 %1360 }
 0x1e4   : > { %v1345_v29 = vpop.permute.xlu1 %1344  ;;  %1306 = vrot.lane.b32.xlu0 %v3735_v4, %s2984_s30 }
 0x1e6   : > { %1590 = vrot.lane.b32.xlu1 %v5692_v17, %s2988_s27  ;;  %v4419_v43 = vpop.permute.xlu0 %1404 }
 0x1e8   : > { %v1389_v52 = vpop.permute.xlu1 %1388  ;;  %1618 = vrot.lane.b32.xlu0 %v5693_v19, %s2988_s27 }
 0x1ea   : > { %1322 = vrot.lane.b32.xlu1 %v3881_v32, %s2984_s30  ;;  %v4425_v61 = vpop.permute.xlu0 %1440  ;;  %v5695_v32 = vld [vmem:[#allocation53_spill] sm:$0xff] }
 0x1ec   : > { %v1425_v31 = vpop.permute.xlu1 %1424  ;;  %1350 = vrot.lane.b32.xlu0 %v5691_v20, %s2985_s3 }
 0x1ee   : > { %1634 = vrot.lane.b32.xlu1 %v3908_v6, %s2988_s27  ;;  %v4431_v38 = vpop.permute.xlu0 %1476 }
 0x1f0   : > { %v1461_v2 = vpop.permute.xlu1 %1460  ;;  %1394 = vrot.lane.b32.xlu0 %v5693_v19, %s2985_s3  ;;  %v1665_v19 = vsel %vm1663_vm3, %v1647_v1, %v4066_v41 }
 0x1f2   : > { %1366 = vrot.lane.b32.xlu1 %v5692_v17, %s2985_s3  ;;  %v4437_v40 = vpop.permute.xlu0 %1509  ;;  %v1223_v17 = vrot.slane %v3889_v63, 1 }
 0x1f4   : > { %v1494_v13 = vpop.permute.xlu1 %1493  ;;  %1430 = vrot.lane.b32.xlu0 %v3969_v57, %s2986_s5  ;;  %v1698_v57 = vsel %vm1696_vm4, %v1665_v19, %v4194_v12 }
 0x1f6   : > { %1410 = vrot.lane.b32.xlu1 %v3908_v6, %s2985_s3  ;;  %v1527_v20 = vpop.permute.xlu0 %1526  ;;  %v1731_v6 = vsel %vm1729_vm5, %v1698_v57, %v4254_v9  ;;  %v1224_v9 = vsel %vm1073_vm1, %v1222_v18, %v1223_v17  ;;  %v5696_v57 = vld [vmem:[#allocation45_spill] sm:$0xff] }
 0x1f7   : > { %v1764_v41 = vsel %vm1762_vm6, %v1731_v6, %v1235_v14 }
 0x1f8   : > { %v4448_v49 = vpop.permute.xlu1 %1252  ;;  %1466 = vrot.lane.b32.xlu0 %v4095_v3, %s2986_s5  ;;  %v1797_v3 = vsel %vm1795_vm7, %v1764_v41, %v1268_v28  ;;  %v4473_v28 = vsel %vm1646_vm2, %v5695_v32, %v3798_v46 }
 0x1f9   : > { %v1830_v12 = vsel %vm1828_vm8, %v1797_v3, %v1301_v10  ;;  %v2142_v10 = vsel %vm1646_vm2, %v5696_v57, %v3726_v24 }
 0x1fa   : > { %1446 = vrot.lane.b32.xlu1 %v4029_v5, %s2986_s5  ;;  %v4459_v42 = vpop.permute.xlu0 %1269  ;;  %v1863_v5 = vsel %vm1861_vm9, %v1830_v12, %v1345_v29  ;;  %v1681_v29 = vsel %vm1663_vm3, %v4473_v28, %v4141_v25 }
 0x1fb   : > { %v1896_v19 = vsel %vm1894_vm10, %v1863_v5, %v1389_v52  ;;  %v4489_v52 = vsel %vm1646_vm2, %v5625_v15, %v3718_v35  ;;  %v1714_v41 = vsel %vm1696_vm4, %v1681_v29, %v4228_v34  ;;  %v2195_v15 = vrot.slane %v2142_v10, 1 }
 0x1fc   : > { %v1543_v1 = vpop.permute.xlu1 %1542  ;;  %1499 = vrot.lane.b32.xlu0 %v5629_v59, %s2987_s6  ;;  %v1929_v17 = vsel %vm1927_vm11, %v1896_v19, %v1425_v31  ;;  %v1747_v25 = vsel %vm1729_vm5, %v1714_v41, %v4283_v58  ;;  %v2194_v34 = vrot.slane %v4489_v52, 1 }
 0x1fd   : > { %v1962_v24 = vsel %vm5484_vm12, %v1929_v17, %v1461_v2  ;;  %v1780_v35 = vsel %vm1762_vm6, %v1747_v25, %v4394_v45  ;;  %v5699_v25 = vld [vmem:[#allocation34_spill] sm:$0xff] }
 0x1fe   : > { %1482 = vrot.lane.b32.xlu1 %v1224_v9, %s2986_s5  ;;  %v1571_v14 = vpop.permute.xlu0 %1570  ;;  %v1995_v31 = vsel %vm1993_vm13, %v1962_v24, %v1494_v13  ;;  %v1813_v2 = vsel %vm1795_vm7, %v1780_v35, %v4401_v54  ;;  %v2150_v54 = vsel %vm1646_vm2, %v5639_v36, %v5686_v55  ;;  %v2218_v55 = vrot.slane %v4313_v7, 1  ;;  %v5698_v7 = vld [vmem:[#allocation63_spill] sm:$0xff] }
 0x1ff   : > { %v1846_v58 = vsel %vm1828_vm8, %v1813_v2, %v4407_v56  ;;  %v2028_v13 = vsel %vm2026_vm14, %v1995_v31, %v1527_v20  ;;  %v2219_v36 = vrot.slane %v2150_v54, 1  ;;  %v5700_v31 = vld [vmem:[#allocation18_spill] sm:$0xff] }
 0x200   : > { %v4483_v6 = vpop.permute.xlu1 %1285  ;;  %1258 = vrot.lane.b32.xlu0 %v1224_v9, %s2982_s21  ;;  %v1879_v45 = vsel %vm1861_vm9, %v1846_v58, %v4413_v0  ;;  %v2061_v12 = vsel %vm2059_vm15, %v2028_v13, %v1571_v14  ;;  %v2196_v0 = vsel %vm1073_vm1, %v2194_v34, %v2195_v15  ;;  %v5701_v58 = vld [vmem:[#allocation31_spill] sm:$0xff] }
 0x201   : > { %v1912_v5 = vsel %vm1894_vm10, %v1879_v45, %v4419_v43  ;;  %v2220_v17 = vsel %vm1073_vm1, %v2218_v55, %v2219_v36  ;;  %v1226_v13 = vrot.slane %v5701_v58, 1  ;;  %v1225_v45 = vrot.slane %v3901_v8, 1 }
 0x202   : > { %1515 = vrot.lane.b32.xlu1 %v3550_v22, %s2987_s6  ;;  %v4499_v18 = vpop.permute.xlu0 %1302  ;;  %v1945_v20 = vsel %vm1927_vm11, %v1912_v5, %v4425_v61  ;;  %v5702_v5 = vld [vmem:[#allocation28_spill] sm:$0xff] }
 0x203   : > { %v1978_v14 = vsel %vm5484_vm12, %v1945_v20, %v4431_v38  ;;  %v5697_v38 = vld [vmem:[#allocation73_spill] sm:$0xff]  ;;  %v1227_v54 = vsel %vm1073_vm1, %v1225_v45, %v1226_v13 }
 0x204   : > { %v1587_v3 = vpop.permute.xlu1 %1586  ;;  %1548 = vrot.lane.b32.xlu0 %v3901_v8, %s2987_s6  ;;  %v2011_v43 = vsel %vm1993_vm13, %v1978_v14, %v4437_v40 }
 0x206   : > { %1532 = vrot.lane.b32.xlu1 %v3758_v50, %s2987_s6  ;;  %v1615_v9 = vpop.permute.xlu0 %1614 }
 0x207   : > { %v2094_v56 = vsel %vm5483_vm0, %v2061_v12, %v1615_v9 }
 0x208   : > { %v1319_v19 = vpop.permute.xlu1 %1318  ;;  %1291 = vrot.lane.b32.xlu0 %v3550_v22, %s2984_s30  ;;  %2392 = vmatmul.mubr.bf16.vlgmr.msra.gmra.mrb[0].mxu0 %v2094_v56  ;;  %v2044_v22 = vsel %vm2026_vm14, %v2011_v43, %v1543_v1  ;;  %v1683_v56 = vsel %vm1663_vm3, %v5702_v5, %v4161_v48  ;;  %v5710_v5 = vld [vmem:[#allocation94_spill] sm:$0xff] }
 0x209   : > { %2683 = vmatprep.mubr.msk.bf16.mxu0 %vm1663_vm3, %v2196_v0  ;;  %v2077_v57 = vsel %vm2059_vm15, %v2044_v22, %v1587_v3 }
 0x20a   : > { %1275 = vrot.lane.b32.xlu1 %v5629_v59, %s2984_s30  ;;  %v4535_v61 = vpop.permute.xlu0 %1346 }
 0x20c   : > { %v1631_v10 = vpop.permute.xlu1 %1630  ;;  %1592 = vrot.lane.b32.xlu0 %v5697_v38, %s2988_s27 }
 0x20d   : > { %v2118_v29 = vsel %vm5483_vm0, %v2077_v57, %v1631_v10 }
 0x20e   : > { %1576 = vrot.lane.b32.xlu1 %v5698_v7, %s2988_s27  ;;  %2456 = vmatmul.mubr.bf16.vlgmr.msra.gmra.mrb[0].mxu1 %v2118_v29  ;;  %v1391_v40 = vpop.permute.xlu0 %1390  ;;  %v5707_v29 = vld [vmem:[#allocation58_spill] sm:$0xff] }
 0x20f   : > { %2691 = vmatprep.mubr.msk.bf16.mxu1 %vm1663_vm3, %v2220_v17 }
 0x210   : > { %v1363_v41 = vpop.permute.xlu1 %1362  ;;  %1324 = vrot.lane.b32.xlu0 %v3901_v8, %s2984_s30  ;;  %v1716_v8 = vsel %vm1696_vm4, %v1683_v56, %v4238_v21 }
 0x211   : > { %v1749_v0 = vsel %vm1729_vm5, %v1716_v8, %v4303_v51 }
 0x212   : > { %1308 = vrot.lane.b32.xlu1 %v3758_v50, %s2984_s30  ;;  %v1427_v1 = vpop.permute.xlu0 %1426  ;;  %v1782_v48 = vsel %vm1762_vm6, %v1749_v0, %v4448_v49 }
 0x213   : > { %v1815_v21 = vsel %vm1795_vm7, %v1782_v48, %v4483_v6 }
 0x214   : > { %v1407_v24 = vpop.permute.xlu1 %1406  ;;  %1636 = vrot.lane.b32.xlu0 %v5699_v25, %s2988_s27  ;;  %v1848_v55 = vsel %vm1828_vm8, %v1815_v21, %v1319_v19 }
 0x215   : > { %v1881_v49 = vsel %vm1861_vm9, %v1848_v55, %v1363_v41 }
 0x216   : > { %1620 = vrot.lane.b32.xlu1 %v5700_v31, %s2988_s27  ;;  %v1463_v35 = vpop.permute.xlu0 %1462  ;;  %v1914_v22 = vsel %vm1894_vm10, %v1881_v49, %v1407_v24  ;;  %v5714_v49 = vld [vmem:[#allocation35_spill] sm:$0xff] }
 0x218   : > { %v1443_v15 = vpop.permute.xlu1 %1442  ;;  %1368 = vrot.lane.b32.xlu0 %v5697_v38, %s2985_s3  ;;  %v5706_v38 = vld [vmem:[#allocation15_spill] sm:$0xff] }
 0x219   : > { %v1947_v10 = vsel %vm1927_vm11, %v1914_v22, %v1443_v15 }
 0x21a   : > { %1352 = vrot.lane.b32.xlu1 %v5698_v7, %s2985_s3  ;;  %v1496_v34 = vpop.permute.xlu0 %1495  ;;  %v2151_v7 = vsel %vm1646_vm2, %v5707_v29, %v3889_v63  ;;  %v5716_v29 = vld [vmem:[#allocation37_spill] sm:$0xff] }
 0x21b   : > { %v2222_v13 = vrot.slane %v2151_v7, 1  ;;  %v1204_v7 = vrot.slane %v5706_v38, 1 }
 0x21c   : > { %v1479_v2 = vpop.permute.xlu1 %1478  ;;  %1412 = vrot.lane.b32.xlu0 %v5699_v25, %s2985_s3  ;;  %v5708_v25 = vld [vmem:[#allocation44_spill] sm:$0xff] }
 0x21e   : > { %1396 = vrot.lane.b32.xlu1 %v5700_v31, %s2985_s3  ;;  %v4562_v3 = vpop.permute.xlu0 %1254  ;;  %v5709_v31 = vld [vmem:[#allocation46_spill] sm:$0xff] }
 0x21f   : > { %v2143_v15 = vsel %vm1646_vm2, %v5709_v31, %v5708_v25 }
 0x220   : > { %v1512_v12 = vpop.permute.xlu1 %1511  ;;  %1448 = vrot.lane.b32.xlu0 %v4052_v47, %s2986_s5  ;;  %v1648_v47 = vsel %vm1646_vm2, %v5622_v39, %v3659_v33  ;;  %v5704_v33 = vld [vmem:[#allocation89_spill] sm:$0xff] }
 0x221   : > { %v1667_v14 = vsel %vm1663_vm3, %v1648_v47, %v4097_v11  ;;  %v5705_v11 = vld [vmem:[#allocation49_spill] sm:$0xff]  ;;  %v5711_v47 = vld [vmem:[#allocation67_spill] sm:$0xff] }
 0x222   : > { %1432 = vrot.lane.b32.xlu1 %v3990_v26, %s2986_s5  ;;  %v1545_v9 = vpop.permute.xlu0 %1544 }
 0x224   : > { %v1529_v20 = vpop.permute.xlu1 %1528  ;;  %1484 = vrot.lane.b32.xlu0 %v1227_v54, %s2986_s5 }
 0x226   : > { %1468 = vrot.lane.b32.xlu1 %v4118_v37, %s2986_s5  ;;  %v4581_v26 = vpop.permute.xlu0 %1287  ;;  %v5703_v37 = vld [vmem:[#allocation11_spill] sm:$0xff] }
 0x227   : > { %v1700_v51 = vsel %vm1696_vm4, %v1667_v14, %v5703_v37  ;;  %v5712_v37 = vld [vmem:[#allocation76_spill] sm:$0xff] }
 0x228   : > { %v4592_v36 = vpop.permute.xlu1 %1271  ;;  %1517 = vrot.lane.b32.xlu0 %v3556_v23, %s2987_s6  ;;  %v1733_v39 = vsel %vm1729_vm5, %v1700_v51, %v5704_v33  ;;  %v5713_v33 = vld [vmem:[#allocation22_spill] sm:$0xff] }
 0x229   : > { %v1766_v6 = vsel %vm1762_vm6, %v1733_v39, %v4381_v27  ;;  %v1980_v27 = vsel %vm5484_vm12, %v1947_v10, %v1479_v2 }
 0x22a   : > { %1501 = vrot.lane.b32.xlu1 %v5705_v11, %s2987_s6  ;;  %v1589_v43 = vpop.permute.xlu0 %1588  ;;  %v1799_v57 = vsel %vm1795_vm7, %v1766_v6, %v4459_v42  ;;  %v2013_v42 = vsel %vm1993_vm13, %v1980_v27, %v1512_v12 }
 0x22b   : > { %v1832_v17 = vsel %vm1828_vm8, %v1799_v57, %v4499_v18  ;;  %v2046_v12 = vsel %vm2026_vm14, %v2013_v42, %v1545_v9  ;;  %v5715_v57 = vld [vmem:[#allocation17_spill] sm:$0xff] }
 0x22c   : > { %v1573_v19 = vpop.permute.xlu1 %1572  ;;  %1534 = vrot.lane.b32.xlu0 %v5706_v38, %s2987_s6  ;;  %v1865_v41 = vsel %vm1861_vm9, %v1832_v17, %v4535_v61  ;;  %v4636_v61 = vsel %vm1646_vm2, %v3442_v62, %v3735_v4  ;;  %v1205_v10 = vrot.slane %v5715_v57, 1  ;;  %v5718_v42 = vld [vmem:[#allocation77_spill] sm:$0xff] }
 0x22d   : > { %v1898_v63 = vsel %vm1894_vm10, %v1865_v41, %v1391_v40  ;;  %v2221_v40 = vrot.slane %v5710_v5, 1  ;;  %v2197_v4 = vrot.slane %v4636_v61, 1  ;;  %v5717_v41 = vld [vmem:[#allocation80_spill] sm:$0xff] }
 0x22e   : > { %1260 = vrot.lane.b32.xlu1 %v1227_v54, %s2982_s21  ;;  %v4622_v24 = vpop.permute.xlu0 %1320  ;;  %v1931_v18 = vsel %vm1927_vm11, %v1898_v63, %v1427_v1  ;;  %v2198_v54 = vrot.slane %v2143_v15, 1  ;;  %v2079_v1 = vsel %vm2059_vm15, %v2046_v12, %v1589_v43  ;;  %v1206_v27 = vsel %vm1073_vm1, %v1204_v7, %v1205_v10  ;;  %v5719_v15 = vld [vmem:[#allocation32_spill] sm:$0xff] }
 0x22f   : > { %v1964_v2 = vsel %vm5484_vm12, %v1931_v18, %v1463_v35  ;;  %v1669_v25 = vsel %vm1663_vm3, %v5718_v42, %v5717_v41  ;;  %v1229_v63 = vrot.slane %v5719_v15, 1 }
 0x230   : > { %v4629_v45 = vpop.permute.xlu1 %1304  ;;  %1277 = vrot.lane.b32.xlu0 %v5705_v11, %s2984_s30  ;;  %v1997_v56 = vsel %vm1993_vm13, %v1964_v2, %v1496_v34  ;;  %v2223_v34 = vsel %vm1073_vm1, %v2221_v40, %v2222_v13  ;;  %v2199_v14 = vsel %vm1073_vm1, %v2197_v4, %v2198_v54  ;;  %v5720_v13 = vld [vmem:[#allocation56_spill] sm:$0xff]  ;;  %v5722_v54 = vld [vmem:[#allocation43_spill] sm:$0xff] }
 0x231   : > { %v2030_v0 = vsel %vm2026_vm14, %v1997_v56, %v1529_v20  ;;  %v1702_v18 = vsel %vm1696_vm4, %v1669_v25, %v5720_v13  ;;  %v5721_v2 = vld [vmem:[#allocation88_spill] sm:$0xff]  ;;  %v1228_v56 = vrot.slane %v3911_v44, 1 }
 0x232   : > { %1550 = vrot.lane.b32.xlu1 %v3911_v44, %s2987_s6  ;;  %v1633_v8 = vpop.permute.xlu0 %1632  ;;  %v2063_v35 = vsel %vm2059_vm15, %v2030_v0, %v1573_v19  ;;  %v1735_v12 = vsel %vm1729_vm5, %v1702_v18, %v5721_v2  ;;  %v5723_v0 = vld [vmem:[#allocation52_spill] sm:$0xff] }
 0x233   : > { %v2121_v62 = vsel %vm5483_vm0, %v2079_v1, %v1633_v8  ;;  %v1768_v40 = vsel %vm1762_vm6, %v1735_v12, %v4378_v53  ;;  %v1230_v4 = vsel %vm1073_vm1, %v1228_v56, %v1229_v63  ;;  %v5729_v12 = vld [vmem:[#allocation66_spill] sm:$0xff] }
 0x234   : > { %v1617_v9 = vpop.permute.xlu1 %1616  ;;  %1578 = vrot.lane.b32.xlu0 %v5711_v47, %s2988_s27  ;;  %2464 = vmatmul.mubr.bf16.gmra.mrb[4].mxu1 %v2121_v62  ;;  %v1801_v1 = vsel %vm1795_vm7, %v1768_v40, %v4592_v36  ;;  %v5724_v36 = vld [vmem:[#allocation14_spill] sm:$0xff]  ;;  %v5730_v40 = vld [vmem:[#allocation75_spill] sm:$0xff] }
 0x235   : > { %2692 = vmatprep.mubr.msk.bf16.mxu1 %vm1663_vm3, %v2223_v34  ;;  %v2097_v48 = vsel %vm5483_vm0, %v2063_v35, %v1617_v9  ;;  %v1834_v62 = vsel %vm1828_vm8, %v1801_v1, %v4629_v45  ;;  %v5725_v34 = vld [vmem:[#allocation47_spill] sm:$0xff]  ;;  %v4721_v45 = vsel %vm1646_vm2, %v5629_v59, %v3758_v50 }
 0x236   : > { %1293 = vrot.lane.b32.xlu1 %v3556_v23, %s2984_s30  ;;  %2400 = vmatmul.mubr.bf16.gmra.mrb[4].mxu0 %v2097_v48  ;;  %v4656_v20 = vpop.permute.xlu0 %1364  ;;  %v2144_v48 = vsel %vm1646_vm2, %v5725_v34, %v5724_v36 }
 0x237   : > { %2684 = vmatprep.mubr.msk.bf16.mxu0 %vm1663_vm3, %v2199_v14 }
 0x238   : > { %v1349_v21 = vpop.permute.xlu1 %1348  ;;  %1310 = vrot.lane.b32.xlu0 %v5706_v38, %s2984_s30 }
 0x239   : > { %v1867_v35 = vsel %vm1861_vm9, %v1834_v62, %v1349_v21 }
 0x23a   : > { %1594 = vrot.lane.b32.xlu1 %v5712_v37, %s2988_s27  ;;  %v1409_v51 = vpop.permute.xlu0 %1408 }
 0x23c   : > { %v1393_v55 = vpop.permute.xlu1 %1392  ;;  %1622 = vrot.lane.b32.xlu0 %v5713_v33, %s2988_s27 }
 0x23d   : > { %v1900_v53 = vsel %vm1894_vm10, %v1867_v35, %v1393_v55  ;;  %v5726_v55 = vld [vmem:[#allocation60_spill] sm:$0xff] }
 0x23e   : > { %1326 = vrot.lane.b32.xlu1 %v3911_v44, %s2984_s30  ;;  %v1445_v23 = vpop.permute.xlu0 %1444 }
 0x240   : > { %v1429_v39 = vpop.permute.xlu1 %1428  ;;  %1354 = vrot.lane.b32.xlu0 %v5711_v47, %s2985_s3 }
 0x241   : > { %v1933_v44 = vsel %vm1927_vm11, %v1900_v53, %v1429_v39  ;;  %v2201_v39 = vrot.slane %v2144_v48, 1 }
 0x242   : > { %1638 = vrot.lane.b32.xlu1 %v5714_v49, %s2988_s27  ;;  %v1481_v43 = vpop.permute.xlu0 %1480 }
 0x244   : > { %v1465_v6 = vpop.permute.xlu1 %1464  ;;  %1398 = vrot.lane.b32.xlu0 %v5713_v33, %s2985_s3  ;;  %v1784_v33 = vsel %vm1762_vm6, %v5726_v55, %v4562_v3 }
 0x245   : > { %v1966_v14 = vsel %vm5484_vm12, %v1933_v44, %v1465_v6  ;;  %v1817_v50 = vsel %vm1795_vm7, %v1784_v33, %v4581_v26  ;;  %v5727_v6 = vld [vmem:[#allocation19_spill] sm:$0xff]  ;;  %v5733_v44 = vld [vmem:[#allocation20_spill] sm:$0xff] }
 0x246   : > { %1370 = vrot.lane.b32.xlu1 %v5712_v37, %s2985_s3  ;;  %v1514_v22 = vpop.permute.xlu0 %1513  ;;  %v1850_v10 = vsel %vm1828_vm8, %v1817_v50, %v4622_v24  ;;  %v1208_v36 = vrot.slane %v5733_v44, 1  ;;  %v1207_v34 = vrot.slane %v5727_v6, 1  ;;  %v1231_v50 = vrot.slane %v3932_v16, 1 }
 0x248   : > { %v1498_v19 = vpop.permute.xlu1 %1497  ;;  %1434 = vrot.lane.b32.xlu0 %v5716_v29, %s2986_s5  ;;  %v1883_v29 = vsel %vm1861_vm9, %v1850_v10, %v4656_v20  ;;  %v1209_v55 = vsel %vm1073_vm1, %v1207_v34, %v1208_v36 }
 0x249   : > { %v1999_v21 = vsel %vm1993_vm13, %v1966_v14, %v1498_v19  ;;  %v1916_v41 = vsel %vm1894_vm10, %v1883_v29, %v1409_v51  ;;  %v5734_v14 = vld [vmem:[#allocation41_spill] sm:$0xff] }
 0x24a   : > { %1414 = vrot.lane.b32.xlu1 %v5714_v49, %s2985_s3  ;;  %v1531_v17 = vpop.permute.xlu0 %1530  ;;  %v2200_v49 = vrot.slane %v4721_v45, 1  ;;  %v1949_v24 = vsel %vm1927_vm11, %v1916_v41, %v1445_v23 }
 0x24b   : > { %v2032_v19 = vsel %vm2026_vm14, %v1999_v21, %v1531_v17  ;;  %v1982_v17 = vsel %vm5484_vm12, %v1949_v24, %v1481_v43 }
 0x24c   : > { %v4686_v31 = vpop.permute.xlu1 %1256  ;;  %1470 = vrot.lane.b32.xlu0 %v1206_v27, %s2986_s5  ;;  %v2202_v20 = vsel %vm1073_vm1, %v2200_v49, %v2201_v39  ;;  %v2015_v51 = vsel %vm1993_vm13, %v1982_v17, %v1514_v22  ;;  %v5735_v39 = vld [vmem:[#allocation33_spill] sm:$0xff] }
 0x24d   : > { %v1232_v49 = vrot.slane %v5735_v39, 1  ;;  %v5741_v17 = vld [vmem:[#allocation101_spill] sm:$0xff] }
 0x24e   : > { %1450 = vrot.lane.b32.xlu1 %v5722_v54, %s2986_s5  ;;  %v4696_v5 = vpop.permute.xlu0 %1273 }
 0x24f   : > { %v1233_v24 = vsel %vm1073_vm1, %v1231_v50, %v1232_v49 }
 0x250   : > { %v1547_v8 = vpop.permute.xlu1 %1546  ;;  %1503 = vrot.lane.b32.xlu0 %v5723_v0, %s2987_s6 }
 0x251   : > { %v2048_v13 = vsel %vm2026_vm14, %v2015_v51, %v1547_v8  ;;  %v5731_v8 = vld [vmem:[#allocation23_spill] sm:$0xff] }
 0x252   : > { %1486 = vrot.lane.b32.xlu1 %v1230_v4, %s2986_s5  ;;  %v1575_v9 = vpop.permute.xlu0 %1574  ;;  %v2822_v51 = vld [vmem:[%s3157_s26 + $0x188] sm:$0xff] }
 0x253   : > { %v2065_v3 = vsel %vm2059_vm15, %v2032_v19, %v1575_v9  ;;  %v5737_v19 = vld [vmem:[#allocation96_spill] sm:$0xff] }
 0x254   : > { %v4712_v47 = vpop.permute.xlu1 %1289  ;;  %1246 = vrot.lane.b32.xlu0 %v1206_v27, %s2982_s21  ;;  %v5728_v27 = vld [vmem:[#allocation59_spill] sm:$0xff]  ;;  %v1786_v29 = vsel %vm1762_vm6, %v5737_v19, %v4686_v31 }
 0x255   : > { %v2152_v26 = vsel %vm1646_vm2, %v5728_v27, %v5701_v58  ;;  %v2224_v58 = vrot.slane %v4341_v60, 1  ;;  %v1819_v27 = vsel %vm1795_vm7, %v1786_v29, %v4712_v47  ;;  %v5740_v31 = vld [vmem:[#allocation91_spill] sm:$0xff] }
 0x256   : > { %1519 = vrot.lane.b32.xlu1 %v3605_v30, %s2987_s6  ;;  %v4727_v37 = vpop.permute.xlu0 %1306  ;;  %v2225_v63 = vrot.slane %v2152_v26, 1  ;;  %v5746_v29 = vld [vmem:[#allocation95_spill] sm:$0xff] }
 0x258   : > { %v1591_v59 = vpop.permute.xlu1 %1590  ;;  %1536 = vrot.lane.b32.xlu0 %v5727_v6, %s2987_s6  ;;  %v2226_v22 = vsel %vm1073_vm1, %v2224_v58, %v2225_v63 }
 0x259   : > { %v2081_v18 = vsel %vm2059_vm15, %v2048_v13, %v1591_v59  ;;  %v5736_v59 = vld [vmem:[#allocation78_spill] sm:$0xff] }
 0x25a   : > { %1262 = vrot.lane.b32.xlu1 %v1230_v4, %s2982_s21  ;;  %v1619_v7 = vpop.permute.xlu0 %1618  ;;  %v5732_v4 = vld [vmem:[#allocation36_spill] sm:$0xff] }
 0x25b   : > { %v2100_v42 = vsel %vm5483_vm0, %v2065_v3, %v1619_v7  ;;  %v5738_v3 = vld [vmem:[#allocation83_spill] sm:$0xff]  ;;  %v2823_v13 = vld [vmem:[%s3157_s26 + $0x180] sm:$0xff] }
 0x25c   : > { %v1323_v25 = vpop.permute.xlu1 %1322  ;;  %1279 = vrot.lane.b32.xlu0 %v5723_v0, %s2984_s30  ;;  %2408 = vmatmul.mubr.bf16.gmra.mrb[8].mxu0 %v2100_v42  ;;  %v1671_v7 = vsel %vm1663_vm3, %v4489_v52, %v5738_v3  ;;  %v2227_v3 = vrot.slane %v5746_v29, 1  ;;  %v5753_v29 = vld [vmem:[#allocation24_spill] sm:$0xff] }
 0x25d   : > { %2685 = vmatprep.mubr.msk.bf16.mxu0 %vm1663_vm3, %v2202_v20  ;;  %v1852_v42 = vsel %vm1828_vm8, %v1819_v27, %v1323_v25 }
 0x25e   : > { %1552 = vrot.lane.b32.xlu1 %v3932_v16, %s2987_s6  ;;  %v4759_v23 = vpop.permute.xlu0 %1350 }
 0x260   : > { %v1635_v2 = vpop.permute.xlu1 %1634  ;;  %1580 = vrot.lane.b32.xlu0 %v5729_v12, %s2988_s27 }
 0x261   : > { %v2124_v43 = vsel %vm5483_vm0, %v2081_v18, %v1635_v2  ;;  %v4835_v18 = vpack.c.bf16 %v2822_v51, %v2823_v13 }
 0x262   : > { %1295 = vrot.lane.b32.xlu1 %v3605_v30, %s2984_s30  ;;  %2472 = vmatmul.mubr.bf16.gmra.mrb[8].mxu1 %v2124_v43  ;;  %v4768_v60 = vpop.permute.xlu0 %1394  ;;  %v5742_v43 = vld [vmem:[#allocation62_spill] sm:$0xff] }
 0x263   : > { %2693 = vmatprep.mubr.msk.bf16.mxu1 %vm1663_vm3, %v2226_v22  ;;  %v2153_v22 = vsel %vm1646_vm2, %v5742_v43, %v5719_v15  ;;  %v2824_v15 = vld [vmem:[%s3157_s26 + $0x190] sm:$0x3] }
 0x264   : > { %v1367_v54 = vpop.permute.xlu1 %1366  ;;  %1312 = vrot.lane.b32.xlu0 %v5727_v6, %s2984_s30  ;;  %v4858_v36 = vpack.c.bf16 %v2824_v15, %v2824_v15  ;;  %v2228_v34 = vrot.slane %v2153_v22, 1 }
 0x265   : > { %v1885_v52 = vsel %vm1861_vm9, %v1852_v42, %v1367_v54 }
 0x266   : > { %1596 = vrot.lane.b32.xlu1 %v5730_v40, %s2988_s27  ;;  %v4776_v56 = vpop.permute.xlu0 %1430 }
 0x268   : > { %v1411_v1 = vpop.permute.xlu1 %1410  ;;  %1624 = vrot.lane.b32.xlu0 %v5731_v8, %s2988_s27 }
 0x269   : > { %v1918_v58 = vsel %vm1894_vm10, %v1885_v52, %v1411_v1  ;;  %v5743_v1 = vld [vmem:[#allocation50_spill] sm:$0xff] }
 0x26a   : > { %1328 = vrot.lane.b32.xlu1 %v3932_v16, %s2984_s30  ;;  %v4782_v30 = vpop.permute.xlu0 %1466  ;;  %v5739_v16 = vld [vmem:[#allocation61_spill] sm:$0xff] }
 0x26b   : > { %v1704_v41 = vsel %vm1696_vm4, %v1671_v7, %v5739_v16  ;;  %v1333_v16 = vshrl.u32 %v4835_v18, 16 }
 0x26c   : > { %v1447_v62 = vpop.permute.xlu1 %1446  ;;  %1356 = vrot.lane.b32.xlu0 %v5729_v12, %s2985_s3  ;;  %v1737_v20 = vsel %vm1729_vm5, %v1704_v41, %v5740_v31 }
 0x26d   : > { %v1770_v63 = vsel %vm1762_vm6, %v1737_v20, %v5741_v17  ;;  %v1951_v2 = vsel %vm1927_vm11, %v1918_v58, %v1447_v62  ;;  %v5747_v20 = vld [vmem:[#allocation40_spill] sm:$0xff] }
 0x26e   : > { %1640 = vrot.lane.b32.xlu1 %v5732_v4, %s2988_s27  ;;  %v4788_v35 = vpop.permute.xlu0 %1499  ;;  %v1803_v25 = vsel %vm1795_vm7, %v1770_v63, %v4696_v5 }
 0x26f   : > { %v1836_v54 = vsel %vm1828_vm8, %v1803_v25, %v4727_v37 }
 0x270   : > { %v1483_v9 = vpop.permute.xlu1 %1482  ;;  %1400 = vrot.lane.b32.xlu0 %v5731_v8, %s2985_s3  ;;  %v2145_v8 = vsel %vm1646_vm2, %v5743_v1, %v5715_v57  ;;  %v1869_v5 = vsel %vm1861_vm9, %v1836_v54, %v4759_v23  ;;  %v5744_v57 = vld [vmem:[#allocation39_spill] sm:$0xff] }
 0x271   : > { %v1902_v37 = vsel %vm1894_vm10, %v1869_v5, %v4768_v60  ;;  %v2204_v50 = vrot.slane %v2145_v8, 1  ;;  %v4874_v60 = vsel %vm1646_vm2, %v5705_v11, %v5706_v38  ;;  %v5750_v5 = vld [vmem:[#allocation26_spill] sm:$0xff] }
 0x272   : > { %1372 = vrot.lane.b32.xlu1 %v5730_v40, %s2985_s3  ;;  %v4794_v53 = vpop.permute.xlu0 %1258  ;;  %v1984_v40 = vsel %vm5484_vm12, %v1951_v2, %v1483_v9  ;;  %v1335_v9 = vshll.u32 %v4835_v18, 16  ;;  %v2203_v42 = vrot.slane %v4874_v60, 1 }
 0x274   : > { %v1516_v48 = vpop.permute.xlu1 %1515  ;;  %1436 = vrot.lane.b32.xlu0 %v5734_v14, %s2986_s5  ;;  %v515_v14 = vmul.f32 %v2822_v51, %v5744_v57  ;;  %v1337_v41 = vrot.slane %v1335_v9, 1  ;;  %v2205_v17 = vsel %vm1073_vm1, %v2203_v42, %v2204_v50  ;;  %v5748_v51 = vld [vmem:[#allocation69_spill] sm:$0xff] }
 0x275   : > { %v2017_v62 = vsel %vm1993_vm13, %v1984_v40, %v1516_v48  ;;  %v1935_v48 = vsel %vm1927_vm11, %v1902_v37, %v4776_v56  ;;  %v5756_v42 = vld [vmem:[#allocation57_spill] sm:$0xff] }
 0x276   : > { %1416 = vrot.lane.b32.xlu1 %v5732_v4, %s2985_s3  ;;  %v1549_v21 = vpop.permute.xlu0 %1548 }
 0x277   : > { %v2050_v19 = vsel %vm2026_vm14, %v2017_v62, %v1549_v21 }
 0x278   : > { %v1533_v33 = vpop.permute.xlu1 %1532  ;;  %1472 = vrot.lane.b32.xlu0 %v1209_v55, %s2986_s5 }
 0x27a   : > { %1452 = vrot.lane.b32.xlu1 %v5736_v59, %s2986_s5  ;;  %v4808_v10 = vpop.permute.xlu0 %1291  ;;  %v1968_v59 = vsel %vm5484_vm12, %v1935_v48, %v4782_v30  ;;  %v1340_v30 = vshll.u32 %v4858_v36, 16  ;;  %v5751_v48 = vld [vmem:[#allocation82_spill] sm:$0xff] }
 0x27b   : > { %v2001_v56 = vsel %vm1993_vm13, %v1968_v59, %v4788_v35  ;;  %v1673_v50 = vsel %vm1663_vm3, %v4636_v61, %v5751_v48 }
 0x27c   : > { %v4818_v26 = vpop.permute.xlu1 %1275  ;;  %1505 = vrot.lane.b32.xlu0 %v5695_v32, %s2987_s6  ;;  %v2034_v11 = vsel %vm2026_vm14, %v2001_v56, %v1533_v33  ;;  %v516_v33 = vmul.f32 %v2824_v15, %v5747_v20  ;;  %v1342_v63 = vrot.slane %v1340_v30, 1  ;;  %v5754_v56 = vld [vmem:[#allocation90_spill] sm:$0xff]  ;;  %v5757_v20 = vld [vmem:[#allocation81_spill] sm:$0xff] }
 0x27e   : > { %1488 = vrot.lane.b32.xlu1 %v1233_v24, %s2986_s5  ;;  %v1593_v47 = vpop.permute.xlu0 %1592 }
 0x27f   : > { %v2083_v7 = vsel %vm2059_vm15, %v2050_v19, %v1593_v47  ;;  %v5752_v19 = vld [vmem:[#allocation38_spill] sm:$0xff] }
 0x280   : > { %v1577_v12 = vpop.permute.xlu1 %1576  ;;  %1248 = vrot.lane.b32.xlu0 %v1209_v55, %s2982_s21  ;;  %v5745_v55 = vld [vmem:[#allocation42_spill] sm:$0xff] }
 0x281   : > { %v514_v23 = vmul.f32 %v2823_v13, %v5745_v55  ;;  %v2067_v35 = vsel %vm2059_vm15, %v2034_v11, %v1577_v12  ;;  %v4906_v13 = vpack.c.bf16 %v516_v33, %v516_v33  ;;  %v1421_v55 = vrot.slane %v4835_v18, 1 }
 0x282   : > { %1521 = vrot.lane.b32.xlu1 %v4835_v18, %s2987_s6  ;;  %v4855_v4 = vpop.permute.xlu0 %1324 }
 0x283   : > { %v4888_v21 = vpack.c.bf16 %v515_v14, %v514_v23  ;;  %v1384_v22 = vshll.u32 %v4906_v13, 16  ;;  %v1422_v23 = vrot.slane %v4858_v36, 1  ;;  %v1458_v33 = vrot.slane %v4906_v13, 1 }
 0x284   : > { %v4867_v49 = vpop.permute.xlu1 %1308  ;;  %1538 = vrot.lane.b32.xlu0 %v3798_v46, %s2987_s6 }
 0x285   : > { %v1379_v25 = vshll.u32 %v4888_v21, 16  ;;  %v1377_v54 = vshrl.u32 %v4888_v21, 16  ;;  %v1386_v62 = vrot.slane %v1384_v22, 1  ;;  %v1423_v61 = vsel %vm1073_vm1, %v1421_v55, %v1422_v23  ;;  %v2827_v22 = vld [vmem:[%s3157_s26 + $0x1a8] sm:$0x3] }
 0x286   : > { %1264 = vrot.lane.b32.xlu1 %v1233_v24, %s2982_s21  ;;  %v1637_v27 = vpop.permute.xlu0 %1636  ;;  %v2229_v24 = vsel %vm1073_vm1, %v2227_v3, %v2228_v34  ;;  %v1706_v3 = vsel %vm1696_vm4, %v1673_v50, %v5753_v29 }
 0x287   : > { %v2127_v38 = vsel %vm5483_vm0, %v2083_v7, %v1637_v27  ;;  %v1381_v40 = vrot.slane %v1379_v25, 1  ;;  %v1739_v7 = vsel %vm1729_vm5, %v1706_v3, %v5754_v56 }
 0x288   : > { %v1621_v31 = vpop.permute.xlu1 %1620  ;;  %1281 = vrot.lane.b32.xlu0 %v5695_v32, %s2984_s30  ;;  %2480 = vmatmul.mubr.bf16.gmra.mrb[12].mxu1 %v2127_v38  ;;  %v1338_v32 = vor.u32 %v1337_v41, %v1333_v16  ;;  %v5755_v16 = vld [vmem:[#allocation100_spill] sm:$0xff]  ;;  %v2825_v38 = vld [vmem:[%s3157_s26 + $0x198] sm:$0xff] }
 0x289   : > { %2694 = vmatprep.mubr.msk.bf16.mxu1 %vm1663_vm3, %v2229_v24  ;;  %v2103_v52 = vsel %vm5483_vm0, %v2067_v35, %v1621_v31  ;;  %vm5749_vm0 = vsmask.f32 7424  ;;  %v1382_v15 = vor.u32 %v1381_v40, %v1377_v54  ;;  %v1772_v11 = vsel %vm1762_vm6, %v1739_v7, %v5755_v16  ;;  %v2826_v41 = vld [vmem:[%s3157_s26 + $0x1a0] sm:$0xff]  ;;  %v5759_v40 = vld [vmem:[#allocation51_spill] sm:$0xff]  ;;  %s2989_s26 = smov [#allocation7]  }
 0x28a   : > { %1554 = vrot.lane.b32.xlu1 %v4888_v21, %s2987_s6  ;;  %2416 = vmatmul.mubr.bf16.gmra.mrb[12].mxu0 %v2103_v52  ;;  %v4900_v47 = vpop.permute.xlu0 %1368  ;;  %v1343_v12 = vsel %vm5749_vm0, %v1338_v32, %v1342_v63  ;;  %v4957_v30 = vpack.c.bf16 %v2826_v41, %v2825_v38  ;;  %v517_v35 = vmul.f32 %v2825_v38, %v5756_v42  ;;  %v5758_v52 = vld [vmem:[#allocation48_spill] sm:$0xff]  ;;  %v1457_v63 = vrot.slane %v4888_v21, 1  ;;  %s2890_s19 = sshll.u32 %s2989_s26, 4  ;;  %s2891_s19 = int_to_ptr.vmem [resolvable:$false] %s2890_s19 }
 0x28b   : > { %2686 = vmatprep.mubr.msk.bf16.mxu0 %vm1663_vm3, %v2205_v17  ;;  %v1387_v9 = vsel %vm5749_vm0, %v1382_v15, %v1386_v62  ;;  %v1805_v31 = vsel %vm1795_vm7, %v1772_v11, %v4818_v26  ;;  %v518_v17 = vmul.f32 %v2826_v41, %v5758_v52  ;;  %v4976_v54 = vpack.c.bf16 %v2827_v22, %v2827_v22  ;;  %v5761_v15 = vld [vmem:[#allocation79_spill] sm:$0xff]  ;;  %v5766_v52 = vld [vmem:[#allocation68_spill] sm:$0xff]  ;;  %s2892_s17 = scalar_lea.vmem %s2891_s19, 8192  ;;  %p2893_p12 = scmp.lt.s32.totalorder %s5273_s4, %s2891_s19 }
 0x28c   : > { %v1353_v58 = vpop.permute.xlu1 %1352  ;;  %1582 = vrot.lane.b32.xlu0 %v5748_v51, %s2988_s27  ;;  %v1838_v32 = vsel %vm1828_vm8, %v1805_v31, %v4867_v49  ;;  %v4984_v49 = vsel %vm1646_vm2, %v5723_v0, %v5727_v6  ;;  %vm5765_vm0 = vcmask 982016   ;;  %p2894_p13 = scmp.lt.s32.totalorder %s2892_s17, %s2886_s16 }
 0x28d   : > { %v4992_v55 = vpack.c.bf16 %v518_v17, %v517_v35  ;;  %v1566_v48 = vshll.u32 %v4976_v54, 16  ;;  %v5764_v35 = vld [vmem:[#allocation65_spill] sm:$0xff] }
 0x28e   : > { %1297 = vrot.lane.b32.xlu1 %v4835_v18, %s2984_s30  ;;  %v4911_v2 = vpop.permute.xlu0 %1412  ;;  %v2154_v31 = vsel %vm1646_vm2, %v5764_v35, %v5735_v39  ;;  %v5774_v35 = vld [vmem:[#allocation102_spill] sm:$0xff]  ;;  %p2895_p0 = por %p2894_p13, %p2893_p12 }
 0x28f   : > { %v1568_v38 = vrot.slane %v1566_v48, 1 }
 0x290   : > { %v1397_v43 = vpop.permute.xlu1 %1396  ;;  %1314 = vrot.lane.b32.xlu0 %v3798_v46, %s2984_s30  ;;  %p2896_p5 = pnand %p2895_p0, %p2889_p8 }
 0x292   : > { %1598 = vrot.lane.b32.xlu1 %v1343_v12, %s2988_s27  ;;  %v4919_v1 = vpop.permute.xlu0 %1448 }
 0x294   : > { %v1433_v8 = vpop.permute.xlu1 %1432  ;;  %1626 = vrot.lane.b32.xlu0 %v5750_v5, %s2988_s27 }
 0x296   : > { %1330 = vrot.lane.b32.xlu1 %v4888_v21, %s2984_s30  ;;  %v4925_v37 = vpop.permute.xlu0 %1484 }
 0x298   : > { %v1469_v46 = vpop.permute.xlu1 %1468  ;;  %1358 = vrot.lane.b32.xlu0 %v5748_v51, %s2985_s3  ;;  %v1871_v51 = vsel %vm1861_vm9, %v1838_v32, %v1353_v58 }
 0x299   : > { %v1904_v26 = vsel %vm1894_vm10, %v1871_v51, %v1397_v43  ;;  %v5760_v43 = vld [vmem:[#allocation55_spill] sm:$0xff]  ;;  %v2231_v51 = vrot.slane %v2154_v31, 1 }
 0x29a   : > { %1642 = vrot.lane.b32.xlu1 %v1387_v9, %s2988_s27  ;;  %v4931_v34 = vpop.permute.xlu0 %1517  ;;  %v1937_v58 = vsel %vm1927_vm11, %v1904_v26, %v1433_v8  ;;  %v5762_v8 = vld [vmem:[#allocation13_spill] sm:$0xff] }
 0x29b   : > { %v1970_v23 = vsel %vm5484_vm12, %v1937_v58, %v1469_v46  ;;  %v1788_v50 = vsel %vm1762_vm6, %v5762_v8, %v4794_v53  ;;  %v2206_v46 = vrot.slane %v4984_v49, 1  ;;  %v5769_v58 = vld [vmem:[#allocation29_spill] sm:$0xff] }
 0x29c   : > { %v1502_v57 = vpop.permute.xlu1 %1501  ;;  %1402 = vrot.lane.b32.xlu0 %v5750_v5, %s2985_s3  ;;  %v2146_v5 = vsel %vm1646_vm2, %v5759_v40, %v5733_v44  ;;  %v1459_v44 = vsel %vm1073_vm1, %v1457_v63, %v1458_v33  ;;  %v1821_v56 = vsel %vm1795_vm7, %v1788_v50, %v4808_v10 }
 0x29d   : > { %v2003_v0 = vsel %vm1993_vm13, %v1970_v23, %v1502_v57  ;;  %v2207_v3 = vrot.slane %v2146_v5, 1  ;;  %v5763_v57 = vld [vmem:[#allocation25_spill] sm:$0xff]  ;;  %v1854_v11 = vsel %vm1828_vm8, %v1821_v56, %v4855_v4 }
 0x29e   : > { %1374 = vrot.lane.b32.xlu1 %v1343_v12, %s2985_s3  ;;  %v1535_v14 = vpop.permute.xlu0 %1534  ;;  %v1561_v12 = vshll.u32 %v4957_v30, 16  ;;  %v1887_v41 = vsel %vm1861_vm9, %v1854_v11, %v4900_v47 }
 0x29f   : > { %v2036_v53 = vsel %vm2026_vm14, %v2003_v0, %v1535_v14  ;;  %v1920_v4 = vsel %vm1894_vm10, %v1887_v41, %v4911_v2  ;;  %v2208_v17 = vsel %vm1073_vm1, %v2206_v46, %v2207_v3  ;;  %v1603_v2 = vshrl.u32 %v4992_v55, 16  ;;  %v5773_v41 = vld [vmem:[#allocation93_spill] sm:$0xff] }
 0x2a0   : > { %v4941_v59 = vpop.permute.xlu1 %1260  ;;  %1438 = vrot.lane.b32.xlu0 %v5752_v19, %s2986_s5  ;;  %v1559_v19 = vshrl.u32 %v4957_v30, 16  ;;  %v1563_v29 = vrot.slane %v1561_v12, 1  ;;  %v1953_v33 = vsel %vm1927_vm11, %v1920_v4, %v4919_v1  ;;  %v5767_v1 = vld [vmem:[#allocation99_spill] sm:$0xff] }
 0x2a1   : > { %v1986_v39 = vsel %vm5484_vm12, %v1953_v33, %v4925_v37  ;;  %vm5770_vm12 = vcmask 982016  }
 0x2a2   : > { %1418 = vrot.lane.b32.xlu1 %v1387_v9, %s2985_s3  ;;  %v4950_v27 = vpop.permute.xlu0 %1277  ;;  %v519_v9 = vmul.f32 %v2827_v22, %v5761_v15  ;;  %v2019_v26 = vsel %vm1993_vm13, %v1986_v39, %v4931_v34 }
 0x2a4   : > { %v4962_v24 = vpop.permute.xlu1 %1550  ;;  %1474 = vrot.lane.b32.xlu0 %v5757_v20, %s2986_s5  ;;  %v5010_v16 = vpack.c.bf16 %v519_v9, %v519_v9  ;;  %v1564_v20 = vor.u32 %v1563_v29, %v1559_v19 }
 0x2a5   : > { %v2052_v22 = vsel %vm2026_vm14, %v2019_v26, %v4962_v24 }
 0x2a6   : > { %1454 = vrot.lane.b32.xlu1 %v1423_v61, %s2986_s5  ;;  %v1579_v25 = vpop.permute.xlu0 %1578  ;;  %v1605_v61 = vshll.u32 %v4992_v55, 16  ;;  %v1610_v32 = vshll.u32 %v5010_v16, 16 }
 0x2a7   : > { %v2069_v42 = vsel %vm2059_vm15, %v2036_v53, %v1579_v25  ;;  %v2230_v25 = vrot.slane %v5767_v1, 1 }
 0x2a8   : > { %v4987_v62 = vpop.permute.xlu1 %1293  ;;  %1507 = vrot.lane.b32.xlu0 %v5760_v43, %s2987_s6  ;;  %v1607_v63 = vrot.slane %v1605_v61, 1  ;;  %v1612_v43 = vrot.slane %v1610_v32, 1  ;;  %v5772_v61 = vld [vmem:[#allocation12_spill] sm:$0xff] }
 0x2a9   : > { %v2232_v23 = vsel %vm1073_vm1, %v2230_v25, %v2231_v51 }
 0x2aa   : > { %1490 = vrot.lane.b32.xlu1 %v1459_v44, %s2986_s5  ;;  %v4999_v6 = vpop.permute.xlu0 %1310  ;;  %v1608_v9 = vor.u32 %v1607_v63, %v1603_v2 }
 0x2ac   : > { %v1595_v7 = vpop.permute.xlu1 %1594  ;;  %1540 = vrot.lane.b32.xlu0 %v5763_v57, %s2987_s6  ;;  %v5771_v57 = vld [vmem:[#allocation85_spill] sm:$0xff] }
 0x2ad   : > { %v2085_v40 = vsel %vm2059_vm15, %v2052_v22, %v1595_v7  ;;  %v1675_v11 = vsel %vm1663_vm3, %v4721_v45, %v5771_v57 }
 0x2ae   : > { %1523 = vrot.lane.b32.xlu1 %v4957_v30, %s2987_s6  ;;  %v1623_v10 = vpop.permute.xlu0 %1622 }
 0x2af   : > { %v2106_v14 = vsel %vm5765_vm0, %v2069_v42, %v1623_v10  ;;  %vm5768_vm0 = vsmask.f32 7424 }
 0x2b0   : > { %v5029_v47 = vpop.permute.xlu1 %1326  ;;  %1584 = vrot.lane.b32.xlu0 %v5766_v52, %s2988_s27  ;;  %2424 = vmatmul.mubr.bf16.gmra.mrb[16].mxu0 %v2106_v14  ;;  %v1569_v37 = vsel %vm5768_vm0, %v1564_v20, %v1568_v38  ;;  %v1613_v44 = vsel %vm5768_vm0, %v1608_v9, %v1612_v43  ;;  %v1708_v38 = vsel %vm1696_vm4, %v1675_v11, %v5772_v61  ;;  %v5775_v52 = vld [vmem:[#allocation21_spill] sm:$0xff]  ;;  %vm5779_vm0 = vcmask 982016  }
 0x2b1   : > { %2687 = vmatprep.mubr.msk.bf16.mxu0 %vm1663_vm3, %v2208_v17  ;;  %v1741_v42 = vsel %vm1729_vm5, %v1708_v38, %v5773_v41  ;;  %v5776_v17 = vld [vmem:[#allocation54_spill] sm:$0xff]  ;;  %v2156_v43 = vsel %vm1646_vm2, %v4858_v36, %v4906_v13 }
 0x2b2   : > { %1556 = vrot.lane.b32.xlu1 %v4992_v55, %s2987_s6  ;;  %v1355_v12 = vpop.permute.xlu0 %1354  ;;  %v1774_v31 = vsel %vm1762_vm6, %v1741_v42, %v5774_v35  ;;  %v2147_v32 = vsel %vm1646_vm2, %v5776_v17, %v5775_v52 }
 0x2b3   : > { %v1807_v4 = vsel %vm1795_vm7, %v1774_v31, %v4950_v27  ;;  %v5777_v27 = vld [vmem:[#allocation98_spill] sm:$0xff]  ;;  %v2210_v1 = vrot.slane %v2147_v32, 1  ;;  %v5780_v32 = vld [vmem:[#allocation84_spill] sm:$0xff] }
 0x2b4   : > { %v1639_v5 = vpop.permute.xlu1 %1638  ;;  %1628 = vrot.lane.b32.xlu0 %v5769_v58, %s2988_s27  ;;  %v1840_v20 = vsel %vm1828_vm8, %v1807_v4, %v4999_v6  ;;  %v1790_v51 = vsel %vm1762_vm6, %v5777_v27, %v4941_v59  ;;  %v5781_v27 = vld [vmem:[#allocation72_spill] sm:$0xff] }
 0x2b5   : > { %v2130_v15 = vsel %vm5770_vm12, %v2085_v40, %v1639_v5  ;;  %v1873_v45 = vsel %vm1861_vm9, %v1840_v20, %v1355_v12  ;;  %vm5778_vm12 = vcmask 719872   ;;  %v1823_v25 = vsel %vm1795_vm7, %v1790_v51, %v4987_v62 }
 0x2b6   : > { %1600 = vrot.lane.b32.xlu1 %v1569_v37, %s2988_s27  ;;  %2488 = vmatmul.mubr.bf16.gmra.mrb[16].mxu1 %v2130_v15  ;;  %v1399_v34 = vpop.permute.xlu0 %1398  ;;  %v1856_v22 = vsel %vm1828_vm8, %v1823_v25, %v5029_v47  ;;  %v2209_v40 = vrot.slane %v4473_v28, 1  ;;  %v2155_v47 = vsel %vm1646_vm2, %v4835_v18, %v4888_v21  ;;  %v2234_v18 = vrot.slane %v2156_v43, 1  ;;  %v5783_v43 = vld [vmem:[#allocation97_spill] sm:$0xff] }
 0x2b7   : > { %2695 = vmatprep.mubr.msk.bf16.mxu1 %vm1663_vm3, %v2232_v23  ;;  %v1906_v39 = vsel %vm1894_vm10, %v1873_v45, %v1399_v34 }
 0x2b8   : > { %v1371_v24 = vpop.permute.xlu1 %1370  ;;  %v2211_v36 = vsel %vm1073_vm1, %v2209_v40, %v2210_v1 }
 0x2b9   : > { %v1889_v5 = vsel %vm1861_vm9, %v1856_v22, %v1371_v24 }
 0x2ba   : > { %1644 = vrot.lane.b32.xlu1 %v1613_v44, %s2988_s27  ;;  %v1435_v48 = vpop.permute.xlu0 %1434 }
 0x2bb   : > { %v1939_v2 = vsel %vm1927_vm11, %v1906_v39, %v1435_v48  ;;  %v1677_v39 = vsel %vm1663_vm3, %v4874_v60, %v5780_v32 }
 0x2bc   : > { %v1415_v0 = vpop.permute.xlu1 %1414  ;;  %v1710_v51 = vsel %vm1696_vm4, %v1677_v39, %v5781_v27  ;;  %v5786_v39 = vld [vmem:[#allocation87_spill] sm:$0xff] }
 0x2bd   : > { %v1922_v62 = vsel %vm1894_vm10, %v1889_v5, %v1415_v0  ;;  %v2233_v0 = vrot.slane %v2155_v47, 1 }
 0x2be   : > { %v1471_v8 = vpop.permute.xlu0 %1470 }
 0x2bf   : > { %v1972_v6 = vsel %vm5778_vm12, %v1939_v2, %v1471_v8 }
 0x2c0   : > { %v1451_v50 = vpop.permute.xlu1 %1450 }
 0x2c1   : > { %v1955_v28 = vsel %vm1927_vm11, %v1922_v62, %v1451_v50 }
 0x2c2   : > { %v1504_v19 = vpop.permute.xlu0 %1503 }
 0x2c3   : > { %v2005_v26 = vsel %vm1993_vm13, %v1972_v6, %v1504_v19  ;;  %v5782_v6 = vld [vmem:[#allocation92_spill] sm:$0xff] }
 0x2c4   : > { %v1487_v29 = vpop.permute.xlu1 %1486  ;;  %v1743_v1 = vsel %vm1729_vm5, %v1710_v51, %v5782_v6  ;;  %v5787_v6 = vld [vmem:[#allocation70_spill] sm:$0xff] }
 0x2c5   : > { %v1988_v13 = vsel %vm5778_vm12, %v1955_v28, %v1487_v29 }
 0x2c6   : > { %v5056_v3 = vpop.permute.xlu0 %1246 }
 0x2c8   : > { %v1520_v46 = vpop.permute.xlu1 %1519 }
 0x2c9   : > { %v2021_v21 = vsel %vm1993_vm13, %v1988_v13, %v1520_v46  ;;  %v2235_v46 = vsel %vm1073_vm1, %v2233_v0, %v2234_v18 }
 0x2ca   : > { %v1537_v56 = vpop.permute.xlu0 %1536 }
 0x2cb   : > { %v2038_v37 = vsel %vm2026_vm14, %v2005_v26, %v1537_v56  ;;  %v1776_v26 = vsel %vm1762_vm6, %v1743_v1, %v5056_v3 }
 0x2cc   : > { %v5058_v7 = vpop.permute.xlu1 %1262 }
 0x2cd   : > { %v1792_v3 = vsel %vm1762_vm6, %v5783_v43, %v5058_v7  ;;  %v2158_v7 = vsel %vm1646_vm2, %v4976_v54, %v5010_v16 }
 0x2ce   : > { %v5063_v53 = vpop.permute.xlu0 %1279 }
 0x2d0   : > { %v1553_v10 = vpop.permute.xlu1 %1552 }
 0x2d1   : > { %v2054_v8 = vsel %vm2026_vm14, %v2021_v21, %v1553_v10 }
 0x2d2   : > { %v1581_v14 = vpop.permute.xlu0 %1580 }
 0x2d3   : > { %v2071_v59 = vsel %vm2059_vm15, %v2038_v37, %v1581_v14 }
 0x2d4   : > { %v5076_v33 = vpop.permute.xlu1 %1295 }
 0x2d5   : > { %v1825_v62 = vsel %vm1795_vm7, %v1792_v3, %v5076_v33 }
 0x2d6   : > { %v5083_v63 = vpop.permute.xlu0 %1312 }
 0x2d8   : > { %v1597_v12 = vpop.permute.xlu1 %1596 }
 0x2d9   : > { %v2087_v50 = vsel %vm2059_vm15, %v2054_v8, %v1597_v12  ;;  %v1809_v12 = vsel %vm1795_vm7, %v1776_v26, %v5063_v53  ;;  %v2237_v8 = vrot.slane %v2158_v7, 1 }
 0x2da   : > { %v1625_v58 = vpop.permute.xlu0 %1624  ;;  %v1842_v37 = vsel %vm1828_vm8, %v1809_v12, %v5083_v63 }
 0x2db   : > { %v2393_v15 = vpop.f32.mrb[0].mxu0  ;;  %v2109_v9 = vsel %vm5779_vm0, %v2071_v59, %v1625_v58 }
 0x2dc   : > { %2520 = vst.msk [vmem:[%s5108_s23] sm:$0xff] %vm1646_vm2, %v2393_v15  ;;  %v1329_v34 = vpop.permute.xlu1 %1328  ;;  %v2395_v23 = vpop.f32.mrb[1].mxu0  ;;  %2432 = vmatmul.mubr.bf16.gmra.mrb[20].mxu0 %v2109_v9 }
 0x2dd   : > { %v2396_v24 = vpop.f32.mrb[2].mxu0  ;;  %2688 = vmatprep.mubr.msk.bf16.mxu0 %vm1663_vm3, %v2211_v36  ;;  %v1858_v9 = vsel %vm1828_vm8, %v1825_v62, %v1329_v34  ;;  %v2157_v34 = vsel %vm1646_vm2, %v4957_v30, %v4992_v55 }
 0x2de   : > { %2521 = vst.msk [vmem:[%s5108_s23 + $0x8] sm:$0xff] %vm1646_vm2, %v2396_v24  ;;  %v2398_v44 = vpop.f32.mrb[3].mxu0  ;;  %v1357_v48 = vpop.permute.xlu0 %1356 }
 0x2df   : > { %v1875_v60 = vsel %vm1861_vm9, %v1842_v37, %v1357_v48  ;;  %v5784_v48 = vld [vmem:[#allocation27_spill] sm:$0xff] }
 0x2e0   : > { %v1641_v19 = vpop.permute.xlu1 %1640 }
 0x2e1   : > { %v2457_v56 = vpop.f32.mrb[0].mxu1  ;;  %v2133_v29 = vsel %vm5779_vm0, %v2087_v50, %v1641_v19  ;;  %v2236_v19 = vrot.slane %v2157_v34, 1 }
 0x2e2   : > { %2536 = vst.msk [vmem:[%s5108_s23 + $0x80] sm:$0xff] %vm1646_vm2, %v2457_v56  ;;  %v2459_v57 = vpop.f32.mrb[1].mxu1  ;;  %2496 = vmatmul.mubr.bf16.gmra.mrb[20].mxu1 %v2133_v29  ;;  %v1401_v11 = vpop.permute.xlu0 %1400 }
 0x2e3   : > { %v2460_v61 = vpop.f32.mrb[2].mxu1  ;;  %2696 = vmatprep.mubr.msk.bf16.mxu1 %vm1663_vm3, %v2235_v46  ;;  %v1908_v5 = vsel %vm1894_vm10, %v1875_v60, %v1401_v11 }
 0x2e4   : > { %2537 = vst.msk [vmem:[%s5108_s23 + $0x88] sm:$0xff] %vm1646_vm2, %v2460_v61  ;;  %v1373_v38 = vpop.permute.xlu1 %1372  ;;  %v2462_v41 = vpop.f32.mrb[3].mxu1 }
 0x2e5   : > { %v1891_v28 = vsel %vm1861_vm9, %v1858_v9, %v1373_v38  ;;  %v2238_v41 = vsel %vm1073_vm1, %v2236_v19, %v2237_v8  ;;  %vm5789_vm1 = vmmov %vm5778_vm12 }
 0x2e6   : > { %v1437_v42 = vpop.permute.xlu0 %1436 }
 0x2e7   : > { %v1941_v59 = vsel %vm1927_vm11, %v1908_v5, %v1437_v42  ;;  %v5788_v5 = vld [vmem:[#allocation30_spill] sm:$0xff] }
 0x2e8   : > { %v1417_v10 = vpop.permute.xlu1 %1416 }
 0x2e9   : > { %v1924_v13 = vsel %vm1894_vm10, %v1891_v28, %v1417_v10 }
 0x2ea   : > { %v1473_v35 = vpop.permute.xlu0 %1472 }
 0x2eb   : > { %v1974_v53 = vsel %vm5778_vm12, %v1941_v59, %v1473_v35 }
 0x2ec   : > { %v1453_v31 = vpop.permute.xlu1 %1452 }
 0x2ed   : > { %v1957_v18 = vsel %vm1927_vm11, %v1924_v13, %v1453_v31 }
 0x2ee   : > { %v1506_v4 = vpop.permute.xlu0 %1505 }
 0x2ef   : > { %v2007_v63 = vsel %vm1993_vm13, %v1974_v53, %v1506_v4 }
 0x2f0   : > { %v1489_v14 = vpop.permute.xlu1 %1488 }
 0x2f1   : > { %v1990_v54 = vsel %vm5778_vm12, %v1957_v18, %v1489_v14 }
 0x2f2   : > { %v5127_v20 = vpop.permute.xlu0 %1248 }
 0x2f4   : > { %v1522_v45 = vpop.permute.xlu1 %1521 }
 0x2f5   : > { %v2023_v50 = vsel %vm1993_vm13, %v1990_v54, %v1522_v45  ;;  %v5785_v45 = vld [vmem:[#allocation86_spill] sm:$0xff] }
 0x2f6   : > { %v1539_v52 = vpop.permute.xlu0 %1538 }
 0x2f7   : > { %v2040_v47 = vsel %vm2026_vm14, %v2007_v63, %v1539_v52  ;;  %v1679_v52 = vsel %vm1663_vm3, %v4984_v49, %v5785_v45 }
 0x2f8   : > { %v5129_v17 = vpop.permute.xlu1 %1264  ;;  %v1712_v27 = vsel %vm1696_vm4, %v1679_v52, %v5786_v39  ;;  %vm5791_vm4 = vmmov %vm5789_vm1 }
 0x2f9   : > { %v1745_v1 = vsel %vm1729_vm5, %v1712_v27, %v5787_v6  ;;  %v1794_v59 = vsel %vm1762_vm6, %v5788_v5, %v5129_v17  ;;  %vm5792_vm5 = vmmov %vm5779_vm0 }
 0x2fa   : > { %v5134_v2 = vpop.permute.xlu0 %1281 }
 0x2fc   : > { %v1555_v25 = vpop.permute.xlu1 %1554 }
 0x2fd   : > { %v2056_v56 = vsel %vm2026_vm14, %v2023_v50, %v1555_v25  ;;  %v1778_v25 = vsel %vm1762_vm6, %v1745_v1, %v5127_v20 }
 0x2fe   : > { %v1583_v22 = vpop.permute.xlu0 %1582  ;;  %v1811_v26 = vsel %vm1795_vm7, %v1778_v25, %v5134_v2 }
 0x2ff   : > { %v2073_v23 = vsel %vm2059_vm15, %v2040_v47, %v1583_v22 }
 0x300   : > { %v5147_v40 = vpop.permute.xlu1 %1297 }
 0x301   : > { %v1827_v20 = vsel %vm1795_vm7, %v1794_v59, %v5147_v40 }
 0x302   : > { %v1315_v58 = vpop.permute.xlu0 %1314 }
 0x303   : > { %v1844_v22 = vsel %vm1828_vm8, %v1811_v26, %v1315_v58 }
 0x304   : > { %v1599_v15 = vpop.permute.xlu1 %1598 }
 0x305   : > { %v2089_v11 = vsel %vm2059_vm15, %v2056_v56, %v1599_v15 }
 0x306   : > { %v1627_v36 = vpop.permute.xlu0 %1626 }
 0x307   : > { %v2465_v33 = vpop.f32.mrb[4].mxu1  ;;  %v2112_v24 = vsel %vm5779_vm0, %v2073_v23, %v1627_v36 }
 0x308   : > { %2538 = vst.msk [vmem:[%s5108_s23 + $0x90] sm:$0xff] %vm1646_vm2, %v2465_v33  ;;  %v1331_v21 = vpop.permute.xlu1 %1330  ;;  %2440 = vmatmul.mubr.bf16.gmra.mrb[24].mxu0 %v2112_v24  ;;  %v2467_v44 = vpop.f32.mrb[5].mxu1 }
 0x309   : > { %v2401_v16 = vpop.f32.mrb[4].mxu0  ;;  %2689 = vmatprep.mubr.msk.bf16.mxu0 %vm1663_vm3, %v5784_v48  ;;  %v2468_v0 = vpop.f32.mrb[6].mxu1  ;;  %v1860_v58 = vsel %vm1828_vm8, %v1827_v20, %v1331_v21 }
 0x30a   : > { %2522 = vst.msk [vmem:[%s5108_s23 + $0x10] sm:$0xff] %vm1646_vm2, %v2401_v16  ;;  %2539 = vst.msk [vmem:[%s5108_s23 + $0x98] sm:$0xff] %vm1646_vm2, %v2468_v0  ;;  %v2403_v30 = vpop.f32.mrb[5].mxu0  ;;  %v2470_v55 = vpop.f32.mrb[7].mxu1 }
 0x30b   : > { %v1359_v29 = vpop.permute.xlu0 %1358  ;;  %v2404_v57 = vpop.f32.mrb[6].mxu0 }
 0x30c   : > { %2523 = vst.msk [vmem:[%s5108_s23 + $0x18] sm:$0xff] %vm1646_vm2, %v2404_v57  ;;  %v1643_v46 = vpop.permute.xlu1 %1642  ;;  %v2406_v61 = vpop.f32.mrb[7].mxu0  ;;  %v1877_v49 = vsel %vm1861_vm9, %v1844_v22, %v1359_v29 }
 0x30d   : > { %v2136_v38 = vsel %vm5779_vm0, %v2089_v11, %v1643_v46 }
 0x30e   : > { %2504 = vmatmul.mubr.bf16.gmra.mrb[24].mxu1 %v2136_v38 }
 0x30f   : > { %v1403_v42 = vpop.permute.xlu0 %1402  ;;  %2697 = vmatprep.mubr.msk.bf16.mxu1 %vm1663_vm3, %v2238_v41  ;;  %vm5790_vm3 = vmmov %vm5779_vm0 }
 0x310   : > { %v1375_v10 = vpop.permute.xlu1 %1374  ;;  %v1910_v60 = vsel %vm1894_vm10, %v1877_v49, %v1403_v42 }
 0x311   : > { %v1893_v63 = vsel %vm1861_vm9, %v1860_v58, %v1375_v10 }
 0x313   : > { %v1439_v35 = vpop.permute.xlu0 %1438 }
 0x314   : > { %v1419_v31 = vpop.permute.xlu1 %1418  ;;  %v1943_v43 = vsel %vm1927_vm11, %v1910_v60, %v1439_v35 }
 0x315   : > { %v1926_v17 = vsel %vm1894_vm10, %v1893_v63, %v1419_v31 }
 0x317   : > { %v1475_v4 = vpop.permute.xlu0 %1474 }
 0x318   : > { %v1455_v14 = vpop.permute.xlu1 %1454  ;;  %v1976_v2 = vsel %vm5789_vm1, %v1943_v43, %v1475_v4 }
 0x319   : > { %v1959_v40 = vsel %vm1927_vm11, %v1926_v17, %v1455_v14 }
 0x31b   : > { %v1508_v32 = vpop.permute.xlu0 %1507 }
 0x31c   : > { %v1491_v51 = vpop.permute.xlu1 %1490  ;;  %v2009_v62 = vsel %vm1993_vm13, %v1976_v2, %v1508_v32 }
 0x31d   : > { %v1992_v36 = vsel %vm5791_vm4, %v1959_v40, %v1491_v51 }
 0x31f   : > { %v1541_v12 = vpop.permute.xlu0 %1540 }
 0x320   : > { %v1524_v37 = vpop.permute.xlu1 %1523  ;;  %v2042_v15 = vsel %vm2026_vm14, %v2009_v62, %v1541_v12 }
 0x321   : > { %v2025_v7 = vsel %vm1993_vm13, %v1992_v36, %v1524_v37 }
 0x323   : > { %v1585_v3 = vpop.permute.xlu0 %1584 }
 0x324   : > { %v1557_v53 = vpop.permute.xlu1 %1556  ;;  %v2075_v9 = vsel %vm2059_vm15, %v2042_v15, %v1585_v3 }
 0x325   : > { %v2058_v13 = vsel %vm2026_vm14, %v2025_v7, %v1557_v53 }
 0x327   : > { %v1629_v47 = vpop.permute.xlu0 %1628 }
 0x328   : > { %v1601_v28 = vpop.permute.xlu1 %1600  ;;  %v2115_v23 = vsel %vm5790_vm3, %v2075_v9, %v1629_v47 }
 0x329   : > { %2448 = vmatmul.mubr.bf16.gmra.mrb[28].mxu0 %v2115_v23  ;;  %v2091_v33 = vsel %vm2059_vm15, %v2058_v13, %v1601_v28 }
 0x32c   : > { %v1645_v24 = vpop.permute.xlu1 %1644 }
 0x32d   : > { %v2139_v34 = vsel %vm5792_vm5, %v2091_v33, %v1645_v24 }
 0x32e   : > { %2512 = vmatmul.mubr.bf16.gmra.mrb[28].mxu1 %v2139_v34 }
 0x32f   : > { %v2409_v18 = vpop.f32.mrb[8].mxu0 }
 0x330   : > { %2524 = vst.msk [vmem:[%s5108_s23 + $0x20] sm:$0xff] %vm1646_vm2, %v2409_v18  ;;  %v2411_v21 = vpop.f32.mrb[9].mxu0 }
 0x331   : > { %v2412_v44 = vpop.f32.mrb[10].mxu0 }
 0x332   : > { %2525 = vst.msk [vmem:[%s5108_s23 + $0x28] sm:$0xff] %vm1646_vm2, %v2412_v44  ;;  %v2414_v54 = vpop.f32.mrb[11].mxu0 }
 0x335   : > { %v2473_v16 = vpop.f32.mrb[8].mxu1 }
 0x336   : > { %2540 = vst.msk [vmem:[%s5108_s23 + $0xa0] sm:$0xff] %vm1646_vm2, %v2473_v16  ;;  %v2475_v48 = vpop.f32.mrb[9].mxu1 }
 0x337   : > { %v2476_v0 = vpop.f32.mrb[10].mxu1 }
 0x338   : > { %2541 = vst.msk [vmem:[%s5108_s23 + $0xa8] sm:$0xff] %vm1646_vm2, %v2476_v0  ;;  %v2478_v8 = vpop.f32.mrb[11].mxu1 }
 0x35b   : > { %v2481_v50 = vpop.f32.mrb[12].mxu1 }
 0x35c   : > { %2542 = vst.msk [vmem:[%s5108_s23 + $0xb0] sm:$0xff] %vm1646_vm2, %v2481_v50  ;;  %v2483_v30 = vpop.f32.mrb[13].mxu1 }
 0x35d   : > { %v2417_v55 = vpop.f32.mrb[12].mxu0  ;;  %v2484_v19 = vpop.f32.mrb[14].mxu1 }
 0x35e   : > { %2526 = vst.msk [vmem:[%s5108_s23 + $0x30] sm:$0xff] %vm1646_vm2, %v2417_v55  ;;  %2543 = vst.msk [vmem:[%s5108_s23 + $0xb8] sm:$0xff] %vm1646_vm2, %v2484_v19  ;;  %v2419_v56 = vpop.f32.mrb[13].mxu0  ;;  %v2486_v29 = vpop.f32.mrb[15].mxu1 }
 0x35f   : > { %v2420_v57 = vpop.f32.mrb[14].mxu0 }
 0x360   : > { %2527 = vst.msk [vmem:[%s5108_s23 + $0x38] sm:$0xff] %vm1646_vm2, %v2420_v57  ;;  %v2422_v11 = vpop.f32.mrb[15].mxu0 }
 0x383   : > { %v2425_v46 = vpop.f32.mrb[16].mxu0 }
 0x384   : > { %2528 = vst.msk [vmem:[%s5108_s23 + $0x40] sm:$0xff] %vm1646_vm2, %v2425_v46  ;;  %v2427_v61 = vpop.f32.mrb[17].mxu0 }
 0x385   : > { %v2428_v38 = vpop.f32.mrb[18].mxu0 }
 0x386   : > { %2529 = vst.msk [vmem:[%s5108_s23 + $0x48] sm:$0xff] %vm1646_vm2, %v2428_v38  ;;  %v2430_v41 = vpop.f32.mrb[19].mxu0 }
 0x389   : > { %v2489_v42 = vpop.f32.mrb[16].mxu1 }
 0x38a   : > { %2544 = vst.msk [vmem:[%s5108_s23 + $0xc0] sm:$0xff] %vm1646_vm2, %v2489_v42  ;;  %v2491_v10 = vpop.f32.mrb[17].mxu1 }
 0x38b   : > { %v2492_v35 = vpop.f32.mrb[18].mxu1 }
 0x38c   : > { %2545 = vst.msk [vmem:[%s5108_s23 + $0xc8] sm:$0xff] %vm1646_vm2, %v2492_v35  ;;  %v2494_v31 = vpop.f32.mrb[19].mxu1 }
 0x3af   : > { %v2433_v4 = vpop.f32.mrb[20].mxu0 }
 0x3b0   : > { %2530 = vst.msk [vmem:[%s5108_s23 + $0x50] sm:$0xff] %vm1646_vm2, %v2433_v4  ;;  %v2435_v14 = vpop.f32.mrb[21].mxu0 }
 0x3b1   : > { %v2436_v45 = vpop.f32.mrb[22].mxu0 }
 0x3b2   : > { %2531 = vst.msk [vmem:[%s5108_s23 + $0x58] sm:$0xff] %vm1646_vm2, %v2436_v45  ;;  %v2438_v52 = vpop.f32.mrb[23].mxu0 }
 0x3b5   : > { %v2497_v32 = vpop.f32.mrb[20].mxu1 }
 0x3b6   : > { %2546 = vst.msk [vmem:[%s5108_s23 + $0xd0] sm:$0xff] %vm1646_vm2, %v2497_v32  ;;  %v2499_v39 = vpop.f32.mrb[21].mxu1 }
 0x3b7   : > { %v2500_v27 = vpop.f32.mrb[22].mxu1 }
 0x3b8   : > { %2547 = vst.msk [vmem:[%s5108_s23 + $0xd8] sm:$0xff] %vm1646_vm2, %v2500_v27  ;;  %v2502_v51 = vpop.f32.mrb[23].mxu1 }
 0x3db   : > { %v2441_v6 = vpop.f32.mrb[24].mxu0 }
 0x3dc   : > { %2532 = vst.msk [vmem:[%s5108_s23 + $0x60] sm:$0xff] %vm1646_vm2, %v2441_v6  ;;  %v2443_v1 = vpop.f32.mrb[25].mxu0 }
 0x3dd   : > { %v2444_v25 = vpop.f32.mrb[26].mxu0 }
 0x3de   : > { %2533 = vst.msk [vmem:[%s5108_s23 + $0x68] sm:$0xff] %vm1646_vm2, %v2444_v25  ;;  %v2446_v26 = vpop.f32.mrb[27].mxu0 }
 0x3e1   : > { %v2505_v12 = vpop.f32.mrb[24].mxu1 }
 0x3e2   : > { %2548 = vst.msk [vmem:[%s5108_s23 + $0xe0] sm:$0xff] %vm1646_vm2, %v2505_v12  ;;  %v2507_v22 = vpop.f32.mrb[25].mxu1 }
 0x3e3   : > { %v2508_v37 = vpop.f32.mrb[26].mxu1 }
 0x3e4   : > { %2549 = vst.msk [vmem:[%s5108_s23 + $0xe8] sm:$0xff] %vm1646_vm2, %v2508_v37  ;;  %v2510_v49 = vpop.f32.mrb[27].mxu1 }
 0x3fc   : > { %v2449_v60 = vpop.f32.mrb[28].mxu0 }
 0x3fd   : > { %2534 = vst.msk [vmem:[%s5108_s23 + $0x70] sm:$0xff] %vm1646_vm2, %v2449_v60  ;;  %v2451_v5 = vpop.f32.mrb[29].mxu0 }
 0x3fe   : > { %v2452_v59 = vpop.f32.mrb[30].mxu0 }
 0x3ff   : > { %2535 = vst.msk [vmem:[%s5108_s23 + $0x78] sm:$0xff] %vm1646_vm2, %v2452_v59  ;;  %v2454_v43 = vpop.f32.mrb[31].mxu0 }
 0x401   : > { %v2513_v3 = vpop.f32.mrb[28].mxu1 }
 0x402   : > { %2550 = vst.msk [vmem:[%s5108_s23 + $0xf0] sm:$0xff] %vm1646_vm2, %v2513_v3  ;;  %v2515_v20 = vpop.f32.mrb[29].mxu1 }
 0x403   : > { %v2516_v2 = vpop.f32.mrb[30].mxu1 }
 0x404   : > { %2551 = vst.msk [vmem:[%s5108_s23 + $0xf8] sm:$0xff] %vm1646_vm2, %v2516_v2  ;;  %v2518_v53 = vpop.f32.mrb[31].mxu1 }
 0x405   : > { %2899 = shalt.err (!%p2896_p5)
}
 0x406   : > { %s2900_s21 = scalar_lea.hbm %s5271_s15, 4096  ;;  %s2904_s5 = scalar_lea.hbm %s5328_s2, 8192 }
 0x407   : > { %p2901_p9 = scmp.ne.s32.totalorder %s5271_s15, %s2900_s21  ;;  %p2905_p3 = scmp.lt.u32.totalorder %s5271_s15, %s5328_s2 }
 0x408   : > { %p2906_p7 = scmp.lt.u32.totalorder %s2904_s5, %s2900_s21  ;;  %p2908_p4 = scmp.lt.u32.totalorder %s2900_s21, %s5271_s15 }
 0x409   : > { %p2902_p1 = pnand %p2901_p9, %p3099_p10 }
 0x40a   : > { %p2907_p11 = por %p2906_p7, %p2905_p3 }
 0x40b   : > { %p2903_p2 = pneg %p2902_p1 }
 0x40c   : > { %p2909_p6 = por %p2908_p4, %p2907_p11 }
 0x40e   : > { %p2910_p8 = pnand %p2909_p6, %p2903_p2 }
 0x410   : > { %2913 = shalt.err (!%p2910_p8)
}
 0x411   : > { %s2990_s24 = smov 128   ;;  %s2991_s23 = smov 8  }
 0x412   : > { %2731 = dma.vmem_to_hbm [thread:$0]  (%p3099_p10), %s5273_s4, 4096, %s5271_s15, %s2553_s12, %s2990_s24, %s2990_s24, %s2991_s23  }
 0x413 PF: > { %s2583_s29 = sand.u32 1, %s2952_s9   ;;  %p5793_p12 = scmp.ne.s32.totalorder %s5488_s20, 0 }
 0x414   : > { %p5794_p13 = scmp.ge.s32.totalorder %s2972_s14, 2  ;;  %s2584_s18 = scalar_lea.sflag [#allocation4], %s2583_s29 }
 0x416   : > { %p2742_p0 = pnand %p5794_p13, %p5793_p12 }
 0x418   : > { %2947 = dma.done.wait (!%p2742_p0), %s2584_s18, 4096  }
 0x419   : > { %2949 = vsyncadd (!%p2742_p0), %s2584_s18, 4294963200  ;;  %s19_s14 = sadd.s32 1, %s2972_s14   ;;  %s5795_s9 = smov %s2956_s10 }
 0x41a   : > { %p16_p5 = scmp.ge.s32.totalorder %s19_s14, 4   ;;  %s5796_s10 = smov %s2960_s11 }
 0x41b   : > { %s5797_s11 = smov %s3108_s28  ;;  %s5798_s12 = smov %s2968_s13 }
 0x41c   : > { %s5799_s13 = smov %s5801_s25  ;;  %18 = sbr.rel (!%p16_p5) target bundleno = 7 (0x7), region = 78 }
 0x423   :  { %2589 = vsyncpa [#allocation3], 1 }
 0x424   :  { %2591 = vsyncpa [#allocation3 + $0x1], 1 }
 0x425   :  { %2592 = vsyncpa [#allocation6], 1 }
 0x426   :  { %2593 = vsyncpa [#allocation4], 1 }
 0x427   :  { %2595 = vsyncpa [#allocation4 + $0x1], 1 }

</bundles_post_ra>
